<compile_context>
chip_gen: v5e
topology: v5e:2x2
jax: 0.10.0
libtpu: 0.0.40
codegen_flags: <defaults>
</compile_context>

<pallas_src>
import functools

import jax
import jax.numpy as jnp
from jax import lax
from jax.experimental import pallas as pl
from jax.experimental.pallas import tpu as pltpu


def _r8(n):
    return ((n + 7) // 8) * 8


# Single-row vectors packed (in this order) into the bias section of the blob.
_BIAS_NAMES = ("enc_b1", "enc_g", "enc_beta", "enc_b2",
               "gnn_b1", "gnn_g", "gnn_beta", "gnn_b2",
               "dx_b", "dm_b", "dec_b1", "dec_b2")


def _blob_layout(H, C):
    """Row offsets of each section in the packed (rows, 2H) parameter blob.

    Every section starts on a multiple-of-8 row so in-kernel slices stay
    sublane-tile aligned."""
    sections = [
        ("enc_w1", C), ("enc_w2", H), ("gnn_w1", 2 * H), ("gnn_w2", H),
        ("dx_w", H), ("dm_w", H), ("dec_w1", H), ("dec_w2", H),
        ("bias", len(_BIAS_NAMES)),
    ]
    off, cur = {}, 0
    for name, rows in sections:
        off[name] = cur
        cur += _r8(rows)
    return off, cur                      # (offsets, total rows)


def pack_params(params, H, C):
    """Pack all weights/biases into one (rows, 2H) f32 blob (single input DMA).

    Done once, outside jit."""
    W = 2 * H
    off, total = _blob_layout(H, C)
    blob = jnp.zeros((total, W), jnp.float32)
    for name in ("enc_w1", "enc_w2", "gnn_w1", "gnn_w2",
                 "dx_w", "dm_w", "dec_w1", "dec_w2"):
        m = params[name].astype(jnp.float32)
        blob = blob.at[off[name]:off[name] + m.shape[0], :m.shape[1]].set(m)
    for i, name in enumerate(_BIAS_NAMES):
        v = params[name].reshape(-1).astype(jnp.float32)
        blob = blob.at[off["bias"] + i, :v.shape[0]].set(v)
    return blob


# ----------------------------------------------------------------------------
# Fused kernel: encoder -> S-step Euler ODE -> decoder  (single gridless call)
# ----------------------------------------------------------------------------
def fused_temporal_gnn_kernel(x0_ref, adj_ref, blob_ref, sol_ref, pred_ref,
                              *, S, BN, H, C, off):
    f32 = jnp.float32
    W = 2 * H
    sqrt_h = float(H) ** 0.5

    def wmat(name, rows, cols):
        # Read-at-use from the packed VMEM blob (static, 8-aligned row offsets):
        # keeps weights out of the vreg live set across the unrolled time loop.
        o = off[name]
        return blob_ref[o:o + rows, :cols]

    # Bias section: one small load (<= 2 vregs), rows sliced from the value.
    bias_blk = blob_ref[off["bias"]:off["bias"] + _r8(len(_BIAS_NAMES)), :]
    bidx = {n: i for i, n in enumerate(_BIAS_NAMES)}

    def bvec(name, cols):
        i = bidx[name]
        return bias_blk[i:i + 1, :cols]          # (1, cols) -- sublane-broadcast on use

    def layernorm(h, gamma, beta):
        mu = jnp.mean(h, axis=-1, keepdims=True)
        var = jnp.mean((h - mu) ** 2, axis=-1, keepdims=True)
        return (h - mu) * lax.rsqrt(var + 1e-5) * gamma + beta

    # ---- encoder on x[:, 0]:  Linear(C->H) -> LN -> ReLU -> Linear(H->2H) ----
    x0 = x0_ref[...]                                                  # (BN, C)
    h = (jnp.dot(x0, wmat("enc_w1", C, H), preferred_element_type=f32)
         + bvec("enc_b1", H))
    h = jnp.maximum(layernorm(h, bvec("enc_g", H), bvec("enc_beta", H)), 0.0)
    z0 = (jnp.dot(h, wmat("enc_w2", H, W), preferred_element_type=f32)
          + bvec("enc_b2", W))                                        # (BN, 2H)
    sol_ref[0] = z0                                                   # solution[0] = z0

    # ---- Euler-integrated GNN ODE, dt = 1.0 (state carried whole as z) ----
    b1, g1, bt1 = bvec("gnn_b1", H), bvec("gnn_g", H), bvec("gnn_beta", H)
    b2 = bvec("gnn_b2", H)
    bdx, bdm = bvec("dx_b", H), bvec("dm_b", H)

    def step(t, z):                                                   # z: (BN, 2H)
        # gnn_layer(cat(x, m)) == gnn_layer(z): single fused matmul with unsplit w1.
        h = jnp.dot(z, wmat("gnn_w1", W, H), preferred_element_type=f32) + b1
        h = jnp.maximum(layernorm(h, g1, bt1), 0.0)
        tr = jnp.dot(h, wmat("gnn_w2", H, H), preferred_element_type=f32) + b2

        # F.normalize(p=2, dim=-1) * sqrt(H)   (rsqrt on EUP; == x / max(||x||, 1e-12))
        ssq = jnp.sum(tr * tr, axis=-1, keepdims=True)
        tr = tr * (lax.rsqrt(ssq + 1e-24) * sqrt_h)

        nb = jnp.dot(adj_ref[...], tr, preferred_element_type=f32)    # neighbor influence
        pre = tr + 0.02 * nb                                          # diffusion_coef
        x = z[:, :H]                                                  # lane-slice, free
        dx = jnp.tanh(jnp.dot(pre - 0.03 * x, wmat("dx_w", H, H),     # decay_coef
                              preferred_element_type=f32) + bdx)
        dm = jnp.tanh(jnp.dot(pre, wmat("dm_w", H, H),
                              preferred_element_type=f32) + bdm)
        dz = jnp.concatenate([dx, dm], axis=-1)                       # (BN, 2H)

        # norm clipping over the full 2H vector; reciprocal on EUP (approx=True is an
        # ulp-level deviation from the f32 divide in the PyTorch reference).
        norm = jnp.sqrt(jnp.sum(dz * dz, axis=-1, keepdims=True))
        scale = jnp.minimum(5.0 * pl.reciprocal(norm + 1e-8, approx=True), 1.0)
        # NaN scrub dropped: tanh is bounded and norm + 1e-8 > 0, so with finite inputs
        # no NaN/inf can appear (torch only calls nan_to_num when NaNs already exist).
        z_new = z + dz * scale                                        # Euler step, dt = 1
        sol_ref[t] = z_new
        return z_new

    # Short static trip count -> fully unroll for LLO scheduler visibility.
    lax.fori_loop(1, S, step, z0, unroll=True)

    # ---- decoder, hoisted out of the loop: two batched matmuls over all timesteps ----
    sol_all = sol_ref[...]                                            # (S, BN, 2H) resident
    xs = sol_all[:, :, :H].reshape(S * BN, H)                         # x-halves, all t
    h1 = jnp.maximum(
        jnp.dot(xs, wmat("dec_w1", H, H), preferred_element_type=f32)
        + bvec("dec_b1", H), 0.0)
    pred_ref[...] = (jnp.dot(h1, wmat("dec_w2", H, C), preferred_element_type=f32)
                     + bvec("dec_b2", C))


# ----------------------------------------------------------------------------
# Wrapper (fold batch, single gridless pallas_call, reshape outputs)
# ----------------------------------------------------------------------------
def simple_temporal_gnn_forward(blob, adj_block, x, hidden_dim):
    B, S, N, C = x.shape
    H = hidden_dim
    BN = B * N
    f32 = jnp.float32
    off, _ = _blob_layout(H, C)

    x0 = x[:, 0, :, :].reshape(BN, C).astype(f32)                     # batch folded

    out_shapes = (
        jax.ShapeDtypeStruct((S, BN, 2 * H), f32),                    # solution (folded)
        jax.ShapeDtypeStruct((S * BN, C), f32),                       # decoder output
    )

    # Advisory cost estimate for XLA's scheduler.
    enc_flops = 2 * BN * (C * H + H * 2 * H)
    ode_flops = 2 * (S - 1) * BN * H * (5 * H + BN)
    dec_flops = 2 * S * BN * (H * H + H * C)
    transcendentals = (S - 1) * BN * 2 * H                            # tanh
    bytes_accessed = 4 * (int(x0.size) + int(adj_block.size) + int(blob.size)
                          + S * BN * 2 * H + S * BN * C)

    # Gridless call: whole arrays resident in VMEM (total < 200 KB on every
    # generation, incl. v7x's 64 MiB), one DMA in per array, one writeback per output.
    sol, pred = pl.pallas_call(
        functools.partial(fused_temporal_gnn_kernel, S=S, BN=BN, H=H, C=C, off=off),
        out_shape=out_shapes,
        cost_estimate=pl.CostEstimate(flops=enc_flops + ode_flops + dec_flops,
                                      transcendentals=transcendentals,
                                      bytes_accessed=bytes_accessed),
    )(x0, adj_block, blob)

    solution = sol.reshape(S, B, N, 2 * H)                            # (S, B, N, 2H)
    pred_sequences = pred.reshape(S, B, N, C).transpose(1, 0, 2, 3)   # (B, S, N, C)
    return pred_sequences, solution


# ----------------------------------------------------------------------------
# Deterministic parameter / input construction
# ----------------------------------------------------------------------------
def init_params(key, C, H):
    ks = jax.random.split(key, 16)

    def lin(k, fi, fo):
        return jax.random.normal(k, (fi, fo), jnp.float32) / jnp.sqrt(float(fi))

    def bias(k, fo):
        return jax.random.normal(k, (1, fo), jnp.float32) * 0.01

    return {
        # encoder: Linear(C,H) -> LN(H) -> ReLU -> Linear(H,2H)
        "enc_w1": lin(ks[0], C, H), "enc_b1": bias(ks[1], H),
        "enc_g": jnp.ones((1, H), jnp.float32), "enc_beta": jnp.zeros((1, H), jnp.float32),
        "enc_w2": lin(ks[2], H, 2 * H), "enc_b2": bias(ks[3], 2 * H),
        # gnn_layer: Linear(2H,H) -> LN(H) -> ReLU -> Linear(H,H)
        "gnn_w1": lin(ks[4], 2 * H, H), "gnn_b1": bias(ks[5], H),
        "gnn_g": jnp.ones((1, H), jnp.float32), "gnn_beta": jnp.zeros((1, H), jnp.float32),
        "gnn_w2": lin(ks[6], H, H), "gnn_b2": bias(ks[7], H),
        # dx_head / dm_head: Linear(H,H) -> Tanh
        "dx_w": lin(ks[8], H, H), "dx_b": bias(ks[9], H),
        "dm_w": lin(ks[10], H, H), "dm_b": bias(ks[11], H),
        # decoder: Linear(H,H) -> ReLU -> Linear(H,C)
        "dec_w1": lin(ks[12], H, H), "dec_b1": bias(ks[13], H),
        "dec_w2": lin(ks[14], H, C), "dec_b2": bias(ks[15], C),
    }


if __name__ == "__main__":
    B, S, N, C, H = 2, 8, 16, 4, 32

    key = jax.random.PRNGKey(0)
    kx, kadj, kp = jax.random.split(key, 3)

    x = jax.random.normal(kx, (B, S, N, C), jnp.float32)

    # deterministic row-normalized symmetric adjacency (stands in for the registered buffer)
    a = jax.random.uniform(kadj, (N, N), jnp.float32)
    a = 0.5 * (a + a.T)
    adj = a / jnp.sum(a, axis=-1, keepdims=True)

    params = init_params(kp, C, H)

    # One-time, outside jit: pack weights into one blob; build block-diagonal adjacency
    # so the batch can be folded into the sublane dimension inside the kernel.
    blob = pack_params(params, H, C)
    adj_block = jnp.kron(jnp.eye(B, dtype=jnp.float32), adj.astype(jnp.float32))

    fwd = jax.jit(functools.partial(simple_temporal_gnn_forward, hidden_dim=H))
    pred_sequences, solution = fwd(blob, adj_block, x)
    jax.block_until_ready((pred_sequences, solution))

    assert pred_sequences.shape == (B, S, N, C)
    assert solution.shape == (S, B, N, 2 * H)
    assert bool(jnp.all(jnp.isfinite(pred_sequences)))
    assert bool(jnp.all(jnp.isfinite(solution)))
    print("KERNEL_OK")
</pallas_src>

<mosaic_0001>
module attributes {stable_mosaic.version = 11 : i64} {
  func.func @fused_temporal_gnn_kernel(%arg0: memref<32x4xf32, #tpu.memory_space<vmem>>, %arg1: memref<32x32xf32, #tpu.memory_space<vmem>>, %arg2: memref<280x64xf32, #tpu.memory_space<vmem>>, %arg3: memref<8x32x64xf32, #tpu.memory_space<vmem>>, %arg4: memref<256x4xf32, #tpu.memory_space<vmem>>) attributes {dimension_semantics = [], scalar_prefetch = 0 : i64, scratch_operands = 0 : i64, tpu.core_type = #tpu.core_type<tc>} {
    %c264 = arith.constant 264 : index
    %c0 = arith.constant 0 : index
    %0 = vector.load %arg2[%c264, %c0] : memref<280x64xf32, #tpu.memory_space<vmem>>, vector<16x64xf32>
    %c0_0 = arith.constant 0 : index
    %c0_1 = arith.constant 0 : index
    %1 = vector.load %arg0[%c0_0, %c0_1] : memref<32x4xf32, #tpu.memory_space<vmem>>, vector<32x4xf32>
    %c0_2 = arith.constant 0 : index
    %c0_3 = arith.constant 0 : index
    %2 = vector.load %arg2[%c0_2, %c0_3] : memref<280x64xf32, #tpu.memory_space<vmem>>, vector<4x32xf32>
    %cst = arith.constant dense<0.000000e+00> : vector<32x32xf32>
    %3 = tpu.matmul %1, %2, %cst {dimension_numbers = #tpu.dot_dimension_numbers<[1], [0], [0], [1], [0, 0, 1, 1], [], []>} : vector<32x4xf32>, vector<4x32xf32>, vector<32x32xf32> -> vector<32x32xf32>
    %4 = vector.extract_strided_slice %0 {offsets = [0, 0], sizes = [1, 32], strides = [1, 1]} : vector<16x64xf32> to vector<1x32xf32>
    %5 = vector.broadcast %4 : vector<1x32xf32> to vector<32x32xf32>
    %6 = arith.addf %3, %5 : vector<32x32xf32>
    %7 = vector.extract_strided_slice %0 {offsets = [1, 0], sizes = [1, 32], strides = [1, 1]} : vector<16x64xf32> to vector<1x32xf32>
    %8 = vector.extract_strided_slice %0 {offsets = [2, 0], sizes = [1, 32], strides = [1, 1]} : vector<16x64xf32> to vector<1x32xf32>
    %cst_4 = arith.constant dense<0.000000e+00> : vector<32xf32>
    %9 = vector.multi_reduction <add>, %6, %cst_4 [1] : vector<32x32xf32> to vector<32xf32>
    %10 = vector.shape_cast %9 : vector<32xf32> to vector<32x1xf32>
    %cst_5 = arith.constant 3.200000e+01 : f32
    %11 = vector.broadcast %cst_5 : f32 to vector<32x1xf32>
    %12 = arith.divf %10, %11 : vector<32x1xf32>
    %13 = vector.broadcast %12 : vector<32x1xf32> to vector<32x32xf32>
    %14 = arith.subf %6, %13 : vector<32x32xf32>
    %15 = arith.mulf %14, %14 : vector<32x32xf32>
    %cst_6 = arith.constant dense<0.000000e+00> : vector<32xf32>
    %16 = vector.multi_reduction <add>, %15, %cst_6 [1] : vector<32x32xf32> to vector<32xf32>
    %17 = vector.shape_cast %16 : vector<32xf32> to vector<32x1xf32>
    %cst_7 = arith.constant 3.200000e+01 : f32
    %18 = vector.broadcast %cst_7 : f32 to vector<32x1xf32>
    %19 = arith.divf %17, %18 : vector<32x1xf32>
    %20 = vector.broadcast %12 : vector<32x1xf32> to vector<32x32xf32>
    %21 = arith.subf %6, %20 : vector<32x32xf32>
    %cst_8 = arith.constant 9.99999974E-6 : f32
    %22 = vector.broadcast %cst_8 : f32 to vector<32x1xf32>
    %23 = arith.addf %19, %22 : vector<32x1xf32>
    %24 = math.rsqrt %23 : vector<32x1xf32>
    %25 = vector.broadcast %24 : vector<32x1xf32> to vector<32x32xf32>
    %26 = arith.mulf %21, %25 : vector<32x32xf32>
    %27 = vector.broadcast %7 : vector<1x32xf32> to vector<32x32xf32>
    %28 = arith.mulf %26, %27 : vector<32x32xf32>
    %29 = vector.broadcast %8 : vector<1x32xf32> to vector<32x32xf32>
    %30 = arith.addf %28, %29 : vector<32x32xf32>
    %cst_9 = arith.constant 0.000000e+00 : f32
    %31 = vector.broadcast %cst_9 : f32 to vector<32x32xf32>
    %32 = arith.maximumf %30, %31 : vector<32x32xf32>
    %c8 = arith.constant 8 : index
    %c0_10 = arith.constant 0 : index
    %33 = vector.load %arg2[%c8, %c0_10] : memref<280x64xf32, #tpu.memory_space<vmem>>, vector<32x64xf32>
    %cst_11 = arith.constant dense<0.000000e+00> : vector<32x64xf32>
    %34 = tpu.matmul %32, %33, %cst_11 {dimension_numbers = #tpu.dot_dimension_numbers<[1], [0], [0], [1], [0, 0, 1, 1], [], []>} : vector<32x32xf32>, vector<32x64xf32>, vector<32x64xf32> -> vector<32x64xf32>
    %35 = vector.extract_strided_slice %0 {offsets = [3, 0], sizes = [1, 64], strides = [1, 1]} : vector<16x64xf32> to vector<1x64xf32>
    %36 = vector.broadcast %35 : vector<1x64xf32> to vector<32x64xf32>
    %37 = arith.addf %34, %36 : vector<32x64xf32>
    %c0_12 = arith.constant 0 : index
    %c0_13 = arith.constant 0 : index
    %c0_14 = arith.constant 0 : index
    %38 = vector.load %arg3[%c0_12, %c0_13, %c0_14] : memref<8x32x64xf32, #tpu.memory_space<vmem>>, vector<1x32x64xf32>
    %39 = vector.shape_cast %38 : vector<1x32x64xf32> to vector<32x64xf32>
    %40 = vector.shape_cast %37 : vector<32x64xf32> to vector<1x32x64xf32>
    tpu.vector_store %arg3[%c0_12, %c0_13, %c0_14], %40 {strides = array<i32>} : memref<8x32x64xf32, #tpu.memory_space<vmem>>, vector<1x32x64xf32>,
    %41 = vector.extract_strided_slice %0 {offsets = [4, 0], sizes = [1, 32], strides = [1, 1]} : vector<16x64xf32> to vector<1x32xf32>
    %42 = vector.extract_strided_slice %0 {offsets = [5, 0], sizes = [1, 32], strides = [1, 1]} : vector<16x64xf32> to vector<1x32xf32>
    %43 = vector.extract_strided_slice %0 {offsets = [6, 0], sizes = [1, 32], strides = [1, 1]} : vector<16x64xf32> to vector<1x32xf32>
    %44 = vector.extract_strided_slice %0 {offsets = [7, 0], sizes = [1, 32], strides = [1, 1]} : vector<16x64xf32> to vector<1x32xf32>
    %45 = vector.extract_strided_slice %0 {offsets = [8, 0], sizes = [1, 32], strides = [1, 1]} : vector<16x64xf32> to vector<1x32xf32>
    %46 = vector.extract_strided_slice %0 {offsets = [9, 0], sizes = [1, 32], strides = [1, 1]} : vector<16x64xf32> to vector<1x32xf32>
    %c1_i32 = arith.constant 1 : i32
    %c40 = arith.constant 40 : index
    %c0_15 = arith.constant 0 : index
    %47 = vector.load %arg2[%c40, %c0_15] : memref<280x64xf32, #tpu.memory_space<vmem>>, vector<64x32xf32>
    %cst_16 = arith.constant dense<0.000000e+00> : vector<32x32xf32>
    %48 = tpu.matmul %37, %47, %cst_16 {dimension_numbers = #tpu.dot_dimension_numbers<[1], [0], [0], [1], [0, 0, 1, 1], [], []>} : vector<32x64xf32>, vector<64x32xf32>, vector<32x32xf32> -> vector<32x32xf32>
    %49 = vector.broadcast %41 : vector<1x32xf32> to vector<32x32xf32>
    %50 = arith.addf %48, %49 : vector<32x32xf32>
    %cst_17 = arith.constant dense<0.000000e+00> : vector<32xf32>
    %51 = vector.multi_reduction <add>, %50, %cst_17 [1] : vector<32x32xf32> to vector<32xf32>
    %52 = vector.shape_cast %51 : vector<32xf32> to vector<32x1xf32>
    %cst_18 = arith.constant 3.200000e+01 : f32
    %53 = vector.broadcast %cst_18 : f32 to vector<32x1xf32>
    %54 = arith.divf %52, %53 : vector<32x1xf32>
    %55 = vector.broadcast %54 : vector<32x1xf32> to vector<32x32xf32>
    %56 = arith.subf %50, %55 : vector<32x32xf32>
    %57 = arith.mulf %56, %56 : vector<32x32xf32>
    %cst_19 = arith.constant dense<0.000000e+00> : vector<32xf32>
    %58 = vector.multi_reduction <add>, %57, %cst_19 [1] : vector<32x32xf32> to vector<32xf32>
    %59 = vector.shape_cast %58 : vector<32xf32> to vector<32x1xf32>
    %cst_20 = arith.constant 3.200000e+01 : f32
    %60 = vector.broadcast %cst_20 : f32 to vector<32x1xf32>
    %61 = arith.divf %59, %60 : vector<32x1xf32>
    %62 = vector.broadcast %54 : vector<32x1xf32> to vector<32x32xf32>
    %63 = arith.subf %50, %62 : vector<32x32xf32>
    %cst_21 = arith.constant 9.99999974E-6 : f32
    %64 = vector.broadcast %cst_21 : f32 to vector<32x1xf32>
    %65 = arith.addf %61, %64 : vector<32x1xf32>
    %66 = math.rsqrt %65 : vector<32x1xf32>
    %67 = vector.broadcast %66 : vector<32x1xf32> to vector<32x32xf32>
    %68 = arith.mulf %63, %67 : vector<32x32xf32>
    %69 = vector.broadcast %42 : vector<1x32xf32> to vector<32x32xf32>
    %70 = arith.mulf %68, %69 : vector<32x32xf32>
    %71 = vector.broadcast %43 : vector<1x32xf32> to vector<32x32xf32>
    %72 = arith.addf %70, %71 : vector<32x32xf32>
    %cst_22 = arith.constant 0.000000e+00 : f32
    %73 = vector.broadcast %cst_22 : f32 to vector<32x32xf32>
    %74 = arith.maximumf %72, %73 : vector<32x32xf32>
    %c104 = arith.constant 104 : index
    %c0_23 = arith.constant 0 : index
    %75 = vector.load %arg2[%c104, %c0_23] : memref<280x64xf32, #tpu.memory_space<vmem>>, vector<32x32xf32>
    %cst_24 = arith.constant dense<0.000000e+00> : vector<32x32xf32>
    %76 = tpu.matmul %74, %75, %cst_24 {dimension_numbers = #tpu.dot_dimension_numbers<[1], [0], [0], [1], [0, 0, 1, 1], [], []>} : vector<32x32xf32>, vector<32x32xf32>, vector<32x32xf32> -> vector<32x32xf32>
    %77 = vector.broadcast %44 : vector<1x32xf32> to vector<32x32xf32>
    %78 = arith.addf %76, %77 : vector<32x32xf32>
    %79 = arith.mulf %78, %78 : vector<32x32xf32>
    %cst_25 = arith.constant dense<0.000000e+00> : vector<32xf32>
    %80 = vector.multi_reduction <add>, %79, %cst_25 [1] : vector<32x32xf32> to vector<32xf32>
    %81 = vector.shape_cast %80 : vector<32xf32> to vector<32x1xf32>
    %cst_26 = arith.constant 1.000000e-24 : f32
    %82 = vector.broadcast %cst_26 : f32 to vector<32x1xf32>
    %83 = arith.addf %81, %82 : vector<32x1xf32>
    %84 = math.rsqrt %83 : vector<32x1xf32>
    %cst_27 = arith.constant 5.65685415 : f32
    %85 = vector.broadcast %cst_27 : f32 to vector<32x1xf32>
    %86 = arith.mulf %84, %85 : vector<32x1xf32>
    %87 = vector.broadcast %86 : vector<32x1xf32> to vector<32x32xf32>
    %88 = arith.mulf %78, %87 : vector<32x32xf32>
    %c0_28 = arith.constant 0 : index
    %c0_29 = arith.constant 0 : index
    %89 = vector.load %arg1[%c0_28, %c0_29] : memref<32x32xf32, #tpu.memory_space<vmem>>, vector<32x32xf32>
    %cst_30 = arith.constant dense<0.000000e+00> : vector<32x32xf32>
    %90 = tpu.matmul %89, %88, %cst_30 {dimension_numbers = #tpu.dot_dimension_numbers<[1], [0], [0], [1], [0, 0, 1, 1], [], []>} : vector<32x32xf32>, vector<32x32xf32>, vector<32x32xf32> -> vector<32x32xf32>
    %cst_31 = arith.constant 2.000000e-02 : f32
    %91 = vector.broadcast %cst_31 : f32 to vector<32x32xf32>
    %92 = arith.mulf %91, %90 : vector<32x32xf32>
    %93 = arith.addf %88, %92 : vector<32x32xf32>
    %94 = vector.extract_strided_slice %37 {offsets = [0, 0], sizes = [32, 32], strides = [1, 1]} : vector<32x64xf32> to vector<32x32xf32>
    %cst_32 = arith.constant 3.000000e-02 : f32
    %95 = vector.broadcast %cst_32 : f32 to vector<32x32xf32>
    %96 = arith.mulf %95, %94 : vector<32x32xf32>
    %97 = arith.subf %93, %96 : vector<32x32xf32>
    %c136 = arith.constant 136 : index
    %c0_33 = arith.constant 0 : index
    %98 = vector.load %arg2[%c136, %c0_33] : memref<280x64xf32, #tpu.memory_space<vmem>>, vector<32x32xf32>
    %cst_34 = arith.constant dense<0.000000e+00> : vector<32x32xf32>
    %99 = tpu.matmul %97, %98, %cst_34 {dimension_numbers = #tpu.dot_dimension_numbers<[1], [0], [0], [1], [0, 0, 1, 1], [], []>} : vector<32x32xf32>, vector<32x32xf32>, vector<32x32xf32> -> vector<32x32xf32>
    %100 = vector.broadcast %45 : vector<1x32xf32> to vector<32x32xf32>
    %101 = arith.addf %99, %100 : vector<32x32xf32>
    %102 = math.tanh %101 : vector<32x32xf32>
    %c168 = arith.constant 168 : index
    %c0_35 = arith.constant 0 : index
    %103 = vector.load %arg2[%c168, %c0_35] : memref<280x64xf32, #tpu.memory_space<vmem>>, vector<32x32xf32>
    %cst_36 = arith.constant dense<0.000000e+00> : vector<32x32xf32>
    %104 = tpu.matmul %93, %103, %cst_36 {dimension_numbers = #tpu.dot_dimension_numbers<[1], [0], [0], [1], [0, 0, 1, 1], [], []>} : vector<32x32xf32>, vector<32x32xf32>, vector<32x32xf32> -> vector<32x32xf32>
    %105 = vector.broadcast %46 : vector<1x32xf32> to vector<32x32xf32>
    %106 = arith.addf %104, %105 : vector<32x32xf32>
    %107 = math.tanh %106 : vector<32x32xf32>
    %108 = tpu.concatenate %102, %107 in 1 : vector<32x32xf32>, vector<32x32xf32> -> vector<32x64xf32>
    %109 = arith.mulf %108, %108 : vector<32x64xf32>
    %cst_37 = arith.constant dense<0.000000e+00> : vector<32xf32>
    %110 = vector.multi_reduction <add>, %109, %cst_37 [1] : vector<32x64xf32> to vector<32xf32>
    %111 = vector.shape_cast %110 : vector<32xf32> to vector<32x1xf32>
    %112 = math.sqrt %111 : vector<32x1xf32>
    %cst_38 = arith.constant 9.99999993E-9 : f32
    %113 = vector.broadcast %cst_38 : f32 to vector<32x1xf32>
    %114 = arith.addf %112, %113 : vector<32x1xf32>
    %115 = tpu.reciprocal %114 {approx = true} : vector<32x1xf32> -> vector<32x1xf32>
    %cst_39 = arith.constant 5.000000e+00 : f32
    %116 = vector.broadcast %cst_39 : f32 to vector<32x1xf32>
    %117 = arith.mulf %116, %115 : vector<32x1xf32>
    %cst_40 = arith.constant 1.000000e+00 : f32
    %118 = vector.broadcast %cst_40 : f32 to vector<32x1xf32>
    %119 = arith.minimumf %117, %118 : vector<32x1xf32>
    %120 = vector.broadcast %119 : vector<32x1xf32> to vector<32x64xf32>
    %121 = arith.mulf %108, %120 : vector<32x64xf32>
    %122 = arith.addf %37, %121 : vector<32x64xf32>
    %123 = arith.index_cast %c1_i32 : i32 to index
    %c0_41 = arith.constant 0 : index
    %c0_42 = arith.constant 0 : index
    %124 = vector.load %arg3[%123, %c0_41, %c0_42] : memref<8x32x64xf32, #tpu.memory_space<vmem>>, vector<1x32x64xf32>
    %125 = vector.shape_cast %124 : vector<1x32x64xf32> to vector<32x64xf32>
    %126 = vector.shape_cast %122 : vector<32x64xf32> to vector<1x32x64xf32>
    tpu.vector_store %arg3[%123, %c0_41, %c0_42], %126 {strides = array<i32>} : memref<8x32x64xf32, #tpu.memory_space<vmem>>, vector<1x32x64xf32>,
    %c2_i32 = arith.constant 2 : i32
    %c40_43 = arith.constant 40 : index
    %c0_44 = arith.constant 0 : index
    %127 = vector.load %arg2[%c40_43, %c0_44] : memref<280x64xf32, #tpu.memory_space<vmem>>, vector<64x32xf32>
    %cst_45 = arith.constant dense<0.000000e+00> : vector<32x32xf32>
    %128 = tpu.matmul %122, %127, %cst_45 {dimension_numbers = #tpu.dot_dimension_numbers<[1], [0], [0], [1], [0, 0, 1, 1], [], []>} : vector<32x64xf32>, vector<64x32xf32>, vector<32x32xf32> -> vector<32x32xf32>
    %129 = vector.broadcast %41 : vector<1x32xf32> to vector<32x32xf32>
    %130 = arith.addf %128, %129 : vector<32x32xf32>
    %cst_46 = arith.constant dense<0.000000e+00> : vector<32xf32>
    %131 = vector.multi_reduction <add>, %130, %cst_46 [1] : vector<32x32xf32> to vector<32xf32>
    %132 = vector.shape_cast %131 : vector<32xf32> to vector<32x1xf32>
    %cst_47 = arith.constant 3.200000e+01 : f32
    %133 = vector.broadcast %cst_47 : f32 to vector<32x1xf32>
    %134 = arith.divf %132, %133 : vector<32x1xf32>
    %135 = vector.broadcast %134 : vector<32x1xf32> to vector<32x32xf32>
    %136 = arith.subf %130, %135 : vector<32x32xf32>
    %137 = arith.mulf %136, %136 : vector<32x32xf32>
    %cst_48 = arith.constant dense<0.000000e+00> : vector<32xf32>
    %138 = vector.multi_reduction <add>, %137, %cst_48 [1] : vector<32x32xf32> to vector<32xf32>
    %139 = vector.shape_cast %138 : vector<32xf32> to vector<32x1xf32>
    %cst_49 = arith.constant 3.200000e+01 : f32
    %140 = vector.broadcast %cst_49 : f32 to vector<32x1xf32>
    %141 = arith.divf %139, %140 : vector<32x1xf32>
    %142 = vector.broadcast %134 : vector<32x1xf32> to vector<32x32xf32>
    %143 = arith.subf %130, %142 : vector<32x32xf32>
    %cst_50 = arith.constant 9.99999974E-6 : f32
    %144 = vector.broadcast %cst_50 : f32 to vector<32x1xf32>
    %145 = arith.addf %141, %144 : vector<32x1xf32>
    %146 = math.rsqrt %145 : vector<32x1xf32>
    %147 = vector.broadcast %146 : vector<32x1xf32> to vector<32x32xf32>
    %148 = arith.mulf %143, %147 : vector<32x32xf32>
    %149 = vector.broadcast %42 : vector<1x32xf32> to vector<32x32xf32>
    %150 = arith.mulf %148, %149 : vector<32x32xf32>
    %151 = vector.broadcast %43 : vector<1x32xf32> to vector<32x32xf32>
    %152 = arith.addf %150, %151 : vector<32x32xf32>
    %cst_51 = arith.constant 0.000000e+00 : f32
    %153 = vector.broadcast %cst_51 : f32 to vector<32x32xf32>
    %154 = arith.maximumf %152, %153 : vector<32x32xf32>
    %c104_52 = arith.constant 104 : index
    %c0_53 = arith.constant 0 : index
    %155 = vector.load %arg2[%c104_52, %c0_53] : memref<280x64xf32, #tpu.memory_space<vmem>>, vector<32x32xf32>
    %cst_54 = arith.constant dense<0.000000e+00> : vector<32x32xf32>
    %156 = tpu.matmul %154, %155, %cst_54 {dimension_numbers = #tpu.dot_dimension_numbers<[1], [0], [0], [1], [0, 0, 1, 1], [], []>} : vector<32x32xf32>, vector<32x32xf32>, vector<32x32xf32> -> vector<32x32xf32>
    %157 = vector.broadcast %44 : vector<1x32xf32> to vector<32x32xf32>
    %158 = arith.addf %156, %157 : vector<32x32xf32>
    %159 = arith.mulf %158, %158 : vector<32x32xf32>
    %cst_55 = arith.constant dense<0.000000e+00> : vector<32xf32>
    %160 = vector.multi_reduction <add>, %159, %cst_55 [1] : vector<32x32xf32> to vector<32xf32>
    %161 = vector.shape_cast %160 : vector<32xf32> to vector<32x1xf32>
    %cst_56 = arith.constant 1.000000e-24 : f32
    %162 = vector.broadcast %cst_56 : f32 to vector<32x1xf32>
    %163 = arith.addf %161, %162 : vector<32x1xf32>
    %164 = math.rsqrt %163 : vector<32x1xf32>
    %cst_57 = arith.constant 5.65685415 : f32
    %165 = vector.broadcast %cst_57 : f32 to vector<32x1xf32>
    %166 = arith.mulf %164, %165 : vector<32x1xf32>
    %167 = vector.broadcast %166 : vector<32x1xf32> to vector<32x32xf32>
    %168 = arith.mulf %158, %167 : vector<32x32xf32>
    %c0_58 = arith.constant 0 : index
    %c0_59 = arith.constant 0 : index
    %169 = vector.load %arg1[%c0_58, %c0_59] : memref<32x32xf32, #tpu.memory_space<vmem>>, vector<32x32xf32>
    %cst_60 = arith.constant dense<0.000000e+00> : vector<32x32xf32>
    %170 = tpu.matmul %169, %168, %cst_60 {dimension_numbers = #tpu.dot_dimension_numbers<[1], [0], [0], [1], [0, 0, 1, 1], [], []>} : vector<32x32xf32>, vector<32x32xf32>, vector<32x32xf32> -> vector<32x32xf32>
    %cst_61 = arith.constant 2.000000e-02 : f32
    %171 = vector.broadcast %cst_61 : f32 to vector<32x32xf32>
    %172 = arith.mulf %171, %170 : vector<32x32xf32>
    %173 = arith.addf %168, %172 : vector<32x32xf32>
    %174 = vector.extract_strided_slice %122 {offsets = [0, 0], sizes = [32, 32], strides = [1, 1]} : vector<32x64xf32> to vector<32x32xf32>
    %cst_62 = arith.constant 3.000000e-02 : f32
    %175 = vector.broadcast %cst_62 : f32 to vector<32x32xf32>
    %176 = arith.mulf %175, %174 : vector<32x32xf32>
    %177 = arith.subf %173, %176 : vector<32x32xf32>
    %c136_63 = arith.constant 136 : index
    %c0_64 = arith.constant 0 : index
    %178 = vector.load %arg2[%c136_63, %c0_64] : memref<280x64xf32, #tpu.memory_space<vmem>>, vector<32x32xf32>
    %cst_65 = arith.constant dense<0.000000e+00> : vector<32x32xf32>
    %179 = tpu.matmul %177, %178, %cst_65 {dimension_numbers = #tpu.dot_dimension_numbers<[1], [0], [0], [1], [0, 0, 1, 1], [], []>} : vector<32x32xf32>, vector<32x32xf32>, vector<32x32xf32> -> vector<32x32xf32>
    %180 = vector.broadcast %45 : vector<1x32xf32> to vector<32x32xf32>
    %181 = arith.addf %179, %180 : vector<32x32xf32>
    %182 = math.tanh %181 : vector<32x32xf32>
    %c168_66 = arith.constant 168 : index
    %c0_67 = arith.constant 0 : index
    %183 = vector.load %arg2[%c168_66, %c0_67] : memref<280x64xf32, #tpu.memory_space<vmem>>, vector<32x32xf32>
    %cst_68 = arith.constant dense<0.000000e+00> : vector<32x32xf32>
    %184 = tpu.matmul %173, %183, %cst_68 {dimension_numbers = #tpu.dot_dimension_numbers<[1], [0], [0], [1], [0, 0, 1, 1], [], []>} : vector<32x32xf32>, vector<32x32xf32>, vector<32x32xf32> -> vector<32x32xf32>
    %185 = vector.broadcast %46 : vector<1x32xf32> to vector<32x32xf32>
    %186 = arith.addf %184, %185 : vector<32x32xf32>
    %187 = math.tanh %186 : vector<32x32xf32>
    %188 = tpu.concatenate %182, %187 in 1 : vector<32x32xf32>, vector<32x32xf32> -> vector<32x64xf32>
    %189 = arith.mulf %188, %188 : vector<32x64xf32>
    %cst_69 = arith.constant dense<0.000000e+00> : vector<32xf32>
    %190 = vector.multi_reduction <add>, %189, %cst_69 [1] : vector<32x64xf32> to vector<32xf32>
    %191 = vector.shape_cast %190 : vector<32xf32> to vector<32x1xf32>
    %192 = math.sqrt %191 : vector<32x1xf32>
    %cst_70 = arith.constant 9.99999993E-9 : f32
    %193 = vector.broadcast %cst_70 : f32 to vector<32x1xf32>
    %194 = arith.addf %192, %193 : vector<32x1xf32>
    %195 = tpu.reciprocal %194 {approx = true} : vector<32x1xf32> -> vector<32x1xf32>
    %cst_71 = arith.constant 5.000000e+00 : f32
    %196 = vector.broadcast %cst_71 : f32 to vector<32x1xf32>
    %197 = arith.mulf %196, %195 : vector<32x1xf32>
    %cst_72 = arith.constant 1.000000e+00 : f32
    %198 = vector.broadcast %cst_72 : f32 to vector<32x1xf32>
    %199 = arith.minimumf %197, %198 : vector<32x1xf32>
    %200 = vector.broadcast %199 : vector<32x1xf32> to vector<32x64xf32>
    %201 = arith.mulf %188, %200 : vector<32x64xf32>
    %202 = arith.addf %122, %201 : vector<32x64xf32>
    %203 = arith.index_cast %c2_i32 : i32 to index
    %c0_73 = arith.constant 0 : index
    %c0_74 = arith.constant 0 : index
    %204 = vector.load %arg3[%203, %c0_73, %c0_74] : memref<8x32x64xf32, #tpu.memory_space<vmem>>, vector<1x32x64xf32>
    %205 = vector.shape_cast %204 : vector<1x32x64xf32> to vector<32x64xf32>
    %206 = vector.shape_cast %202 : vector<32x64xf32> to vector<1x32x64xf32>
    tpu.vector_store %arg3[%203, %c0_73, %c0_74], %206 {strides = array<i32>} : memref<8x32x64xf32, #tpu.memory_space<vmem>>, vector<1x32x64xf32>,
    %c3_i32 = arith.constant 3 : i32
    %c40_75 = arith.constant 40 : index
    %c0_76 = arith.constant 0 : index
    %207 = vector.load %arg2[%c40_75, %c0_76] : memref<280x64xf32, #tpu.memory_space<vmem>>, vector<64x32xf32>
    %cst_77 = arith.constant dense<0.000000e+00> : vector<32x32xf32>
    %208 = tpu.matmul %202, %207, %cst_77 {dimension_numbers = #tpu.dot_dimension_numbers<[1], [0], [0], [1], [0, 0, 1, 1], [], []>} : vector<32x64xf32>, vector<64x32xf32>, vector<32x32xf32> -> vector<32x32xf32>
    %209 = vector.broadcast %41 : vector<1x32xf32> to vector<32x32xf32>
    %210 = arith.addf %208, %209 : vector<32x32xf32>
    %cst_78 = arith.constant dense<0.000000e+00> : vector<32xf32>
    %211 = vector.multi_reduction <add>, %210, %cst_78 [1] : vector<32x32xf32> to vector<32xf32>
    %212 = vector.shape_cast %211 : vector<32xf32> to vector<32x1xf32>
    %cst_79 = arith.constant 3.200000e+01 : f32
    %213 = vector.broadcast %cst_79 : f32 to vector<32x1xf32>
    %214 = arith.divf %212, %213 : vector<32x1xf32>
    %215 = vector.broadcast %214 : vector<32x1xf32> to vector<32x32xf32>
    %216 = arith.subf %210, %215 : vector<32x32xf32>
    %217 = arith.mulf %216, %216 : vector<32x32xf32>
    %cst_80 = arith.constant dense<0.000000e+00> : vector<32xf32>
    %218 = vector.multi_reduction <add>, %217, %cst_80 [1] : vector<32x32xf32> to vector<32xf32>
    %219 = vector.shape_cast %218 : vector<32xf32> to vector<32x1xf32>
    %cst_81 = arith.constant 3.200000e+01 : f32
    %220 = vector.broadcast %cst_81 : f32 to vector<32x1xf32>
    %221 = arith.divf %219, %220 : vector<32x1xf32>
    %222 = vector.broadcast %214 : vector<32x1xf32> to vector<32x32xf32>
    %223 = arith.subf %210, %222 : vector<32x32xf32>
    %cst_82 = arith.constant 9.99999974E-6 : f32
    %224 = vector.broadcast %cst_82 : f32 to vector<32x1xf32>
    %225 = arith.addf %221, %224 : vector<32x1xf32>
    %226 = math.rsqrt %225 : vector<32x1xf32>
    %227 = vector.broadcast %226 : vector<32x1xf32> to vector<32x32xf32>
    %228 = arith.mulf %223, %227 : vector<32x32xf32>
    %229 = vector.broadcast %42 : vector<1x32xf32> to vector<32x32xf32>
    %230 = arith.mulf %228, %229 : vector<32x32xf32>
    %231 = vector.broadcast %43 : vector<1x32xf32> to vector<32x32xf32>
    %232 = arith.addf %230, %231 : vector<32x32xf32>
    %cst_83 = arith.constant 0.000000e+00 : f32
    %233 = vector.broadcast %cst_83 : f32 to vector<32x32xf32>
    %234 = arith.maximumf %232, %233 : vector<32x32xf32>
    %c104_84 = arith.constant 104 : index
    %c0_85 = arith.constant 0 : index
    %235 = vector.load %arg2[%c104_84, %c0_85] : memref<280x64xf32, #tpu.memory_space<vmem>>, vector<32x32xf32>
    %cst_86 = arith.constant dense<0.000000e+00> : vector<32x32xf32>
    %236 = tpu.matmul %234, %235, %cst_86 {dimension_numbers = #tpu.dot_dimension_numbers<[1], [0], [0], [1], [0, 0, 1, 1], [], []>} : vector<32x32xf32>, vector<32x32xf32>, vector<32x32xf32> -> vector<32x32xf32>
    %237 = vector.broadcast %44 : vector<1x32xf32> to vector<32x32xf32>
    %238 = arith.addf %236, %237 : vector<32x32xf32>
    %239 = arith.mulf %238, %238 : vector<32x32xf32>
    %cst_87 = arith.constant dense<0.000000e+00> : vector<32xf32>
    %240 = vector.multi_reduction <add>, %239, %cst_87 [1] : vector<32x32xf32> to vector<32xf32>
    %241 = vector.shape_cast %240 : vector<32xf32> to vector<32x1xf32>
    %cst_88 = arith.constant 1.000000e-24 : f32
    %242 = vector.broadcast %cst_88 : f32 to vector<32x1xf32>
    %243 = arith.addf %241, %242 : vector<32x1xf32>
    %244 = math.rsqrt %243 : vector<32x1xf32>
    %cst_89 = arith.constant 5.65685415 : f32
    %245 = vector.broadcast %cst_89 : f32 to vector<32x1xf32>
    %246 = arith.mulf %244, %245 : vector<32x1xf32>
    %247 = vector.broadcast %246 : vector<32x1xf32> to vector<32x32xf32>
    %248 = arith.mulf %238, %247 : vector<32x32xf32>
    %c0_90 = arith.constant 0 : index
    %c0_91 = arith.constant 0 : index
    %249 = vector.load %arg1[%c0_90, %c0_91] : memref<32x32xf32, #tpu.memory_space<vmem>>, vector<32x32xf32>
    %cst_92 = arith.constant dense<0.000000e+00> : vector<32x32xf32>
    %250 = tpu.matmul %249, %248, %cst_92 {dimension_numbers = #tpu.dot_dimension_numbers<[1], [0], [0], [1], [0, 0, 1, 1], [], []>} : vector<32x32xf32>, vector<32x32xf32>, vector<32x32xf32> -> vector<32x32xf32>
    %cst_93 = arith.constant 2.000000e-02 : f32
    %251 = vector.broadcast %cst_93 : f32 to vector<32x32xf32>
    %252 = arith.mulf %251, %250 : vector<32x32xf32>
    %253 = arith.addf %248, %252 : vector<32x32xf32>
    %254 = vector.extract_strided_slice %202 {offsets = [0, 0], sizes = [32, 32], strides = [1, 1]} : vector<32x64xf32> to vector<32x32xf32>
    %cst_94 = arith.constant 3.000000e-02 : f32
    %255 = vector.broadcast %cst_94 : f32 to vector<32x32xf32>
    %256 = arith.mulf %255, %254 : vector<32x32xf32>
    %257 = arith.subf %253, %256 : vector<32x32xf32>
    %c136_95 = arith.constant 136 : index
    %c0_96 = arith.constant 0 : index
    %258 = vector.load %arg2[%c136_95, %c0_96] : memref<280x64xf32, #tpu.memory_space<vmem>>, vector<32x32xf32>
    %cst_97 = arith.constant dense<0.000000e+00> : vector<32x32xf32>
    %259 = tpu.matmul %257, %258, %cst_97 {dimension_numbers = #tpu.dot_dimension_numbers<[1], [0], [0], [1], [0, 0, 1, 1], [], []>} : vector<32x32xf32>, vector<32x32xf32>, vector<32x32xf32> -> vector<32x32xf32>
    %260 = vector.broadcast %45 : vector<1x32xf32> to vector<32x32xf32>
    %261 = arith.addf %259, %260 : vector<32x32xf32>
    %262 = math.tanh %261 : vector<32x32xf32>
    %c168_98 = arith.constant 168 : index
    %c0_99 = arith.constant 0 : index
    %263 = vector.load %arg2[%c168_98, %c0_99] : memref<280x64xf32, #tpu.memory_space<vmem>>, vector<32x32xf32>
    %cst_100 = arith.constant dense<0.000000e+00> : vector<32x32xf32>
    %264 = tpu.matmul %253, %263, %cst_100 {dimension_numbers = #tpu.dot_dimension_numbers<[1], [0], [0], [1], [0, 0, 1, 1], [], []>} : vector<32x32xf32>, vector<32x32xf32>, vector<32x32xf32> -> vector<32x32xf32>
    %265 = vector.broadcast %46 : vector<1x32xf32> to vector<32x32xf32>
    %266 = arith.addf %264, %265 : vector<32x32xf32>
    %267 = math.tanh %266 : vector<32x32xf32>
    %268 = tpu.concatenate %262, %267 in 1 : vector<32x32xf32>, vector<32x32xf32> -> vector<32x64xf32>
    %269 = arith.mulf %268, %268 : vector<32x64xf32>
    %cst_101 = arith.constant dense<0.000000e+00> : vector<32xf32>
    %270 = vector.multi_reduction <add>, %269, %cst_101 [1] : vector<32x64xf32> to vector<32xf32>
    %271 = vector.shape_cast %270 : vector<32xf32> to vector<32x1xf32>
    %272 = math.sqrt %271 : vector<32x1xf32>
    %cst_102 = arith.constant 9.99999993E-9 : f32
    %273 = vector.broadcast %cst_102 : f32 to vector<32x1xf32>
    %274 = arith.addf %272, %273 : vector<32x1xf32>
    %275 = tpu.reciprocal %274 {approx = true} : vector<32x1xf32> -> vector<32x1xf32>
    %cst_103 = arith.constant 5.000000e+00 : f32
    %276 = vector.broadcast %cst_103 : f32 to vector<32x1xf32>
    %277 = arith.mulf %276, %275 : vector<32x1xf32>
    %cst_104 = arith.constant 1.000000e+00 : f32
    %278 = vector.broadcast %cst_104 : f32 to vector<32x1xf32>
    %279 = arith.minimumf %277, %278 : vector<32x1xf32>
    %280 = vector.broadcast %279 : vector<32x1xf32> to vector<32x64xf32>
    %281 = arith.mulf %268, %280 : vector<32x64xf32>
    %282 = arith.addf %202, %281 : vector<32x64xf32>
    %283 = arith.index_cast %c3_i32 : i32 to index
    %c0_105 = arith.constant 0 : index
    %c0_106 = arith.constant 0 : index
    %284 = vector.load %arg3[%283, %c0_105, %c0_106] : memref<8x32x64xf32, #tpu.memory_space<vmem>>, vector<1x32x64xf32>
    %285 = vector.shape_cast %284 : vector<1x32x64xf32> to vector<32x64xf32>
    %286 = vector.shape_cast %282 : vector<32x64xf32> to vector<1x32x64xf32>
    tpu.vector_store %arg3[%283, %c0_105, %c0_106], %286 {strides = array<i32>} : memref<8x32x64xf32, #tpu.memory_space<vmem>>, vector<1x32x64xf32>,
    %c4_i32 = arith.constant 4 : i32
    %c40_107 = arith.constant 40 : index
    %c0_108 = arith.constant 0 : index
    %287 = vector.load %arg2[%c40_107, %c0_108] : memref<280x64xf32, #tpu.memory_space<vmem>>, vector<64x32xf32>
    %cst_109 = arith.constant dense<0.000000e+00> : vector<32x32xf32>
    %288 = tpu.matmul %282, %287, %cst_109 {dimension_numbers = #tpu.dot_dimension_numbers<[1], [0], [0], [1], [0, 0, 1, 1], [], []>} : vector<32x64xf32>, vector<64x32xf32>, vector<32x32xf32> -> vector<32x32xf32>
    %289 = vector.broadcast %41 : vector<1x32xf32> to vector<32x32xf32>
    %290 = arith.addf %288, %289 : vector<32x32xf32>
    %cst_110 = arith.constant dense<0.000000e+00> : vector<32xf32>
    %291 = vector.multi_reduction <add>, %290, %cst_110 [1] : vector<32x32xf32> to vector<32xf32>
    %292 = vector.shape_cast %291 : vector<32xf32> to vector<32x1xf32>
    %cst_111 = arith.constant 3.200000e+01 : f32
    %293 = vector.broadcast %cst_111 : f32 to vector<32x1xf32>
    %294 = arith.divf %292, %293 : vector<32x1xf32>
    %295 = vector.broadcast %294 : vector<32x1xf32> to vector<32x32xf32>
    %296 = arith.subf %290, %295 : vector<32x32xf32>
    %297 = arith.mulf %296, %296 : vector<32x32xf32>
    %cst_112 = arith.constant dense<0.000000e+00> : vector<32xf32>
    %298 = vector.multi_reduction <add>, %297, %cst_112 [1] : vector<32x32xf32> to vector<32xf32>
    %299 = vector.shape_cast %298 : vector<32xf32> to vector<32x1xf32>
    %cst_113 = arith.constant 3.200000e+01 : f32
    %300 = vector.broadcast %cst_113 : f32 to vector<32x1xf32>
    %301 = arith.divf %299, %300 : vector<32x1xf32>
    %302 = vector.broadcast %294 : vector<32x1xf32> to vector<32x32xf32>
    %303 = arith.subf %290, %302 : vector<32x32xf32>
    %cst_114 = arith.constant 9.99999974E-6 : f32
    %304 = vector.broadcast %cst_114 : f32 to vector<32x1xf32>
    %305 = arith.addf %301, %304 : vector<32x1xf32>
    %306 = math.rsqrt %305 : vector<32x1xf32>
    %307 = vector.broadcast %306 : vector<32x1xf32> to vector<32x32xf32>
    %308 = arith.mulf %303, %307 : vector<32x32xf32>
    %309 = vector.broadcast %42 : vector<1x32xf32> to vector<32x32xf32>
    %310 = arith.mulf %308, %309 : vector<32x32xf32>
    %311 = vector.broadcast %43 : vector<1x32xf32> to vector<32x32xf32>
    %312 = arith.addf %310, %311 : vector<32x32xf32>
    %cst_115 = arith.constant 0.000000e+00 : f32
    %313 = vector.broadcast %cst_115 : f32 to vector<32x32xf32>
    %314 = arith.maximumf %312, %313 : vector<32x32xf32>
    %c104_116 = arith.constant 104 : index
    %c0_117 = arith.constant 0 : index
    %315 = vector.load %arg2[%c104_116, %c0_117] : memref<280x64xf32, #tpu.memory_space<vmem>>, vector<32x32xf32>
    %cst_118 = arith.constant dense<0.000000e+00> : vector<32x32xf32>
    %316 = tpu.matmul %314, %315, %cst_118 {dimension_numbers = #tpu.dot_dimension_numbers<[1], [0], [0], [1], [0, 0, 1, 1], [], []>} : vector<32x32xf32>, vector<32x32xf32>, vector<32x32xf32> -> vector<32x32xf32>
    %317 = vector.broadcast %44 : vector<1x32xf32> to vector<32x32xf32>
    %318 = arith.addf %316, %317 : vector<32x32xf32>
    %319 = arith.mulf %318, %318 : vector<32x32xf32>
    %cst_119 = arith.constant dense<0.000000e+00> : vector<32xf32>
    %320 = vector.multi_reduction <add>, %319, %cst_119 [1] : vector<32x32xf32> to vector<32xf32>
    %321 = vector.shape_cast %320 : vector<32xf32> to vector<32x1xf32>
    %cst_120 = arith.constant 1.000000e-24 : f32
    %322 = vector.broadcast %cst_120 : f32 to vector<32x1xf32>
    %323 = arith.addf %321, %322 : vector<32x1xf32>
    %324 = math.rsqrt %323 : vector<32x1xf32>
    %cst_121 = arith.constant 5.65685415 : f32
    %325 = vector.broadcast %cst_121 : f32 to vector<32x1xf32>
    %326 = arith.mulf %324, %325 : vector<32x1xf32>
    %327 = vector.broadcast %326 : vector<32x1xf32> to vector<32x32xf32>
    %328 = arith.mulf %318, %327 : vector<32x32xf32>
    %c0_122 = arith.constant 0 : index
    %c0_123 = arith.constant 0 : index
    %329 = vector.load %arg1[%c0_122, %c0_123] : memref<32x32xf32, #tpu.memory_space<vmem>>, vector<32x32xf32>
    %cst_124 = arith.constant dense<0.000000e+00> : vector<32x32xf32>
    %330 = tpu.matmul %329, %328, %cst_124 {dimension_numbers = #tpu.dot_dimension_numbers<[1], [0], [0], [1], [0, 0, 1, 1], [], []>} : vector<32x32xf32>, vector<32x32xf32>, vector<32x32xf32> -> vector<32x32xf32>
    %cst_125 = arith.constant 2.000000e-02 : f32
    %331 = vector.broadcast %cst_125 : f32 to vector<32x32xf32>
    %332 = arith.mulf %331, %330 : vector<32x32xf32>
    %333 = arith.addf %328, %332 : vector<32x32xf32>
    %334 = vector.extract_strided_slice %282 {offsets = [0, 0], sizes = [32, 32], strides = [1, 1]} : vector<32x64xf32> to vector<32x32xf32>
    %cst_126 = arith.constant 3.000000e-02 : f32
    %335 = vector.broadcast %cst_126 : f32 to vector<32x32xf32>
    %336 = arith.mulf %335, %334 : vector<32x32xf32>
    %337 = arith.subf %333, %336 : vector<32x32xf32>
    %c136_127 = arith.constant 136 : index
    %c0_128 = arith.constant 0 : index
    %338 = vector.load %arg2[%c136_127, %c0_128] : memref<280x64xf32, #tpu.memory_space<vmem>>, vector<32x32xf32>
    %cst_129 = arith.constant dense<0.000000e+00> : vector<32x32xf32>
    %339 = tpu.matmul %337, %338, %cst_129 {dimension_numbers = #tpu.dot_dimension_numbers<[1], [0], [0], [1], [0, 0, 1, 1], [], []>} : vector<32x32xf32>, vector<32x32xf32>, vector<32x32xf32> -> vector<32x32xf32>
    %340 = vector.broadcast %45 : vector<1x32xf32> to vector<32x32xf32>
    %341 = arith.addf %339, %340 : vector<32x32xf32>
    %342 = math.tanh %341 : vector<32x32xf32>
    %c168_130 = arith.constant 168 : index
    %c0_131 = arith.constant 0 : index
    %343 = vector.load %arg2[%c168_130, %c0_131] : memref<280x64xf32, #tpu.memory_space<vmem>>, vector<32x32xf32>
    %cst_132 = arith.constant dense<0.000000e+00> : vector<32x32xf32>
    %344 = tpu.matmul %333, %343, %cst_132 {dimension_numbers = #tpu.dot_dimension_numbers<[1], [0], [0], [1], [0, 0, 1, 1], [], []>} : vector<32x32xf32>, vector<32x32xf32>, vector<32x32xf32> -> vector<32x32xf32>
    %345 = vector.broadcast %46 : vector<1x32xf32> to vector<32x32xf32>
    %346 = arith.addf %344, %345 : vector<32x32xf32>
    %347 = math.tanh %346 : vector<32x32xf32>
    %348 = tpu.concatenate %342, %347 in 1 : vector<32x32xf32>, vector<32x32xf32> -> vector<32x64xf32>
    %349 = arith.mulf %348, %348 : vector<32x64xf32>
    %cst_133 = arith.constant dense<0.000000e+00> : vector<32xf32>
    %350 = vector.multi_reduction <add>, %349, %cst_133 [1] : vector<32x64xf32> to vector<32xf32>
    %351 = vector.shape_cast %350 : vector<32xf32> to vector<32x1xf32>
    %352 = math.sqrt %351 : vector<32x1xf32>
    %cst_134 = arith.constant 9.99999993E-9 : f32
    %353 = vector.broadcast %cst_134 : f32 to vector<32x1xf32>
    %354 = arith.addf %352, %353 : vector<32x1xf32>
    %355 = tpu.reciprocal %354 {approx = true} : vector<32x1xf32> -> vector<32x1xf32>
    %cst_135 = arith.constant 5.000000e+00 : f32
    %356 = vector.broadcast %cst_135 : f32 to vector<32x1xf32>
    %357 = arith.mulf %356, %355 : vector<32x1xf32>
    %cst_136 = arith.constant 1.000000e+00 : f32
    %358 = vector.broadcast %cst_136 : f32 to vector<32x1xf32>
    %359 = arith.minimumf %357, %358 : vector<32x1xf32>
    %360 = vector.broadcast %359 : vector<32x1xf32> to vector<32x64xf32>
    %361 = arith.mulf %348, %360 : vector<32x64xf32>
    %362 = arith.addf %282, %361 : vector<32x64xf32>
    %363 = arith.index_cast %c4_i32 : i32 to index
    %c0_137 = arith.constant 0 : index
    %c0_138 = arith.constant 0 : index
    %364 = vector.load %arg3[%363, %c0_137, %c0_138] : memref<8x32x64xf32, #tpu.memory_space<vmem>>, vector<1x32x64xf32>
    %365 = vector.shape_cast %364 : vector<1x32x64xf32> to vector<32x64xf32>
    %366 = vector.shape_cast %362 : vector<32x64xf32> to vector<1x32x64xf32>
    tpu.vector_store %arg3[%363, %c0_137, %c0_138], %366 {strides = array<i32>} : memref<8x32x64xf32, #tpu.memory_space<vmem>>, vector<1x32x64xf32>,
    %c5_i32 = arith.constant 5 : i32
    %c40_139 = arith.constant 40 : index
    %c0_140 = arith.constant 0 : index
    %367 = vector.load %arg2[%c40_139, %c0_140] : memref<280x64xf32, #tpu.memory_space<vmem>>, vector<64x32xf32>
    %cst_141 = arith.constant dense<0.000000e+00> : vector<32x32xf32>
    %368 = tpu.matmul %362, %367, %cst_141 {dimension_numbers = #tpu.dot_dimension_numbers<[1], [0], [0], [1], [0, 0, 1, 1], [], []>} : vector<32x64xf32>, vector<64x32xf32>, vector<32x32xf32> -> vector<32x32xf32>
    %369 = vector.broadcast %41 : vector<1x32xf32> to vector<32x32xf32>
    %370 = arith.addf %368, %369 : vector<32x32xf32>
    %cst_142 = arith.constant dense<0.000000e+00> : vector<32xf32>
    %371 = vector.multi_reduction <add>, %370, %cst_142 [1] : vector<32x32xf32> to vector<32xf32>
    %372 = vector.shape_cast %371 : vector<32xf32> to vector<32x1xf32>
    %cst_143 = arith.constant 3.200000e+01 : f32
    %373 = vector.broadcast %cst_143 : f32 to vector<32x1xf32>
    %374 = arith.divf %372, %373 : vector<32x1xf32>
    %375 = vector.broadcast %374 : vector<32x1xf32> to vector<32x32xf32>
    %376 = arith.subf %370, %375 : vector<32x32xf32>
    %377 = arith.mulf %376, %376 : vector<32x32xf32>
    %cst_144 = arith.constant dense<0.000000e+00> : vector<32xf32>
    %378 = vector.multi_reduction <add>, %377, %cst_144 [1] : vector<32x32xf32> to vector<32xf32>
    %379 = vector.shape_cast %378 : vector<32xf32> to vector<32x1xf32>
    %cst_145 = arith.constant 3.200000e+01 : f32
    %380 = vector.broadcast %cst_145 : f32 to vector<32x1xf32>
    %381 = arith.divf %379, %380 : vector<32x1xf32>
    %382 = vector.broadcast %374 : vector<32x1xf32> to vector<32x32xf32>
    %383 = arith.subf %370, %382 : vector<32x32xf32>
    %cst_146 = arith.constant 9.99999974E-6 : f32
    %384 = vector.broadcast %cst_146 : f32 to vector<32x1xf32>
    %385 = arith.addf %381, %384 : vector<32x1xf32>
    %386 = math.rsqrt %385 : vector<32x1xf32>
    %387 = vector.broadcast %386 : vector<32x1xf32> to vector<32x32xf32>
    %388 = arith.mulf %383, %387 : vector<32x32xf32>
    %389 = vector.broadcast %42 : vector<1x32xf32> to vector<32x32xf32>
    %390 = arith.mulf %388, %389 : vector<32x32xf32>
    %391 = vector.broadcast %43 : vector<1x32xf32> to vector<32x32xf32>
    %392 = arith.addf %390, %391 : vector<32x32xf32>
    %cst_147 = arith.constant 0.000000e+00 : f32
    %393 = vector.broadcast %cst_147 : f32 to vector<32x32xf32>
    %394 = arith.maximumf %392, %393 : vector<32x32xf32>
    %c104_148 = arith.constant 104 : index
    %c0_149 = arith.constant 0 : index
    %395 = vector.load %arg2[%c104_148, %c0_149] : memref<280x64xf32, #tpu.memory_space<vmem>>, vector<32x32xf32>
    %cst_150 = arith.constant dense<0.000000e+00> : vector<32x32xf32>
    %396 = tpu.matmul %394, %395, %cst_150 {dimension_numbers = #tpu.dot_dimension_numbers<[1], [0], [0], [1], [0, 0, 1, 1], [], []>} : vector<32x32xf32>, vector<32x32xf32>, vector<32x32xf32> -> vector<32x32xf32>
    %397 = vector.broadcast %44 : vector<1x32xf32> to vector<32x32xf32>
    %398 = arith.addf %396, %397 : vector<32x32xf32>
    %399 = arith.mulf %398, %398 : vector<32x32xf32>
    %cst_151 = arith.constant dense<0.000000e+00> : vector<32xf32>
    %400 = vector.multi_reduction <add>, %399, %cst_151 [1] : vector<32x32xf32> to vector<32xf32>
    %401 = vector.shape_cast %400 : vector<32xf32> to vector<32x1xf32>
    %cst_152 = arith.constant 1.000000e-24 : f32
    %402 = vector.broadcast %cst_152 : f32 to vector<32x1xf32>
    %403 = arith.addf %401, %402 : vector<32x1xf32>
    %404 = math.rsqrt %403 : vector<32x1xf32>
    %cst_153 = arith.constant 5.65685415 : f32
    %405 = vector.broadcast %cst_153 : f32 to vector<32x1xf32>
    %406 = arith.mulf %404, %405 : vector<32x1xf32>
    %407 = vector.broadcast %406 : vector<32x1xf32> to vector<32x32xf32>
    %408 = arith.mulf %398, %407 : vector<32x32xf32>
    %c0_154 = arith.constant 0 : index
    %c0_155 = arith.constant 0 : index
    %409 = vector.load %arg1[%c0_154, %c0_155] : memref<32x32xf32, #tpu.memory_space<vmem>>, vector<32x32xf32>
    %cst_156 = arith.constant dense<0.000000e+00> : vector<32x32xf32>
    %410 = tpu.matmul %409, %408, %cst_156 {dimension_numbers = #tpu.dot_dimension_numbers<[1], [0], [0], [1], [0, 0, 1, 1], [], []>} : vector<32x32xf32>, vector<32x32xf32>, vector<32x32xf32> -> vector<32x32xf32>
    %cst_157 = arith.constant 2.000000e-02 : f32
    %411 = vector.broadcast %cst_157 : f32 to vector<32x32xf32>
    %412 = arith.mulf %411, %410 : vector<32x32xf32>
    %413 = arith.addf %408, %412 : vector<32x32xf32>
    %414 = vector.extract_strided_slice %362 {offsets = [0, 0], sizes = [32, 32], strides = [1, 1]} : vector<32x64xf32> to vector<32x32xf32>
    %cst_158 = arith.constant 3.000000e-02 : f32
    %415 = vector.broadcast %cst_158 : f32 to vector<32x32xf32>
    %416 = arith.mulf %415, %414 : vector<32x32xf32>
    %417 = arith.subf %413, %416 : vector<32x32xf32>
    %c136_159 = arith.constant 136 : index
    %c0_160 = arith.constant 0 : index
    %418 = vector.load %arg2[%c136_159, %c0_160] : memref<280x64xf32, #tpu.memory_space<vmem>>, vector<32x32xf32>
    %cst_161 = arith.constant dense<0.000000e+00> : vector<32x32xf32>
    %419 = tpu.matmul %417, %418, %cst_161 {dimension_numbers = #tpu.dot_dimension_numbers<[1], [0], [0], [1], [0, 0, 1, 1], [], []>} : vector<32x32xf32>, vector<32x32xf32>, vector<32x32xf32> -> vector<32x32xf32>
    %420 = vector.broadcast %45 : vector<1x32xf32> to vector<32x32xf32>
    %421 = arith.addf %419, %420 : vector<32x32xf32>
    %422 = math.tanh %421 : vector<32x32xf32>
    %c168_162 = arith.constant 168 : index
    %c0_163 = arith.constant 0 : index
    %423 = vector.load %arg2[%c168_162, %c0_163] : memref<280x64xf32, #tpu.memory_space<vmem>>, vector<32x32xf32>
    %cst_164 = arith.constant dense<0.000000e+00> : vector<32x32xf32>
    %424 = tpu.matmul %413, %423, %cst_164 {dimension_numbers = #tpu.dot_dimension_numbers<[1], [0], [0], [1], [0, 0, 1, 1], [], []>} : vector<32x32xf32>, vector<32x32xf32>, vector<32x32xf32> -> vector<32x32xf32>
    %425 = vector.broadcast %46 : vector<1x32xf32> to vector<32x32xf32>
    %426 = arith.addf %424, %425 : vector<32x32xf32>
    %427 = math.tanh %426 : vector<32x32xf32>
    %428 = tpu.concatenate %422, %427 in 1 : vector<32x32xf32>, vector<32x32xf32> -> vector<32x64xf32>
    %429 = arith.mulf %428, %428 : vector<32x64xf32>
    %cst_165 = arith.constant dense<0.000000e+00> : vector<32xf32>
    %430 = vector.multi_reduction <add>, %429, %cst_165 [1] : vector<32x64xf32> to vector<32xf32>
    %431 = vector.shape_cast %430 : vector<32xf32> to vector<32x1xf32>
    %432 = math.sqrt %431 : vector<32x1xf32>
    %cst_166 = arith.constant 9.99999993E-9 : f32
    %433 = vector.broadcast %cst_166 : f32 to vector<32x1xf32>
    %434 = arith.addf %432, %433 : vector<32x1xf32>
    %435 = tpu.reciprocal %434 {approx = true} : vector<32x1xf32> -> vector<32x1xf32>
    %cst_167 = arith.constant 5.000000e+00 : f32
    %436 = vector.broadcast %cst_167 : f32 to vector<32x1xf32>
    %437 = arith.mulf %436, %435 : vector<32x1xf32>
    %cst_168 = arith.constant 1.000000e+00 : f32
    %438 = vector.broadcast %cst_168 : f32 to vector<32x1xf32>
    %439 = arith.minimumf %437, %438 : vector<32x1xf32>
    %440 = vector.broadcast %439 : vector<32x1xf32> to vector<32x64xf32>
    %441 = arith.mulf %428, %440 : vector<32x64xf32>
    %442 = arith.addf %362, %441 : vector<32x64xf32>
    %443 = arith.index_cast %c5_i32 : i32 to index
    %c0_169 = arith.constant 0 : index
    %c0_170 = arith.constant 0 : index
    %444 = vector.load %arg3[%443, %c0_169, %c0_170] : memref<8x32x64xf32, #tpu.memory_space<vmem>>, vector<1x32x64xf32>
    %445 = vector.shape_cast %444 : vector<1x32x64xf32> to vector<32x64xf32>
    %446 = vector.shape_cast %442 : vector<32x64xf32> to vector<1x32x64xf32>
    tpu.vector_store %arg3[%443, %c0_169, %c0_170], %446 {strides = array<i32>} : memref<8x32x64xf32, #tpu.memory_space<vmem>>, vector<1x32x64xf32>,
    %c6_i32 = arith.constant 6 : i32
    %c40_171 = arith.constant 40 : index
    %c0_172 = arith.constant 0 : index
    %447 = vector.load %arg2[%c40_171, %c0_172] : memref<280x64xf32, #tpu.memory_space<vmem>>, vector<64x32xf32>
    %cst_173 = arith.constant dense<0.000000e+00> : vector<32x32xf32>
    %448 = tpu.matmul %442, %447, %cst_173 {dimension_numbers = #tpu.dot_dimension_numbers<[1], [0], [0], [1], [0, 0, 1, 1], [], []>} : vector<32x64xf32>, vector<64x32xf32>, vector<32x32xf32> -> vector<32x32xf32>
    %449 = vector.broadcast %41 : vector<1x32xf32> to vector<32x32xf32>
    %450 = arith.addf %448, %449 : vector<32x32xf32>
    %cst_174 = arith.constant dense<0.000000e+00> : vector<32xf32>
    %451 = vector.multi_reduction <add>, %450, %cst_174 [1] : vector<32x32xf32> to vector<32xf32>
    %452 = vector.shape_cast %451 : vector<32xf32> to vector<32x1xf32>
    %cst_175 = arith.constant 3.200000e+01 : f32
    %453 = vector.broadcast %cst_175 : f32 to vector<32x1xf32>
    %454 = arith.divf %452, %453 : vector<32x1xf32>
    %455 = vector.broadcast %454 : vector<32x1xf32> to vector<32x32xf32>
    %456 = arith.subf %450, %455 : vector<32x32xf32>
    %457 = arith.mulf %456, %456 : vector<32x32xf32>
    %cst_176 = arith.constant dense<0.000000e+00> : vector<32xf32>
    %458 = vector.multi_reduction <add>, %457, %cst_176 [1] : vector<32x32xf32> to vector<32xf32>
    %459 = vector.shape_cast %458 : vector<32xf32> to vector<32x1xf32>
    %cst_177 = arith.constant 3.200000e+01 : f32
    %460 = vector.broadcast %cst_177 : f32 to vector<32x1xf32>
    %461 = arith.divf %459, %460 : vector<32x1xf32>
    %462 = vector.broadcast %454 : vector<32x1xf32> to vector<32x32xf32>
    %463 = arith.subf %450, %462 : vector<32x32xf32>
    %cst_178 = arith.constant 9.99999974E-6 : f32
    %464 = vector.broadcast %cst_178 : f32 to vector<32x1xf32>
    %465 = arith.addf %461, %464 : vector<32x1xf32>
    %466 = math.rsqrt %465 : vector<32x1xf32>
    %467 = vector.broadcast %466 : vector<32x1xf32> to vector<32x32xf32>
    %468 = arith.mulf %463, %467 : vector<32x32xf32>
    %469 = vector.broadcast %42 : vector<1x32xf32> to vector<32x32xf32>
    %470 = arith.mulf %468, %469 : vector<32x32xf32>
    %471 = vector.broadcast %43 : vector<1x32xf32> to vector<32x32xf32>
    %472 = arith.addf %470, %471 : vector<32x32xf32>
    %cst_179 = arith.constant 0.000000e+00 : f32
    %473 = vector.broadcast %cst_179 : f32 to vector<32x32xf32>
    %474 = arith.maximumf %472, %473 : vector<32x32xf32>
    %c104_180 = arith.constant 104 : index
    %c0_181 = arith.constant 0 : index
    %475 = vector.load %arg2[%c104_180, %c0_181] : memref<280x64xf32, #tpu.memory_space<vmem>>, vector<32x32xf32>
    %cst_182 = arith.constant dense<0.000000e+00> : vector<32x32xf32>
    %476 = tpu.matmul %474, %475, %cst_182 {dimension_numbers = #tpu.dot_dimension_numbers<[1], [0], [0], [1], [0, 0, 1, 1], [], []>} : vector<32x32xf32>, vector<32x32xf32>, vector<32x32xf32> -> vector<32x32xf32>
    %477 = vector.broadcast %44 : vector<1x32xf32> to vector<32x32xf32>
    %478 = arith.addf %476, %477 : vector<32x32xf32>
    %479 = arith.mulf %478, %478 : vector<32x32xf32>
    %cst_183 = arith.constant dense<0.000000e+00> : vector<32xf32>
    %480 = vector.multi_reduction <add>, %479, %cst_183 [1] : vector<32x32xf32> to vector<32xf32>
    %481 = vector.shape_cast %480 : vector<32xf32> to vector<32x1xf32>
    %cst_184 = arith.constant 1.000000e-24 : f32
    %482 = vector.broadcast %cst_184 : f32 to vector<32x1xf32>
    %483 = arith.addf %481, %482 : vector<32x1xf32>
    %484 = math.rsqrt %483 : vector<32x1xf32>
    %cst_185 = arith.constant 5.65685415 : f32
    %485 = vector.broadcast %cst_185 : f32 to vector<32x1xf32>
    %486 = arith.mulf %484, %485 : vector<32x1xf32>
    %487 = vector.broadcast %486 : vector<32x1xf32> to vector<32x32xf32>
    %488 = arith.mulf %478, %487 : vector<32x32xf32>
    %c0_186 = arith.constant 0 : index
    %c0_187 = arith.constant 0 : index
    %489 = vector.load %arg1[%c0_186, %c0_187] : memref<32x32xf32, #tpu.memory_space<vmem>>, vector<32x32xf32>
    %cst_188 = arith.constant dense<0.000000e+00> : vector<32x32xf32>
    %490 = tpu.matmul %489, %488, %cst_188 {dimension_numbers = #tpu.dot_dimension_numbers<[1], [0], [0], [1], [0, 0, 1, 1], [], []>} : vector<32x32xf32>, vector<32x32xf32>, vector<32x32xf32> -> vector<32x32xf32>
    %cst_189 = arith.constant 2.000000e-02 : f32
    %491 = vector.broadcast %cst_189 : f32 to vector<32x32xf32>
    %492 = arith.mulf %491, %490 : vector<32x32xf32>
    %493 = arith.addf %488, %492 : vector<32x32xf32>
    %494 = vector.extract_strided_slice %442 {offsets = [0, 0], sizes = [32, 32], strides = [1, 1]} : vector<32x64xf32> to vector<32x32xf32>
    %cst_190 = arith.constant 3.000000e-02 : f32
    %495 = vector.broadcast %cst_190 : f32 to vector<32x32xf32>
    %496 = arith.mulf %495, %494 : vector<32x32xf32>
    %497 = arith.subf %493, %496 : vector<32x32xf32>
    %c136_191 = arith.constant 136 : index
    %c0_192 = arith.constant 0 : index
    %498 = vector.load %arg2[%c136_191, %c0_192] : memref<280x64xf32, #tpu.memory_space<vmem>>, vector<32x32xf32>
    %cst_193 = arith.constant dense<0.000000e+00> : vector<32x32xf32>
    %499 = tpu.matmul %497, %498, %cst_193 {dimension_numbers = #tpu.dot_dimension_numbers<[1], [0], [0], [1], [0, 0, 1, 1], [], []>} : vector<32x32xf32>, vector<32x32xf32>, vector<32x32xf32> -> vector<32x32xf32>
    %500 = vector.broadcast %45 : vector<1x32xf32> to vector<32x32xf32>
    %501 = arith.addf %499, %500 : vector<32x32xf32>
    %502 = math.tanh %501 : vector<32x32xf32>
    %c168_194 = arith.constant 168 : index
    %c0_195 = arith.constant 0 : index
    %503 = vector.load %arg2[%c168_194, %c0_195] : memref<280x64xf32, #tpu.memory_space<vmem>>, vector<32x32xf32>
    %cst_196 = arith.constant dense<0.000000e+00> : vector<32x32xf32>
    %504 = tpu.matmul %493, %503, %cst_196 {dimension_numbers = #tpu.dot_dimension_numbers<[1], [0], [0], [1], [0, 0, 1, 1], [], []>} : vector<32x32xf32>, vector<32x32xf32>, vector<32x32xf32> -> vector<32x32xf32>
    %505 = vector.broadcast %46 : vector<1x32xf32> to vector<32x32xf32>
    %506 = arith.addf %504, %505 : vector<32x32xf32>
    %507 = math.tanh %506 : vector<32x32xf32>
    %508 = tpu.concatenate %502, %507 in 1 : vector<32x32xf32>, vector<32x32xf32> -> vector<32x64xf32>
    %509 = arith.mulf %508, %508 : vector<32x64xf32>
    %cst_197 = arith.constant dense<0.000000e+00> : vector<32xf32>
    %510 = vector.multi_reduction <add>, %509, %cst_197 [1] : vector<32x64xf32> to vector<32xf32>
    %511 = vector.shape_cast %510 : vector<32xf32> to vector<32x1xf32>
    %512 = math.sqrt %511 : vector<32x1xf32>
    %cst_198 = arith.constant 9.99999993E-9 : f32
    %513 = vector.broadcast %cst_198 : f32 to vector<32x1xf32>
    %514 = arith.addf %512, %513 : vector<32x1xf32>
    %515 = tpu.reciprocal %514 {approx = true} : vector<32x1xf32> -> vector<32x1xf32>
    %cst_199 = arith.constant 5.000000e+00 : f32
    %516 = vector.broadcast %cst_199 : f32 to vector<32x1xf32>
    %517 = arith.mulf %516, %515 : vector<32x1xf32>
    %cst_200 = arith.constant 1.000000e+00 : f32
    %518 = vector.broadcast %cst_200 : f32 to vector<32x1xf32>
    %519 = arith.minimumf %517, %518 : vector<32x1xf32>
    %520 = vector.broadcast %519 : vector<32x1xf32> to vector<32x64xf32>
    %521 = arith.mulf %508, %520 : vector<32x64xf32>
    %522 = arith.addf %442, %521 : vector<32x64xf32>
    %523 = arith.index_cast %c6_i32 : i32 to index
    %c0_201 = arith.constant 0 : index
    %c0_202 = arith.constant 0 : index
    %524 = vector.load %arg3[%523, %c0_201, %c0_202] : memref<8x32x64xf32, #tpu.memory_space<vmem>>, vector<1x32x64xf32>
    %525 = vector.shape_cast %524 : vector<1x32x64xf32> to vector<32x64xf32>
    %526 = vector.shape_cast %522 : vector<32x64xf32> to vector<1x32x64xf32>
    tpu.vector_store %arg3[%523, %c0_201, %c0_202], %526 {strides = array<i32>} : memref<8x32x64xf32, #tpu.memory_space<vmem>>, vector<1x32x64xf32>,
    %c7_i32 = arith.constant 7 : i32
    %c40_203 = arith.constant 40 : index
    %c0_204 = arith.constant 0 : index
    %527 = vector.load %arg2[%c40_203, %c0_204] : memref<280x64xf32, #tpu.memory_space<vmem>>, vector<64x32xf32>
    %cst_205 = arith.constant dense<0.000000e+00> : vector<32x32xf32>
    %528 = tpu.matmul %522, %527, %cst_205 {dimension_numbers = #tpu.dot_dimension_numbers<[1], [0], [0], [1], [0, 0, 1, 1], [], []>} : vector<32x64xf32>, vector<64x32xf32>, vector<32x32xf32> -> vector<32x32xf32>
    %529 = vector.broadcast %41 : vector<1x32xf32> to vector<32x32xf32>
    %530 = arith.addf %528, %529 : vector<32x32xf32>
    %cst_206 = arith.constant dense<0.000000e+00> : vector<32xf32>
    %531 = vector.multi_reduction <add>, %530, %cst_206 [1] : vector<32x32xf32> to vector<32xf32>
    %532 = vector.shape_cast %531 : vector<32xf32> to vector<32x1xf32>
    %cst_207 = arith.constant 3.200000e+01 : f32
    %533 = vector.broadcast %cst_207 : f32 to vector<32x1xf32>
    %534 = arith.divf %532, %533 : vector<32x1xf32>
    %535 = vector.broadcast %534 : vector<32x1xf32> to vector<32x32xf32>
    %536 = arith.subf %530, %535 : vector<32x32xf32>
    %537 = arith.mulf %536, %536 : vector<32x32xf32>
    %cst_208 = arith.constant dense<0.000000e+00> : vector<32xf32>
    %538 = vector.multi_reduction <add>, %537, %cst_208 [1] : vector<32x32xf32> to vector<32xf32>
    %539 = vector.shape_cast %538 : vector<32xf32> to vector<32x1xf32>
    %cst_209 = arith.constant 3.200000e+01 : f32
    %540 = vector.broadcast %cst_209 : f32 to vector<32x1xf32>
    %541 = arith.divf %539, %540 : vector<32x1xf32>
    %542 = vector.broadcast %534 : vector<32x1xf32> to vector<32x32xf32>
    %543 = arith.subf %530, %542 : vector<32x32xf32>
    %cst_210 = arith.constant 9.99999974E-6 : f32
    %544 = vector.broadcast %cst_210 : f32 to vector<32x1xf32>
    %545 = arith.addf %541, %544 : vector<32x1xf32>
    %546 = math.rsqrt %545 : vector<32x1xf32>
    %547 = vector.broadcast %546 : vector<32x1xf32> to vector<32x32xf32>
    %548 = arith.mulf %543, %547 : vector<32x32xf32>
    %549 = vector.broadcast %42 : vector<1x32xf32> to vector<32x32xf32>
    %550 = arith.mulf %548, %549 : vector<32x32xf32>
    %551 = vector.broadcast %43 : vector<1x32xf32> to vector<32x32xf32>
    %552 = arith.addf %550, %551 : vector<32x32xf32>
    %cst_211 = arith.constant 0.000000e+00 : f32
    %553 = vector.broadcast %cst_211 : f32 to vector<32x32xf32>
    %554 = arith.maximumf %552, %553 : vector<32x32xf32>
    %c104_212 = arith.constant 104 : index
    %c0_213 = arith.constant 0 : index
    %555 = vector.load %arg2[%c104_212, %c0_213] : memref<280x64xf32, #tpu.memory_space<vmem>>, vector<32x32xf32>
    %cst_214 = arith.constant dense<0.000000e+00> : vector<32x32xf32>
    %556 = tpu.matmul %554, %555, %cst_214 {dimension_numbers = #tpu.dot_dimension_numbers<[1], [0], [0], [1], [0, 0, 1, 1], [], []>} : vector<32x32xf32>, vector<32x32xf32>, vector<32x32xf32> -> vector<32x32xf32>
    %557 = vector.broadcast %44 : vector<1x32xf32> to vector<32x32xf32>
    %558 = arith.addf %556, %557 : vector<32x32xf32>
    %559 = arith.mulf %558, %558 : vector<32x32xf32>
    %cst_215 = arith.constant dense<0.000000e+00> : vector<32xf32>
    %560 = vector.multi_reduction <add>, %559, %cst_215 [1] : vector<32x32xf32> to vector<32xf32>
    %561 = vector.shape_cast %560 : vector<32xf32> to vector<32x1xf32>
    %cst_216 = arith.constant 1.000000e-24 : f32
    %562 = vector.broadcast %cst_216 : f32 to vector<32x1xf32>
    %563 = arith.addf %561, %562 : vector<32x1xf32>
    %564 = math.rsqrt %563 : vector<32x1xf32>
    %cst_217 = arith.constant 5.65685415 : f32
    %565 = vector.broadcast %cst_217 : f32 to vector<32x1xf32>
    %566 = arith.mulf %564, %565 : vector<32x1xf32>
    %567 = vector.broadcast %566 : vector<32x1xf32> to vector<32x32xf32>
    %568 = arith.mulf %558, %567 : vector<32x32xf32>
    %c0_218 = arith.constant 0 : index
    %c0_219 = arith.constant 0 : index
    %569 = vector.load %arg1[%c0_218, %c0_219] : memref<32x32xf32, #tpu.memory_space<vmem>>, vector<32x32xf32>
    %cst_220 = arith.constant dense<0.000000e+00> : vector<32x32xf32>
    %570 = tpu.matmul %569, %568, %cst_220 {dimension_numbers = #tpu.dot_dimension_numbers<[1], [0], [0], [1], [0, 0, 1, 1], [], []>} : vector<32x32xf32>, vector<32x32xf32>, vector<32x32xf32> -> vector<32x32xf32>
    %cst_221 = arith.constant 2.000000e-02 : f32
    %571 = vector.broadcast %cst_221 : f32 to vector<32x32xf32>
    %572 = arith.mulf %571, %570 : vector<32x32xf32>
    %573 = arith.addf %568, %572 : vector<32x32xf32>
    %574 = vector.extract_strided_slice %522 {offsets = [0, 0], sizes = [32, 32], strides = [1, 1]} : vector<32x64xf32> to vector<32x32xf32>
    %cst_222 = arith.constant 3.000000e-02 : f32
    %575 = vector.broadcast %cst_222 : f32 to vector<32x32xf32>
    %576 = arith.mulf %575, %574 : vector<32x32xf32>
    %577 = arith.subf %573, %576 : vector<32x32xf32>
    %c136_223 = arith.constant 136 : index
    %c0_224 = arith.constant 0 : index
    %578 = vector.load %arg2[%c136_223, %c0_224] : memref<280x64xf32, #tpu.memory_space<vmem>>, vector<32x32xf32>
    %cst_225 = arith.constant dense<0.000000e+00> : vector<32x32xf32>
    %579 = tpu.matmul %577, %578, %cst_225 {dimension_numbers = #tpu.dot_dimension_numbers<[1], [0], [0], [1], [0, 0, 1, 1], [], []>} : vector<32x32xf32>, vector<32x32xf32>, vector<32x32xf32> -> vector<32x32xf32>
    %580 = vector.broadcast %45 : vector<1x32xf32> to vector<32x32xf32>
    %581 = arith.addf %579, %580 : vector<32x32xf32>
    %582 = math.tanh %581 : vector<32x32xf32>
    %c168_226 = arith.constant 168 : index
    %c0_227 = arith.constant 0 : index
    %583 = vector.load %arg2[%c168_226, %c0_227] : memref<280x64xf32, #tpu.memory_space<vmem>>, vector<32x32xf32>
    %cst_228 = arith.constant dense<0.000000e+00> : vector<32x32xf32>
    %584 = tpu.matmul %573, %583, %cst_228 {dimension_numbers = #tpu.dot_dimension_numbers<[1], [0], [0], [1], [0, 0, 1, 1], [], []>} : vector<32x32xf32>, vector<32x32xf32>, vector<32x32xf32> -> vector<32x32xf32>
    %585 = vector.broadcast %46 : vector<1x32xf32> to vector<32x32xf32>
    %586 = arith.addf %584, %585 : vector<32x32xf32>
    %587 = math.tanh %586 : vector<32x32xf32>
    %588 = tpu.concatenate %582, %587 in 1 : vector<32x32xf32>, vector<32x32xf32> -> vector<32x64xf32>
    %589 = arith.mulf %588, %588 : vector<32x64xf32>
    %cst_229 = arith.constant dense<0.000000e+00> : vector<32xf32>
    %590 = vector.multi_reduction <add>, %589, %cst_229 [1] : vector<32x64xf32> to vector<32xf32>
    %591 = vector.shape_cast %590 : vector<32xf32> to vector<32x1xf32>
    %592 = math.sqrt %591 : vector<32x1xf32>
    %cst_230 = arith.constant 9.99999993E-9 : f32
    %593 = vector.broadcast %cst_230 : f32 to vector<32x1xf32>
    %594 = arith.addf %592, %593 : vector<32x1xf32>
    %595 = tpu.reciprocal %594 {approx = true} : vector<32x1xf32> -> vector<32x1xf32>
    %cst_231 = arith.constant 5.000000e+00 : f32
    %596 = vector.broadcast %cst_231 : f32 to vector<32x1xf32>
    %597 = arith.mulf %596, %595 : vector<32x1xf32>
    %cst_232 = arith.constant 1.000000e+00 : f32
    %598 = vector.broadcast %cst_232 : f32 to vector<32x1xf32>
    %599 = arith.minimumf %597, %598 : vector<32x1xf32>
    %600 = vector.broadcast %599 : vector<32x1xf32> to vector<32x64xf32>
    %601 = arith.mulf %588, %600 : vector<32x64xf32>
    %602 = arith.addf %522, %601 : vector<32x64xf32>
    %603 = arith.index_cast %c7_i32 : i32 to index
    %c0_233 = arith.constant 0 : index
    %c0_234 = arith.constant 0 : index
    %604 = vector.load %arg3[%603, %c0_233, %c0_234] : memref<8x32x64xf32, #tpu.memory_space<vmem>>, vector<1x32x64xf32>
    %605 = vector.shape_cast %604 : vector<1x32x64xf32> to vector<32x64xf32>
    %606 = vector.shape_cast %602 : vector<32x64xf32> to vector<1x32x64xf32>
    tpu.vector_store %arg3[%603, %c0_233, %c0_234], %606 {strides = array<i32>} : memref<8x32x64xf32, #tpu.memory_space<vmem>>, vector<1x32x64xf32>,
    %c7_i32_235 = arith.constant 7 : i32
    %c0_236 = arith.constant 0 : index
    %c0_237 = arith.constant 0 : index
    %c0_238 = arith.constant 0 : index
    %607 = vector.load %arg3[%c0_236, %c0_237, %c0_238] : memref<8x32x64xf32, #tpu.memory_space<vmem>>, vector<8x32x64xf32>
    %608 = vector.extract_strided_slice %607 {offsets = [0, 0, 0], sizes = [8, 32, 32], strides = [1, 1, 1]} : vector<8x32x64xf32> to vector<8x32x32xf32>
    %609 = vector.shape_cast %608 : vector<8x32x32xf32> to vector<256x32xf32>
    %c200 = arith.constant 200 : index
    %c0_239 = arith.constant 0 : index
    %610 = vector.load %arg2[%c200, %c0_239] : memref<280x64xf32, #tpu.memory_space<vmem>>, vector<32x32xf32>
    %cst_240 = arith.constant dense<0.000000e+00> : vector<256x32xf32>
    %611 = tpu.matmul %609, %610, %cst_240 {dimension_numbers = #tpu.dot_dimension_numbers<[1], [0], [0], [1], [0, 0, 1, 1], [], []>} : vector<256x32xf32>, vector<32x32xf32>, vector<256x32xf32> -> vector<256x32xf32>
    %612 = vector.extract_strided_slice %0 {offsets = [10, 0], sizes = [1, 32], strides = [1, 1]} : vector<16x64xf32> to vector<1x32xf32>
    %613 = vector.broadcast %612 : vector<1x32xf32> to vector<256x32xf32>
    %614 = arith.addf %611, %613 : vector<256x32xf32>
    %cst_241 = arith.constant 0.000000e+00 : f32
    %615 = vector.broadcast %cst_241 : f32 to vector<256x32xf32>
    %616 = arith.maximumf %614, %615 : vector<256x32xf32>
    %c232 = arith.constant 232 : index
    %c0_242 = arith.constant 0 : index
    %617 = vector.load %arg2[%c232, %c0_242] : memref<280x64xf32, #tpu.memory_space<vmem>>, vector<32x4xf32>
    %cst_243 = arith.constant dense<0.000000e+00> : vector<256x4xf32>
    %618 = tpu.matmul %616, %617, %cst_243 {dimension_numbers = #tpu.dot_dimension_numbers<[1], [0], [0], [1], [0, 0, 1, 1], [], []>} : vector<256x32xf32>, vector<32x4xf32>, vector<256x4xf32> -> vector<256x4xf32>
    %619 = vector.extract_strided_slice %0 {offsets = [11, 0], sizes = [1, 4], strides = [1, 1]} : vector<16x64xf32> to vector<1x4xf32>
    %620 = vector.broadcast %619 : vector<1x4xf32> to vector<256x4xf32>
    %621 = arith.addf %618, %620 : vector<256x4xf32>
    %c0_244 = arith.constant 0 : index
    %c0_245 = arith.constant 0 : index
    %622 = vector.load %arg4[%c0_244, %c0_245] : memref<256x4xf32, #tpu.memory_space<vmem>>, vector<256x4xf32>
    tpu.vector_store %arg4[%c0_244, %c0_245], %621 {strides = array<i32>} : memref<256x4xf32, #tpu.memory_space<vmem>>, vector<256x4xf32>,
    return
  }
}

</mosaic_0001>

<bundles_post_ra>
// kernel: simple_temporal_gnn_forward.1
= control target key start
LH: loop header
LB: loop body
LE: loop exit
PB: predicated region body
PF: predicated region fallthrough
CT: control target
= control target key end

     0   :  { %vm38_vm0 = vcmask 1043456   ;;  %vm25_vm1 = vcmask 31744   ;;  %s7173_s0 = inlined_call_operand.vmem [shape: f32[32,4], index: 0, kind: input, shape index: {}]   ;;  %s7174_s1 = inlined_call_operand.vmem [shape: f32[32,32], index: 1, kind: input, shape index: {}]   ;;  %s7175_s2 = inlined_call_operand.vmem [shape: f32[280,64], index: 2, kind: input, shape index: {}]   ;;  %s7176_s3 = inlined_call_operand.hbm [shape: f32[8,32,64], index: 3, kind: output, shape index: {0}]   ;;  %s7177_s4 = inlined_call_operand.vmem [shape: f32[256,4], index: 4, kind: output, shape index: {1}]  }
   0x1   :  { %v23_v0 = vld [vmem:[%s7175_s2] sm:$0xf]  ;;  %v21_v2 = vld [vmem:[%s7173_s0 + $0x10] sm:$0xff] }
   0x2   :  { %v19_v1 = vld [vmem:[%s7173_s0] sm:$0xff]  ;;  %4522 = vmatpush.msk.msra.mxu0 %vm38_vm0, %v23_v0  ;;  %4735 = vmatpush.msk.msra.mxu2 %vm38_vm0, %v23_v0 }
   0x3   :  { %10 = vsyncpa [#allocation3], 0  ;;  %4523 = vmatmul.msk.f32.vlgmr.msra.gmra.mxu0 %vm25_vm1, %v19_v1  ;;  %4525 = vmatmul.msk.f32.vlgmr.msra.gmra.mxu2 %vm25_vm1, %v21_v2  ;;  %v20_v3 = vld [vmem:[%s7173_s0 + $0x8] sm:$0xff]  ;;  %v22_v4 = vld [vmem:[%s7173_s0 + $0x18] sm:$0xff]  ;;  %vm71_vm2 = vcmask 261120   ;;  %v5122_v19 = vmov 32.0  }
   0x4   :  { %v5174_v5 = vld [vmem:[%s7175_s2 + $0x108] sm:$0xff]  ;;  %4749 = vrcp.f32 %v5122_v19  ;;  %v184_v46 = vld [vmem:[%s7175_s2 + $0x20] sm:$0xff]  ;;  %v183_v47 = vld [vmem:[%s7175_s2 + $0x18] sm:$0xff]  ;;  %vm227_vm0 = vcmask 523264   ;;  %s5123_s30 = smov 32   ;;  %s5124_s8 = smov [#allocation2]  }
   0x5   :  { %v24_v6 = vperm.slane %v5174_v5, 0  ;;  %210 = vmatpush.msra.mxu1 %v184_v46  ;;  %v182_v48 = vld [vmem:[%s7175_s2 + $0x10] sm:$0xff]  ;;  %v181_v49 = vld [vmem:[%s7175_s2 + $0x8] sm:$0xff]  ;;  %s4504_s9 = sshll.u32 %s5124_s8, 4  ;;  %s4506_s11 = sshll.u32 %s7176_s3, 4  ;;  %s4505_s9 = int_to_ptr.vmem [resolvable:$true] %s4504_s9  ;;  %s4507_s11 = int_to_ptr.hbm [resolvable:$true] %s4506_s11 }
   0x6   :  { %s5125_s12 = smov 128   ;;  %s5126_s13 = smov 8  }
   0x7   :  { %211 = vmatpush.msra.mxu1 %v183_v47 }
   0x9   :  { %212 = vmatpush.msra.mxu1 %v182_v48 }
   0xa   :  { %v4750_v20 = vpop.eup %4749 }
   0xb   :  { %4524 = vmatmul.msk.f32.gmra.mxu0 %vm25_vm1, %v20_v3  ;;  %4526 = vmatmul.msk.f32.gmra.mxu2 %vm25_vm1, %v22_v4  ;;  %v85_v21 = vmul.f32 32.0, %v4750_v20  ;;  %vm89_vm3 = vweird.f32 %v4750_v20 }
   0xc   :  { %213 = vmatpush.msra.mxu1 %v181_v49 }
   0xd   :  { %v86_v22 = vsub.f32 1.0, %v85_v21 }
   0xf   :  { %v87_v23 = vmul.f32 %v4750_v20, %v86_v22  ;;  %v237_v22 = vld [vmem:[%s7175_s2 + $0x50] sm:$0xff] }
  0x11   :  { %v88_v24 = vadd.f32 %v4750_v20, %v87_v23 }
  0x13   :  { %v5181_v25 = vsel %vm89_vm3, %v4750_v20, %v88_v24 }
  0x80   :  { %v59_v7 = vpop.f32.mrf.mxu0 }
  0x81   :  { %v60_v8 = vadd.f32 %v59_v7, %v24_v6 }
  0x83   :  { %v72_v9 = vsel %vm71_vm2, %v60_v8, 0.0 }
  0x84   :  { %73 = vadd.xlane.f32.xlu0 %v72_v9 }
  0x86   :  { %v65_v10 = vpop.f32.mrf.mxu2 }
  0x87   :  { %v66_v11 = vadd.f32 %v65_v10, %v24_v6  ;;  %v167_v10 = vperm.slane %v5174_v5, 1 }
  0x88   :  { %v62_v12 = vpop.f32.mrf.mxu0 }
  0x89   :  { %v63_v13 = vadd.f32 %v62_v12, %v24_v6  ;;  %v78_v14 = vsel %vm71_vm2, %v66_v11, 0.0 }
  0x8a   :  { %79 = vadd.xlane.f32.xlu1 %v78_v14 }
  0x8b   :  { %v75_v15 = vsel %vm71_vm2, %v63_v13, 0.0 }
  0x8c   :  { %76 = vadd.xlane.f32.xlu0 %v75_v15  ;;  %v172_v15 = vperm.slane %v5174_v5, 2 }
  0x8e   :  { %v68_v16 = vpop.f32.mrf.mxu2 }
  0x8f   :  { %v69_v17 = vadd.f32 %v68_v16, %v24_v6  ;;  %v239_v16 = vld [vmem:[%s7175_s2 + $0x60] sm:$0xff] }
  0x90   :  { %261 = vmatpush.msrb.mxu2 %v239_v16 }
  0x91   :  { %v81_v18 = vsel %vm71_vm2, %v69_v17, 0.0 }
  0x92   :  { %82 = vadd.xlane.f32.xlu1 %v81_v18 }
  0xf7   :  { %v74_v26 = vpop.xlane.xlu0 %73 }
  0xf8   :  { %v91_v27 = vmul.f32 %v5181_v25, %v74_v26 }
  0xfa   :  { %v5184_v28 = vsub.f32 %v60_v8, %v91_v27 }
  0xfc   :  { %v99_v29 = vmul.f32 %v5184_v28, %v5184_v28 }
  0xfd   :  { %v80_v30 = vpop.xlane.xlu1 %79 }
  0xfe   :  { %v93_v31 = vmul.f32 %v5181_v25, %v80_v30  ;;  %v103_v32 = vsel %vm71_vm2, %v99_v29, 0.0 }
  0xff   :  { %104 = vadd.xlane.f32.xlu2 %v103_v32  ;;  %v77_v33 = vpop.xlane.xlu0 %76 }
 0x100   :  { %v5190_v34 = vsub.f32 %v66_v11, %v93_v31  ;;  %v92_v35 = vmul.f32 %v5181_v25, %v77_v33  ;;  %v235_v33 = vld [vmem:[%s7175_s2 + $0x40] sm:$0xff] }
 0x102   :  { %v5193_v36 = vsub.f32 %v63_v13, %v92_v35  ;;  %v101_v37 = vmul.f32 %v5190_v34, %v5190_v34 }
 0x104   :  { %v109_v38 = vsel %vm71_vm2, %v101_v37, 0.0  ;;  %v100_v39 = vmul.f32 %v5193_v36, %v5193_v36 }
 0x105   :  { %v83_v40 = vpop.xlane.xlu1 %82  ;;  %110 = vadd.xlane.f32.xlu0 %v109_v38 }
 0x106   :  { %v94_v41 = vmul.f32 %v5181_v25, %v83_v40  ;;  %v106_v42 = vsel %vm71_vm2, %v100_v39, 0.0  ;;  %v234_v40 = vld [vmem:[%s7175_s2 + $0x38] sm:$0xff] }
 0x107   :  { %107 = vadd.xlane.f32.xlu2 %v106_v42 }
 0x108   :  { %v5202_v43 = vsub.f32 %v69_v17, %v94_v41  ;;  %v238_v17 = vld [vmem:[%s7175_s2 + $0x58] sm:$0xff] }
 0x109   :  { %262 = vmatpush.msrb.mxu2 %v238_v17 }
 0x10a   :  { %v102_v44 = vmul.f32 %v5202_v43, %v5202_v43 }
 0x10b   :  { %263 = vmatpush.msrb.mxu2 %v237_v22 }
 0x10c   :  { %v112_v45 = vsel %vm71_vm2, %v102_v44, 0.0 }
 0x10d   :  { %113 = vadd.xlane.f32.xlu1 %v112_v45 }
 0x172   :  { %v105_v50 = vpop.xlane.xlu2 %104 }
 0x173   :  { %v115_v51 = vmul.f32 %v105_v50, %v5181_v25 }
 0x175   :  { %v119_v52 = vadd.f32 1e-05, %v115_v51 }
 0x177   :  { %4751 = vrsqrt.f32 %v119_v52  ;;  %vm129_vm5 = vweird.f32 %v119_v52 }
 0x178   :  { %v111_v53 = vpop.xlane.xlu0 %110 }
 0x179   :  { %v117_v54 = vmul.f32 %v111_v53, %v5181_v25 }
 0x17a   :  { %v108_v55 = vpop.xlane.xlu2 %107 }
 0x17b   :  { %v121_v56 = vadd.f32 1e-05, %v117_v54  ;;  %v116_v57 = vmul.f32 %v108_v55, %v5181_v25  ;;  %v233_v54 = vld [vmem:[%s7175_s2 + $0x30] sm:$0xff]  ;;  %v232_v55 = vld [vmem:[%s7175_s2 + $0x28] sm:$0xff] }
 0x17d   :  { %v4752_v58 = vpop.eup %4751  ;;  %4753 = vrsqrt.f32 %v121_v56  ;;  %v120_v59 = vadd.f32 1e-05, %v116_v57  ;;  %vm149_vm9 = vweird.f32 %v121_v56 }
 0x17e   :  { %v124_v60 = vmul.f32 %v4752_v58, %v119_v52  ;;  %vm130_vm4 = vweird.f32 %v4752_v58 }
 0x17f   :  { %4755 = vrsqrt.f32 %v120_v59  ;;  %vm131_vm6 = vmor %vm129_vm5, %vm130_vm4  ;;  %vm139_vm11 = vweird.f32 %v120_v59 }
 0x180   :  { %v125_v61 = vmul.f32 %v4752_v58, %v124_v60  ;;  %v114_v62 = vpop.xlane.xlu1 %113 }
 0x181   :  { %v118_v63 = vmul.f32 %v114_v62, %v5181_v25 }
 0x182   :  { %v126_v0 = vmul.f32 0.5, %v125_v61 }
 0x183   :  { %v4754_v1 = vpop.eup %4753  ;;  %v122_v2 = vadd.f32 1e-05, %v118_v63 }
 0x184   :  { %v127_v3 = vsub.f32 1.5, %v126_v0  ;;  %v144_v4 = vmul.f32 %v4754_v1, %v121_v56  ;;  %vm150_vm7 = vweird.f32 %v4754_v1  ;;  %v5289_v0 = vperm.slane %v5174_v5, 4 }
 0x185   :  { %v4756_v6 = vpop.eup %4755  ;;  %4757 = vrsqrt.f32 %v122_v2  ;;  %vm5238_vm10 = vmor %vm149_vm9, %vm150_vm7  ;;  %vm159_vm14 = vweird.f32 %v122_v2 }
 0x186   :  { %v128_v7 = vmul.f32 %v4752_v58, %v127_v3  ;;  %v145_v8 = vmul.f32 %v4754_v1, %v144_v4  ;;  %v134_v9 = vmul.f32 %v4756_v6, %v120_v59  ;;  %vm140_vm8 = vweird.f32 %v4756_v6 }
 0x187   :  { %vm141_vm12 = vmor %vm139_vm11, %vm140_vm8 }
 0x188   :  { %v132_v11 = vsel %vm131_vm6, %v4752_v58, %v128_v7  ;;  %v146_v12 = vmul.f32 0.5, %v145_v8  ;;  %v135_v13 = vmul.f32 %v4756_v6, %v134_v9 }
 0x189   :  { %v163_v14 = vmul.f32 %v132_v11, %v5184_v28  ;;  %v236_v28 = vld [vmem:[%s7175_s2 + $0x48] sm:$0xff] }
 0x18a   :  { %v147_v18 = vsub.f32 1.5, %v146_v12  ;;  %v136_v19 = vmul.f32 0.5, %v135_v13  ;;  %264 = vmatpush.msrb.mxu2 %v236_v28 }
 0x18b   :  { %v4758_v20 = vpop.eup %4757  ;;  %v168_v21 = vmul.f32 %v167_v10, %v163_v14 }
 0x18c   :  { %v148_v23 = vmul.f32 %v4754_v1, %v147_v18  ;;  %v137_v24 = vsub.f32 1.5, %v136_v19  ;;  %v154_v26 = vmul.f32 %v4758_v20, %v122_v2  ;;  %265 = vmatpush.msrb.mxu2 %v235_v33  ;;  %vm160_vm13 = vweird.f32 %v4758_v20 }
 0x18d   :  { %v173_v27 = vadd.f32 %v172_v15, %v168_v21  ;;  %vm161_vm15 = vmor %vm159_vm14, %vm160_vm13 }
 0x18e   :  { %v138_v30 = vmul.f32 %v4756_v6, %v137_v24  ;;  %v155_v31 = vmul.f32 %v4758_v20, %v154_v26  ;;  %v152_v38 = vsel %vm5238_vm10, %v4754_v1, %v148_v23  ;;  %266 = vmatpush.msrb.mxu2 %v234_v40 }
 0x18f   :  { %v177_v32 = vmax.f32 %v173_v27, 0.0  ;;  %v165_v44 = vmul.f32 %v152_v38, %v5190_v34  ;;  %v5328_v38 = vld [vmem:[%s7175_s2 + $0x78] sm:$0xff] }
 0x190   :  { %v142_v35 = vsel %vm141_vm12, %v4756_v6, %v138_v30  ;;  %v156_v37 = vmul.f32 0.5, %v155_v31  ;;  %267 = vmatpush.msrb.mxu2 %v233_v54 }
 0x191   :  { %4527 = vmatmul.msk.f32.vlgmr.msra.gmra.mxu1 %vm71_vm2, %v177_v32  ;;  %v164_v39 = vmul.f32 %v142_v35, %v5193_v36  ;;  %v170_v48 = vmul.f32 %v167_v10, %v165_v44 }
 0x192   :  { %v157_v41 = vsub.f32 1.5, %v156_v37  ;;  %268 = vmatpush.msrb.mxu2 %v232_v55  ;;  %v5322_v37 = vld [vmem:[%s7175_s2 + $0x80] sm:$0xff] }
 0x193   :  { %v169_v42 = vmul.f32 %v167_v10, %v164_v39  ;;  %v175_v36 = vadd.f32 %v172_v15, %v170_v48  ;;  %413 = vmatpush.msra.mxu3 %v5322_v37  ;;  %v5334_v39 = vld [vmem:[%s7175_s2 + $0x70] sm:$0xff] }
 0x194   :  { %v158_v45 = vmul.f32 %v4758_v20, %v157_v41  ;;  %800 = vmatpush.msra.mxu2 %v239_v16 }
 0x195   :  { %v174_v46 = vadd.f32 %v172_v15, %v169_v42  ;;  %v179_v51 = vmax.f32 %v175_v36, 0.0  ;;  %414 = vmatpush.msra.mxu3 %v5328_v38 }
 0x196   :  { %v162_v49 = vsel %vm161_vm15, %v4758_v20, %v158_v45  ;;  %801 = vmatpush.msra.mxu2 %v238_v17 }
 0x197   :  { %v178_v47 = vmax.f32 %v174_v46, 0.0  ;;  %v166_v50 = vmul.f32 %v162_v49, %v5202_v43  ;;  %v185_v43 = vperm.slane %v5174_v5, 3  ;;  %415 = vmatpush.msra.mxu3 %v5334_v39 }
 0x198   :  { %802 = vmatpush.msra.mxu2 %v237_v22 }
 0x199   :  { %4528 = vmatmul.msk.f32.gmra.mxu1 %vm71_vm2, %v178_v47  ;;  %v171_v52 = vmul.f32 %v167_v10, %v166_v50 }
 0x19a   :  { %803 = vmatpush.msra.mxu2 %v236_v28 }
 0x19b   :  { %v176_v53 = vadd.f32 %v172_v15, %v171_v52 }
 0x19c   :  { %804 = vmatpush.msra.mxu2 %v235_v33 }
 0x19d   :  { %v180_v34 = vmax.f32 %v176_v53, 0.0 }
 0x19e   :  { %805 = vmatpush.msra.mxu2 %v234_v40  ;;  %v5340_v40 = vld [vmem:[%s7175_s2 + $0x68] sm:$0xff] }
 0x19f   :  { %416 = vmatpush.msra.mxu3 %v5340_v40 }
 0x1a0   :  { %806 = vmatpush.msra.mxu2 %v233_v54 }
 0x1a1   :  { %4529 = vmatmul.msk.f32.gmra.mxu1 %vm71_vm2, %v179_v51 }
 0x1a2   :  { %807 = vmatpush.msra.mxu2 %v232_v55 }
 0x1a9   :  { %4530 = vmatmul.msk.f32.gmra.mxu1 %vm71_vm2, %v180_v34 }
 0x20e   :  { %v215_v56 = vpop.f32.mrf.mxu1 }
 0x20f   :  { %v5264_v57 = vadd.f32 %v215_v56, %v185_v43  ;;  %v5347_v56 = vperm.slane %v5174_v5, 5 }
 0x211   :  { %228 = vst.msk [vmem:[#allocation2] sm:$0xff] %vm227_vm0, %v5264_v57  ;;  %4531 = vmatmul.msk.f32.vlgmr.msrb.gmra.mxu2 %vm227_vm0, %v5264_v57 }
 0x216   :  { %v218_v58 = vpop.f32.mrf.mxu1 }
 0x217   :  { %v5270_v59 = vadd.f32 %v218_v58, %v185_v43 }
 0x219   :  { %229 = vst.msk [vmem:[#allocation2 + $0x8] sm:$0xff] %vm227_vm0, %v5270_v59  ;;  %4532 = vmatmul.msk.f32.gmra.mxu2 %vm227_vm0, %v5270_v59 }
 0x21e   :  { %v221_v60 = vpop.f32.mrf.mxu1 }
 0x21f   :  { %v5276_v61 = vadd.f32 %v221_v60, %v185_v43 }
 0x221   :  { %230 = vst.msk [vmem:[#allocation2 + $0x10] sm:$0xff] %vm227_vm0, %v5276_v61  ;;  %4533 = vmatmul.msk.f32.gmra.mxu2 %vm227_vm0, %v5276_v61 }
 0x226   :  { %v224_v62 = vpop.f32.mrf.mxu1 }
 0x227   :  { %v5282_v63 = vadd.f32 %v224_v62, %v185_v43  ;;  %v5350_v62 = vperm.slane %v5174_v5, 6 }
 0x229   :  { %231 = vst.msk [vmem:[#allocation2 + $0x18] sm:$0xff] %vm227_vm0, %v5282_v63  ;;  %4534 = vmatmul.msk.f32.gmra.mxu2 %vm227_vm0, %v5282_v63 }
 0x294   :  { %v270_v1 = vpop.f32.mrf.mxu2 }
 0x295   :  { %v271_v2 = vadd.f32 %v270_v1, %v5289_v0 }
 0x297   :  { %v282_v3 = vsel %vm71_vm2, %v271_v2, 0.0 }
 0x298   :  { %283 = vadd.xlane.f32.xlu2 %v282_v3 }
 0x29c   :  { %v273_v4 = vpop.f32.mrf.mxu2 }
 0x29d   :  { %v274_v6 = vadd.f32 %v273_v4, %v5289_v0 }
 0x29f   :  { %v285_v7 = vsel %vm71_vm2, %v274_v6, 0.0 }
 0x2a0   :  { %286 = vadd.xlane.f32.xlu0 %v285_v7 }
 0x2a4   :  { %v276_v8 = vpop.f32.mrf.mxu2 }
 0x2a5   :  { %v277_v9 = vadd.f32 %v276_v8, %v5289_v0 }
 0x2a7   :  { %v288_v10 = vsel %vm71_vm2, %v277_v9, 0.0 }
 0x2a8   :  { %289 = vadd.xlane.f32.xlu1 %v288_v10 }
 0x2ac   :  { %v279_v11 = vpop.f32.mrf.mxu2 }
 0x2ad   :  { %v280_v12 = vadd.f32 %v279_v11, %v5289_v0 }
 0x2af   :  { %v291_v13 = vsel %vm71_vm2, %v280_v12, 0.0 }
 0x2b0   :  { %292 = vadd.xlane.f32.xlu2 %v291_v13 }
 0x30b   :  { %v284_v14 = vpop.xlane.xlu2 %283 }
 0x30c   :  { %v294_v15 = vmul.f32 %v284_v14, %v5181_v25 }
 0x30e   :  { %v298_v16 = vsub.f32 %v271_v2, %v294_v15 }
 0x310   :  { %v302_v17 = vmul.f32 %v298_v16, %v298_v16 }
 0x312   :  { %v306_v18 = vsel %vm71_vm2, %v302_v17, 0.0 }
 0x313   :  { %307 = vadd.xlane.f32.xlu0 %v306_v18  ;;  %v287_v19 = vpop.xlane.xlu0 %286 }
 0x314   :  { %v295_v20 = vmul.f32 %v287_v19, %v5181_v25 }
 0x316   :  { %v5302_v21 = vsub.f32 %v274_v6, %v295_v20 }
 0x318   :  { %v303_v22 = vmul.f32 %v5302_v21, %v5302_v21 }
 0x31a   :  { %v309_v23 = vsel %vm71_vm2, %v303_v22, 0.0 }
 0x31b   :  { %v290_v24 = vpop.xlane.xlu1 %289  ;;  %310 = vadd.xlane.f32.xlu1 %v309_v23 }
 0x31c   :  { %v296_v26 = vmul.f32 %v290_v24, %v5181_v25 }
 0x31e   :  { %v5308_v27 = vsub.f32 %v277_v9, %v296_v26 }
 0x320   :  { %v304_v28 = vmul.f32 %v5308_v27, %v5308_v27 }
 0x322   :  { %v312_v29 = vsel %vm71_vm2, %v304_v28, 0.0 }
 0x323   :  { %v293_v30 = vpop.xlane.xlu2 %292  ;;  %313 = vadd.xlane.f32.xlu2 %v312_v29 }
 0x324   :  { %v297_v31 = vmul.f32 %v293_v30, %v5181_v25 }
 0x326   :  { %v5314_v32 = vsub.f32 %v280_v12, %v297_v31 }
 0x328   :  { %v305_v33 = vmul.f32 %v5314_v32, %v5314_v32 }
 0x32a   :  { %v315_v35 = vsel %vm71_vm2, %v305_v33, 0.0 }
 0x32b   :  { %316 = vadd.xlane.f32.xlu0 %v315_v35 }
 0x386   :  { %v308_v41 = vpop.xlane.xlu0 %307 }
 0x387   :  { %v318_v42 = vmul.f32 %v308_v41, %v5181_v25 }
 0x389   :  { %v322_v44 = vadd.f32 1e-05, %v318_v42 }
 0x38b   :  { %4759 = vrsqrt.f32 %v322_v44  ;;  %vm332_vm4 = vweird.f32 %v322_v44 }
 0x38e   :  { %v311_v45 = vpop.xlane.xlu1 %310 }
 0x38f   :  { %v319_v46 = vmul.f32 %v311_v45, %v5181_v25 }
 0x391   :  { %v4760_v47 = vpop.eup %4759  ;;  %v323_v48 = vadd.f32 1e-05, %v319_v46 }
 0x392   :  { %v327_v49 = vmul.f32 %v4760_v47, %v322_v44  ;;  %vm333_vm3 = vweird.f32 %v4760_v47 }
 0x393   :  { %4761 = vrsqrt.f32 %v323_v48  ;;  %vm334_vm5 = vmor %vm332_vm4, %vm333_vm3  ;;  %vm342_vm7 = vweird.f32 %v323_v48 }
 0x394   :  { %v328_v36 = vmul.f32 %v4760_v47, %v327_v49  ;;  %v5369_v49 = vperm.slane %v5174_v5, 7 }
 0x396   :  { %v329_v50 = vmul.f32 0.5, %v328_v36  ;;  %v314_v51 = vpop.xlane.xlu2 %313 }
 0x397   :  { %v320_v52 = vmul.f32 %v314_v51, %v5181_v25 }
 0x398   :  { %v330_v53 = vsub.f32 1.5, %v329_v50 }
 0x399   :  { %v4762_v34 = vpop.eup %4761  ;;  %v324_v54 = vadd.f32 1e-05, %v320_v52 }
 0x39a   :  { %v331_v55 = vmul.f32 %v4760_v47, %v330_v53  ;;  %v337_v43 = vmul.f32 %v4762_v34, %v323_v48  ;;  %vm343_vm6 = vweird.f32 %v4762_v34 }
 0x39b   :  { %4763 = vrsqrt.f32 %v324_v54  ;;  %vm344_vm8 = vmor %vm342_vm7, %vm343_vm6  ;;  %vm352_vm10 = vweird.f32 %v324_v54 }
 0x39c   :  { %v335_v58 = vsel %vm334_vm5, %v4760_v47, %v331_v55  ;;  %v338_v60 = vmul.f32 %v4762_v34, %v337_v43 }
 0x39d   :  { %v366_v1 = vmul.f32 %v335_v58, %v298_v16 }
 0x39e   :  { %v339_v2 = vmul.f32 0.5, %v338_v60  ;;  %v317_v3 = vpop.xlane.xlu0 %316 }
 0x39f   :  { %v321_v4 = vmul.f32 %v317_v3, %v5181_v25  ;;  %v371_v6 = vmul.f32 %v5347_v56, %v366_v1 }
 0x3a0   :  { %v340_v7 = vsub.f32 1.5, %v339_v2 }
 0x3a1   :  { %v4764_v8 = vpop.eup %4763  ;;  %v325_v9 = vadd.f32 1e-05, %v321_v4  ;;  %v376_v10 = vadd.f32 %v5350_v62, %v371_v6 }
 0x3a2   :  { %v341_v11 = vmul.f32 %v4762_v34, %v340_v7  ;;  %v347_v12 = vmul.f32 %v4764_v8, %v324_v54  ;;  %vm353_vm9 = vweird.f32 %v4764_v8 }
 0x3a3   :  { %4765 = vrsqrt.f32 %v325_v9  ;;  %v380_v13 = vmax.f32 %v376_v10, 0.0  ;;  %vm354_vm11 = vmor %vm352_vm10, %vm353_vm9  ;;  %vm362_vm13 = vweird.f32 %v325_v9 }
 0x3a4   :  { %v345_v14 = vsel %vm344_vm8, %v4762_v34, %v341_v11  ;;  %v348_v15 = vmul.f32 %v4764_v8, %v347_v12 }
 0x3a5   :  { %4535 = vmatmul.msk.f32.vlgmr.msra.gmra.mxu3 %vm71_vm2, %v380_v13  ;;  %v367_v16 = vmul.f32 %v345_v14, %v5302_v21 }
 0x3a6   :  { %v349_v17 = vmul.f32 0.5, %v348_v15 }
 0x3a7   :  { %v372_v18 = vmul.f32 %v5347_v56, %v367_v16 }
 0x3a8   :  { %v350_v19 = vsub.f32 1.5, %v349_v17 }
 0x3a9   :  { %v4766_v20 = vpop.eup %4765  ;;  %v377_v22 = vadd.f32 %v5350_v62, %v372_v18 }
 0x3aa   :  { %v351_v23 = vmul.f32 %v4764_v8, %v350_v19  ;;  %v357_v24 = vmul.f32 %v4766_v20, %v325_v9  ;;  %vm363_vm12 = vweird.f32 %v4766_v20 }
 0x3ab   :  { %v381_v26 = vmax.f32 %v377_v22, 0.0  ;;  %vm364_vm14 = vmor %vm362_vm13, %vm363_vm12 }
 0x3ac   :  { %v355_v28 = vsel %vm354_vm11, %v4764_v8, %v351_v23  ;;  %v358_v29 = vmul.f32 %v4766_v20, %v357_v24 }
 0x3ad   :  { %4536 = vmatmul.msk.f32.gmra.mxu3 %vm71_vm2, %v381_v26  ;;  %v368_v30 = vmul.f32 %v355_v28, %v5308_v27 }
 0x3ae   :  { %v359_v21 = vmul.f32 0.5, %v358_v29 }
 0x3af   :  { %v373_v31 = vmul.f32 %v5347_v56, %v368_v30 }
 0x3b0   :  { %v360_v33 = vsub.f32 1.5, %v359_v21 }
 0x3b1   :  { %v378_v35 = vadd.f32 %v5350_v62, %v373_v31 }
 0x3b2   :  { %v361_v41 = vmul.f32 %v4766_v20, %v360_v33 }
 0x3b3   :  { %v382_v42 = vmax.f32 %v378_v35, 0.0 }
 0x3b4   :  { %v365_v44 = vsel %vm364_vm14, %v4766_v20, %v361_v41 }
 0x3b5   :  { %4537 = vmatmul.msk.f32.gmra.mxu3 %vm71_vm2, %v382_v42  ;;  %v369_v45 = vmul.f32 %v365_v44, %v5314_v32 }
 0x3b7   :  { %v374_v46 = vmul.f32 %v5347_v56, %v369_v45 }
 0x3b9   :  { %v379_v27 = vadd.f32 %v5350_v62, %v374_v46 }
 0x3bb   :  { %v383_v47 = vmax.f32 %v379_v27, 0.0 }
 0x3bd   :  { %4538 = vmatmul.msk.f32.gmra.mxu3 %vm71_vm2, %v383_v47 }
 0x428   :  { %v418_v48 = vpop.f32.mrf.mxu3 }
 0x429   :  { %v5385_v58 = vadd.f32 %v418_v48, %v5369_v49 }
 0x42b   :  { %v430_v1 = vmul.f32 %v5385_v58, %v5385_v58 }
 0x42d   :  { %v434_v2 = vsel %vm71_vm2, %v430_v1, 0.0  ;;  %v560_v1 = vld [vmem:[%s7175_s2 + $0x90] sm:$0xff] }
 0x430   :  { %v421_v36 = vpop.f32.mrf.mxu3 }
 0x431   :  { %v5372_v50 = vadd.f32 %v421_v36, %v5369_v49 }
 0x433   :  { %v431_v51 = vmul.f32 %v5372_v50, %v5372_v50 }
 0x435   :  { %v437_v32 = vsel %vm71_vm2, %v431_v51, 0.0 }
 0x436   :  { %438 = vadd.xlane.f32.xlu0 %v437_v32 }
 0x438   :  { %v424_v52 = vpop.f32.mrf.mxu3 }
 0x439   :  { %v5378_v53 = vadd.f32 %v424_v52, %v5369_v49 }
 0x43b   :  { %v432_v34 = vmul.f32 %v5378_v53, %v5378_v53 }
 0x43d   :  { %v440_v5 = vsel %vm71_vm2, %v432_v34, 0.0  ;;  %v612_v34 = vld [vmem:[%s7175_s2 + $0xc0] sm:$0xff] }
 0x43e   :  { %441 = vadd.xlane.f32.xlu2 %v440_v5  ;;  %638 = vmatpush.msrb.mxu3 %v612_v34 }
 0x43f   :  { %1172 = vmatpush.msrb.mxu2 %v612_v34 }
 0x440   :  { %v427_v54 = vpop.f32.mrf.mxu3 }
 0x441   :  { %v428_v55 = vadd.f32 %v427_v54, %v5369_v49 }
 0x443   :  { %v433_v43 = vmul.f32 %v428_v55, %v428_v55 }
 0x445   :  { %v443_v60 = vsel %vm71_vm2, %v433_v43, 0.0 }
 0x446   :  { %444 = vadd.xlane.f32.xlu1 %v443_v60  ;;  %v610_v60 = vld [vmem:[%s7175_s2 + $0xb0] sm:$0xff] }
 0x44e   :  { %435 = vadd.xlane.f32.xlu1 %v434_v2  ;;  %v609_v2 = vld [vmem:[%s7175_s2 + $0xa8] sm:$0xff] }
 0x4a9   :  { %v439_v3 = vpop.xlane.xlu0 %438 }
 0x4aa   :  { %v447_v4 = vadd.f32 1e-24, %v439_v3  ;;  %v559_v3 = vld [vmem:[%s7175_s2 + $0x88] sm:$0xff] }
 0x4ac   :  { %4767 = vrsqrt.f32 %v447_v4  ;;  %vm466_vm6 = vweird.f32 %v447_v4 }
 0x4b1   :  { %v442_v6 = vpop.xlane.xlu2 %441 }
 0x4b2   :  { %v448_v7 = vadd.f32 1e-24, %v442_v6  ;;  %v4768_v8 = vpop.eup %4767 }
 0x4b3   :  { %v461_v9 = vmul.f32 %v4768_v8, %v447_v4  ;;  %vm467_vm3 = vweird.f32 %v4768_v8 }
 0x4b4   :  { %4769 = vrsqrt.f32 %v448_v7  ;;  %vm476_vm4 = vweird.f32 %v448_v7  ;;  %vm468_vm9 = vmor %vm466_vm6, %vm467_vm3 }
 0x4b5   :  { %v462_v14 = vmul.f32 %v4768_v8, %v461_v9 }
 0x4b7   :  { %v463_v17 = vmul.f32 0.5, %v462_v14 }
 0x4b9   :  { %v445_v10 = vpop.xlane.xlu1 %444  ;;  %v464_v24 = vsub.f32 1.5, %v463_v17 }
 0x4ba   :  { %v4770_v11 = vpop.eup %4769  ;;  %v449_v12 = vadd.f32 1e-24, %v445_v10 }
 0x4bb   :  { %v471_v13 = vmul.f32 %v4770_v11, %v448_v7  ;;  %vm477_vm15 = vweird.f32 %v4770_v11  ;;  %v465_v21 = vmul.f32 %v4768_v8, %v464_v24  ;;  %v554_v24 = vmul.f32 0.03, %v5282_v63 }
 0x4bc   :  { %4771 = vrsqrt.f32 %v449_v12  ;;  %vm478_vm7 = vmor %vm476_vm4, %vm477_vm15  ;;  %vm486_vm8 = vweird.f32 %v449_v12 }
 0x4bd   :  { %v472_v15 = vmul.f32 %v4770_v11, %v471_v13  ;;  %v469_v45 = vsel %vm468_vm9, %v4768_v8, %v465_v21  ;;  %v551_v8 = vmul.f32 0.03, %v5264_v57  ;;  %v552_v13 = vmul.f32 0.03, %v5270_v59 }
 0x4be   :  { %v491_v36 = vmul.f32 5.656854, %v469_v45 }
 0x4bf   :  { %v473_v16 = vmul.f32 0.5, %v472_v15 }
 0x4c0   :  { %v495_v5 = vmul.f32 %v491_v36, %v5372_v50  ;;  %v5415_v50 = vld [vmem:[%s7174_s1 + $0x8] sm:$0xff] }
 0x4c1   :  { %v436_v18 = vpop.xlane.xlu1 %435  ;;  %v474_v22 = vsub.f32 1.5, %v473_v16 }
 0x4c2   :  { %v4772_v19 = vpop.eup %4771  ;;  %v446_v20 = vadd.f32 1e-24, %v436_v18  ;;  %v553_v18 = vmul.f32 0.03, %v5276_v61 }
 0x4c3   :  { %v481_v23 = vmul.f32 %v4772_v19, %v449_v12  ;;  %v475_v29 = vmul.f32 %v4770_v11, %v474_v22  ;;  %vm487_vm5 = vweird.f32 %v4772_v19 }
 0x4c4   :  { %4773 = vrsqrt.f32 %v446_v20  ;;  %vm488_vm10 = vmor %vm486_vm8, %vm487_vm5  ;;  %vm456_vm12 = vweird.f32 %v446_v20 }
 0x4c5   :  { %v482_v26 = vmul.f32 %v4772_v19, %v481_v23  ;;  %v479_v41 = vsel %vm478_vm7, %v4770_v11, %v475_v29 }
 0x4c6   :  { %v492_v27 = vmul.f32 5.656854, %v479_v41 }
 0x4c7   :  { %v483_v28 = vmul.f32 0.5, %v482_v26 }
 0x4c8   :  { %v5395_v32 = vmul.f32 %v492_v27, %v5378_v53  ;;  %v5406_v53 = vld [vmem:[%s7174_s1] sm:$0xff] }
 0x4c9   :  { %v484_v30 = vsub.f32 1.5, %v483_v28  ;;  %v18_v28 = vld [vmem:[%s7175_s2 + $0x110] sm:$0xff] }
 0x4ca   :  { %v4774_v31 = vpop.eup %4773  ;;  %v5473_v29 = vperm.slane %v18_v28, 1  ;;  %v5483_v36 = vperm.slane %v18_v28, 0 }
 0x4cb   :  { %v451_v33 = vmul.f32 %v4774_v31, %v446_v20  ;;  %v485_v35 = vmul.f32 %v4772_v19, %v484_v30  ;;  %vm457_vm11 = vweird.f32 %v4774_v31 }
 0x4cc   :  { %vm458_vm13 = vmor %vm456_vm12, %vm457_vm11 }
 0x4cd   :  { %v452_v42 = vmul.f32 %v4774_v31, %v451_v33  ;;  %v489_v44 = vsel %vm488_vm10, %v4772_v19, %v485_v35 }
 0x4ce   :  { %v493_v46 = vmul.f32 5.656854, %v489_v44 }
 0x4cf   :  { %v453_v47 = vmul.f32 0.5, %v452_v42 }
 0x4d0   :  { %v5391_v48 = vmul.f32 %v493_v46, %v428_v55 }
 0x4d1   :  { %v454_v51 = vsub.f32 1.5, %v453_v47 }
 0x4d2   :  { %526 = vmatpush.msrb.mxu0 %v5391_v48 }
 0x4d3   :  { %v455_v52 = vmul.f32 %v4774_v31, %v454_v51 }
 0x4d4   :  { %527 = vmatpush.msrb.mxu0 %v5395_v32 }
 0x4d5   :  { %v459_v54 = vsel %vm458_vm13, %v4774_v31, %v455_v52 }
 0x4d6   :  { %528 = vmatpush.msrb.mxu0 %v495_v5  ;;  %v490_v55 = vmul.f32 5.656854, %v459_v54 }
 0x4d8   :  { %v494_v43 = vmul.f32 %v490_v55, %v5385_v58  ;;  %v5424_v58 = vld [vmem:[%s7174_s1 + $0x10] sm:$0xff] }
 0x4da   :  { %529 = vmatpush.msrb.mxu0 %v494_v43 }
 0x4db   :  { %4539 = vmatmul.msk.f32.vlgmr.msrb.gmra.mxu0 %vm71_vm2, %v5406_v53 }
 0x4dc   :  { %949 = vmatpush.msra.mxu0 %v5322_v37  ;;  %v5431_v37 = vld [vmem:[%s7174_s1 + $0x18] sm:$0xff] }
 0x4de   :  { %950 = vmatpush.msra.mxu0 %v5328_v38  ;;  %v562_v38 = vld [vmem:[%s7175_s2 + $0xa0] sm:$0xff] }
 0x4df   :  { %588 = vmatpush.msrb.mxu1 %v562_v38 }
 0x4e0   :  { %951 = vmatpush.msra.mxu0 %v5334_v39  ;;  %v611_v39 = vld [vmem:[%s7175_s2 + $0xb8] sm:$0xff] }
 0x4e1   :  { %639 = vmatpush.msrb.mxu3 %v611_v39  ;;  %1173 = vmatpush.msrb.mxu2 %v611_v39 }
 0x4e2   :  { %952 = vmatpush.msra.mxu0 %v5340_v40  ;;  %v561_v40 = vld [vmem:[%s7175_s2 + $0x98] sm:$0xff] }
 0x4e3   :  { %4540 = vmatmul.msk.f32.gmra.mxu0 %vm71_vm2, %v5415_v50  ;;  %589 = vmatpush.msrb.mxu1 %v561_v40 }
 0x4e4   :  { %640 = vmatpush.msrb.mxu3 %v610_v60  ;;  %1174 = vmatpush.msrb.mxu2 %v610_v60 }
 0x4e5   :  { %590 = vmatpush.msrb.mxu1 %v560_v1 }
 0x4e6   :  { %641 = vmatpush.msrb.mxu3 %v609_v2  ;;  %1175 = vmatpush.msrb.mxu2 %v609_v2 }
 0x4e7   :  { %591 = vmatpush.msrb.mxu1 %v559_v3 }
 0x4e8   :  { %1123 = vmatpush.msra.mxu3 %v562_v38 }
 0x4ea   :  { %1124 = vmatpush.msra.mxu3 %v561_v40 }
 0x4eb   :  { %4541 = vmatmul.msk.f32.gmra.mxu0 %vm71_vm2, %v5424_v58 }
 0x4ec   :  { %1125 = vmatpush.msra.mxu3 %v560_v1 }
 0x4ee   :  { %1126 = vmatpush.msra.mxu3 %v559_v3 }
 0x4f3   :  { %4542 = vmatmul.msk.f32.gmra.mxu0 %vm71_vm2, %v5431_v37 }
 0x558   :  { %v531_v4 = vpop.f32.mrf.mxu0 }
 0x559   :  { %v543_v6 = vmul.f32 0.02, %v531_v4 }
 0x55b   :  { %v547_v7 = vadd.f32 %v543_v6, %v494_v43 }
 0x55d   :  { %v555_v9 = vsub.f32 %v547_v7, %v551_v8  ;;  %4547 = vmatmul.msk.f32.vlgmr.msrb.gmra.mxu3 %vm71_vm2, %v547_v7 }
 0x55f   :  { %4543 = vmatmul.msk.f32.vlgmr.msrb.gmra.mxu1 %vm71_vm2, %v555_v9 }
 0x560   :  { %v534_v10 = vpop.f32.mrf.mxu0 }
 0x561   :  { %v544_v11 = vmul.f32 0.02, %v534_v10 }
 0x563   :  { %v548_v12 = vadd.f32 %v544_v11, %v495_v5 }
 0x565   :  { %4548 = vmatmul.msk.f32.gmra.mxu3 %vm71_vm2, %v548_v12  ;;  %v556_v14 = vsub.f32 %v548_v12, %v552_v13 }
 0x567   :  { %4544 = vmatmul.msk.f32.gmra.mxu1 %vm71_vm2, %v556_v14 }
 0x568   :  { %v537_v15 = vpop.f32.mrf.mxu0 }
 0x569   :  { %v545_v16 = vmul.f32 0.02, %v537_v15 }
 0x56b   :  { %v549_v17 = vadd.f32 %v545_v16, %v5395_v32 }
 0x56d   :  { %4549 = vmatmul.msk.f32.gmra.mxu3 %vm71_vm2, %v549_v17  ;;  %v557_v19 = vsub.f32 %v549_v17, %v553_v18 }
 0x56f   :  { %4545 = vmatmul.msk.f32.gmra.mxu1 %vm71_vm2, %v557_v19 }
 0x570   :  { %v540_v20 = vpop.f32.mrf.mxu0 }
 0x571   :  { %v546_v22 = vmul.f32 0.02, %v540_v20 }
 0x573   :  { %v550_v23 = vadd.f32 %v546_v22, %v5391_v48 }
 0x575   :  { %4550 = vmatmul.msk.f32.gmra.mxu3 %vm71_vm2, %v550_v23  ;;  %v558_v26 = vsub.f32 %v550_v23, %v554_v24 }
 0x577   :  { %4546 = vmatmul.msk.f32.gmra.mxu1 %vm71_vm2, %v558_v26 }
 0x5dc   :  { %v593_v48 = vpop.f32.mrf.mxu1 }
 0x5dd   :  { %v594_v51 = vadd.f32 %v593_v48, %v5483_v36 }
 0x5e0   :  { %v643_v30 = vpop.f32.mrf.mxu3 }
 0x5e1   :  { %v644_v21 = vadd.f32 %v643_v30, %v5473_v29 }
 0x5e3   :  { %4775 = vtanh.f32 %v644_v21 }
 0x5e4   :  { %v596_v32 = vpop.f32.mrf.mxu1 }
 0x5e5   :  { %v597_v40 = vadd.f32 %v596_v32, %v5483_v36 }
 0x5e8   :  { %v646_v31 = vpop.f32.mrf.mxu3 }
 0x5e9   :  { %v4776_v33 = vpop.eup %4775  ;;  %v647_v35 = vadd.f32 %v646_v31, %v5473_v29 }
 0x5ea   :  { %663 = vrot.lane.b32.xlu2 %v4776_v33, %s5123_s30 }
 0x5eb   :  { %4777 = vtanh.f32 %v647_v35 }
 0x5ec   :  { %v599_v5 = vpop.f32.mrf.mxu1 }
 0x5ed   :  { %v600_v6 = vadd.f32 %v599_v5, %v5483_v36 }
 0x5f0   :  { %v649_v41 = vpop.f32.mrf.mxu3 }
 0x5f1   :  { %v4778_v42 = vpop.eup %4777  ;;  %v650_v44 = vadd.f32 %v649_v41, %v5473_v29 }
 0x5f2   :  { %665 = vrot.lane.b32.xlu0 %v4778_v42, %s5123_s30 }
 0x5f3   :  { %4779 = vtanh.f32 %v650_v44 }
 0x5f4   :  { %v602_v38 = vpop.f32.mrf.mxu1 }
 0x5f5   :  { %v603_v39 = vadd.f32 %v602_v38, %v5483_v36 }
 0x5f8   :  { %v652_v45 = vpop.f32.mrf.mxu3 }
 0x5f9   :  { %v4780_v46 = vpop.eup %4779  ;;  %v653_v27 = vadd.f32 %v652_v45, %v5473_v29 }
 0x5fa   :  { %667 = vrot.lane.b32.xlu1 %v4780_v46, %s5123_s30 }
 0x5fb   :  { %4781 = vtanh.f32 %v653_v27 }
 0x5fc   :  { %4783 = vtanh.f32 %v594_v51 }
 0x5fd   :  { %4785 = vtanh.f32 %v603_v39 }
 0x5fe   :  { %4787 = vtanh.f32 %v597_v40 }
 0x5ff   :  { %4789 = vtanh.f32 %v600_v6 }
 0x601   :  { %v4782_v47 = vpop.eup %4781 }
 0x602   :  { %669 = vrot.lane.b32.xlu2 %v4782_v47, %s5123_s30  ;;  %v4784_v52 = vpop.eup %4783 }
 0x603   :  { %v4786_v60 = vpop.eup %4785 }
 0x604   :  { %v4788_v7 = vpop.eup %4787 }
 0x605   :  { %v4790_v12 = vpop.eup %4789 }
 0x644   :  { %v664_v34 = vpop.permute.xlu2 %663 }
 0x645   :  { %v675_v54 = vsel %vm71_vm2, %v4784_v52, %v664_v34 }
 0x646   :  { %v679_v55 = vmul.f32 %v675_v54, %v675_v54 }
 0x648   :  { %v683_v43 = vsel %vm227_vm0, %v679_v55, 0.0 }
 0x649   :  { %684 = vadd.xlane.f32.xlu0 %v683_v43 }
 0x65c   :  { %v670_v1 = vpop.permute.xlu2 %669 }
 0x65d   :  { %v5491_v2 = vsel %vm71_vm2, %v4786_v60, %v670_v1 }
 0x65e   :  { %v682_v3 = vmul.f32 %v5491_v2, %v5491_v2 }
 0x660   :  { %v692_v4 = vsel %vm227_vm0, %v682_v3, 0.0 }
 0x661   :  { %693 = vadd.xlane.f32.xlu0 %v692_v4 }
 0x664   :  { %v666_v8 = vpop.permute.xlu0 %665 }
 0x665   :  { %v5498_v9 = vsel %vm71_vm2, %v4788_v7, %v666_v8 }
 0x666   :  { %v680_v10 = vmul.f32 %v5498_v9, %v5498_v9 }
 0x668   :  { %v686_v11 = vsel %vm227_vm0, %v680_v10, 0.0 }
 0x669   :  { %687 = vadd.xlane.f32.xlu2 %v686_v11 }
 0x66c   :  { %v668_v13 = vpop.permute.xlu1 %667 }
 0x66d   :  { %v5504_v14 = vsel %vm71_vm2, %v4790_v12, %v668_v13 }
 0x66e   :  { %v681_v15 = vmul.f32 %v5504_v14, %v5504_v14 }
 0x670   :  { %v689_v16 = vsel %vm227_vm0, %v681_v15, 0.0 }
 0x671   :  { %690 = vadd.xlane.f32.xlu1 %v689_v16 }
 0x6bc   :  { %v685_v17 = vpop.xlane.xlu0 %684 }
 0x6bd   :  { %4791 = vrsqrt.f32 %v685_v17  ;;  %vm702_vm14 = vcmp.eq.f32.partialorder %v685_v17, inf  ;;  %v705_v28 = vand.u32 2147483648, %v685_v17  ;;  %vm704_vm15 = vcmp.eq.f32.partialorder %v685_v17, 0.0 }
 0x6c3   :  { %v4792_v18 = vpop.eup %4791 }
 0x6c4   :  { %v696_v19 = vmul.f32 %v4792_v18, %v685_v17 }
 0x6c6   :  { %v697_v20 = vmul.f32 %v4792_v18, %v696_v19 }
 0x6c8   :  { %v698_v22 = vmul.f32 0.5, %v697_v20 }
 0x6ca   :  { %v699_v23 = vsub.f32 1.5, %v698_v22 }
 0x6cc   :  { %v700_v24 = vmul.f32 %v4792_v18, %v699_v23 }
 0x6ce   :  { %v701_v26 = vmul.f32 %v700_v24, %v685_v17 }
 0x6d0   :  { %v703_v30 = vsel %vm702_vm14, %v685_v17, %v701_v26 }
 0x6d1   :  { %v706_v21 = vsel %vm704_vm15, %v705_v28, %v703_v30 }
 0x6d2   :  { %v743_v31 = vadd.f32 1e-08, %v706_v21 }
 0x6d4   :  { %v694_v33 = vpop.xlane.xlu0 %693  ;;  %4793 = vrcp.f32 %v743_v31 }
 0x6d5   :  { %4795 = vrsqrt.f32 %v694_v33  ;;  %vm738_vm3 = vcmp.eq.f32.partialorder %v694_v33, inf  ;;  %v741_v39 = vand.u32 2147483648, %v694_v33  ;;  %vm740_vm4 = vcmp.eq.f32.partialorder %v694_v33, 0.0 }
 0x6da   :  { %v4794_v35 = vpop.eup %4793 }
 0x6db   :  { %v4796_v41 = vpop.eup %4795  ;;  %v751_v42 = vmul.f32 5.0, %v4794_v35 }
 0x6dc   :  { %v732_v44 = vmul.f32 %v4796_v41, %v694_v33  ;;  %v688_v45 = vpop.xlane.xlu2 %687 }
 0x6dd   :  { %4797 = vrsqrt.f32 %v688_v45  ;;  %v755_v27 = vmin.f32 %v751_v42, 1.0  ;;  %vm714_vm5 = vcmp.eq.f32.partialorder %v688_v45, inf  ;;  %v717_v10 = vand.u32 2147483648, %v688_v45 }
 0x6de   :  { %v733_v46 = vmul.f32 %v4796_v41, %v732_v44  ;;  %vm716_vm6 = vcmp.eq.f32.partialorder %v688_v45, 0.0 }
 0x6df   :  { %v759_v48 = vmul.f32 %v755_v27, %v675_v54 }
 0x6e0   :  { %v734_v47 = vmul.f32 0.5, %v733_v46 }
 0x6e1   :  { %v5510_v32 = vadd.f32 %v759_v48, %v5264_v57 }
 0x6e2   :  { %v735_v51 = vsub.f32 1.5, %v734_v47 }
 0x6e3   :  { %v4798_v52 = vpop.eup %4797  ;;  %768 = vst.msk [vmem:[#allocation2 + $0x20] sm:$0xff] %vm227_vm0, %v5510_v32  ;;  %4551 = vmatmul.msk.f32.vlgmr.msra.gmra.mxu2 %vm227_vm0, %v5510_v32 }
 0x6e4   :  { %v736_v34 = vmul.f32 %v4796_v41, %v735_v51  ;;  %v708_v5 = vmul.f32 %v4798_v52, %v688_v45  ;;  %v691_v55 = vpop.xlane.xlu1 %690 }
 0x6e5   :  { %4799 = vrsqrt.f32 %v691_v55  ;;  %vm726_vm7 = vcmp.eq.f32.partialorder %v691_v55, inf  ;;  %v729_v23 = vand.u32 2147483648, %v691_v55  ;;  %vm728_vm8 = vcmp.eq.f32.partialorder %v691_v55, 0.0 }
 0x6e6   :  { %v737_v43 = vmul.f32 %v736_v34, %v694_v33  ;;  %v709_v38 = vmul.f32 %v4798_v52, %v708_v5 }
 0x6e8   :  { %v739_v54 = vsel %vm738_vm3, %v694_v33, %v737_v43  ;;  %v710_v40 = vmul.f32 0.5, %v709_v38 }
 0x6e9   :  { %v742_v57 = vsel %vm740_vm4, %v741_v39, %v739_v54 }
 0x6ea   :  { %v711_v60 = vsub.f32 1.5, %v710_v40  ;;  %v746_v1 = vadd.f32 1e-08, %v742_v57 }
 0x6eb   :  { %v4800_v3 = vpop.eup %4799 }
 0x6ec   :  { %v712_v4 = vmul.f32 %v4798_v52, %v711_v60  ;;  %v720_v6 = vmul.f32 %v4800_v3, %v691_v55  ;;  %4801 = vrcp.f32 %v746_v1 }
 0x6ee   :  { %v713_v7 = vmul.f32 %v712_v4, %v688_v45  ;;  %v721_v8 = vmul.f32 %v4800_v3, %v720_v6 }
 0x6f0   :  { %v715_v11 = vsel %vm714_vm5, %v688_v45, %v713_v7  ;;  %v722_v12 = vmul.f32 0.5, %v721_v8 }
 0x6f1   :  { %v718_v13 = vsel %vm716_vm6, %v717_v10, %v715_v11 }
 0x6f2   :  { %v4802_v15 = vpop.eup %4801  ;;  %v723_v16 = vsub.f32 1.5, %v722_v12  ;;  %v744_v17 = vadd.f32 1e-08, %v718_v13 }
 0x6f3   :  { %v754_v18 = vmul.f32 5.0, %v4802_v15 }
 0x6f4   :  { %v724_v19 = vmul.f32 %v4800_v3, %v723_v16  ;;  %4803 = vrcp.f32 %v744_v17 }
 0x6f5   :  { %v758_v20 = vmin.f32 %v754_v18, 1.0 }
 0x6f6   :  { %v725_v22 = vmul.f32 %v724_v19, %v691_v55 }
 0x6f7   :  { %v762_v24 = vmul.f32 %v758_v20, %v5491_v2 }
 0x6f8   :  { %v727_v26 = vsel %vm726_vm7, %v691_v55, %v725_v22 }
 0x6f9   :  { %v730_v28 = vsel %vm728_vm8, %v729_v23, %v727_v26  ;;  %v5518_v30 = vadd.f32 %v762_v24, %v5282_v63 }
 0x6fa   :  { %v4804_v21 = vpop.eup %4803  ;;  %v745_v31 = vadd.f32 1e-08, %v730_v28 }
 0x6fb   :  { %v752_v33 = vmul.f32 5.0, %v4804_v21  ;;  %771 = vst.msk [vmem:[#allocation2 + $0x38] sm:$0xff] %vm227_vm0, %v5518_v30 }
 0x6fc   :  { %4805 = vrcp.f32 %v745_v31 }
 0x6fd   :  { %v756_v35 = vmin.f32 %v752_v33, 1.0 }
 0x6ff   :  { %v760_v41 = vmul.f32 %v756_v35, %v5498_v9 }
 0x701   :  { %v5524_v42 = vadd.f32 %v760_v41, %v5270_v59 }
 0x702   :  { %v4806_v2 = vpop.eup %4805 }
 0x703   :  { %769 = vst.msk [vmem:[#allocation2 + $0x28] sm:$0xff] %vm227_vm0, %v5524_v42  ;;  %4552 = vmatmul.msk.f32.gmra.mxu2 %vm227_vm0, %v5524_v42  ;;  %v753_v63 = vmul.f32 5.0, %v4806_v2 }
 0x705   :  { %v757_v44 = vmin.f32 %v753_v63, 1.0 }
 0x707   :  { %v761_v45 = vmul.f32 %v757_v44, %v5504_v14 }
 0x709   :  { %v5532_v46 = vadd.f32 %v761_v45, %v5276_v61 }
 0x70b   :  { %770 = vst.msk [vmem:[#allocation2 + $0x30] sm:$0xff] %vm227_vm0, %v5532_v46  ;;  %4553 = vmatmul.msk.f32.gmra.mxu2 %vm227_vm0, %v5532_v46 }
 0x713   :  { %4554 = vmatmul.msk.f32.gmra.mxu2 %vm227_vm0, %v5518_v30 }
 0x766   :  { %v809_v59 = vpop.f32.mrf.mxu2 }
 0x767   :  { %v810_v9 = vadd.f32 %v809_v59, %v5289_v0 }
 0x769   :  { %v821_v27 = vsel %vm71_vm2, %v810_v9, 0.0 }
 0x76a   :  { %822 = vadd.xlane.f32.xlu2 %v821_v27 }
 0x786   :  { %v812_v47 = vpop.f32.mrf.mxu2 }
 0x787   :  { %v813_v14 = vadd.f32 %v812_v47, %v5289_v0 }
 0x789   :  { %v824_v61 = vsel %vm71_vm2, %v813_v14, 0.0 }
 0x78a   :  { %825 = vadd.xlane.f32.xlu1 %v824_v61 }
 0x78e   :  { %v815_v48 = vpop.f32.mrf.mxu2 }
 0x78f   :  { %v816_v51 = vadd.f32 %v815_v48, %v5289_v0 }
 0x791   :  { %v827_v52 = vsel %vm71_vm2, %v816_v51, 0.0 }
 0x792   :  { %828 = vadd.xlane.f32.xlu0 %v827_v52 }
 0x796   :  { %v818_v34 = vpop.f32.mrf.mxu2 }
 0x797   :  { %v819_v5 = vadd.f32 %v818_v34, %v5289_v0 }
 0x799   :  { %v830_v55 = vsel %vm71_vm2, %v819_v5, 0.0 }
 0x79a   :  { %831 = vadd.xlane.f32.xlu2 %v830_v55 }
 0x7dd   :  { %v823_v43 = vpop.xlane.xlu2 %822 }
 0x7de   :  { %v833_v38 = vmul.f32 %v823_v43, %v5181_v25 }
 0x7e0   :  { %v837_v39 = vsub.f32 %v810_v9, %v833_v38 }
 0x7e2   :  { %v841_v54 = vmul.f32 %v837_v39, %v837_v39 }
 0x7e4   :  { %v845_v40 = vsel %vm71_vm2, %v841_v54, 0.0 }
 0x7e5   :  { %846 = vadd.xlane.f32.xlu1 %v845_v40 }
 0x7fd   :  { %v826_v57 = vpop.xlane.xlu1 %825 }
 0x7fe   :  { %v834_v60 = vmul.f32 %v826_v57, %v5181_v25 }
 0x800   :  { %v838_v1 = vsub.f32 %v813_v14, %v834_v60 }
 0x802   :  { %v842_v3 = vmul.f32 %v838_v1, %v838_v1 }
 0x804   :  { %v848_v4 = vsel %vm71_vm2, %v842_v3, 0.0 }
 0x805   :  { %849 = vadd.xlane.f32.xlu0 %v848_v4  ;;  %v829_v6 = vpop.xlane.xlu0 %828 }
 0x806   :  { %v835_v7 = vmul.f32 %v829_v6, %v5181_v25 }
 0x808   :  { %v5553_v8 = vsub.f32 %v816_v51, %v835_v7 }
 0x80a   :  { %v843_v10 = vmul.f32 %v5553_v8, %v5553_v8 }
 0x80c   :  { %v851_v11 = vsel %vm71_vm2, %v843_v10, 0.0 }
 0x80d   :  { %v832_v12 = vpop.xlane.xlu2 %831  ;;  %852 = vadd.xlane.f32.xlu2 %v851_v11 }
 0x80e   :  { %v836_v13 = vmul.f32 %v832_v12, %v5181_v25 }
 0x810   :  { %v5559_v15 = vsub.f32 %v819_v5, %v836_v13 }
 0x812   :  { %v844_v16 = vmul.f32 %v5559_v15, %v5559_v15 }
 0x814   :  { %v854_v17 = vsel %vm71_vm2, %v844_v16, 0.0 }
 0x815   :  { %855 = vadd.xlane.f32.xlu1 %v854_v17 }
 0x858   :  { %v847_v18 = vpop.xlane.xlu1 %846 }
 0x859   :  { %v857_v19 = vmul.f32 %v847_v18, %v5181_v25 }
 0x85b   :  { %v861_v20 = vadd.f32 1e-05, %v857_v19 }
 0x85d   :  { %4807 = vrsqrt.f32 %v861_v20  ;;  %vm871_vm10 = vweird.f32 %v861_v20 }
 0x863   :  { %v4808_v22 = vpop.eup %4807 }
 0x864   :  { %v866_v23 = vmul.f32 %v4808_v22, %v861_v20  ;;  %vm872_vm9 = vweird.f32 %v4808_v22 }
 0x865   :  { %vm873_vm11 = vmor %vm871_vm10, %vm872_vm9 }
 0x866   :  { %v867_v24 = vmul.f32 %v4808_v22, %v866_v23 }
 0x868   :  { %v868_v26 = vmul.f32 0.5, %v867_v24 }
 0x86a   :  { %v869_v28 = vsub.f32 1.5, %v868_v26 }
 0x86c   :  { %v870_v21 = vmul.f32 %v4808_v22, %v869_v28 }
 0x86e   :  { %v874_v31 = vsel %vm873_vm11, %v4808_v22, %v870_v21 }
 0x86f   :  { %v905_v33 = vmul.f32 %v874_v31, %v837_v39 }
 0x871   :  { %v909_v35 = vmul.f32 %v905_v33, %v5347_v56 }
 0x873   :  { %v913_v41 = vadd.f32 %v909_v35, %v5350_v62 }
 0x875   :  { %v917_v2 = vmax.f32 %v913_v41, 0.0 }
 0x877   :  { %4555 = vmatmul.msk.f32.vlgmr.msra.gmra.mxu0 %vm71_vm2, %v917_v2 }
 0x878   :  { %v850_v63 = vpop.xlane.xlu0 %849 }
 0x879   :  { %v858_v44 = vmul.f32 %v850_v63, %v5181_v25 }
 0x87b   :  { %v862_v45 = vadd.f32 1e-05, %v858_v44 }
 0x87d   :  { %4809 = vrsqrt.f32 %v862_v45  ;;  %vm881_vm13 = vweird.f32 %v862_v45 }
 0x880   :  { %v853_v59 = vpop.xlane.xlu2 %852 }
 0x881   :  { %v859_v9 = vmul.f32 %v853_v59, %v5181_v25 }
 0x883   :  { %v4810_v27 = vpop.eup %4809  ;;  %v863_v47 = vadd.f32 1e-05, %v859_v9 }
 0x884   :  { %v876_v14 = vmul.f32 %v4810_v27, %v862_v45  ;;  %vm882_vm12 = vweird.f32 %v4810_v27 }
 0x885   :  { %4811 = vrsqrt.f32 %v863_v47  ;;  %vm883_vm14 = vmor %vm881_vm13, %vm882_vm12  ;;  %vm891_vm3 = vweird.f32 %v863_v47 }
 0x886   :  { %v877_v61 = vmul.f32 %v4810_v27, %v876_v14 }
 0x888   :  { %v878_v48 = vmul.f32 0.5, %v877_v61  ;;  %v856_v51 = vpop.xlane.xlu1 %855 }
 0x889   :  { %v860_v52 = vmul.f32 %v856_v51, %v5181_v25 }
 0x88a   :  { %v879_v34 = vsub.f32 1.5, %v878_v48 }
 0x88b   :  { %v4812_v5 = vpop.eup %4811  ;;  %v864_v55 = vadd.f32 1e-05, %v860_v52 }
 0x88c   :  { %v880_v43 = vmul.f32 %v4810_v27, %v879_v34  ;;  %v886_v38 = vmul.f32 %v4812_v5, %v863_v47  ;;  %vm892_vm15 = vweird.f32 %v4812_v5 }
 0x88d   :  { %4813 = vrsqrt.f32 %v864_v55  ;;  %vm893_vm4 = vmor %vm891_vm3, %vm892_vm15  ;;  %vm901_vm6 = vweird.f32 %v864_v55 }
 0x88e   :  { %v884_v39 = vsel %vm883_vm14, %v4810_v27, %v880_v43  ;;  %v887_v54 = vmul.f32 %v4812_v5, %v886_v38 }
 0x88f   :  { %v906_v40 = vmul.f32 %v884_v39, %v838_v1 }
 0x890   :  { %v888_v57 = vmul.f32 0.5, %v887_v54 }
 0x891   :  { %v910_v60 = vmul.f32 %v906_v40, %v5347_v56 }
 0x892   :  { %v889_v3 = vsub.f32 1.5, %v888_v57 }
 0x893   :  { %v4814_v4 = vpop.eup %4813  ;;  %v914_v6 = vadd.f32 %v910_v60, %v5350_v62 }
 0x894   :  { %v890_v7 = vmul.f32 %v4812_v5, %v889_v3  ;;  %v896_v10 = vmul.f32 %v4814_v4, %v864_v55  ;;  %vm902_vm5 = vweird.f32 %v4814_v4 }
 0x895   :  { %v918_v11 = vmax.f32 %v914_v6, 0.0  ;;  %vm903_vm7 = vmor %vm901_vm6, %vm902_vm5 }
 0x896   :  { %v894_v12 = vsel %vm893_vm4, %v4812_v5, %v890_v7  ;;  %v897_v13 = vmul.f32 %v4814_v4, %v896_v10 }
 0x897   :  { %4556 = vmatmul.msk.f32.gmra.mxu0 %vm71_vm2, %v918_v11  ;;  %v907_v16 = vmul.f32 %v894_v12, %v5553_v8 }
 0x898   :  { %v898_v1 = vmul.f32 0.5, %v897_v13 }
 0x899   :  { %v911_v17 = vmul.f32 %v907_v16, %v5347_v56 }
 0x89a   :  { %v899_v18 = vsub.f32 1.5, %v898_v1 }
 0x89b   :  { %v915_v19 = vadd.f32 %v911_v17, %v5350_v62 }
 0x89c   :  { %v900_v20 = vmul.f32 %v4814_v4, %v899_v18 }
 0x89d   :  { %v919_v22 = vmax.f32 %v915_v19, 0.0 }
 0x89e   :  { %v904_v23 = vsel %vm903_vm7, %v4814_v4, %v900_v20 }
 0x89f   :  { %4557 = vmatmul.msk.f32.gmra.mxu0 %vm71_vm2, %v919_v22  ;;  %v908_v24 = vmul.f32 %v904_v23, %v5559_v15 }
 0x8a1   :  { %v912_v26 = vmul.f32 %v908_v24, %v5347_v56 }
 0x8a3   :  { %v916_v8 = vadd.f32 %v912_v26, %v5350_v62 }
 0x8a5   :  { %v920_v28 = vmax.f32 %v916_v8, 0.0 }
 0x8a7   :  { %4558 = vmatmul.msk.f32.gmra.mxu0 %vm71_vm2, %v920_v28 }
 0x8f4   :  { %v954_v21 = vpop.f32.mrf.mxu0 }
 0x8f5   :  { %v5596_v27 = vadd.f32 %v954_v21, %v5369_v49 }
 0x8f7   :  { %v966_v14 = vmul.f32 %v5596_v27, %v5596_v27 }
 0x8f9   :  { %v970_v61 = vsel %vm71_vm2, %v966_v14, 0.0 }
 0x914   :  { %v957_v31 = vpop.f32.mrf.mxu0 }
 0x915   :  { %v5583_v33 = vadd.f32 %v957_v31, %v5369_v49 }
 0x917   :  { %v967_v35 = vmul.f32 %v5583_v33, %v5583_v33 }
 0x919   :  { %v973_v41 = vsel %vm71_vm2, %v967_v35, 0.0 }
 0x91a   :  { %974 = vadd.xlane.f32.xlu1 %v973_v41 }
 0x91c   :  { %v960_v2 = vpop.f32.mrf.mxu0 }
 0x91d   :  { %v5589_v15 = vadd.f32 %v960_v2, %v5369_v49 }
 0x91f   :  { %v968_v63 = vmul.f32 %v5589_v15, %v5589_v15 }
 0x921   :  { %v976_v44 = vsel %vm71_vm2, %v968_v63, 0.0 }
 0x922   :  { %977 = vadd.xlane.f32.xlu2 %v976_v44 }
 0x924   :  { %v963_v45 = vpop.f32.mrf.mxu0 }
 0x925   :  { %v964_v59 = vadd.f32 %v963_v45, %v5369_v49 }
 0x927   :  { %v969_v9 = vmul.f32 %v964_v59, %v964_v59 }
 0x929   :  { %v979_v47 = vsel %vm71_vm2, %v969_v9, 0.0 }
 0x92a   :  { %980 = vadd.xlane.f32.xlu0 %v979_v47 }
 0x932   :  { %971 = vadd.xlane.f32.xlu0 %v970_v61  ;;  %v1087_v61 = vmul.f32 0.03, %v5510_v32 }
 0x98d   :  { %v975_v48 = vpop.xlane.xlu1 %974 }
 0x98e   :  { %v983_v51 = vadd.f32 1e-24, %v975_v48 }
 0x990   :  { %4815 = vrsqrt.f32 %v983_v51  ;;  %vm1002_vm12 = vweird.f32 %v983_v51 }
 0x995   :  { %v978_v52 = vpop.xlane.xlu2 %977 }
 0x996   :  { %v984_v34 = vadd.f32 1e-24, %v978_v52  ;;  %v4816_v5 = vpop.eup %4815 }
 0x997   :  { %v997_v55 = vmul.f32 %v4816_v5, %v983_v51  ;;  %vm1003_vm9 = vweird.f32 %v4816_v5 }
 0x998   :  { %4817 = vrsqrt.f32 %v984_v34  ;;  %vm1012_vm10 = vweird.f32 %v984_v34  ;;  %vm1004_vm14 = vmor %vm1002_vm12, %vm1003_vm9 }
 0x999   :  { %v998_v40 = vmul.f32 %v4816_v5, %v997_v55 }
 0x99b   :  { %v999_v3 = vmul.f32 0.5, %v998_v40 }
 0x99d   :  { %v981_v43 = vpop.xlane.xlu0 %980  ;;  %v1000_v12 = vsub.f32 1.5, %v999_v3 }
 0x99e   :  { %v4818_v38 = vpop.eup %4817  ;;  %v985_v39 = vadd.f32 1e-24, %v981_v43 }
 0x99f   :  { %v1007_v54 = vmul.f32 %v4818_v38, %v984_v34  ;;  %vm1013_vm8 = vweird.f32 %v4818_v38  ;;  %v1001_v17 = vmul.f32 %v4816_v5, %v1000_v12 }
 0x9a0   :  { %4819 = vrsqrt.f32 %v985_v39  ;;  %vm1014_vm13 = vmor %vm1012_vm10, %vm1013_vm8  ;;  %vm1022_vm15 = vweird.f32 %v985_v39 }
 0x9a1   :  { %v1008_v57 = vmul.f32 %v4818_v38, %v1007_v54  ;;  %v1005_v8 = vsel %vm1004_vm14, %v4816_v5, %v1001_v17  ;;  %v1089_v5 = vmul.f32 0.03, %v5532_v46  ;;  %v1090_v54 = vmul.f32 0.03, %v5518_v30 }
 0x9a2   :  { %v1027_v41 = vmul.f32 5.656854, %v1005_v8 }
 0x9a3   :  { %v1009_v60 = vmul.f32 0.5, %v1008_v57 }
 0x9a4   :  { %v1031_v45 = vmul.f32 %v1027_v41, %v5583_v33 }
 0x9a5   :  { %v972_v4 = vpop.xlane.xlu0 %971  ;;  %v1010_v10 = vsub.f32 1.5, %v1009_v60 }
 0x9a6   :  { %v4820_v6 = vpop.eup %4819  ;;  %v982_v7 = vadd.f32 1e-24, %v972_v4 }
 0x9a7   :  { %v1017_v11 = vmul.f32 %v4820_v6, %v985_v39  ;;  %v1011_v16 = vmul.f32 %v4818_v38, %v1010_v10  ;;  %vm1023_vm11 = vweird.f32 %v4820_v6 }
 0x9a8   :  { %4821 = vrsqrt.f32 %v982_v7  ;;  %vm1024_vm3 = vmor %vm1022_vm15, %vm1023_vm11  ;;  %vm992_vm5 = vweird.f32 %v982_v7 }
 0x9a9   :  { %v1018_v13 = vmul.f32 %v4820_v6, %v1017_v11  ;;  %v1015_v23 = vsel %vm1014_vm13, %v4818_v38, %v1011_v16 }
 0x9aa   :  { %v1028_v21 = vmul.f32 5.656854, %v1015_v23 }
 0x9ab   :  { %v1019_v1 = vmul.f32 0.5, %v1018_v13 }
 0x9ac   :  { %v1032_v63 = vmul.f32 %v1028_v21, %v5589_v15 }
 0x9ad   :  { %v1020_v18 = vsub.f32 1.5, %v1019_v1 }
 0x9ae   :  { %v4822_v19 = vpop.eup %4821 }
 0x9af   :  { %v1021_v20 = vmul.f32 %v4820_v6, %v1020_v18  ;;  %v987_v22 = vmul.f32 %v4822_v19, %v982_v7  ;;  %vm993_vm4 = vweird.f32 %v4822_v19 }
 0x9b0   :  { %vm994_vm6 = vmor %vm992_vm5, %vm993_vm4 }
 0x9b1   :  { %v1025_v24 = vsel %vm1024_vm3, %v4820_v6, %v1021_v20  ;;  %v988_v26 = vmul.f32 %v4822_v19, %v987_v22 }
 0x9b2   :  { %v1029_v28 = vmul.f32 5.656854, %v1025_v24 }
 0x9b3   :  { %v989_v31 = vmul.f32 0.5, %v988_v26 }
 0x9b4   :  { %v1033_v35 = vmul.f32 %v1029_v28, %v964_v59 }
 0x9b5   :  { %v990_v2 = vsub.f32 1.5, %v989_v31 }
 0x9b6   :  { %1062 = vmatpush.msra.mxu1 %v1033_v35 }
 0x9b7   :  { %v991_v44 = vmul.f32 %v4822_v19, %v990_v2 }
 0x9b8   :  { %1063 = vmatpush.msra.mxu1 %v1032_v63 }
 0x9b9   :  { %v995_v9 = vsel %vm994_vm6, %v4822_v19, %v991_v44 }
 0x9ba   :  { %1064 = vmatpush.msra.mxu1 %v1031_v45  ;;  %v1026_v47 = vmul.f32 5.656854, %v995_v9 }
 0x9bc   :  { %v1030_v14 = vmul.f32 %v1026_v47, %v5596_v27 }
 0x9be   :  { %1065 = vmatpush.msra.mxu1 %v1030_v14 }
 0x9bf   :  { %4559 = vmatmul.msk.f32.vlgmr.msra.gmra.mxu1 %vm71_vm2, %v5406_v53 }
 0x9c7   :  { %4560 = vmatmul.msk.f32.gmra.mxu1 %vm71_vm2, %v5415_v50  ;;  %v1088_v50 = vmul.f32 0.03, %v5524_v42 }
 0x9cf   :  { %4561 = vmatmul.msk.f32.gmra.mxu1 %vm71_vm2, %v5424_v58 }
 0x9d7   :  { %4562 = vmatmul.msk.f32.gmra.mxu1 %vm71_vm2, %v5431_v37 }
 0xa3c   :  { %v1067_v15 = vpop.f32.mrf.mxu1 }
 0xa3d   :  { %v1079_v33 = vmul.f32 0.02, %v1067_v15 }
 0xa3f   :  { %v1083_v59 = vadd.f32 %v1079_v33, %v1030_v14 }
 0xa41   :  { %v1091_v48 = vsub.f32 %v1083_v59, %v1087_v61  ;;  %4567 = vmatmul.msk.f32.vlgmr.msrb.gmra.mxu2 %vm71_vm2, %v1083_v59 }
 0xa43   :  { %4563 = vmatmul.msk.f32.vlgmr.msra.gmra.mxu3 %vm71_vm2, %v1091_v48 }
 0xa44   :  { %v1070_v53 = vpop.f32.mrf.mxu1 }
 0xa45   :  { %v1080_v27 = vmul.f32 0.02, %v1070_v53 }
 0xa47   :  { %v1084_v51 = vadd.f32 %v1080_v27, %v1031_v45 }
 0xa49   :  { %4568 = vmatmul.msk.f32.gmra.mxu2 %vm71_vm2, %v1084_v51  ;;  %v1092_v58 = vsub.f32 %v1084_v51, %v1088_v50  ;;  %v5664_v51 = vld [vmem:[%s7175_s2 + $0x60] sm:$0xff]  ;;  %v5670_v50 = vld [vmem:[%s7175_s2 + $0x58] sm:$0xff] }
 0xa4a   :  { %1334 = vmatpush.msrb.mxu0 %v5664_v51 }
 0xa4b   :  { %4564 = vmatmul.msk.f32.gmra.mxu3 %vm71_vm2, %v1092_v58  ;;  %v5676_v58 = vld [vmem:[%s7175_s2 + $0x50] sm:$0xff] }
 0xa4c   :  { %v1073_v37 = vpop.f32.mrf.mxu1  ;;  %1335 = vmatpush.msrb.mxu0 %v5670_v50 }
 0xa4d   :  { %v1081_v52 = vmul.f32 0.02, %v1073_v37  ;;  %v5682_v37 = vld [vmem:[%s7175_s2 + $0x48] sm:$0xff] }
 0xa4e   :  { %1336 = vmatpush.msrb.mxu0 %v5676_v58 }
 0xa4f   :  { %v1085_v34 = vadd.f32 %v1081_v52, %v1032_v63 }
 0xa50   :  { %1337 = vmatpush.msrb.mxu0 %v5682_v37 }
 0xa51   :  { %4569 = vmatmul.msk.f32.gmra.mxu2 %vm71_vm2, %v1085_v34  ;;  %v1093_v55 = vsub.f32 %v1085_v34, %v1089_v5  ;;  %v5688_v34 = vld [vmem:[%s7175_s2 + $0x40] sm:$0xff]  ;;  %v5694_v5 = vld [vmem:[%s7175_s2 + $0x38] sm:$0xff] }
 0xa52   :  { %1338 = vmatpush.msrb.mxu0 %v5688_v34 }
 0xa53   :  { %4565 = vmatmul.msk.f32.gmra.mxu3 %vm71_vm2, %v1093_v55  ;;  %v5700_v55 = vld [vmem:[%s7175_s2 + $0x30] sm:$0xff] }
 0xa54   :  { %v1076_v43 = vpop.f32.mrf.mxu1  ;;  %1339 = vmatpush.msrb.mxu0 %v5694_v5 }
 0xa55   :  { %v1082_v38 = vmul.f32 0.02, %v1076_v43  ;;  %v5706_v43 = vld [vmem:[%s7175_s2 + $0x28] sm:$0xff] }
 0xa56   :  { %1340 = vmatpush.msrb.mxu0 %v5700_v55 }
 0xa57   :  { %v1086_v39 = vadd.f32 %v1082_v38, %v1033_v35 }
 0xa58   :  { %1341 = vmatpush.msrb.mxu0 %v5706_v43 }
 0xa59   :  { %4570 = vmatmul.msk.f32.gmra.mxu2 %vm71_vm2, %v1086_v39  ;;  %v1094_v40 = vsub.f32 %v1086_v39, %v1090_v54 }
 0xa5b   :  { %4566 = vmatmul.msk.f32.gmra.mxu3 %vm71_vm2, %v1094_v40 }
 0xac4   :  { %v1177_v57 = vpop.f32.mrf.mxu2 }
 0xac5   :  { %v1178_v60 = vadd.f32 %v1177_v57, %v5473_v29 }
 0xac6   :  { %v1128_v17 = vpop.f32.mrf.mxu3 }
 0xac7   :  { %4823 = vtanh.f32 %v1178_v60  ;;  %v1129_v18 = vadd.f32 %v1128_v17, %v5483_v36 }
 0xacc   :  { %v1180_v3 = vpop.f32.mrf.mxu2 }
 0xacd   :  { %v4824_v4 = vpop.eup %4823  ;;  %v1181_v6 = vadd.f32 %v1180_v3, %v5473_v29 }
 0xace   :  { %1197 = vrot.lane.b32.xlu2 %v4824_v4, %s5123_s30  ;;  %v1131_v19 = vpop.f32.mrf.mxu3 }
 0xacf   :  { %4825 = vtanh.f32 %v1181_v6  ;;  %v1132_v31 = vadd.f32 %v1131_v19, %v5483_v36 }
 0xad4   :  { %v1183_v7 = vpop.f32.mrf.mxu2 }
 0xad5   :  { %v4826_v10 = vpop.eup %4825  ;;  %v1184_v11 = vadd.f32 %v1183_v7, %v5473_v29 }
 0xad6   :  { %1199 = vrot.lane.b32.xlu1 %v4826_v10, %s5123_s30  ;;  %v1134_v23 = vpop.f32.mrf.mxu3 }
 0xad7   :  { %4827 = vtanh.f32 %v1184_v11  ;;  %v1135_v45 = vadd.f32 %v1134_v23, %v5483_v36 }
 0xadc   :  { %v1186_v12 = vpop.f32.mrf.mxu2 }
 0xadd   :  { %v4828_v13 = vpop.eup %4827  ;;  %v1187_v16 = vadd.f32 %v1186_v12, %v5473_v29 }
 0xade   :  { %1201 = vrot.lane.b32.xlu0 %v4828_v13, %s5123_s30  ;;  %v1137_v28 = vpop.f32.mrf.mxu3 }
 0xadf   :  { %4829 = vtanh.f32 %v1187_v16  ;;  %v1138_v21 = vadd.f32 %v1137_v28, %v5483_v36 }
 0xae0   :  { %4831 = vtanh.f32 %v1129_v18 }
 0xae1   :  { %4833 = vtanh.f32 %v1138_v21 }
 0xae2   :  { %4835 = vtanh.f32 %v1132_v31 }
 0xae3   :  { %4837 = vtanh.f32 %v1135_v45 }
 0xae5   :  { %v4830_v1 = vpop.eup %4829 }
 0xae6   :  { %1203 = vrot.lane.b32.xlu2 %v4830_v1, %s5123_s30  ;;  %v4832_v20 = vpop.eup %4831 }
 0xae7   :  { %v4834_v35 = vpop.eup %4833 }
 0xae8   :  { %v4836_v9 = vpop.eup %4835 }
 0xae9   :  { %v4838_v59 = vpop.eup %4837 }
 0xb28   :  { %v1198_v22 = vpop.permute.xlu2 %1197 }
 0xb29   :  { %v5635_v24 = vsel %vm71_vm2, %v4832_v20, %v1198_v22 }
 0xb2a   :  { %v1213_v26 = vmul.f32 %v5635_v24, %v5635_v24 }
 0xb2c   :  { %v1217_v8 = vsel %vm227_vm0, %v1213_v26, 0.0 }
 0xb2d   :  { %1218 = vadd.xlane.f32.xlu0 %v1217_v8 }
 0xb40   :  { %v1204_v41 = vpop.permute.xlu2 %1203 }
 0xb41   :  { %v5643_v2 = vsel %vm71_vm2, %v4834_v35, %v1204_v41 }
 0xb42   :  { %v1216_v63 = vmul.f32 %v5643_v2, %v5643_v2 }
 0xb44   :  { %v1226_v44 = vsel %vm227_vm0, %v1216_v63, 0.0 }
 0xb45   :  { %1227 = vadd.xlane.f32.xlu0 %v1226_v44 }
 0xb48   :  { %v1200_v47 = vpop.permute.xlu1 %1199 }
 0xb49   :  { %v5650_v14 = vsel %vm71_vm2, %v4836_v9, %v1200_v47 }
 0xb4a   :  { %v1214_v15 = vmul.f32 %v5650_v14, %v5650_v14 }
 0xb4c   :  { %v1220_v33 = vsel %vm227_vm0, %v1214_v15, 0.0 }
 0xb4d   :  { %1221 = vadd.xlane.f32.xlu1 %v1220_v33 }
 0xb50   :  { %v1202_v61 = vpop.permute.xlu0 %1201 }
 0xb51   :  { %v5656_v48 = vsel %vm71_vm2, %v4838_v59, %v1202_v61 }
 0xb52   :  { %v1215_v53 = vmul.f32 %v5656_v48, %v5656_v48 }
 0xb54   :  { %v1223_v27 = vsel %vm227_vm0, %v1215_v53, 0.0 }
 0xb55   :  { %1224 = vadd.xlane.f32.xlu2 %v1223_v27 }
 0xba0   :  { %v1219_v52 = vpop.xlane.xlu0 %1218 }
 0xba1   :  { %4839 = vrsqrt.f32 %v1219_v52  ;;  %vm1236_vm7 = vcmp.eq.f32.partialorder %v1219_v52, inf  ;;  %v1239_v4 = vand.u32 2147483648, %v1219_v52  ;;  %vm1238_vm8 = vcmp.eq.f32.partialorder %v1219_v52, 0.0 }
 0xba7   :  { %v4840_v38 = vpop.eup %4839 }
 0xba8   :  { %v1230_v39 = vmul.f32 %v4840_v38, %v1219_v52 }
 0xbaa   :  { %v1231_v54 = vmul.f32 %v4840_v38, %v1230_v39 }
 0xbac   :  { %v1232_v40 = vmul.f32 0.5, %v1231_v54 }
 0xbae   :  { %v1233_v57 = vsub.f32 1.5, %v1232_v40 }
 0xbb0   :  { %v1234_v60 = vmul.f32 %v4840_v38, %v1233_v57 }
 0xbb2   :  { %v1235_v3 = vmul.f32 %v1234_v60, %v1219_v52 }
 0xbb4   :  { %v1237_v6 = vsel %vm1236_vm7, %v1219_v52, %v1235_v3 }
 0xbb5   :  { %v1240_v7 = vsel %vm1238_vm8, %v1239_v4, %v1237_v6 }
 0xbb6   :  { %v1277_v10 = vadd.f32 1e-08, %v1240_v7 }
 0xbb8   :  { %v1228_v11 = vpop.xlane.xlu0 %1227  ;;  %4841 = vrcp.f32 %v1277_v10 }
 0xbb9   :  { %4843 = vrsqrt.f32 %v1228_v11  ;;  %vm1272_vm9 = vcmp.eq.f32.partialorder %v1228_v11, inf  ;;  %v1275_v63 = vand.u32 2147483648, %v1228_v11  ;;  %vm1274_vm10 = vcmp.eq.f32.partialorder %v1228_v11, 0.0 }
 0xbbe   :  { %v4842_v12 = vpop.eup %4841 }
 0xbbf   :  { %v4844_v13 = vpop.eup %4843  ;;  %v1285_v16 = vmul.f32 5.0, %v4842_v12 }
 0xbc0   :  { %v1266_v1 = vmul.f32 %v4844_v13, %v1228_v11  ;;  %v1222_v17 = vpop.xlane.xlu1 %1221 }
 0xbc1   :  { %4845 = vrsqrt.f32 %v1222_v17  ;;  %v1289_v19 = vmin.f32 %v1285_v16, 1.0  ;;  %vm1248_vm11 = vcmp.eq.f32.partialorder %v1222_v17, inf  ;;  %v1251_v53 = vand.u32 2147483648, %v1222_v17 }
 0xbc2   :  { %v1267_v18 = vmul.f32 %v4844_v13, %v1266_v1  ;;  %vm1250_vm12 = vcmp.eq.f32.partialorder %v1222_v17, 0.0 }
 0xbc3   :  { %v1293_v22 = vmul.f32 %v1289_v19, %v5635_v24 }
 0xbc4   :  { %v1268_v20 = vmul.f32 0.5, %v1267_v18 }
 0xbc5   :  { %v5711_v26 = vadd.f32 %v1293_v22, %v5510_v32 }
 0xbc6   :  { %v1269_v23 = vsub.f32 1.5, %v1268_v20 }
 0xbc7   :  { %v4846_v8 = vpop.eup %4845  ;;  %1302 = vst.msk [vmem:[#allocation2 + $0x40] sm:$0xff] %vm227_vm0, %v5711_v26  ;;  %4571 = vmatmul.msk.f32.vlgmr.msrb.gmra.mxu0 %vm227_vm0, %v5711_v26 }
 0xbc8   :  { %v1270_v28 = vmul.f32 %v4844_v13, %v1269_v23  ;;  %v1242_v21 = vmul.f32 %v4846_v8, %v1222_v17  ;;  %v1225_v31 = vpop.xlane.xlu2 %1224 }
 0xbc9   :  { %4847 = vrsqrt.f32 %v1225_v31  ;;  %vm1260_vm13 = vcmp.eq.f32.partialorder %v1225_v31, inf  ;;  %v1263_v6 = vand.u32 2147483648, %v1225_v31  ;;  %vm1262_vm14 = vcmp.eq.f32.partialorder %v1225_v31, 0.0 }
 0xbca   :  { %v1271_v35 = vmul.f32 %v1270_v28, %v1228_v11  ;;  %v1243_v41 = vmul.f32 %v4846_v8, %v1242_v21 }
 0xbcc   :  { %v1273_v24 = vsel %vm1272_vm9, %v1228_v11, %v1271_v35  ;;  %v1244_v44 = vmul.f32 0.5, %v1243_v41 }
 0xbcd   :  { %v1276_v32 = vsel %vm1274_vm10, %v1275_v63, %v1273_v24 }
 0xbce   :  { %v1245_v45 = vsub.f32 1.5, %v1244_v44  ;;  %v1280_v9 = vadd.f32 1e-08, %v1276_v32 }
 0xbcf   :  { %v4848_v47 = vpop.eup %4847 }
 0xbd0   :  { %v1246_v15 = vmul.f32 %v4846_v8, %v1245_v45  ;;  %v1254_v33 = vmul.f32 %v4848_v47, %v1225_v31  ;;  %4849 = vrcp.f32 %v1280_v9 }
 0xbd2   :  { %v1247_v59 = vmul.f32 %v1246_v15, %v1222_v17  ;;  %v1255_v61 = vmul.f32 %v4848_v47, %v1254_v33 }
 0xbd4   :  { %v1249_v27 = vsel %vm1248_vm11, %v1222_v17, %v1247_v59  ;;  %v1256_v52 = vmul.f32 0.5, %v1255_v61 }
 0xbd5   :  { %v1252_v38 = vsel %vm1250_vm12, %v1251_v53, %v1249_v27 }
 0xbd6   :  { %v4850_v39 = vpop.eup %4849  ;;  %v1257_v54 = vsub.f32 1.5, %v1256_v52  ;;  %v1278_v40 = vadd.f32 1e-08, %v1252_v38 }
 0xbd7   :  { %v1288_v57 = vmul.f32 5.0, %v4850_v39 }
 0xbd8   :  { %v1258_v60 = vmul.f32 %v4848_v47, %v1257_v54  ;;  %4851 = vrcp.f32 %v1278_v40 }
 0xbd9   :  { %v1292_v3 = vmin.f32 %v1288_v57, 1.0 }
 0xbda   :  { %v1259_v4 = vmul.f32 %v1258_v60, %v1225_v31 }
 0xbdb   :  { %v1296_v7 = vmul.f32 %v1292_v3, %v5643_v2 }
 0xbdc   :  { %v1261_v10 = vsel %vm1260_vm13, %v1225_v31, %v1259_v4 }
 0xbdd   :  { %v1264_v11 = vsel %vm1262_vm14, %v1263_v6, %v1261_v10  ;;  %v5719_v12 = vadd.f32 %v1296_v7, %v5518_v30  ;;  %v5772_v6 = vld [vmem:[%s7175_s2 + $0x80] sm:$0xff]  ;;  %v5778_v7 = vld [vmem:[%s7175_s2 + $0x78] sm:$0xff]  ;;  %v5783_v10 = vld [vmem:[%s7175_s2 + $0x70] sm:$0xff] }
 0xbde   :  { %v4852_v13 = vpop.eup %4851  ;;  %v1279_v16 = vadd.f32 1e-08, %v1264_v11  ;;  %1483 = vmatpush.msrb.mxu1 %v5772_v6  ;;  %v5789_v11 = vld [vmem:[%s7175_s2 + $0x68] sm:$0xff] }
 0xbdf   :  { %v1286_v1 = vmul.f32 5.0, %v4852_v13  ;;  %1305 = vst.msk [vmem:[#allocation2 + $0x58] sm:$0xff] %vm227_vm0, %v5719_v12 }
 0xbe0   :  { %4853 = vrcp.f32 %v1279_v16  ;;  %1484 = vmatpush.msrb.mxu1 %v5778_v7 }
 0xbe1   :  { %v1290_v17 = vmin.f32 %v1286_v1, 1.0 }
 0xbe2   :  { %1485 = vmatpush.msrb.mxu1 %v5783_v10 }
 0xbe3   :  { %v1294_v18 = vmul.f32 %v1290_v17, %v5650_v14 }
 0xbe4   :  { %1486 = vmatpush.msrb.mxu1 %v5789_v11 }
 0xbe5   :  { %v5725_v19 = vadd.f32 %v1294_v18, %v5524_v42 }
 0xbe6   :  { %v4854_v2 = vpop.eup %4853  ;;  %1868 = vmatpush.msra.mxu1 %v5664_v51 }
 0xbe7   :  { %1303 = vst.msk [vmem:[#allocation2 + $0x48] sm:$0xff] %vm227_vm0, %v5725_v19  ;;  %4572 = vmatmul.msk.f32.gmra.mxu0 %vm227_vm0, %v5725_v19  ;;  %v1287_v30 = vmul.f32 5.0, %v4854_v2 }
 0xbe8   :  { %1869 = vmatpush.msra.mxu1 %v5670_v50 }
 0xbe9   :  { %v1291_v20 = vmin.f32 %v1287_v30, 1.0 }
 0xbea   :  { %1870 = vmatpush.msra.mxu1 %v5676_v58 }
 0xbeb   :  { %v1295_v22 = vmul.f32 %v1291_v20, %v5656_v48 }
 0xbec   :  { %1871 = vmatpush.msra.mxu1 %v5682_v37 }
 0xbed   :  { %v5733_v23 = vadd.f32 %v1295_v22, %v5532_v46 }
 0xbee   :  { %1872 = vmatpush.msra.mxu1 %v5688_v34 }
 0xbef   :  { %1304 = vst.msk [vmem:[#allocation2 + $0x50] sm:$0xff] %vm227_vm0, %v5733_v23  ;;  %4573 = vmatmul.msk.f32.gmra.mxu0 %vm227_vm0, %v5733_v23 }
 0xbf0   :  { %1873 = vmatpush.msra.mxu1 %v5694_v5 }
 0xbf2   :  { %1874 = vmatpush.msra.mxu1 %v5700_v55 }
 0xbf4   :  { %1875 = vmatpush.msra.mxu1 %v5706_v43 }
 0xbf7   :  { %4574 = vmatmul.msk.f32.gmra.mxu0 %vm227_vm0, %v5719_v12 }
 0xc44   :  { %v1343_v42 = vpop.f32.mrf.mxu0 }
 0xc45   :  { %v1344_v14 = vadd.f32 %v1343_v42, %v5289_v0 }
 0xc47   :  { %v1355_v8 = vsel %vm71_vm2, %v1344_v14, 0.0 }
 0xc48   :  { %1356 = vadd.xlane.f32.xlu1 %v1355_v8 }
 0xc64   :  { %v1346_v28 = vpop.f32.mrf.mxu0 }
 0xc65   :  { %v1347_v48 = vadd.f32 %v1346_v28, %v5289_v0 }
 0xc67   :  { %v1358_v46 = vsel %vm71_vm2, %v1347_v48, 0.0 }
 0xc68   :  { %1359 = vadd.xlane.f32.xlu2 %v1358_v46 }
 0xc6c   :  { %v1349_v21 = vpop.f32.mrf.mxu0 }
 0xc6d   :  { %v1350_v31 = vadd.f32 %v1349_v21, %v5289_v0 }
 0xc6f   :  { %v1361_v35 = vsel %vm71_vm2, %v1350_v31, 0.0 }
 0xc70   :  { %1362 = vadd.xlane.f32.xlu0 %v1361_v35 }
 0xc74   :  { %v1352_v41 = vpop.f32.mrf.mxu0 }
 0xc75   :  { %v1353_v63 = vadd.f32 %v1352_v41, %v5289_v0 }
 0xc77   :  { %v1364_v24 = vsel %vm71_vm2, %v1353_v63, 0.0 }
 0xc78   :  { %1365 = vadd.xlane.f32.xlu1 %v1364_v24 }
 0xcbb   :  { %v1357_v44 = vpop.xlane.xlu1 %1356 }
 0xcbc   :  { %v1367_v32 = vmul.f32 %v1357_v44, %v5181_v25 }
 0xcbe   :  { %v1371_v45 = vsub.f32 %v1344_v14, %v1367_v32 }
 0xcc0   :  { %v1375_v9 = vmul.f32 %v1371_v45, %v1371_v45 }
 0xcc2   :  { %v1379_v47 = vsel %vm71_vm2, %v1375_v9, 0.0 }
 0xcc3   :  { %1380 = vadd.xlane.f32.xlu2 %v1379_v47 }
 0xcdb   :  { %v1360_v15 = vpop.xlane.xlu2 %1359 }
 0xcdc   :  { %v1368_v33 = vmul.f32 %v1360_v15, %v5181_v25 }
 0xcde   :  { %v5752_v59 = vsub.f32 %v1347_v48, %v1368_v33 }
 0xce0   :  { %v1376_v61 = vmul.f32 %v5752_v59, %v5752_v59 }
 0xce2   :  { %v1382_v53 = vsel %vm71_vm2, %v1376_v61, 0.0 }
 0xce3   :  { %1383 = vadd.xlane.f32.xlu0 %v1382_v53  ;;  %v1363_v27 = vpop.xlane.xlu0 %1362 }
 0xce4   :  { %v1369_v52 = vmul.f32 %v1363_v27, %v5181_v25 }
 0xce6   :  { %v5758_v38 = vsub.f32 %v1350_v31, %v1369_v52 }
 0xce8   :  { %v1377_v39 = vmul.f32 %v5758_v38, %v5758_v38 }
 0xcea   :  { %v1385_v54 = vsel %vm71_vm2, %v1377_v39, 0.0 }
 0xceb   :  { %v1366_v40 = vpop.xlane.xlu1 %1365  ;;  %1386 = vadd.xlane.f32.xlu1 %v1385_v54 }
 0xcec   :  { %v1370_v57 = vmul.f32 %v1366_v40, %v5181_v25 }
 0xcee   :  { %v5764_v60 = vsub.f32 %v1353_v63, %v1370_v57 }
 0xcf0   :  { %v1378_v3 = vmul.f32 %v5764_v60, %v5764_v60 }
 0xcf2   :  { %v1388_v4 = vsel %vm71_vm2, %v1378_v3, 0.0 }
 0xcf3   :  { %1389 = vadd.xlane.f32.xlu2 %v1388_v4 }
 0xd36   :  { %v1381_v13 = vpop.xlane.xlu2 %1380 }
 0xd37   :  { %v1391_v16 = vmul.f32 %v1381_v13, %v5181_v25 }
 0xd39   :  { %v1395_v1 = vadd.f32 1e-05, %v1391_v16 }
 0xd3b   :  { %4855 = vrsqrt.f32 %v1395_v1  ;;  %vm1405_vm3 = vweird.f32 %v1395_v1 }
 0xd41   :  { %v4856_v17 = vpop.eup %4855 }
 0xd42   :  { %v1400_v18 = vmul.f32 %v4856_v17, %v1395_v1  ;;  %vm1406_vm15 = vweird.f32 %v4856_v17 }
 0xd43   :  { %vm1407_vm4 = vmor %vm1405_vm3, %vm1406_vm15 }
 0xd44   :  { %v1401_v51 = vmul.f32 %v4856_v17, %v1400_v18 }
 0xd46   :  { %v1402_v2 = vmul.f32 0.5, %v1401_v51 }
 0xd48   :  { %v1403_v30 = vsub.f32 1.5, %v1402_v2 }
 0xd4a   :  { %v1404_v50 = vmul.f32 %v4856_v17, %v1403_v30 }
 0xd4c   :  { %v1408_v58 = vsel %vm1407_vm4, %v4856_v17, %v1404_v50 }
 0xd4d   :  { %v1439_v20 = vmul.f32 %v1408_v58, %v1371_v45 }
 0xd4f   :  { %v1443_v37 = vmul.f32 %v1439_v20, %v5347_v56 }
 0xd51   :  { %v1447_v34 = vadd.f32 %v1443_v37, %v5350_v62 }
 0xd53   :  { %v1451_v5 = vmax.f32 %v1447_v34, 0.0 }
 0xd55   :  { %4575 = vmatmul.msk.f32.vlgmr.msrb.gmra.mxu1 %vm71_vm2, %v1451_v5 }
 0xd56   :  { %v1384_v55 = vpop.xlane.xlu0 %1383 }
 0xd57   :  { %v1392_v22 = vmul.f32 %v1384_v55, %v5181_v25 }
 0xd59   :  { %v1396_v43 = vadd.f32 1e-05, %v1392_v22 }
 0xd5b   :  { %4857 = vrsqrt.f32 %v1396_v43  ;;  %vm1415_vm6 = vweird.f32 %v1396_v43 }
 0xd5e   :  { %v1387_v42 = vpop.xlane.xlu1 %1386 }
 0xd5f   :  { %v1393_v14 = vmul.f32 %v1387_v42, %v5181_v25 }
 0xd61   :  { %v4858_v8 = vpop.eup %4857  ;;  %v1397_v28 = vadd.f32 1e-05, %v1393_v14 }
 0xd62   :  { %v1410_v48 = vmul.f32 %v4858_v8, %v1396_v43  ;;  %vm1416_vm5 = vweird.f32 %v4858_v8 }
 0xd63   :  { %4859 = vrsqrt.f32 %v1397_v28  ;;  %vm1417_vm7 = vmor %vm1415_vm6, %vm1416_vm5  ;;  %vm1425_vm9 = vweird.f32 %v1397_v28 }
 0xd64   :  { %v1411_v46 = vmul.f32 %v4858_v8, %v1410_v48 }
 0xd66   :  { %v1412_v21 = vmul.f32 0.5, %v1411_v46  ;;  %v1390_v31 = vpop.xlane.xlu2 %1389 }
 0xd67   :  { %v1394_v35 = vmul.f32 %v1390_v31, %v5181_v25 }
 0xd68   :  { %v1413_v41 = vsub.f32 1.5, %v1412_v21 }
 0xd69   :  { %v4860_v63 = vpop.eup %4859  ;;  %v1398_v24 = vadd.f32 1e-05, %v1394_v35 }
 0xd6a   :  { %v1414_v44 = vmul.f32 %v4858_v8, %v1413_v41  ;;  %v1420_v32 = vmul.f32 %v4860_v63, %v1397_v28  ;;  %vm1426_vm8 = vweird.f32 %v4860_v63 }
 0xd6b   :  { %4861 = vrsqrt.f32 %v1398_v24  ;;  %vm1427_vm10 = vmor %vm1425_vm9, %vm1426_vm8  ;;  %vm1435_vm12 = vweird.f32 %v1398_v24 }
 0xd6c   :  { %v1418_v45 = vsel %vm1417_vm7, %v4858_v8, %v1414_v44  ;;  %v1421_v9 = vmul.f32 %v4860_v63, %v1420_v32 }
 0xd6d   :  { %v1440_v47 = vmul.f32 %v1418_v45, %v5752_v59 }
 0xd6e   :  { %v1422_v15 = vmul.f32 0.5, %v1421_v9 }
 0xd6f   :  { %v1444_v33 = vmul.f32 %v1440_v47, %v5347_v56 }
 0xd70   :  { %v1423_v61 = vsub.f32 1.5, %v1422_v15 }
 0xd71   :  { %v4862_v53 = vpop.eup %4861  ;;  %v1448_v27 = vadd.f32 %v1444_v33, %v5350_v62 }
 0xd72   :  { %v1424_v52 = vmul.f32 %v4860_v63, %v1423_v61  ;;  %v1430_v39 = vmul.f32 %v4862_v53, %v1398_v24  ;;  %vm1436_vm11 = vweird.f32 %v4862_v53 }
 0xd73   :  { %v1452_v54 = vmax.f32 %v1448_v27, 0.0  ;;  %vm1437_vm13 = vmor %vm1435_vm12, %vm1436_vm11 }
 0xd74   :  { %v1428_v40 = vsel %vm1427_vm10, %v4860_v63, %v1424_v52  ;;  %v1431_v57 = vmul.f32 %v4862_v53, %v1430_v39 }
 0xd75   :  { %4576 = vmatmul.msk.f32.gmra.mxu1 %vm71_vm2, %v1452_v54  ;;  %v1441_v3 = vmul.f32 %v1428_v40, %v5758_v38 }
 0xd76   :  { %v1432_v59 = vmul.f32 0.5, %v1431_v57 }
 0xd77   :  { %v1445_v4 = vmul.f32 %v1441_v3, %v5347_v56 }
 0xd78   :  { %v1433_v13 = vsub.f32 1.5, %v1432_v59 }
 0xd79   :  { %v1449_v16 = vadd.f32 %v1445_v4, %v5350_v62 }
 0xd7a   :  { %v1434_v1 = vmul.f32 %v4862_v53, %v1433_v13 }
 0xd7b   :  { %v1453_v17 = vmax.f32 %v1449_v16, 0.0 }
 0xd7c   :  { %v1438_v18 = vsel %vm1437_vm13, %v4862_v53, %v1434_v1 }
 0xd7d   :  { %4577 = vmatmul.msk.f32.gmra.mxu1 %vm71_vm2, %v1453_v17  ;;  %v1442_v51 = vmul.f32 %v1438_v18, %v5764_v60 }
 0xd7f   :  { %v1446_v2 = vmul.f32 %v1442_v51, %v5347_v56 }
 0xd81   :  { %v1450_v38 = vadd.f32 %v1446_v2, %v5350_v62 }
 0xd83   :  { %v1454_v30 = vmax.f32 %v1450_v38, 0.0 }
 0xd85   :  { %4578 = vmatmul.msk.f32.gmra.mxu1 %vm71_vm2, %v1454_v30 }
 0xdd2   :  { %v1488_v50 = vpop.f32.mrf.mxu1 }
 0xdd3   :  { %v5834_v8 = vadd.f32 %v1488_v50, %v5369_v49 }
 0xdd5   :  { %v1500_v48 = vmul.f32 %v5834_v8, %v5834_v8 }
 0xdd7   :  { %v1504_v46 = vsel %vm71_vm2, %v1500_v48, 0.0 }
 0xdf2   :  { %v1491_v58 = vpop.f32.mrf.mxu1 }
 0xdf3   :  { %v5821_v20 = vadd.f32 %v1491_v58, %v5369_v49 }
 0xdf5   :  { %v1501_v37 = vmul.f32 %v5821_v20, %v5821_v20 }
 0xdf7   :  { %v1507_v34 = vsel %vm71_vm2, %v1501_v37, 0.0 }
 0xdf8   :  { %1508 = vadd.xlane.f32.xlu2 %v1507_v34 }
 0xdfa   :  { %v1494_v5 = vpop.f32.mrf.mxu1 }
 0xdfb   :  { %v5827_v60 = vadd.f32 %v1494_v5, %v5369_v49 }
 0xdfd   :  { %v1502_v55 = vmul.f32 %v5827_v60, %v5827_v60 }
 0xdff   :  { %v1510_v22 = vsel %vm71_vm2, %v1502_v55, 0.0 }
 0xe00   :  { %1511 = vadd.xlane.f32.xlu1 %v1510_v22 }
 0xe02   :  { %v1497_v43 = vpop.f32.mrf.mxu1 }
 0xe03   :  { %v1498_v42 = vadd.f32 %v1497_v43, %v5369_v49  ;;  %v1681_v43 = vld [vmem:[%s7175_s2 + $0xc0] sm:$0xff] }
 0xe04   :  { %1706 = vmatpush.msra.mxu0 %v1681_v43  ;;  %2240 = vmatpush.msrb.mxu1 %v1681_v43 }
 0xe05   :  { %v1503_v14 = vmul.f32 %v1498_v42, %v1498_v42 }
 0xe07   :  { %v1513_v28 = vsel %vm71_vm2, %v1503_v14, 0.0 }
 0xe08   :  { %1514 = vadd.xlane.f32.xlu0 %v1513_v28 }
 0xe10   :  { %1505 = vadd.xlane.f32.xlu0 %v1504_v46  ;;  %v1679_v46 = vld [vmem:[%s7175_s2 + $0xb0] sm:$0xff] }
 0xe6b   :  { %v1509_v21 = vpop.xlane.xlu2 %1508 }
 0xe6c   :  { %v1517_v31 = vadd.f32 1e-24, %v1509_v21  ;;  %v1630_v21 = vld [vmem:[%s7175_s2 + $0x90] sm:$0xff] }
 0xe6e   :  { %4863 = vrsqrt.f32 %v1517_v31  ;;  %vm1536_vm5 = vweird.f32 %v1517_v31 }
 0xe73   :  { %v1512_v35 = vpop.xlane.xlu1 %1511 }
 0xe74   :  { %v1518_v41 = vadd.f32 1e-24, %v1512_v35  ;;  %v4864_v63 = vpop.eup %4863  ;;  %v1629_v35 = vld [vmem:[%s7175_s2 + $0x88] sm:$0xff] }
 0xe75   :  { %v1531_v24 = vmul.f32 %v4864_v63, %v1517_v31  ;;  %vm1537_vm15 = vweird.f32 %v4864_v63  ;;  %v1678_v31 = vld [vmem:[%s7175_s2 + $0xa8] sm:$0xff] }
 0xe76   :  { %4865 = vrsqrt.f32 %v1518_v41  ;;  %vm1546_vm3 = vweird.f32 %v1518_v41  ;;  %vm1538_vm7 = vmor %vm1536_vm5, %vm1537_vm15 }
 0xe77   :  { %v1532_v47 = vmul.f32 %v4864_v63, %v1531_v24 }
 0xe79   :  { %v1533_v61 = vmul.f32 0.5, %v1532_v47 }
 0xe7b   :  { %v1515_v44 = vpop.xlane.xlu0 %1514  ;;  %v1534_v40 = vsub.f32 1.5, %v1533_v61 }
 0xe7c   :  { %v4866_v32 = vpop.eup %4865  ;;  %v1519_v45 = vadd.f32 1e-24, %v1515_v44  ;;  %v1621_v44 = vmul.f32 0.03, %v5711_v26 }
 0xe7d   :  { %v1541_v9 = vmul.f32 %v4866_v32, %v1518_v41  ;;  %vm1547_vm14 = vweird.f32 %v4866_v32  ;;  %v1535_v4 = vmul.f32 %v4864_v63, %v1534_v40 }
 0xe7e   :  { %4867 = vrsqrt.f32 %v1519_v45  ;;  %vm1548_vm6 = vmor %vm1546_vm3, %vm1547_vm14  ;;  %vm1556_vm8 = vweird.f32 %v1519_v45 }
 0xe7f   :  { %v1542_v15 = vmul.f32 %v4866_v32, %v1541_v9  ;;  %v1539_v38 = vsel %vm1538_vm7, %v4864_v63, %v1535_v4 }
 0xe80   :  { %v1561_v34 = vmul.f32 5.656854, %v1539_v38 }
 0xe81   :  { %v1543_v33 = vmul.f32 0.5, %v1542_v15  ;;  %v1622_v15 = vmul.f32 0.03, %v5725_v19 }
 0xe83   :  { %v1506_v53 = vpop.xlane.xlu0 %1505  ;;  %v1544_v39 = vsub.f32 1.5, %v1543_v33 }
 0xe84   :  { %v4868_v27 = vpop.eup %4867  ;;  %v1516_v52 = vadd.f32 1e-24, %v1506_v53 }
 0xe85   :  { %v1551_v54 = vmul.f32 %v4868_v27, %v1519_v45  ;;  %v1545_v3 = vmul.f32 %v4866_v32, %v1544_v39  ;;  %vm1557_vm4 = vweird.f32 %v4868_v27 }
 0xe86   :  { %4869 = vrsqrt.f32 %v1516_v52  ;;  %vm1558_vm9 = vmor %vm1556_vm8, %vm1557_vm4  ;;  %vm1526_vm11 = vweird.f32 %v1516_v52 }
 0xe87   :  { %v1552_v57 = vmul.f32 %v4868_v27, %v1551_v54  ;;  %v1549_v18 = vsel %vm1548_vm6, %v4866_v32, %v1545_v3  ;;  %v1624_v3 = vmul.f32 0.03, %v5719_v12 }
 0xe88   :  { %v1562_v50 = vmul.f32 5.656854, %v1549_v18 }
 0xe89   :  { %v1553_v59 = vmul.f32 0.5, %v1552_v57 }
 0xe8a   :  { %v5844_v55 = vmul.f32 %v1562_v50, %v5827_v60  ;;  %v5855_v60 = vld [vmem:[%s7174_s1] sm:$0xff] }
 0xe8b   :  { %v1554_v13 = vsub.f32 1.5, %v1553_v59 }
 0xe8c   :  { %v4870_v16 = vpop.eup %4869 }
 0xe8d   :  { %v1555_v1 = vmul.f32 %v4868_v27, %v1554_v13  ;;  %v1521_v17 = vmul.f32 %v4870_v16, %v1516_v52  ;;  %vm1527_vm10 = vweird.f32 %v4870_v16  ;;  %v1623_v52 = vmul.f32 0.03, %v5733_v23 }
 0xe8e   :  { %vm1528_vm12 = vmor %vm1526_vm11, %vm1527_vm10 }
 0xe8f   :  { %v1559_v51 = vsel %vm1558_vm9, %v4868_v27, %v1555_v1  ;;  %v1522_v2 = vmul.f32 %v4870_v16, %v1521_v17 }
 0xe90   :  { %v1563_v30 = vmul.f32 5.656854, %v1559_v51 }
 0xe91   :  { %v1523_v58 = vmul.f32 0.5, %v1522_v2 }
 0xe92   :  { %v5840_v37 = vmul.f32 %v1563_v30, %v1498_v42  ;;  %v1565_v42 = vmul.f32 %v1561_v34, %v5821_v20  ;;  %v5864_v20 = vld [vmem:[%s7174_s1 + $0x8] sm:$0xff] }
 0xe93   :  { %v1524_v5 = vsub.f32 1.5, %v1523_v58 }
 0xe94   :  { %1596 = vmatpush.msrb.mxu3 %v5840_v37 }
 0xe95   :  { %v1525_v22 = vmul.f32 %v4870_v16, %v1524_v5 }
 0xe96   :  { %1597 = vmatpush.msrb.mxu3 %v5844_v55 }
 0xe97   :  { %v1529_v14 = vsel %vm1528_vm12, %v4870_v16, %v1525_v22 }
 0xe98   :  { %1598 = vmatpush.msrb.mxu3 %v1565_v42  ;;  %v1560_v28 = vmul.f32 5.656854, %v1529_v14 }
 0xe9a   :  { %v1564_v48 = vmul.f32 %v1560_v28, %v5834_v8  ;;  %v5873_v8 = vld [vmem:[%s7174_s1 + $0x10] sm:$0xff] }
 0xe9c   :  { %1599 = vmatpush.msrb.mxu3 %v1564_v48 }
 0xe9d   :  { %4579 = vmatmul.msk.f32.vlgmr.msrb.gmra.mxu3 %vm71_vm2, %v5855_v60 }
 0xe9e   :  { %2017 = vmatpush.msra.mxu3 %v5772_v6  ;;  %v5880_v6 = vld [vmem:[%s7174_s1 + $0x18] sm:$0xff] }
 0xea0   :  { %2018 = vmatpush.msra.mxu3 %v5778_v7  ;;  %v1632_v7 = vld [vmem:[%s7175_s2 + $0xa0] sm:$0xff] }
 0xea1   :  { %1657 = vmatpush.msra.mxu2 %v1632_v7 }
 0xea2   :  { %2019 = vmatpush.msra.mxu3 %v5783_v10  ;;  %v1680_v10 = vld [vmem:[%s7175_s2 + $0xb8] sm:$0xff] }
 0xea3   :  { %1707 = vmatpush.msra.mxu0 %v1680_v10  ;;  %2241 = vmatpush.msrb.mxu1 %v1680_v10 }
 0xea4   :  { %2020 = vmatpush.msra.mxu3 %v5789_v11  ;;  %v1631_v11 = vld [vmem:[%s7175_s2 + $0x98] sm:$0xff] }
 0xea5   :  { %4580 = vmatmul.msk.f32.gmra.mxu3 %vm71_vm2, %v5864_v20  ;;  %1658 = vmatpush.msra.mxu2 %v1631_v11 }
 0xea6   :  { %1708 = vmatpush.msra.mxu0 %v1679_v46  ;;  %2242 = vmatpush.msrb.mxu1 %v1679_v46 }
 0xea7   :  { %1659 = vmatpush.msra.mxu2 %v1630_v21 }
 0xea8   :  { %1709 = vmatpush.msra.mxu0 %v1678_v31  ;;  %2243 = vmatpush.msrb.mxu1 %v1678_v31 }
 0xea9   :  { %1660 = vmatpush.msra.mxu2 %v1629_v35 }
 0xeaa   :  { %2191 = vmatpush.msrb.mxu0 %v1632_v7 }
 0xeac   :  { %2192 = vmatpush.msrb.mxu0 %v1631_v11 }
 0xead   :  { %4581 = vmatmul.msk.f32.gmra.mxu3 %vm71_vm2, %v5873_v8 }
 0xeae   :  { %2193 = vmatpush.msrb.mxu0 %v1630_v21 }
 0xeb0   :  { %2194 = vmatpush.msrb.mxu0 %v1629_v35 }
 0xeb5   :  { %4582 = vmatmul.msk.f32.gmra.mxu3 %vm71_vm2, %v5880_v6 }
 0xf20   :  { %v1601_v41 = vpop.f32.mrf.mxu3 }
 0xf21   :  { %v1613_v63 = vmul.f32 0.02, %v1601_v41 }
 0xf23   :  { %v1617_v24 = vadd.f32 %v1613_v63, %v1564_v48 }
 0xf25   :  { %v1625_v32 = vsub.f32 %v1617_v24, %v1621_v44  ;;  %4587 = vmatmul.msk.f32.vlgmr.msra.gmra.mxu0 %vm71_vm2, %v1617_v24 }
 0xf27   :  { %4583 = vmatmul.msk.f32.vlgmr.msra.gmra.mxu2 %vm71_vm2, %v1625_v32 }
 0xf28   :  { %v1604_v45 = vpop.f32.mrf.mxu3 }
 0xf29   :  { %v1614_v9 = vmul.f32 0.02, %v1604_v45 }
 0xf2b   :  { %v1618_v47 = vadd.f32 %v1614_v9, %v1565_v42 }
 0xf2d   :  { %4588 = vmatmul.msk.f32.gmra.mxu0 %vm71_vm2, %v1618_v47  ;;  %v1626_v33 = vsub.f32 %v1618_v47, %v1622_v15 }
 0xf2f   :  { %4584 = vmatmul.msk.f32.gmra.mxu2 %vm71_vm2, %v1626_v33 }
 0xf30   :  { %v1607_v61 = vpop.f32.mrf.mxu3 }
 0xf31   :  { %v1615_v53 = vmul.f32 0.02, %v1607_v61 }
 0xf33   :  { %v1619_v27 = vadd.f32 %v1615_v53, %v5844_v55 }
 0xf35   :  { %4589 = vmatmul.msk.f32.gmra.mxu0 %vm71_vm2, %v1619_v27  ;;  %v1627_v39 = vsub.f32 %v1619_v27, %v1623_v52 }
 0xf37   :  { %4585 = vmatmul.msk.f32.gmra.mxu2 %vm71_vm2, %v1627_v39 }
 0xf38   :  { %v1610_v54 = vpop.f32.mrf.mxu3 }
 0xf39   :  { %v1616_v40 = vmul.f32 0.02, %v1610_v54 }
 0xf3b   :  { %v1620_v57 = vadd.f32 %v1616_v40, %v5840_v37 }
 0xf3d   :  { %4590 = vmatmul.msk.f32.gmra.mxu0 %vm71_vm2, %v1620_v57  ;;  %v1628_v59 = vsub.f32 %v1620_v57, %v1624_v3 }
 0xf3f   :  { %4586 = vmatmul.msk.f32.gmra.mxu2 %vm71_vm2, %v1628_v59 }
 0xfa2   :  { %v1711_v4 = vpop.f32.mrf.mxu0 }
 0xfa3   :  { %v1712_v13 = vadd.f32 %v1711_v4, %v5473_v29 }
 0xfa5   :  { %4871 = vtanh.f32 %v1712_v13 }
 0xfaa   :  { %v1714_v16 = vpop.f32.mrf.mxu0  ;;  %v1662_v37 = vpop.f32.mrf.mxu2 }
 0xfab   :  { %v4872_v1 = vpop.eup %4871  ;;  %v1715_v17 = vadd.f32 %v1714_v16, %v5473_v29  ;;  %v1663_v28 = vadd.f32 %v1662_v37, %v5483_v36 }
 0xfac   :  { %1731 = vrot.lane.b32.xlu1 %v4872_v1, %s5123_s30 }
 0xfad   :  { %4873 = vtanh.f32 %v1715_v17 }
 0xfb2   :  { %v1717_v18 = vpop.f32.mrf.mxu0  ;;  %v1665_v34 = vpop.f32.mrf.mxu2 }
 0xfb3   :  { %v1718_v51 = vadd.f32 %v1717_v18, %v5473_v29  ;;  %v4874_v2 = vpop.eup %4873  ;;  %v1666_v5 = vadd.f32 %v1665_v34, %v5483_v36 }
 0xfb4   :  { %1733 = vrot.lane.b32.xlu2 %v4874_v2, %s5123_s30 }
 0xfb5   :  { %4875 = vtanh.f32 %v1718_v51 }
 0xfba   :  { %v1720_v38 = vpop.f32.mrf.mxu0  ;;  %v1668_v11 = vpop.f32.mrf.mxu2 }
 0xfbb   :  { %v1721_v30 = vadd.f32 %v1720_v38, %v5473_v29  ;;  %v4876_v50 = vpop.eup %4875  ;;  %v1669_v31 = vadd.f32 %v1668_v11, %v5483_v36 }
 0xfbc   :  { %1735 = vrot.lane.b32.xlu0 %v4876_v50, %s5123_s30 }
 0xfbd   :  { %4877 = vtanh.f32 %v1721_v30 }
 0xfbe   :  { %4879 = vtanh.f32 %v1666_v5 }
 0xfbf   :  { %4881 = vtanh.f32 %v1663_v28 }
 0xfc0   :  { %4883 = vtanh.f32 %v1669_v31 }
 0xfc2   :  { %v1671_v35 = vpop.f32.mrf.mxu2 }
 0xfc3   :  { %v4878_v58 = vpop.eup %4877  ;;  %v1672_v41 = vadd.f32 %v1671_v35, %v5483_v36 }
 0xfc4   :  { %1737 = vrot.lane.b32.xlu1 %v4878_v58, %s5123_s30  ;;  %v4880_v55 = vpop.eup %4879 }
 0xfc5   :  { %v4882_v48 = vpop.eup %4881  ;;  %4885 = vtanh.f32 %v1672_v41 }
 0xfc6   :  { %v4884_v63 = vpop.eup %4883 }
 0xfcb   :  { %v4886_v9 = vpop.eup %4885 }
0x100e   :  { %v1734_v22 = vpop.permute.xlu2 %1733 }
0x100f   :  { %v5929_v43 = vsel %vm71_vm2, %v4880_v55, %v1734_v22 }
0x1010   :  { %v1748_v42 = vmul.f32 %v5929_v43, %v5929_v43 }
0x1012   :  { %v1754_v14 = vsel %vm227_vm0, %v1748_v42, 0.0 }
0x1013   :  { %1755 = vadd.xlane.f32.xlu2 %v1754_v14 }
0x101e   :  { %v1732_v7 = vpop.permute.xlu1 %1731 }
0x101f   :  { %v5936_v10 = vsel %vm71_vm2, %v4882_v48, %v1732_v7 }
0x1020   :  { %v1747_v46 = vmul.f32 %v5936_v10, %v5936_v10 }
0x1022   :  { %v1751_v21 = vsel %vm227_vm0, %v1747_v46, 0.0 }
0x1023   :  { %1752 = vadd.xlane.f32.xlu0 %v1751_v21 }
0x102e   :  { %v1736_v24 = vpop.permute.xlu0 %1735 }
0x102f   :  { %v5944_v44 = vsel %vm71_vm2, %v4884_v63, %v1736_v24 }
0x1030   :  { %v1749_v32 = vmul.f32 %v5944_v44, %v5944_v44 }
0x1032   :  { %v1757_v45 = vsel %vm227_vm0, %v1749_v32, 0.0 }
0x1033   :  { %1758 = vadd.xlane.f32.xlu1 %v1757_v45 }
0x1036   :  { %v1738_v47 = vpop.permute.xlu1 %1737 }
0x1037   :  { %v5950_v15 = vsel %vm71_vm2, %v4886_v9, %v1738_v47 }
0x1038   :  { %v1750_v33 = vmul.f32 %v5950_v15, %v5950_v15 }
0x103a   :  { %v1760_v61 = vsel %vm227_vm0, %v1750_v33, 0.0 }
0x103b   :  { %1761 = vadd.xlane.f32.xlu0 %v1760_v61 }
0x1086   :  { %v1756_v53 = vpop.xlane.xlu2 %1755 }
0x1087   :  { %4887 = vrsqrt.f32 %v1756_v53  ;;  %vm1782_vm13 = vcmp.eq.f32.partialorder %v1756_v53, inf  ;;  %v1785_v4 = vand.u32 2147483648, %v1756_v53  ;;  %vm1784_vm14 = vcmp.eq.f32.partialorder %v1756_v53, 0.0 }
0x108d   :  { %v4888_v27 = vpop.eup %4887 }
0x108e   :  { %v1776_v52 = vmul.f32 %v4888_v27, %v1756_v53 }
0x1090   :  { %v1777_v39 = vmul.f32 %v4888_v27, %v1776_v52 }
0x1092   :  { %v1778_v54 = vmul.f32 0.5, %v1777_v39 }
0x1094   :  { %v1779_v40 = vsub.f32 1.5, %v1778_v54 }
0x1096   :  { %v1753_v57 = vpop.xlane.xlu0 %1752  ;;  %v1780_v3 = vmul.f32 %v4888_v27, %v1779_v40 }
0x1097   :  { %4889 = vrsqrt.f32 %v1753_v57  ;;  %vm1770_vm15 = vcmp.eq.f32.partialorder %v1753_v57, inf  ;;  %v1773_v5 = vand.u32 2147483648, %v1753_v57  ;;  %vm1772_vm3 = vcmp.eq.f32.partialorder %v1753_v57, 0.0 }
0x1098   :  { %v1781_v59 = vmul.f32 %v1780_v3, %v1756_v53 }
0x109a   :  { %v1783_v13 = vsel %vm1782_vm13, %v1756_v53, %v1781_v59 }
0x109b   :  { %v1786_v16 = vsel %vm1784_vm14, %v1785_v4, %v1783_v13 }
0x109c   :  { %v1812_v17 = vadd.f32 1e-08, %v1786_v16 }
0x109d   :  { %v4890_v1 = vpop.eup %4889 }
0x109e   :  { %v1764_v18 = vmul.f32 %v4890_v1, %v1753_v57  ;;  %4891 = vrcp.f32 %v1812_v17 }
0x10a0   :  { %v1765_v51 = vmul.f32 %v4890_v1, %v1764_v18 }
0x10a2   :  { %v1766_v2 = vmul.f32 0.5, %v1765_v51 }
0x10a4   :  { %v1767_v38 = vsub.f32 1.5, %v1766_v2  ;;  %v4892_v30 = vpop.eup %4891 }
0x10a5   :  { %v1820_v58 = vmul.f32 5.0, %v4892_v30 }
0x10a6   :  { %v1768_v50 = vmul.f32 %v4890_v1, %v1767_v38  ;;  %v1759_v37 = vpop.xlane.xlu1 %1758 }
0x10a7   :  { %4893 = vrsqrt.f32 %v1759_v37  ;;  %v1824_v55 = vmin.f32 %v1820_v58, 1.0  ;;  %vm1794_vm4 = vcmp.eq.f32.partialorder %v1759_v37, inf  ;;  %v1797_v33 = vand.u32 2147483648, %v1759_v37 }
0x10a8   :  { %v1769_v34 = vmul.f32 %v1768_v50, %v1753_v57  ;;  %vm1796_vm5 = vcmp.eq.f32.partialorder %v1759_v37, 0.0 }
0x10a9   :  { %v1828_v14 = vmul.f32 %v1824_v55, %v5929_v43 }
0x10aa   :  { %v1771_v22 = vsel %vm1770_vm15, %v1753_v57, %v1769_v34 }
0x10ab   :  { %v1774_v42 = vsel %vm1772_vm3, %v1773_v5, %v1771_v22  ;;  %v5957_v48 = vadd.f32 %v1828_v14, %v5725_v19 }
0x10ac   :  { %v1811_v28 = vadd.f32 1e-08, %v1774_v42 }
0x10ad   :  { %v4894_v7 = vpop.eup %4893  ;;  %1837 = vst.msk [vmem:[#allocation2 + $0x68] sm:$0xff] %vm227_vm0, %v5957_v48 }
0x10ae   :  { %4895 = vrcp.f32 %v1811_v28  ;;  %v1788_v11 = vmul.f32 %v4894_v7, %v1759_v37  ;;  %v1762_v46 = vpop.xlane.xlu0 %1761 }
0x10af   :  { %4897 = vrsqrt.f32 %v1762_v46  ;;  %vm1806_vm6 = vcmp.eq.f32.partialorder %v1762_v46, inf  ;;  %v1809_v57 = vand.u32 2147483648, %v1762_v46  ;;  %vm1808_vm7 = vcmp.eq.f32.partialorder %v1762_v46, 0.0 }
0x10b0   :  { %v1789_v21 = vmul.f32 %v4894_v7, %v1788_v11 }
0x10b2   :  { %v1790_v31 = vmul.f32 0.5, %v1789_v21 }
0x10b4   :  { %v4896_v35 = vpop.eup %4895  ;;  %v1791_v41 = vsub.f32 1.5, %v1790_v31 }
0x10b5   :  { %v1819_v63 = vmul.f32 5.0, %v4896_v35  ;;  %v4898_v24 = vpop.eup %4897 }
0x10b6   :  { %v1792_v32 = vmul.f32 %v4894_v7, %v1791_v41  ;;  %v1800_v43 = vmul.f32 %v4898_v24, %v1762_v46 }
0x10b7   :  { %v1823_v45 = vmin.f32 %v1819_v63, 1.0 }
0x10b8   :  { %v1793_v9 = vmul.f32 %v1792_v32, %v1759_v37  ;;  %v1801_v19 = vmul.f32 %v4898_v24, %v1800_v43 }
0x10b9   :  { %v1827_v47 = vmul.f32 %v1823_v45, %v5936_v10 }
0x10ba   :  { %v1795_v61 = vsel %vm1794_vm4, %v1759_v37, %v1793_v9  ;;  %v1802_v53 = vmul.f32 0.5, %v1801_v19 }
0x10bb   :  { %v5963_v27 = vadd.f32 %v1827_v47, %v5711_v26  ;;  %v1798_v52 = vsel %vm1796_vm5, %v1797_v33, %v1795_v61 }
0x10bc   :  { %v1803_v39 = vsub.f32 1.5, %v1802_v53  ;;  %v1813_v54 = vadd.f32 1e-08, %v1798_v52 }
0x10bd   :  { %1836 = vst.msk [vmem:[#allocation2 + $0x60] sm:$0xff] %vm227_vm0, %v5963_v27  ;;  %4591 = vmatmul.msk.f32.vlgmr.msra.gmra.mxu1 %vm227_vm0, %v5963_v27 }
0x10be   :  { %v1804_v40 = vmul.f32 %v4898_v24, %v1803_v39  ;;  %4899 = vrcp.f32 %v1813_v54 }
0x10c0   :  { %v1805_v10 = vmul.f32 %v1804_v40, %v1762_v46 }
0x10c2   :  { %v1807_v3 = vsel %vm1806_vm6, %v1762_v46, %v1805_v10 }
0x10c3   :  { %v1810_v59 = vsel %vm1808_vm7, %v1809_v57, %v1807_v3 }
0x10c4   :  { %v4900_v4 = vpop.eup %4899  ;;  %v1814_v26 = vadd.f32 1e-08, %v1810_v59 }
0x10c5   :  { %4592 = vmatmul.msk.f32.gmra.mxu1 %vm227_vm0, %v5957_v48  ;;  %v1821_v13 = vmul.f32 5.0, %v4900_v4 }
0x10c6   :  { %4901 = vrcp.f32 %v1814_v26 }
0x10c7   :  { %v1825_v16 = vmin.f32 %v1821_v13, 1.0 }
0x10c9   :  { %v1829_v1 = vmul.f32 %v1825_v16, %v5944_v44 }
0x10cb   :  { %v5973_v17 = vadd.f32 %v1829_v1, %v5733_v23 }
0x10cc   :  { %v4902_v18 = vpop.eup %4901 }
0x10cd   :  { %1838 = vst.msk [vmem:[#allocation2 + $0x70] sm:$0xff] %vm227_vm0, %v5973_v17  ;;  %4593 = vmatmul.msk.f32.gmra.mxu1 %vm227_vm0, %v5973_v17  ;;  %v1822_v51 = vmul.f32 5.0, %v4902_v18 }
0x10cf   :  { %v1826_v2 = vmin.f32 %v1822_v51, 1.0 }
0x10d1   :  { %v1830_v38 = vmul.f32 %v1826_v2, %v5950_v15 }
0x10d3   :  { %v5981_v30 = vadd.f32 %v1830_v38, %v5719_v12 }
0x10d5   :  { %1839 = vst.msk [vmem:[#allocation2 + $0x78] sm:$0xff] %vm227_vm0, %v5981_v30  ;;  %4594 = vmatmul.msk.f32.gmra.mxu1 %vm227_vm0, %v5981_v30 }
0x113a   :  { %v1877_v23 = vpop.f32.mrf.mxu1 }
0x113b   :  { %v1878_v44 = vadd.f32 %v1877_v23, %v5289_v0 }
0x113d   :  { %v1889_v50 = vsel %vm71_vm2, %v1878_v44, 0.0 }
0x113e   :  { %1890 = vadd.xlane.f32.xlu2 %v1889_v50 }
0x1142   :  { %v1880_v58 = vpop.f32.mrf.mxu1 }
0x1143   :  { %v1881_v37 = vadd.f32 %v1880_v58, %v5289_v0 }
0x1145   :  { %v1892_v15 = vsel %vm71_vm2, %v1881_v37, 0.0 }
0x1146   :  { %1893 = vadd.xlane.f32.xlu1 %v1892_v15 }
0x114a   :  { %v1883_v12 = vpop.f32.mrf.mxu1 }
0x114b   :  { %v1884_v34 = vadd.f32 %v1883_v12, %v5289_v0 }
0x114d   :  { %v1895_v5 = vsel %vm71_vm2, %v1884_v34, 0.0 }
0x114e   :  { %1896 = vadd.xlane.f32.xlu0 %v1895_v5 }
0x1152   :  { %v1886_v55 = vpop.f32.mrf.mxu1 }
0x1153   :  { %v1887_v22 = vadd.f32 %v1886_v55, %v5289_v0 }
0x1155   :  { %v1898_v42 = vsel %vm71_vm2, %v1887_v22, 0.0 }
0x1156   :  { %1899 = vadd.xlane.f32.xlu2 %v1898_v42 }
0x11b1   :  { %v1891_v14 = vpop.xlane.xlu2 %1890 }
0x11b2   :  { %v1901_v28 = vmul.f32 %v1891_v14, %v5181_v25 }
0x11b4   :  { %v1905_v7 = vsub.f32 %v1878_v44, %v1901_v28 }
0x11b6   :  { %v1909_v11 = vmul.f32 %v1905_v7, %v1905_v7 }
0x11b8   :  { %v1913_v46 = vsel %vm71_vm2, %v1909_v11, 0.0 }
0x11b9   :  { %1914 = vadd.xlane.f32.xlu1 %v1913_v46  ;;  %v1894_v21 = vpop.xlane.xlu1 %1893 }
0x11ba   :  { %v1902_v31 = vmul.f32 %v1894_v21, %v5181_v25 }
0x11bc   :  { %v1906_v35 = vsub.f32 %v1881_v37, %v1902_v31 }
0x11be   :  { %v1910_v41 = vmul.f32 %v1906_v35, %v1906_v35 }
0x11c0   :  { %v1916_v63 = vsel %vm71_vm2, %v1910_v41, 0.0 }
0x11c1   :  { %1917 = vadd.xlane.f32.xlu0 %v1916_v63  ;;  %v1897_v24 = vpop.xlane.xlu0 %1896 }
0x11c2   :  { %v1903_v32 = vmul.f32 %v1897_v24, %v5181_v25 }
0x11c4   :  { %v6000_v43 = vsub.f32 %v1884_v34, %v1903_v32 }
0x11c6   :  { %v1911_v45 = vmul.f32 %v6000_v43, %v6000_v43 }
0x11c8   :  { %v1919_v9 = vsel %vm71_vm2, %v1911_v45, 0.0 }
0x11c9   :  { %v1900_v19 = vpop.xlane.xlu2 %1899  ;;  %1920 = vadd.xlane.f32.xlu2 %v1919_v9 }
0x11ca   :  { %v1904_v47 = vmul.f32 %v1900_v19, %v5181_v25 }
0x11cc   :  { %v6006_v33 = vsub.f32 %v1887_v22, %v1904_v47 }
0x11ce   :  { %v1912_v61 = vmul.f32 %v6006_v33, %v6006_v33 }
0x11d0   :  { %v1922_v53 = vsel %vm71_vm2, %v1912_v61, 0.0 }
0x11d1   :  { %1923 = vadd.xlane.f32.xlu1 %v1922_v53 }
0x122c   :  { %v1915_v52 = vpop.xlane.xlu1 %1914 }
0x122d   :  { %v1925_v39 = vmul.f32 %v1915_v52, %v5181_v25 }
0x122f   :  { %v1929_v54 = vadd.f32 1e-05, %v1925_v39 }
0x1231   :  { %4903 = vrsqrt.f32 %v1929_v54  ;;  %vm1939_vm9 = vweird.f32 %v1929_v54 }
0x1234   :  { %v1918_v40 = vpop.xlane.xlu0 %1917 }
0x1235   :  { %v1926_v10 = vmul.f32 %v1918_v40, %v5181_v25 }
0x1237   :  { %v4904_v57 = vpop.eup %4903  ;;  %v1930_v3 = vadd.f32 1e-05, %v1926_v10 }
0x1238   :  { %v1934_v59 = vmul.f32 %v4904_v57, %v1929_v54  ;;  %vm1940_vm8 = vweird.f32 %v4904_v57 }
0x1239   :  { %4905 = vrsqrt.f32 %v1930_v3  ;;  %vm1941_vm10 = vmor %vm1939_vm9, %vm1940_vm8  ;;  %vm1949_vm12 = vweird.f32 %v1930_v3 }
0x123a   :  { %v1935_v4 = vmul.f32 %v4904_v57, %v1934_v59 }
0x123c   :  { %v1936_v26 = vmul.f32 0.5, %v1935_v4  ;;  %v1921_v13 = vpop.xlane.xlu2 %1920 }
0x123d   :  { %v1927_v1 = vmul.f32 %v1921_v13, %v5181_v25 }
0x123e   :  { %v1937_v16 = vsub.f32 1.5, %v1936_v26 }
0x123f   :  { %v4906_v18 = vpop.eup %4905  ;;  %v1931_v38 = vadd.f32 1e-05, %v1927_v1 }
0x1240   :  { %v1938_v51 = vmul.f32 %v4904_v57, %v1937_v16  ;;  %v1944_v2 = vmul.f32 %v4906_v18, %v1930_v3  ;;  %vm1950_vm11 = vweird.f32 %v4906_v18 }
0x1241   :  { %4907 = vrsqrt.f32 %v1931_v38  ;;  %vm1951_vm13 = vmor %vm1949_vm12, %vm1950_vm11  ;;  %vm1959_vm15 = vweird.f32 %v1931_v38 }
0x1242   :  { %v1942_v23 = vsel %vm1941_vm10, %v4904_v57, %v1938_v51  ;;  %v1945_v44 = vmul.f32 %v4906_v18, %v1944_v2 }
0x1243   :  { %v1973_v50 = vmul.f32 %v1942_v23, %v1905_v7 }
0x1244   :  { %v1946_v58 = vmul.f32 0.5, %v1945_v44  ;;  %v1924_v15 = vpop.xlane.xlu1 %1923 }
0x1245   :  { %v1977_v37 = vmul.f32 %v1973_v50, %v5347_v56  ;;  %v1928_v34 = vmul.f32 %v1924_v15, %v5181_v25 }
0x1246   :  { %v1947_v12 = vsub.f32 1.5, %v1946_v58 }
0x1247   :  { %v1981_v5 = vadd.f32 %v1977_v37, %v5350_v62  ;;  %v4908_v55 = vpop.eup %4907  ;;  %v1932_v42 = vadd.f32 1e-05, %v1928_v34 }
0x1248   :  { %v1948_v22 = vmul.f32 %v4906_v18, %v1947_v12  ;;  %v1954_v14 = vmul.f32 %v4908_v55, %v1931_v38  ;;  %vm1960_vm14 = vweird.f32 %v4908_v55 }
0x1249   :  { %v1985_v28 = vmax.f32 %v1981_v5, 0.0  ;;  %4909 = vrsqrt.f32 %v1932_v42  ;;  %vm1961_vm3 = vmor %vm1959_vm15, %vm1960_vm14  ;;  %vm1969_vm5 = vweird.f32 %v1932_v42 }
0x124a   :  { %v1952_v11 = vsel %vm1951_vm13, %v4906_v18, %v1948_v22  ;;  %v1955_v7 = vmul.f32 %v4908_v55, %v1954_v14 }
0x124b   :  { %4595 = vmatmul.msk.f32.vlgmr.msra.gmra.mxu3 %vm71_vm2, %v1985_v28  ;;  %v1974_v46 = vmul.f32 %v1952_v11, %v1906_v35 }
0x124c   :  { %v1956_v21 = vmul.f32 0.5, %v1955_v7 }
0x124d   :  { %v1978_v31 = vmul.f32 %v1974_v46, %v5347_v56 }
0x124e   :  { %v1957_v41 = vsub.f32 1.5, %v1956_v21 }
0x124f   :  { %v1982_v63 = vadd.f32 %v1978_v31, %v5350_v62  ;;  %v4910_v24 = vpop.eup %4909 }
0x1250   :  { %v1958_v32 = vmul.f32 %v4908_v55, %v1957_v41  ;;  %v1964_v45 = vmul.f32 %v4910_v24, %v1932_v42  ;;  %vm1970_vm4 = vweird.f32 %v4910_v24 }
0x1251   :  { %v1986_v9 = vmax.f32 %v1982_v63, 0.0  ;;  %vm1971_vm6 = vmor %vm1969_vm5, %vm1970_vm4 }
0x1252   :  { %v1962_v19 = vsel %vm1961_vm3, %v4908_v55, %v1958_v32  ;;  %v1965_v47 = vmul.f32 %v4910_v24, %v1964_v45 }
0x1253   :  { %4596 = vmatmul.msk.f32.gmra.mxu3 %vm71_vm2, %v1986_v9  ;;  %v1975_v61 = vmul.f32 %v1962_v19, %v6000_v43 }
0x1254   :  { %v1966_v35 = vmul.f32 0.5, %v1965_v47 }
0x1255   :  { %v1979_v53 = vmul.f32 %v1975_v61, %v5347_v56 }
0x1256   :  { %v1967_v52 = vsub.f32 1.5, %v1966_v35 }
0x1257   :  { %v1983_v39 = vadd.f32 %v1979_v53, %v5350_v62 }
0x1258   :  { %v1968_v54 = vmul.f32 %v4910_v24, %v1967_v52 }
0x1259   :  { %v1987_v40 = vmax.f32 %v1983_v39, 0.0 }
0x125a   :  { %v1972_v10 = vsel %vm1971_vm6, %v4910_v24, %v1968_v54 }
0x125b   :  { %4597 = vmatmul.msk.f32.gmra.mxu3 %vm71_vm2, %v1987_v40  ;;  %v1976_v57 = vmul.f32 %v1972_v10, %v6006_v33 }
0x125d   :  { %v1980_v3 = vmul.f32 %v1976_v57, %v5347_v56 }
0x125f   :  { %v1984_v43 = vadd.f32 %v1980_v3, %v5350_v62 }
0x1261   :  { %v1988_v59 = vmax.f32 %v1984_v43, 0.0 }
0x1263   :  { %4598 = vmatmul.msk.f32.gmra.mxu3 %vm71_vm2, %v1988_v59 }
0x12ce   :  { %v2022_v4 = vpop.f32.mrf.mxu3 }
0x12cf   :  { %v6043_v50 = vadd.f32 %v2022_v4, %v5369_v49 }
0x12d1   :  { %v2034_v37 = vmul.f32 %v6043_v50, %v6043_v50 }
0x12d3   :  { %v2038_v15 = vsel %vm71_vm2, %v2034_v37, 0.0 }
0x12d6   :  { %v2025_v26 = vpop.f32.mrf.mxu3 }
0x12d7   :  { %v6030_v13 = vadd.f32 %v2025_v26, %v5369_v49 }
0x12d9   :  { %v2035_v16 = vmul.f32 %v6030_v13, %v6030_v13 }
0x12db   :  { %v2041_v1 = vsel %vm71_vm2, %v2035_v16, 0.0 }
0x12dc   :  { %2042 = vadd.xlane.f32.xlu1 %v2041_v1 }
0x12de   :  { %v2028_v18 = vpop.f32.mrf.mxu3 }
0x12df   :  { %v6036_v33 = vadd.f32 %v2028_v18, %v5369_v49 }
0x12e1   :  { %v2036_v51 = vmul.f32 %v6036_v33, %v6036_v33 }
0x12e3   :  { %v2044_v2 = vsel %vm71_vm2, %v2036_v51, 0.0 }
0x12e4   :  { %2045 = vadd.xlane.f32.xlu2 %v2044_v2 }
0x12e6   :  { %v2031_v38 = vpop.f32.mrf.mxu3 }
0x12e7   :  { %v2032_v23 = vadd.f32 %v2031_v38, %v5369_v49 }
0x12e9   :  { %v2037_v44 = vmul.f32 %v2032_v23, %v2032_v23 }
0x12eb   :  { %v2047_v58 = vsel %vm71_vm2, %v2037_v44, 0.0 }
0x12ec   :  { %2048 = vadd.xlane.f32.xlu0 %v2047_v58 }
0x12f4   :  { %2039 = vadd.xlane.f32.xlu0 %v2038_v15  ;;  %v2155_v15 = vmul.f32 0.03, %v5963_v27 }
0x134f   :  { %v2043_v12 = vpop.xlane.xlu1 %2042 }
0x1350   :  { %v2051_v34 = vadd.f32 1e-24, %v2043_v12 }
0x1352   :  { %4911 = vrsqrt.f32 %v2051_v34  ;;  %vm2070_vm11 = vweird.f32 %v2051_v34 }
0x1357   :  { %v2046_v5 = vpop.xlane.xlu2 %2045 }
0x1358   :  { %v2052_v55 = vadd.f32 1e-24, %v2046_v5  ;;  %v4912_v22 = vpop.eup %4911 }
0x1359   :  { %v2065_v42 = vmul.f32 %v4912_v22, %v2051_v34  ;;  %vm2071_vm8 = vweird.f32 %v4912_v22 }
0x135a   :  { %4913 = vrsqrt.f32 %v2052_v55  ;;  %vm2080_vm9 = vweird.f32 %v2052_v55  ;;  %vm2072_vm13 = vmor %vm2070_vm11, %vm2071_vm8 }
0x135b   :  { %v2066_v46 = vmul.f32 %v4912_v22, %v2065_v42 }
0x135d   :  { %v2067_v41 = vmul.f32 0.5, %v2066_v46 }
0x135f   :  { %v2049_v14 = vpop.xlane.xlu0 %2048  ;;  %v2068_v19 = vsub.f32 1.5, %v2067_v41 }
0x1360   :  { %v4914_v28 = vpop.eup %4913  ;;  %v2053_v11 = vadd.f32 1e-24, %v2049_v14 }
0x1361   :  { %v2075_v7 = vmul.f32 %v4914_v28, %v2052_v55  ;;  %vm2081_vm7 = vweird.f32 %v4914_v28  ;;  %v2069_v53 = vmul.f32 %v4912_v22, %v2068_v19 }
0x1362   :  { %4915 = vrsqrt.f32 %v2053_v11  ;;  %vm2082_vm12 = vmor %vm2080_vm9, %vm2081_vm7  ;;  %vm2090_vm14 = vweird.f32 %v2053_v11 }
0x1363   :  { %v2076_v21 = vmul.f32 %v4914_v28, %v2075_v7  ;;  %v2073_v43 = vsel %vm2072_vm13, %v4912_v22, %v2069_v53  ;;  %v2157_v22 = vmul.f32 0.03, %v5973_v17  ;;  %v2158_v7 = vmul.f32 0.03, %v5981_v30 }
0x1364   :  { %v2095_v1 = vmul.f32 5.656854, %v2073_v43 }
0x1365   :  { %v2077_v31 = vmul.f32 0.5, %v2076_v21 }
0x1366   :  { %v2099_v38 = vmul.f32 %v2095_v1, %v6030_v13 }
0x1367   :  { %v2040_v63 = vpop.xlane.xlu0 %2039  ;;  %v2078_v45 = vsub.f32 1.5, %v2077_v31 }
0x1368   :  { %v4916_v24 = vpop.eup %4915  ;;  %v2050_v32 = vadd.f32 1e-24, %v2040_v63 }
0x1369   :  { %v2085_v9 = vmul.f32 %v4916_v24, %v2053_v11  ;;  %v2079_v61 = vmul.f32 %v4914_v28, %v2078_v45  ;;  %vm2091_vm10 = vweird.f32 %v4916_v24 }
0x136a   :  { %4917 = vrsqrt.f32 %v2050_v32  ;;  %vm2092_vm15 = vmor %vm2090_vm14, %vm2091_vm10  ;;  %vm2060_vm4 = vweird.f32 %v2050_v32 }
0x136b   :  { %v2086_v47 = vmul.f32 %v4916_v24, %v2085_v9  ;;  %v2083_v10 = vsel %vm2082_vm12, %v4914_v28, %v2079_v61 }
0x136c   :  { %v2096_v4 = vmul.f32 5.656854, %v2083_v10 }
0x136d   :  { %v2087_v35 = vmul.f32 0.5, %v2086_v47 }
0x136e   :  { %v2100_v51 = vmul.f32 %v2096_v4, %v6036_v33 }
0x136f   :  { %v2088_v52 = vsub.f32 1.5, %v2087_v35 }
0x1370   :  { %v4918_v39 = vpop.eup %4917 }
0x1371   :  { %v2089_v54 = vmul.f32 %v4916_v24, %v2088_v52  ;;  %v2055_v40 = vmul.f32 %v4918_v39, %v2050_v32  ;;  %vm2061_vm3 = vweird.f32 %v4918_v39 }
0x1372   :  { %vm2062_vm5 = vmor %vm2060_vm4, %vm2061_vm3 }
0x1373   :  { %v2093_v57 = vsel %vm2092_vm15, %v4916_v24, %v2089_v54  ;;  %v2056_v3 = vmul.f32 %v4918_v39, %v2055_v40 }
0x1374   :  { %v2097_v59 = vmul.f32 5.656854, %v2093_v57 }
0x1375   :  { %v2057_v26 = vmul.f32 0.5, %v2056_v3 }
0x1376   :  { %v2101_v16 = vmul.f32 %v2097_v59, %v2032_v23 }
0x1377   :  { %v2058_v18 = vsub.f32 1.5, %v2057_v26 }
0x1378   :  { %2130 = vmatpush.msrb.mxu2 %v2101_v16 }
0x1379   :  { %v2059_v2 = vmul.f32 %v4918_v39, %v2058_v18 }
0x137a   :  { %2131 = vmatpush.msrb.mxu2 %v2100_v51 }
0x137b   :  { %v2063_v44 = vsel %vm2062_vm5, %v4918_v39, %v2059_v2 }
0x137c   :  { %2132 = vmatpush.msrb.mxu2 %v2099_v38  ;;  %v2094_v58 = vmul.f32 5.656854, %v2063_v44 }
0x137e   :  { %v2098_v37 = vmul.f32 %v2094_v58, %v6043_v50 }
0x1380   :  { %2133 = vmatpush.msrb.mxu2 %v2098_v37 }
0x1381   :  { %4599 = vmatmul.msk.f32.vlgmr.msrb.gmra.mxu2 %vm71_vm2, %v5855_v60 }
0x1389   :  { %4600 = vmatmul.msk.f32.gmra.mxu2 %vm71_vm2, %v5864_v20  ;;  %v2156_v20 = vmul.f32 0.03, %v5957_v48 }
0x1391   :  { %4601 = vmatmul.msk.f32.gmra.mxu2 %vm71_vm2, %v5873_v8 }
0x1399   :  { %4602 = vmatmul.msk.f32.gmra.mxu2 %vm71_vm2, %v5880_v6 }
0x1404   :  { %v2135_v33 = vpop.f32.mrf.mxu2 }
0x1405   :  { %v2147_v13 = vmul.f32 0.02, %v2135_v33 }
0x1407   :  { %v2151_v23 = vadd.f32 %v2147_v13, %v2098_v37 }
0x1409   :  { %v2159_v12 = vsub.f32 %v2151_v23, %v2155_v15  ;;  %4607 = vmatmul.msk.f32.vlgmr.msrb.gmra.mxu1 %vm71_vm2, %v2151_v23 }
0x140b   :  { %4603 = vmatmul.msk.f32.vlgmr.msrb.gmra.mxu0 %vm71_vm2, %v2159_v12 }
0x140c   :  { %v2138_v60 = vpop.f32.mrf.mxu2 }
0x140d   :  { %v2148_v50 = vmul.f32 0.02, %v2138_v60 }
0x140f   :  { %v2152_v34 = vadd.f32 %v2148_v50, %v2099_v38 }
0x1411   :  { %4608 = vmatmul.msk.f32.gmra.mxu1 %vm71_vm2, %v2152_v34  ;;  %v2160_v8 = vsub.f32 %v2152_v34, %v2156_v20  ;;  %v6111_v34 = vld [vmem:[%s7175_s2 + $0x60] sm:$0xff]  ;;  %v6117_v20 = vld [vmem:[%s7175_s2 + $0x58] sm:$0xff] }
0x1412   :  { %2402 = vmatpush.msrb.mxu3 %v6111_v34 }
0x1413   :  { %4604 = vmatmul.msk.f32.gmra.mxu0 %vm71_vm2, %v2160_v8  ;;  %v6123_v8 = vld [vmem:[%s7175_s2 + $0x50] sm:$0xff] }
0x1414   :  { %v2141_v6 = vpop.f32.mrf.mxu2  ;;  %2403 = vmatpush.msrb.mxu3 %v6117_v20 }
0x1415   :  { %v2149_v5 = vmul.f32 0.02, %v2141_v6  ;;  %v6129_v6 = vld [vmem:[%s7175_s2 + $0x48] sm:$0xff] }
0x1416   :  { %2404 = vmatpush.msrb.mxu3 %v6123_v8 }
0x1417   :  { %v2153_v55 = vadd.f32 %v2149_v5, %v2100_v51 }
0x1418   :  { %2405 = vmatpush.msrb.mxu3 %v6129_v6 }
0x1419   :  { %4609 = vmatmul.msk.f32.gmra.mxu1 %vm71_vm2, %v2153_v55  ;;  %v2161_v42 = vsub.f32 %v2153_v55, %v2157_v22  ;;  %v6135_v55 = vld [vmem:[%s7175_s2 + $0x40] sm:$0xff]  ;;  %v6141_v22 = vld [vmem:[%s7175_s2 + $0x38] sm:$0xff] }
0x141a   :  { %2406 = vmatpush.msrb.mxu3 %v6135_v55 }
0x141b   :  { %4605 = vmatmul.msk.f32.gmra.mxu0 %vm71_vm2, %v2161_v42  ;;  %v6147_v42 = vld [vmem:[%s7175_s2 + $0x30] sm:$0xff] }
0x141c   :  { %v2144_v14 = vpop.f32.mrf.mxu2  ;;  %2407 = vmatpush.msrb.mxu3 %v6141_v22 }
0x141d   :  { %v2150_v28 = vmul.f32 0.02, %v2144_v14  ;;  %v6153_v14 = vld [vmem:[%s7175_s2 + $0x28] sm:$0xff] }
0x141e   :  { %2408 = vmatpush.msrb.mxu3 %v6147_v42 }
0x141f   :  { %v2154_v11 = vadd.f32 %v2150_v28, %v2101_v16 }
0x1420   :  { %2409 = vmatpush.msrb.mxu3 %v6153_v14 }
0x1421   :  { %4610 = vmatmul.msk.f32.gmra.mxu1 %vm71_vm2, %v2154_v11  ;;  %v2162_v46 = vsub.f32 %v2154_v11, %v2158_v7 }
0x1423   :  { %4606 = vmatmul.msk.f32.gmra.mxu0 %vm71_vm2, %v2162_v46 }
0x1486   :  { %v2245_v21 = vpop.f32.mrf.mxu1 }
0x1487   :  { %v2246_v31 = vadd.f32 %v2245_v21, %v5473_v29 }
0x1488   :  { %v2196_v53 = vpop.f32.mrf.mxu0 }
0x1489   :  { %4919 = vtanh.f32 %v2246_v31  ;;  %v2197_v52 = vadd.f32 %v2196_v53, %v5483_v36 }
0x148e   :  { %v2248_v41 = vpop.f32.mrf.mxu1 }
0x148f   :  { %v4920_v63 = vpop.eup %4919  ;;  %v2249_v24 = vadd.f32 %v2248_v41, %v5473_v29 }
0x1490   :  { %2265 = vrot.lane.b32.xlu2 %v4920_v63, %s5123_s30  ;;  %v2199_v39 = vpop.f32.mrf.mxu0 }
0x1491   :  { %4921 = vtanh.f32 %v2249_v24  ;;  %v2200_v26 = vadd.f32 %v2199_v39, %v5483_v36 }
0x1496   :  { %v2251_v32 = vpop.f32.mrf.mxu1 }
0x1497   :  { %v4922_v45 = vpop.eup %4921  ;;  %v2252_v9 = vadd.f32 %v2251_v32, %v5473_v29 }
0x1498   :  { %2267 = vrot.lane.b32.xlu1 %v4922_v45, %s5123_s30  ;;  %v2202_v10 = vpop.f32.mrf.mxu0 }
0x1499   :  { %4923 = vtanh.f32 %v2252_v9  ;;  %v2203_v38 = vadd.f32 %v2202_v10, %v5483_v36 }
0x149e   :  { %v2254_v19 = vpop.f32.mrf.mxu1 }
0x149f   :  { %v4924_v47 = vpop.eup %4923  ;;  %v2255_v61 = vadd.f32 %v2254_v19, %v5473_v29 }
0x14a0   :  { %2269 = vrot.lane.b32.xlu0 %v4924_v47, %s5123_s30  ;;  %v2205_v59 = vpop.f32.mrf.mxu0 }
0x14a1   :  { %4925 = vtanh.f32 %v2255_v61  ;;  %v2206_v4 = vadd.f32 %v2205_v59, %v5483_v36 }
0x14a2   :  { %4927 = vtanh.f32 %v2197_v52 }
0x14a3   :  { %4929 = vtanh.f32 %v2206_v4 }
0x14a4   :  { %4931 = vtanh.f32 %v2200_v26 }
0x14a5   :  { %4933 = vtanh.f32 %v2203_v38 }
0x14a7   :  { %v4926_v35 = vpop.eup %4925 }
0x14a8   :  { %2271 = vrot.lane.b32.xlu2 %v4926_v35, %s5123_s30  ;;  %v4928_v54 = vpop.eup %4927 }
0x14a9   :  { %v4930_v16 = vpop.eup %4929 }
0x14aa   :  { %v4932_v44 = vpop.eup %4931 }
0x14ab   :  { %v4934_v23 = vpop.eup %4933 }
0x14ea   :  { %v2266_v40 = vpop.permute.xlu2 %2265 }
0x14eb   :  { %v6082_v57 = vsel %vm71_vm2, %v4928_v54, %v2266_v40 }
0x14ec   :  { %v2281_v3 = vmul.f32 %v6082_v57, %v6082_v57 }
0x14ee   :  { %v2285_v43 = vsel %vm227_vm0, %v2281_v3, 0.0 }
0x14ef   :  { %2286 = vadd.xlane.f32.xlu0 %v2285_v43 }
0x1502   :  { %v2272_v1 = vpop.permute.xlu2 %2271 }
0x1503   :  { %v6090_v18 = vsel %vm71_vm2, %v4930_v16, %v2272_v1 }
0x1504   :  { %v2284_v51 = vmul.f32 %v6090_v18, %v6090_v18 }
0x1506   :  { %v2294_v2 = vsel %vm227_vm0, %v2284_v51, 0.0 }
0x1507   :  { %2295 = vadd.xlane.f32.xlu0 %v2294_v2 }
0x150a   :  { %v2268_v58 = vpop.permute.xlu1 %2267 }
0x150b   :  { %v6097_v37 = vsel %vm71_vm2, %v4932_v44, %v2268_v58 }
0x150c   :  { %v2282_v33 = vmul.f32 %v6097_v37, %v6097_v37 }
0x150e   :  { %v2288_v13 = vsel %vm227_vm0, %v2282_v33, 0.0 }
0x150f   :  { %2289 = vadd.xlane.f32.xlu1 %v2288_v13 }
0x1512   :  { %v2270_v15 = vpop.permute.xlu0 %2269 }
0x1513   :  { %v6103_v12 = vsel %vm71_vm2, %v4934_v23, %v2270_v15 }
0x1514   :  { %v2283_v60 = vmul.f32 %v6103_v12, %v6103_v12 }
0x1516   :  { %v2291_v50 = vsel %vm227_vm0, %v2283_v60, 0.0 }
0x1517   :  { %2292 = vadd.xlane.f32.xlu2 %v2291_v50 }
0x1562   :  { %v2287_v5 = vpop.xlane.xlu0 %2286 }
0x1563   :  { %4935 = vrsqrt.f32 %v2287_v5  ;;  %vm2304_vm6 = vcmp.eq.f32.partialorder %v2287_v5, inf  ;;  %v2307_v63 = vand.u32 2147483648, %v2287_v5  ;;  %vm2306_vm7 = vcmp.eq.f32.partialorder %v2287_v5, 0.0 }
0x1569   :  { %v4936_v28 = vpop.eup %4935 }
0x156a   :  { %v2298_v11 = vmul.f32 %v4936_v28, %v2287_v5 }
0x156c   :  { %v2299_v7 = vmul.f32 %v4936_v28, %v2298_v11 }
0x156e   :  { %v2300_v46 = vmul.f32 0.5, %v2299_v7 }
0x1570   :  { %v2301_v21 = vsub.f32 1.5, %v2300_v46 }
0x1572   :  { %v2302_v31 = vmul.f32 %v4936_v28, %v2301_v21 }
0x1574   :  { %v2303_v41 = vmul.f32 %v2302_v31, %v2287_v5 }
0x1576   :  { %v2305_v24 = vsel %vm2304_vm6, %v2287_v5, %v2303_v41 }
0x1577   :  { %v2308_v32 = vsel %vm2306_vm7, %v2307_v63, %v2305_v24 }
0x1578   :  { %v2345_v45 = vadd.f32 1e-08, %v2308_v32 }
0x157a   :  { %v2296_v9 = vpop.xlane.xlu0 %2295  ;;  %4937 = vrcp.f32 %v2345_v45 }
0x157b   :  { %4939 = vrsqrt.f32 %v2296_v9  ;;  %vm2340_vm8 = vcmp.eq.f32.partialorder %v2296_v9, inf  ;;  %v2343_v51 = vand.u32 2147483648, %v2296_v9  ;;  %vm2342_vm9 = vcmp.eq.f32.partialorder %v2296_v9, 0.0 }
0x1580   :  { %v4938_v19 = vpop.eup %4937 }
0x1581   :  { %v4940_v47 = vpop.eup %4939  ;;  %v2353_v61 = vmul.f32 5.0, %v4938_v19 }
0x1582   :  { %v2334_v35 = vmul.f32 %v4940_v47, %v2296_v9  ;;  %v2290_v53 = vpop.xlane.xlu1 %2289 }
0x1583   :  { %4941 = vrsqrt.f32 %v2290_v53  ;;  %v2357_v39 = vmin.f32 %v2353_v61, 1.0  ;;  %vm2316_vm10 = vcmp.eq.f32.partialorder %v2290_v53, inf  ;;  %v2319_v60 = vand.u32 2147483648, %v2290_v53 }
0x1584   :  { %v2335_v52 = vmul.f32 %v4940_v47, %v2334_v35  ;;  %vm2318_vm11 = vcmp.eq.f32.partialorder %v2290_v53, 0.0 }
0x1585   :  { %v2361_v40 = vmul.f32 %v2357_v39, %v6082_v57 }
0x1586   :  { %v2336_v54 = vmul.f32 0.5, %v2335_v52 }
0x1587   :  { %v6158_v3 = vadd.f32 %v2361_v40, %v5963_v27 }
0x1588   :  { %v2337_v10 = vsub.f32 1.5, %v2336_v54 }
0x1589   :  { %v4942_v43 = vpop.eup %4941  ;;  %2370 = vst.msk [vmem:[#allocation2 + $0x80] sm:$0xff] %vm227_vm0, %v6158_v3  ;;  %4611 = vmatmul.msk.f32.vlgmr.msrb.gmra.mxu3 %vm227_vm0, %v6158_v3 }
0x158a   :  { %v2338_v59 = vmul.f32 %v4940_v47, %v2337_v10  ;;  %v2310_v4 = vmul.f32 %v4942_v43, %v2290_v53  ;;  %v2293_v26 = vpop.xlane.xlu2 %2292 }
0x158b   :  { %4943 = vrsqrt.f32 %v2293_v26  ;;  %vm2328_vm12 = vcmp.eq.f32.partialorder %v2293_v26, inf  ;;  %v2331_v24 = vand.u32 2147483648, %v2293_v26  ;;  %vm2330_vm13 = vcmp.eq.f32.partialorder %v2293_v26, 0.0 }
0x158c   :  { %v2339_v16 = vmul.f32 %v2338_v59, %v2296_v9  ;;  %v2311_v1 = vmul.f32 %v4942_v43, %v2310_v4 }
0x158e   :  { %v2341_v57 = vsel %vm2340_vm8, %v2296_v9, %v2339_v16  ;;  %v2312_v2 = vmul.f32 0.5, %v2311_v1 }
0x158f   :  { %v2344_v27 = vsel %vm2342_vm9, %v2343_v51, %v2341_v57 }
0x1590   :  { %v2313_v38 = vsub.f32 1.5, %v2312_v2  ;;  %v2348_v44 = vadd.f32 1e-08, %v2344_v27 }
0x1591   :  { %v4944_v58 = vpop.eup %4943 }
0x1592   :  { %v2314_v33 = vmul.f32 %v4942_v43, %v2313_v38  ;;  %v2322_v13 = vmul.f32 %v4944_v58, %v2293_v26  ;;  %4945 = vrcp.f32 %v2348_v44 }
0x1594   :  { %v2315_v23 = vmul.f32 %v2314_v33, %v2290_v53  ;;  %v2323_v15 = vmul.f32 %v4944_v58, %v2322_v13 }
0x1596   :  { %v2317_v50 = vsel %vm2316_vm10, %v2290_v53, %v2315_v23  ;;  %v2324_v5 = vmul.f32 0.5, %v2323_v15 }
0x1597   :  { %v2320_v28 = vsel %vm2318_vm11, %v2319_v60, %v2317_v50 }
0x1598   :  { %v4946_v11 = vpop.eup %4945  ;;  %v2325_v7 = vsub.f32 1.5, %v2324_v5  ;;  %v2346_v46 = vadd.f32 1e-08, %v2320_v28 }
0x1599   :  { %v2356_v21 = vmul.f32 5.0, %v4946_v11 }
0x159a   :  { %v2326_v31 = vmul.f32 %v4944_v58, %v2325_v7  ;;  %4947 = vrcp.f32 %v2346_v46 }
0x159b   :  { %v2360_v41 = vmin.f32 %v2356_v21, 1.0 }
0x159c   :  { %v2327_v63 = vmul.f32 %v2326_v31, %v2293_v26 }
0x159d   :  { %v2364_v32 = vmul.f32 %v2360_v41, %v6090_v18 }
0x159e   :  { %v2329_v45 = vsel %vm2328_vm12, %v2293_v26, %v2327_v63 }
0x159f   :  { %v2332_v9 = vsel %vm2330_vm13, %v2331_v24, %v2329_v45  ;;  %v6166_v19 = vadd.f32 %v2364_v32, %v5981_v30  ;;  %v6219_v24 = vld [vmem:[%s7175_s2 + $0x80] sm:$0xff]  ;;  %v6225_v32 = vld [vmem:[%s7175_s2 + $0x78] sm:$0xff]  ;;  %v6230_v45 = vld [vmem:[%s7175_s2 + $0x70] sm:$0xff] }
0x15a0   :  { %v4948_v47 = vpop.eup %4947  ;;  %v2347_v61 = vadd.f32 1e-08, %v2332_v9  ;;  %2551 = vmatpush.msra.mxu2 %v6219_v24  ;;  %v6236_v9 = vld [vmem:[%s7175_s2 + $0x68] sm:$0xff] }
0x15a1   :  { %v2354_v35 = vmul.f32 5.0, %v4948_v47  ;;  %2373 = vst.msk [vmem:[#allocation2 + $0x98] sm:$0xff] %vm227_vm0, %v6166_v19 }
0x15a2   :  { %4949 = vrcp.f32 %v2347_v61  ;;  %2552 = vmatpush.msra.mxu2 %v6225_v32 }
0x15a3   :  { %v2358_v53 = vmin.f32 %v2354_v35, 1.0 }
0x15a4   :  { %2553 = vmatpush.msra.mxu2 %v6230_v45 }
0x15a5   :  { %v2362_v52 = vmul.f32 %v2358_v53, %v6097_v37 }
0x15a6   :  { %2554 = vmatpush.msra.mxu2 %v6236_v9 }
0x15a7   :  { %v6172_v39 = vadd.f32 %v2362_v52, %v5957_v48 }
0x15a8   :  { %v4950_v18 = vpop.eup %4949  ;;  %2936 = vmatpush.msrb.mxu2 %v6111_v34 }
0x15a9   :  { %2371 = vst.msk [vmem:[#allocation2 + $0x88] sm:$0xff] %vm227_vm0, %v6172_v39  ;;  %4612 = vmatmul.msk.f32.gmra.mxu3 %vm227_vm0, %v6172_v39  ;;  %v2355_v30 = vmul.f32 5.0, %v4950_v18 }
0x15aa   :  { %2937 = vmatpush.msrb.mxu2 %v6117_v20 }
0x15ab   :  { %v2359_v54 = vmin.f32 %v2355_v30, 1.0 }
0x15ac   :  { %2938 = vmatpush.msrb.mxu2 %v6123_v8 }
0x15ad   :  { %v2363_v40 = vmul.f32 %v2359_v54, %v6103_v12 }
0x15ae   :  { %2939 = vmatpush.msrb.mxu2 %v6129_v6 }
0x15af   :  { %v6180_v10 = vadd.f32 %v2363_v40, %v5973_v17 }
0x15b0   :  { %2940 = vmatpush.msrb.mxu2 %v6135_v55 }
0x15b1   :  { %2372 = vst.msk [vmem:[#allocation2 + $0x90] sm:$0xff] %vm227_vm0, %v6180_v10  ;;  %4613 = vmatmul.msk.f32.gmra.mxu3 %vm227_vm0, %v6180_v10 }
0x15b2   :  { %2941 = vmatpush.msrb.mxu2 %v6141_v22 }
0x15b4   :  { %2942 = vmatpush.msrb.mxu2 %v6147_v42 }
0x15b6   :  { %2943 = vmatpush.msrb.mxu2 %v6153_v14 }
0x15b9   :  { %4614 = vmatmul.msk.f32.gmra.mxu3 %vm227_vm0, %v6166_v19 }
0x160c   :  { %v2411_v48 = vpop.f32.mrf.mxu3 }
0x160d   :  { %v2412_v37 = vadd.f32 %v2411_v48, %v5289_v0 }
0x160f   :  { %v2423_v43 = vsel %vm71_vm2, %v2412_v37, 0.0 }
0x1610   :  { %2424 = vadd.xlane.f32.xlu1 %v2423_v43 }
0x162c   :  { %v2414_v59 = vpop.f32.mrf.mxu3 }
0x162d   :  { %v2415_v12 = vadd.f32 %v2414_v59, %v5289_v0 }
0x162f   :  { %v2426_v17 = vsel %vm71_vm2, %v2415_v12, 0.0 }
0x1630   :  { %2427 = vadd.xlane.f32.xlu2 %v2426_v17 }
0x1634   :  { %v2417_v4 = vpop.f32.mrf.mxu3 }
0x1635   :  { %v2418_v26 = vadd.f32 %v2417_v4, %v5289_v0 }
0x1637   :  { %v2429_v16 = vsel %vm71_vm2, %v2418_v26, 0.0 }
0x1638   :  { %2430 = vadd.xlane.f32.xlu0 %v2429_v16 }
0x163c   :  { %v2420_v1 = vpop.f32.mrf.mxu3 }
0x163d   :  { %v2421_v51 = vadd.f32 %v2420_v1, %v5289_v0 }
0x163f   :  { %v2432_v57 = vsel %vm71_vm2, %v2421_v51, 0.0 }
0x1640   :  { %2433 = vadd.xlane.f32.xlu1 %v2432_v57 }
0x1683   :  { %v2425_v2 = vpop.xlane.xlu1 %2424 }
0x1684   :  { %v2435_v27 = vmul.f32 %v2425_v2, %v5181_v25 }
0x1686   :  { %v2439_v38 = vsub.f32 %v2412_v37, %v2435_v27 }
0x1688   :  { %v2443_v44 = vmul.f32 %v2439_v38, %v2439_v38 }
0x168a   :  { %v2447_v58 = vsel %vm71_vm2, %v2443_v44, 0.0 }
0x168b   :  { %2448 = vadd.xlane.f32.xlu2 %v2447_v58 }
0x16a3   :  { %v2428_v33 = vpop.xlane.xlu2 %2427 }
0x16a4   :  { %v2436_v13 = vmul.f32 %v2428_v33, %v5181_v25 }
0x16a6   :  { %v6199_v23 = vsub.f32 %v2415_v12, %v2436_v13 }
0x16a8   :  { %v2444_v15 = vmul.f32 %v6199_v23, %v6199_v23 }
0x16aa   :  { %v2450_v60 = vsel %vm71_vm2, %v2444_v15, 0.0 }
0x16ab   :  { %2451 = vadd.xlane.f32.xlu0 %v2450_v60  ;;  %v2431_v50 = vpop.xlane.xlu0 %2430 }
0x16ac   :  { %v2437_v5 = vmul.f32 %v2431_v50, %v5181_v25 }
0x16ae   :  { %v6205_v28 = vsub.f32 %v2418_v26, %v2437_v5 }
0x16b0   :  { %v2445_v11 = vmul.f32 %v6205_v28, %v6205_v28 }
0x16b2   :  { %v2453_v7 = vsel %vm71_vm2, %v2445_v11, 0.0 }
0x16b3   :  { %v2434_v46 = vpop.xlane.xlu1 %2433  ;;  %2454 = vadd.xlane.f32.xlu1 %v2453_v7 }
0x16b4   :  { %v2438_v21 = vmul.f32 %v2434_v46, %v5181_v25 }
0x16b6   :  { %v6211_v31 = vsub.f32 %v2421_v51, %v2438_v21 }
0x16b8   :  { %v2446_v41 = vmul.f32 %v6211_v31, %v6211_v31 }
0x16ba   :  { %v2456_v63 = vsel %vm71_vm2, %v2446_v41, 0.0 }
0x16bb   :  { %2457 = vadd.xlane.f32.xlu2 %v2456_v63 }
0x16fe   :  { %v2449_v47 = vpop.xlane.xlu2 %2448 }
0x16ff   :  { %v2459_v61 = vmul.f32 %v2449_v47, %v5181_v25 }
0x1701   :  { %v2463_v35 = vadd.f32 1e-05, %v2459_v61 }
0x1703   :  { %4951 = vrsqrt.f32 %v2463_v35  ;;  %vm2473_vm15 = vweird.f32 %v2463_v35 }
0x1709   :  { %v4952_v53 = vpop.eup %4951 }
0x170a   :  { %v2468_v52 = vmul.f32 %v4952_v53, %v2463_v35  ;;  %vm2474_vm14 = vweird.f32 %v4952_v53 }
0x170b   :  { %vm2475_vm3 = vmor %vm2473_vm15, %vm2474_vm14 }
0x170c   :  { %v2469_v34 = vmul.f32 %v4952_v53, %v2468_v52 }
0x170e   :  { %v2470_v18 = vmul.f32 0.5, %v2469_v34 }
0x1710   :  { %v2471_v30 = vsub.f32 1.5, %v2470_v18 }
0x1712   :  { %v2472_v20 = vmul.f32 %v4952_v53, %v2471_v30 }
0x1714   :  { %v2476_v8 = vsel %vm2475_vm3, %v4952_v53, %v2472_v20 }
0x1715   :  { %v2507_v54 = vmul.f32 %v2476_v8, %v2439_v38 }
0x1717   :  { %v2511_v6 = vmul.f32 %v2507_v54, %v5347_v56 }
0x1719   :  { %v2515_v55 = vadd.f32 %v2511_v6, %v5350_v62 }
0x171b   :  { %v2519_v22 = vmax.f32 %v2515_v55, 0.0 }
0x171d   :  { %4615 = vmatmul.msk.f32.vlgmr.msra.gmra.mxu2 %vm71_vm2, %v2519_v22 }
0x171e   :  { %v2452_v42 = vpop.xlane.xlu0 %2451 }
0x171f   :  { %v2460_v40 = vmul.f32 %v2452_v42, %v5181_v25 }
0x1721   :  { %v2464_v14 = vadd.f32 1e-05, %v2460_v40 }
0x1723   :  { %4953 = vrsqrt.f32 %v2464_v14  ;;  %vm2483_vm5 = vweird.f32 %v2464_v14 }
0x1726   :  { %v2455_v48 = vpop.xlane.xlu1 %2454 }
0x1727   :  { %v2461_v37 = vmul.f32 %v2455_v48, %v5181_v25 }
0x1729   :  { %v4954_v43 = vpop.eup %4953  ;;  %v2465_v59 = vadd.f32 1e-05, %v2461_v37 }
0x172a   :  { %v2478_v12 = vmul.f32 %v4954_v43, %v2464_v14  ;;  %vm2484_vm4 = vweird.f32 %v4954_v43 }
0x172b   :  { %4955 = vrsqrt.f32 %v2465_v59  ;;  %vm2485_vm6 = vmor %vm2483_vm5, %vm2484_vm4  ;;  %vm2493_vm8 = vweird.f32 %v2465_v59 }
0x172c   :  { %v2479_v17 = vmul.f32 %v4954_v43, %v2478_v12 }
0x172e   :  { %v2480_v4 = vmul.f32 0.5, %v2479_v17  ;;  %v2458_v26 = vpop.xlane.xlu2 %2457 }
0x172f   :  { %v2462_v16 = vmul.f32 %v2458_v26, %v5181_v25 }
0x1730   :  { %v2481_v1 = vsub.f32 1.5, %v2480_v4 }
0x1731   :  { %v4956_v51 = vpop.eup %4955  ;;  %v2466_v57 = vadd.f32 1e-05, %v2462_v16 }
0x1732   :  { %v2482_v2 = vmul.f32 %v4954_v43, %v2481_v1  ;;  %v2488_v27 = vmul.f32 %v4956_v51, %v2465_v59  ;;  %vm2494_vm7 = vweird.f32 %v4956_v51 }
0x1733   :  { %4957 = vrsqrt.f32 %v2466_v57  ;;  %vm2495_vm9 = vmor %vm2493_vm8, %vm2494_vm7  ;;  %vm2503_vm11 = vweird.f32 %v2466_v57 }
0x1734   :  { %v2486_v38 = vsel %vm2485_vm6, %v4954_v43, %v2482_v2  ;;  %v2489_v44 = vmul.f32 %v4956_v51, %v2488_v27 }
0x1735   :  { %v2508_v58 = vmul.f32 %v2486_v38, %v6199_v23 }
0x1736   :  { %v2490_v33 = vmul.f32 0.5, %v2489_v44 }
0x1737   :  { %v2512_v13 = vmul.f32 %v2508_v58, %v5347_v56 }
0x1738   :  { %v2491_v15 = vsub.f32 1.5, %v2490_v33 }
0x1739   :  { %v4958_v60 = vpop.eup %4957  ;;  %v2516_v50 = vadd.f32 %v2512_v13, %v5350_v62 }
0x173a   :  { %v2492_v5 = vmul.f32 %v4956_v51, %v2491_v15  ;;  %v2498_v11 = vmul.f32 %v4958_v60, %v2466_v57  ;;  %vm2504_vm10 = vweird.f32 %v4958_v60 }
0x173b   :  { %v2520_v7 = vmax.f32 %v2516_v50, 0.0  ;;  %vm2505_vm12 = vmor %vm2503_vm11, %vm2504_vm10 }
0x173c   :  { %v2496_v46 = vsel %vm2495_vm9, %v4956_v51, %v2492_v5  ;;  %v2499_v21 = vmul.f32 %v4958_v60, %v2498_v11 }
0x173d   :  { %v2509_v41 = vmul.f32 %v2496_v46, %v6205_v28  ;;  %4616 = vmatmul.msk.f32.gmra.mxu2 %vm71_vm2, %v2520_v7 }
0x173e   :  { %v2500_v23 = vmul.f32 0.5, %v2499_v21 }
0x173f   :  { %v2513_v63 = vmul.f32 %v2509_v41, %v5347_v56 }
0x1740   :  { %v2501_v47 = vsub.f32 1.5, %v2500_v23 }
0x1741   :  { %v2517_v61 = vadd.f32 %v2513_v63, %v5350_v62 }
0x1742   :  { %v2502_v35 = vmul.f32 %v4958_v60, %v2501_v47 }
0x1743   :  { %v2521_v53 = vmax.f32 %v2517_v61, 0.0 }
0x1744   :  { %v2506_v52 = vsel %vm2505_vm12, %v4958_v60, %v2502_v35 }
0x1745   :  { %v2510_v34 = vmul.f32 %v2506_v52, %v6211_v31  ;;  %4617 = vmatmul.msk.f32.gmra.mxu2 %vm71_vm2, %v2521_v53 }
0x1747   :  { %v2514_v28 = vmul.f32 %v2510_v34, %v5347_v56 }
0x1749   :  { %v2518_v18 = vadd.f32 %v2514_v28, %v5350_v62 }
0x174b   :  { %v2522_v30 = vmax.f32 %v2518_v18, 0.0 }
0x174d   :  { %4618 = vmatmul.msk.f32.gmra.mxu2 %vm71_vm2, %v2522_v30 }
0x17a0   :  { %v2556_v20 = vpop.f32.mrf.mxu2 }
0x17a1   :  { %v6281_v43 = vadd.f32 %v2556_v20, %v5369_v49 }
0x17a3   :  { %v2568_v12 = vmul.f32 %v6281_v43, %v6281_v43 }
0x17a5   :  { %v2572_v17 = vsel %vm71_vm2, %v2568_v12, 0.0 }
0x17c0   :  { %v2559_v8 = vpop.f32.mrf.mxu2 }
0x17c1   :  { %v6268_v54 = vadd.f32 %v2559_v8, %v5369_v49 }
0x17c3   :  { %v2569_v6 = vmul.f32 %v6268_v54, %v6268_v54 }
0x17c5   :  { %v2575_v55 = vsel %vm71_vm2, %v2569_v6, 0.0 }
0x17c6   :  { %2576 = vadd.xlane.f32.xlu2 %v2575_v55 }
0x17c8   :  { %v2562_v31 = vpop.f32.mrf.mxu2 }
0x17c9   :  { %v6274_v22 = vadd.f32 %v2562_v31, %v5369_v49 }
0x17cb   :  { %v2570_v42 = vmul.f32 %v6274_v22, %v6274_v22 }
0x17cd   :  { %v2578_v40 = vsel %vm71_vm2, %v2570_v42, 0.0 }
0x17ce   :  { %2579 = vadd.xlane.f32.xlu1 %v2578_v40 }
0x17d0   :  { %v2565_v14 = vpop.f32.mrf.mxu2 }
0x17d1   :  { %v2566_v48 = vadd.f32 %v2565_v14, %v5369_v49  ;;  %v2749_v14 = vld [vmem:[%s7175_s2 + $0xc0] sm:$0xff] }
0x17d2   :  { %2774 = vmatpush.msra.mxu3 %v2749_v14  ;;  %3308 = vmatpush.msra.mxu2 %v2749_v14 }
0x17d3   :  { %v2571_v37 = vmul.f32 %v2566_v48, %v2566_v48 }
0x17d5   :  { %v2581_v59 = vsel %vm71_vm2, %v2571_v37, 0.0 }
0x17d6   :  { %2582 = vadd.xlane.f32.xlu0 %v2581_v59 }
0x17de   :  { %2573 = vadd.xlane.f32.xlu0 %v2572_v17  ;;  %v2747_v17 = vld [vmem:[%s7175_s2 + $0xb0] sm:$0xff] }
0x1839   :  { %v2577_v4 = vpop.xlane.xlu2 %2576 }
0x183a   :  { %v2585_v26 = vadd.f32 1e-24, %v2577_v4  ;;  %v2698_v4 = vld [vmem:[%s7175_s2 + $0x90] sm:$0xff] }
0x183c   :  { %4959 = vrsqrt.f32 %v2585_v26  ;;  %vm2604_vm4 = vweird.f32 %v2585_v26 }
0x1841   :  { %v2580_v16 = vpop.xlane.xlu1 %2579 }
0x1842   :  { %v2586_v1 = vadd.f32 1e-24, %v2580_v16  ;;  %v4960_v51 = vpop.eup %4959  ;;  %v2697_v16 = vld [vmem:[%s7175_s2 + $0x88] sm:$0xff] }
0x1843   :  { %v2599_v57 = vmul.f32 %v4960_v51, %v2585_v26  ;;  %vm2605_vm14 = vweird.f32 %v4960_v51  ;;  %v2746_v26 = vld [vmem:[%s7175_s2 + $0xa8] sm:$0xff] }
0x1844   :  { %4961 = vrsqrt.f32 %v2586_v1  ;;  %vm2614_vm15 = vweird.f32 %v2586_v1  ;;  %vm2606_vm6 = vmor %vm2604_vm4, %vm2605_vm14 }
0x1845   :  { %v2600_v58 = vmul.f32 %v4960_v51, %v2599_v57 }
0x1847   :  { %v2601_v15 = vmul.f32 0.5, %v2600_v58 }
0x1849   :  { %v2583_v2 = vpop.xlane.xlu0 %2582  ;;  %v2602_v46 = vsub.f32 1.5, %v2601_v15 }
0x184a   :  { %v4962_v27 = vpop.eup %4961  ;;  %v2587_v38 = vadd.f32 1e-24, %v2583_v2  ;;  %v2689_v2 = vmul.f32 0.03, %v6158_v3 }
0x184b   :  { %v2609_v44 = vmul.f32 %v4962_v27, %v2586_v1  ;;  %vm2615_vm13 = vweird.f32 %v4962_v27  ;;  %v2603_v63 = vmul.f32 %v4960_v51, %v2602_v46 }
0x184c   :  { %4963 = vrsqrt.f32 %v2587_v38  ;;  %vm2616_vm5 = vmor %vm2614_vm15, %vm2615_vm13  ;;  %vm2624_vm7 = vweird.f32 %v2587_v38 }
0x184d   :  { %v2610_v33 = vmul.f32 %v4962_v27, %v2609_v44  ;;  %v2607_v18 = vsel %vm2606_vm6, %v4960_v51, %v2603_v63 }
0x184e   :  { %v2629_v55 = vmul.f32 5.656854, %v2607_v18 }
0x184f   :  { %v2611_v13 = vmul.f32 0.5, %v2610_v33  ;;  %v2690_v33 = vmul.f32 0.03, %v6172_v39 }
0x1851   :  { %v2574_v60 = vpop.xlane.xlu0 %2573  ;;  %v2612_v11 = vsub.f32 1.5, %v2611_v13 }
0x1852   :  { %v4964_v50 = vpop.eup %4963  ;;  %v2584_v5 = vadd.f32 1e-24, %v2574_v60 }
0x1853   :  { %v2619_v7 = vmul.f32 %v4964_v50, %v2587_v38  ;;  %v2613_v41 = vmul.f32 %v4962_v27, %v2612_v11  ;;  %vm2625_vm3 = vweird.f32 %v4964_v50 }
0x1854   :  { %4965 = vrsqrt.f32 %v2584_v5  ;;  %vm2626_vm8 = vmor %vm2624_vm7, %vm2625_vm3  ;;  %vm2594_vm10 = vweird.f32 %v2584_v5 }
0x1855   :  { %v2620_v21 = vmul.f32 %v4964_v50, %v2619_v7  ;;  %v2617_v52 = vsel %vm2616_vm5, %v4962_v27, %v2613_v41  ;;  %v2692_v41 = vmul.f32 0.03, %v6166_v19 }
0x1856   :  { %v2630_v20 = vmul.f32 5.656854, %v2617_v52 }
0x1857   :  { %v2621_v23 = vmul.f32 0.5, %v2620_v21 }
0x1858   :  { %v6291_v42 = vmul.f32 %v2630_v20, %v6274_v22  ;;  %v6302_v22 = vld [vmem:[%s7174_s1] sm:$0xff] }
0x1859   :  { %v2622_v47 = vsub.f32 1.5, %v2621_v23 }
0x185a   :  { %v4966_v61 = vpop.eup %4965 }
0x185b   :  { %v2623_v35 = vmul.f32 %v4964_v50, %v2622_v47  ;;  %v2589_v53 = vmul.f32 %v4966_v61, %v2584_v5  ;;  %vm2595_vm9 = vweird.f32 %v4966_v61  ;;  %v2691_v5 = vmul.f32 0.03, %v6180_v10 }
0x185c   :  { %vm2596_vm11 = vmor %vm2594_vm10, %vm2595_vm9 }
0x185d   :  { %v2627_v34 = vsel %vm2626_vm8, %v4964_v50, %v2623_v35  ;;  %v2590_v28 = vmul.f32 %v4966_v61, %v2589_v53 }
0x185e   :  { %v2631_v30 = vmul.f32 5.656854, %v2627_v34 }
0x185f   :  { %v2591_v8 = vmul.f32 0.5, %v2590_v28 }
0x1860   :  { %v6287_v6 = vmul.f32 %v2631_v30, %v2566_v48  ;;  %v2633_v48 = vmul.f32 %v2629_v55, %v6268_v54  ;;  %v6311_v54 = vld [vmem:[%s7174_s1 + $0x8] sm:$0xff] }
0x1861   :  { %v2592_v31 = vsub.f32 1.5, %v2591_v8 }
0x1862   :  { %2664 = vmatpush.msra.mxu0 %v6287_v6 }
0x1863   :  { %v2593_v40 = vmul.f32 %v4966_v61, %v2592_v31 }
0x1864   :  { %2665 = vmatpush.msra.mxu0 %v6291_v42 }
0x1865   :  { %v2597_v37 = vsel %vm2596_vm11, %v4966_v61, %v2593_v40 }
0x1866   :  { %2666 = vmatpush.msra.mxu0 %v2633_v48  ;;  %v2628_v59 = vmul.f32 5.656854, %v2597_v37 }
0x1868   :  { %v2632_v12 = vmul.f32 %v2628_v59, %v6281_v43  ;;  %v6320_v43 = vld [vmem:[%s7174_s1 + $0x10] sm:$0xff] }
0x186a   :  { %2667 = vmatpush.msra.mxu0 %v2632_v12 }
0x186b   :  { %4619 = vmatmul.msk.f32.vlgmr.msra.gmra.mxu0 %vm71_vm2, %v6302_v22 }
0x186c   :  { %3085 = vmatpush.msrb.mxu0 %v6219_v24  ;;  %v6327_v24 = vld [vmem:[%s7174_s1 + $0x18] sm:$0xff] }
0x186e   :  { %3086 = vmatpush.msrb.mxu0 %v6225_v32  ;;  %v2700_v32 = vld [vmem:[%s7175_s2 + $0xa0] sm:$0xff] }
0x186f   :  { %2725 = vmatpush.msra.mxu1 %v2700_v32 }
0x1870   :  { %3087 = vmatpush.msrb.mxu0 %v6230_v45  ;;  %v2748_v45 = vld [vmem:[%s7175_s2 + $0xb8] sm:$0xff] }
0x1871   :  { %2775 = vmatpush.msra.mxu3 %v2748_v45  ;;  %3309 = vmatpush.msra.mxu2 %v2748_v45 }
0x1872   :  { %3088 = vmatpush.msrb.mxu0 %v6236_v9  ;;  %v2699_v9 = vld [vmem:[%s7175_s2 + $0x98] sm:$0xff] }
0x1873   :  { %4620 = vmatmul.msk.f32.gmra.mxu0 %vm71_vm2, %v6311_v54  ;;  %2726 = vmatpush.msra.mxu1 %v2699_v9 }
0x1874   :  { %2776 = vmatpush.msra.mxu3 %v2747_v17  ;;  %3310 = vmatpush.msra.mxu2 %v2747_v17 }
0x1875   :  { %2727 = vmatpush.msra.mxu1 %v2698_v4 }
0x1876   :  { %2777 = vmatpush.msra.mxu3 %v2746_v26  ;;  %3311 = vmatpush.msra.mxu2 %v2746_v26 }
0x1877   :  { %2728 = vmatpush.msra.mxu1 %v2697_v16 }
0x1878   :  { %3259 = vmatpush.msrb.mxu3 %v2700_v32 }
0x187a   :  { %3260 = vmatpush.msrb.mxu3 %v2699_v9 }
0x187b   :  { %4621 = vmatmul.msk.f32.gmra.mxu0 %vm71_vm2, %v6320_v43 }
0x187c   :  { %3261 = vmatpush.msrb.mxu3 %v2698_v4 }
0x187e   :  { %3262 = vmatpush.msrb.mxu3 %v2697_v16 }
0x1883   :  { %4622 = vmatmul.msk.f32.gmra.mxu0 %vm71_vm2, %v6327_v24 }
0x18e8   :  { %v2669_v1 = vpop.f32.mrf.mxu0 }
0x18e9   :  { %v2681_v51 = vmul.f32 0.02, %v2669_v1 }
0x18eb   :  { %v2685_v57 = vadd.f32 %v2681_v51, %v2632_v12 }
0x18ed   :  { %v2693_v27 = vsub.f32 %v2685_v57, %v2689_v2  ;;  %4627 = vmatmul.msk.f32.vlgmr.msra.gmra.mxu3 %vm71_vm2, %v2685_v57 }
0x18ef   :  { %4623 = vmatmul.msk.f32.vlgmr.msra.gmra.mxu1 %vm71_vm2, %v2693_v27 }
0x18f0   :  { %v2672_v38 = vpop.f32.mrf.mxu0 }
0x18f1   :  { %v2682_v44 = vmul.f32 0.02, %v2672_v38 }
0x18f3   :  { %v2686_v58 = vadd.f32 %v2682_v44, %v2633_v48 }
0x18f5   :  { %v2694_v13 = vsub.f32 %v2686_v58, %v2690_v33  ;;  %4628 = vmatmul.msk.f32.gmra.mxu3 %vm71_vm2, %v2686_v58 }
0x18f7   :  { %4624 = vmatmul.msk.f32.gmra.mxu1 %vm71_vm2, %v2694_v13 }
0x18f8   :  { %v2675_v15 = vpop.f32.mrf.mxu0 }
0x18f9   :  { %v2683_v60 = vmul.f32 0.02, %v2675_v15 }
0x18fb   :  { %v2687_v50 = vadd.f32 %v2683_v60, %v6291_v42 }
0x18fd   :  { %v2695_v11 = vsub.f32 %v2687_v50, %v2691_v5  ;;  %4629 = vmatmul.msk.f32.gmra.mxu3 %vm71_vm2, %v2687_v50 }
0x18ff   :  { %4625 = vmatmul.msk.f32.gmra.mxu1 %vm71_vm2, %v2695_v11 }
0x1900   :  { %v2678_v7 = vpop.f32.mrf.mxu0 }
0x1901   :  { %v2684_v46 = vmul.f32 0.02, %v2678_v7 }
0x1903   :  { %v2688_v21 = vadd.f32 %v2684_v46, %v6287_v6 }
0x1905   :  { %v2696_v23 = vsub.f32 %v2688_v21, %v2692_v41  ;;  %4630 = vmatmul.msk.f32.gmra.mxu3 %vm71_vm2, %v2688_v21 }
0x1907   :  { %4626 = vmatmul.msk.f32.gmra.mxu1 %vm71_vm2, %v2696_v23 }
0x196c   :  { %v2730_v6 = vpop.f32.mrf.mxu1 }
0x196d   :  { %v2731_v59 = vadd.f32 %v2730_v6, %v5483_v36 }
0x1970   :  { %v2779_v63 = vpop.f32.mrf.mxu3 }
0x1971   :  { %v2780_v47 = vadd.f32 %v2779_v63, %v5473_v29 }
0x1973   :  { %4967 = vtanh.f32 %v2780_v47 }
0x1974   :  { %v2733_v55 = vpop.f32.mrf.mxu1 }
0x1975   :  { %v2734_v31 = vadd.f32 %v2733_v55, %v5483_v36 }
0x1978   :  { %v2782_v61 = vpop.f32.mrf.mxu3 }
0x1979   :  { %v4968_v35 = vpop.eup %4967  ;;  %v2783_v53 = vadd.f32 %v2782_v61, %v5473_v29 }
0x197a   :  { %2799 = vrot.lane.b32.xlu1 %v4968_v35, %s5123_s30 }
0x197b   :  { %4969 = vtanh.f32 %v2783_v53 }
0x197c   :  { %v2736_v45 = vpop.f32.mrf.mxu1 }
0x197d   :  { %v2737_v26 = vadd.f32 %v2736_v45, %v5483_v36 }
0x1980   :  { %v2785_v52 = vpop.f32.mrf.mxu3 }
0x1981   :  { %v4970_v34 = vpop.eup %4969  ;;  %v2786_v28 = vadd.f32 %v2785_v52, %v5473_v29 }
0x1982   :  { %2801 = vrot.lane.b32.xlu2 %v4970_v34, %s5123_s30 }
0x1983   :  { %4971 = vtanh.f32 %v2786_v28 }
0x1984   :  { %v2739_v16 = vpop.f32.mrf.mxu1 }
0x1985   :  { %v2740_v1 = vadd.f32 %v2739_v16, %v5483_v36 }
0x1988   :  { %v2788_v18 = vpop.f32.mrf.mxu3 }
0x1989   :  { %v4972_v30 = vpop.eup %4971  ;;  %v2789_v20 = vadd.f32 %v2788_v18, %v5473_v29 }
0x198a   :  { %2803 = vrot.lane.b32.xlu0 %v4972_v30, %s5123_s30 }
0x198b   :  { %4973 = vtanh.f32 %v2789_v20 }
0x198c   :  { %4975 = vtanh.f32 %v2734_v31 }
0x198d   :  { %4977 = vtanh.f32 %v2731_v59 }
0x198e   :  { %4979 = vtanh.f32 %v2737_v26 }
0x198f   :  { %4981 = vtanh.f32 %v2740_v1 }
0x1991   :  { %v4974_v8 = vpop.eup %4973 }
0x1992   :  { %2805 = vrot.lane.b32.xlu0 %v4974_v8, %s5123_s30  ;;  %v4976_v42 = vpop.eup %4975 }
0x1993   :  { %v4978_v12 = vpop.eup %4977 }
0x1994   :  { %v4980_v51 = vpop.eup %4979 }
0x1995   :  { %v4982_v44 = vpop.eup %4981 }
0x19dc   :  { %v2802_v40 = vpop.permute.xlu2 %2801 }
0x19dd   :  { %v6376_v14 = vsel %vm71_vm2, %v4976_v42, %v2802_v40 }
0x19de   :  { %v2816_v48 = vmul.f32 %v6376_v14, %v6376_v14 }
0x19e0   :  { %v2822_v37 = vsel %vm227_vm0, %v2816_v48, 0.0 }
0x19e1   :  { %2823 = vadd.xlane.f32.xlu1 %v2822_v37 }
0x19ec   :  { %v2800_v32 = vpop.permute.xlu1 %2799 }
0x19ed   :  { %v6383_v9 = vsel %vm71_vm2, %v4978_v12, %v2800_v32 }
0x19ee   :  { %v2815_v17 = vmul.f32 %v6383_v9, %v6383_v9 }
0x19f0   :  { %v2819_v4 = vsel %vm227_vm0, %v2815_v17, 0.0 }
0x19f1   :  { %2820 = vadd.xlane.f32.xlu2 %v2819_v4 }
0x19fc   :  { %v2804_v57 = vpop.permute.xlu0 %2803 }
0x19fd   :  { %v6391_v2 = vsel %vm71_vm2, %v4980_v51, %v2804_v57 }
0x19fe   :  { %v2817_v27 = vmul.f32 %v6391_v2, %v6391_v2 }
0x1a00   :  { %v2825_v38 = vsel %vm227_vm0, %v2817_v27, 0.0 }
0x1a01   :  { %2826 = vadd.xlane.f32.xlu0 %v2825_v38 }
0x1a04   :  { %v2806_v58 = vpop.permute.xlu0 %2805 }
0x1a05   :  { %v6397_v33 = vsel %vm71_vm2, %v4982_v44, %v2806_v58 }
0x1a06   :  { %v2818_v13 = vmul.f32 %v6397_v33, %v6397_v33 }
0x1a08   :  { %v2828_v15 = vsel %vm227_vm0, %v2818_v13, 0.0 }
0x1a09   :  { %2829 = vadd.xlane.f32.xlu2 %v2828_v15 }
0x1a54   :  { %v2824_v60 = vpop.xlane.xlu1 %2823 }
0x1a55   :  { %4983 = vrsqrt.f32 %v2824_v60  ;;  %vm2850_vm12 = vcmp.eq.f32.partialorder %v2824_v60, inf  ;;  %v2853_v63 = vand.u32 2147483648, %v2824_v60  ;;  %vm2852_vm13 = vcmp.eq.f32.partialorder %v2824_v60, 0.0 }
0x1a5b   :  { %v4984_v50 = vpop.eup %4983 }
0x1a5c   :  { %v2844_v5 = vmul.f32 %v4984_v50, %v2824_v60 }
0x1a5e   :  { %v2845_v11 = vmul.f32 %v4984_v50, %v2844_v5 }
0x1a60   :  { %v2846_v7 = vmul.f32 0.5, %v2845_v11 }
0x1a62   :  { %v2847_v46 = vsub.f32 1.5, %v2846_v7 }
0x1a64   :  { %v2848_v21 = vmul.f32 %v4984_v50, %v2847_v46  ;;  %v2821_v41 = vpop.xlane.xlu2 %2820 }
0x1a65   :  { %4985 = vrsqrt.f32 %v2821_v41  ;;  %vm2838_vm14 = vcmp.eq.f32.partialorder %v2821_v41, inf  ;;  %v2841_v42 = vand.u32 2147483648, %v2821_v41  ;;  %vm2840_vm15 = vcmp.eq.f32.partialorder %v2821_v41, 0.0 }
0x1a66   :  { %v2849_v23 = vmul.f32 %v2848_v21, %v2824_v60 }
0x1a68   :  { %v2851_v47 = vsel %vm2850_vm12, %v2824_v60, %v2849_v23 }
0x1a69   :  { %v2854_v61 = vsel %vm2852_vm13, %v2853_v63, %v2851_v47 }
0x1a6a   :  { %v2880_v35 = vadd.f32 1e-08, %v2854_v61 }
0x1a6b   :  { %v4986_v53 = vpop.eup %4985 }
0x1a6c   :  { %v2832_v52 = vmul.f32 %v4986_v53, %v2821_v41  ;;  %4987 = vrcp.f32 %v2880_v35 }
0x1a6e   :  { %v2833_v34 = vmul.f32 %v4986_v53, %v2832_v52 }
0x1a70   :  { %v2834_v28 = vmul.f32 0.5, %v2833_v34 }
0x1a72   :  { %v4988_v18 = vpop.eup %4987  ;;  %v2835_v30 = vsub.f32 1.5, %v2834_v28 }
0x1a73   :  { %v2888_v20 = vmul.f32 5.0, %v4988_v18 }
0x1a74   :  { %v2836_v8 = vmul.f32 %v4986_v53, %v2835_v30  ;;  %v2827_v6 = vpop.xlane.xlu0 %2826 }
0x1a75   :  { %4989 = vrsqrt.f32 %v2827_v6  ;;  %v2892_v31 = vmin.f32 %v2888_v20, 1.0  ;;  %vm2862_vm3 = vcmp.eq.f32.partialorder %v2827_v6, inf  ;;  %v2865_v58 = vand.u32 2147483648, %v2827_v6 }
0x1a76   :  { %v2837_v55 = vmul.f32 %v2836_v8, %v2821_v41  ;;  %vm2864_vm4 = vcmp.eq.f32.partialorder %v2827_v6, 0.0 }
0x1a77   :  { %v2896_v48 = vmul.f32 %v2892_v31, %v6376_v14 }
0x1a78   :  { %v2839_v40 = vsel %vm2838_vm14, %v2821_v41, %v2837_v55 }
0x1a79   :  { %v2842_v37 = vsel %vm2840_vm15, %v2841_v42, %v2839_v40  ;;  %v6404_v12 = vadd.f32 %v2896_v48, %v6172_v39 }
0x1a7a   :  { %v2879_v59 = vadd.f32 1e-08, %v2842_v37 }
0x1a7b   :  { %v4990_v32 = vpop.eup %4989  ;;  %2905 = vst.msk [vmem:[#allocation2 + $0xa8] sm:$0xff] %vm227_vm0, %v6404_v12 }
0x1a7c   :  { %4991 = vrcp.f32 %v2879_v59  ;;  %v2856_v45 = vmul.f32 %v4990_v32, %v2827_v6  ;;  %v2830_v17 = vpop.xlane.xlu2 %2829 }
0x1a7d   :  { %4993 = vrsqrt.f32 %v2830_v17  ;;  %vm2874_vm5 = vcmp.eq.f32.partialorder %v2830_v17, inf  ;;  %vm2876_vm6 = vcmp.eq.f32.partialorder %v2830_v17, 0.0 }
0x1a7e   :  { %v2857_v4 = vmul.f32 %v4990_v32, %v2856_v45 }
0x1a80   :  { %v2858_v26 = vmul.f32 0.5, %v2857_v4 }
0x1a82   :  { %v4992_v16 = vpop.eup %4991  ;;  %v2859_v1 = vsub.f32 1.5, %v2858_v26 }
0x1a83   :  { %v4994_v51 = vpop.eup %4993  ;;  %v2887_v57 = vmul.f32 5.0, %v4992_v16 }
0x1a84   :  { %v2860_v14 = vmul.f32 %v4990_v32, %v2859_v1  ;;  %v2868_v27 = vmul.f32 %v4994_v51, %v2830_v17 }
0x1a85   :  { %v2891_v38 = vmin.f32 %v2887_v57, 1.0 }
0x1a86   :  { %v2861_v44 = vmul.f32 %v2860_v14, %v2827_v6  ;;  %v2869_v39 = vmul.f32 %v4994_v51, %v2868_v27 }
0x1a87   :  { %v2895_v13 = vmul.f32 %v2891_v38, %v6383_v9  ;;  %v2877_v9 = vand.u32 2147483648, %v2830_v17 }
0x1a88   :  { %v2863_v15 = vsel %vm2862_vm3, %v2827_v6, %v2861_v44  ;;  %v2870_v60 = vmul.f32 0.5, %v2869_v39 }
0x1a89   :  { %v6410_v50 = vadd.f32 %v2895_v13, %v6158_v3  ;;  %v2866_v5 = vsel %vm2864_vm4, %v2865_v58, %v2863_v15 }
0x1a8a   :  { %v2871_v11 = vsub.f32 1.5, %v2870_v60  ;;  %v2881_v7 = vadd.f32 1e-08, %v2866_v5 }
0x1a8b   :  { %2904 = vst.msk [vmem:[#allocation2 + $0xa0] sm:$0xff] %vm227_vm0, %v6410_v50  ;;  %4631 = vmatmul.msk.f32.vlgmr.msrb.gmra.mxu2 %vm227_vm0, %v6410_v50 }
0x1a8c   :  { %v2872_v46 = vmul.f32 %v4994_v51, %v2871_v11  ;;  %4995 = vrcp.f32 %v2881_v7 }
0x1a8e   :  { %v2873_v21 = vmul.f32 %v2872_v46, %v2830_v17 }
0x1a90   :  { %v2875_v41 = vsel %vm2874_vm5, %v2830_v17, %v2873_v21 }
0x1a91   :  { %v2878_v23 = vsel %vm2876_vm6, %v2877_v9, %v2875_v41 }
0x1a92   :  { %v4996_v63 = vpop.eup %4995  ;;  %v2882_v3 = vadd.f32 1e-08, %v2878_v23 }
0x1a93   :  { %4632 = vmatmul.msk.f32.gmra.mxu2 %vm227_vm0, %v6404_v12  ;;  %v2889_v47 = vmul.f32 5.0, %v4996_v63 }
0x1a94   :  { %4997 = vrcp.f32 %v2882_v3 }
0x1a95   :  { %v2893_v61 = vmin.f32 %v2889_v47, 1.0 }
0x1a97   :  { %v2897_v35 = vmul.f32 %v2893_v61, %v6391_v2 }
0x1a99   :  { %v6420_v53 = vadd.f32 %v2897_v35, %v6180_v10 }
0x1a9a   :  { %v4998_v52 = vpop.eup %4997 }
0x1a9b   :  { %2906 = vst.msk [vmem:[#allocation2 + $0xb0] sm:$0xff] %vm227_vm0, %v6420_v53  ;;  %4633 = vmatmul.msk.f32.gmra.mxu2 %vm227_vm0, %v6420_v53  ;;  %v2890_v34 = vmul.f32 5.0, %v4998_v52 }
0x1a9d   :  { %v2894_v28 = vmin.f32 %v2890_v34, 1.0 }
0x1a9f   :  { %v2898_v18 = vmul.f32 %v2894_v28, %v6397_v33 }
0x1aa1   :  { %v6428_v30 = vadd.f32 %v2898_v18, %v6166_v19 }
0x1aa3   :  { %2907 = vst.msk [vmem:[#allocation2 + $0xb8] sm:$0xff] %vm227_vm0, %v6428_v30  ;;  %4634 = vmatmul.msk.f32.gmra.mxu2 %vm227_vm0, %v6428_v30 }
0x1b0e   :  { %v2945_v10 = vpop.f32.mrf.mxu2 }
0x1b0f   :  { %v2946_v2 = vadd.f32 %v2945_v10, %v5289_v0 }
0x1b11   :  { %v2957_v20 = vsel %vm71_vm2, %v2946_v2, 0.0 }
0x1b12   :  { %2958 = vadd.xlane.f32.xlu1 %v2957_v20 }
0x1b16   :  { %v2948_v8 = vpop.f32.mrf.mxu2 }
0x1b17   :  { %v2949_v6 = vadd.f32 %v2948_v8, %v5289_v0 }
0x1b19   :  { %v2960_v33 = vsel %vm71_vm2, %v2949_v6, 0.0 }
0x1b1a   :  { %2961 = vadd.xlane.f32.xlu2 %v2960_v33 }
0x1b1e   :  { %v2951_v19 = vpop.f32.mrf.mxu2 }
0x1b1f   :  { %v2952_v55 = vadd.f32 %v2951_v19, %v5289_v0 }
0x1b21   :  { %v2963_v31 = vsel %vm71_vm2, %v2952_v55, 0.0 }
0x1b22   :  { %2964 = vadd.xlane.f32.xlu0 %v2963_v31 }
0x1b26   :  { %v2954_v42 = vpop.f32.mrf.mxu2 }
0x1b27   :  { %v2955_v40 = vadd.f32 %v2954_v42, %v5289_v0 }
0x1b29   :  { %v2966_v48 = vsel %vm71_vm2, %v2955_v40, 0.0 }
0x1b2a   :  { %2967 = vadd.xlane.f32.xlu1 %v2966_v48 }
0x1b85   :  { %v2959_v37 = vpop.xlane.xlu1 %2958 }
0x1b86   :  { %v2969_v59 = vmul.f32 %v2959_v37, %v5181_v25 }
0x1b88   :  { %v2973_v32 = vsub.f32 %v2946_v2, %v2969_v59 }
0x1b8a   :  { %v2977_v45 = vmul.f32 %v2973_v32, %v2973_v32 }
0x1b8c   :  { %v2981_v17 = vsel %vm71_vm2, %v2977_v45, 0.0 }
0x1b8d   :  { %2982 = vadd.xlane.f32.xlu2 %v2981_v17  ;;  %v2962_v4 = vpop.xlane.xlu2 %2961 }
0x1b8e   :  { %v2970_v26 = vmul.f32 %v2962_v4, %v5181_v25 }
0x1b90   :  { %v2974_v16 = vsub.f32 %v2949_v6, %v2970_v26 }
0x1b92   :  { %v2978_v1 = vmul.f32 %v2974_v16, %v2974_v16 }
0x1b94   :  { %v2984_v51 = vsel %vm71_vm2, %v2978_v1, 0.0 }
0x1b95   :  { %v2965_v57 = vpop.xlane.xlu0 %2964  ;;  %2985 = vadd.xlane.f32.xlu0 %v2984_v51 }
0x1b96   :  { %v2971_v14 = vmul.f32 %v2965_v57, %v5181_v25 }
0x1b98   :  { %v6447_v27 = vsub.f32 %v2952_v55, %v2971_v14 }
0x1b9a   :  { %v2979_v38 = vmul.f32 %v6447_v27, %v6447_v27 }
0x1b9c   :  { %v2987_v44 = vsel %vm71_vm2, %v2979_v38, 0.0 }
0x1b9d   :  { %2988 = vadd.xlane.f32.xlu1 %v2987_v44  ;;  %v2968_v39 = vpop.xlane.xlu1 %2967 }
0x1b9e   :  { %v2972_v58 = vmul.f32 %v2968_v39, %v5181_v25 }
0x1ba0   :  { %v6453_v13 = vsub.f32 %v2955_v40, %v2972_v58 }
0x1ba2   :  { %v2980_v15 = vmul.f32 %v6453_v13, %v6453_v13 }
0x1ba4   :  { %v2990_v60 = vsel %vm71_vm2, %v2980_v15, 0.0 }
0x1ba5   :  { %2991 = vadd.xlane.f32.xlu2 %v2990_v60 }
0x1c00   :  { %v2983_v5 = vpop.xlane.xlu2 %2982 }
0x1c01   :  { %v2993_v11 = vmul.f32 %v2983_v5, %v5181_v25 }
0x1c03   :  { %v2997_v7 = vadd.f32 1e-05, %v2993_v11 }
0x1c05   :  { %4999 = vrsqrt.f32 %v2997_v7  ;;  %vm3007_vm8 = vweird.f32 %v2997_v7 }
0x1c08   :  { %v2986_v46 = vpop.xlane.xlu0 %2985 }
0x1c09   :  { %v2994_v21 = vmul.f32 %v2986_v46, %v5181_v25 }
0x1c0b   :  { %v5000_v9 = vpop.eup %4999  ;;  %v2998_v41 = vadd.f32 1e-05, %v2994_v21 }
0x1c0c   :  { %v3002_v23 = vmul.f32 %v5000_v9, %v2997_v7  ;;  %vm3008_vm7 = vweird.f32 %v5000_v9 }
0x1c0d   :  { %5001 = vrsqrt.f32 %v2998_v41  ;;  %vm3009_vm9 = vmor %vm3007_vm8, %vm3008_vm7  ;;  %vm3017_vm11 = vweird.f32 %v2998_v41 }
0x1c0e   :  { %v3003_v63 = vmul.f32 %v5000_v9, %v3002_v23 }
0x1c10   :  { %v3004_v3 = vmul.f32 0.5, %v3003_v63  ;;  %v2989_v47 = vpop.xlane.xlu1 %2988 }
0x1c11   :  { %v2995_v61 = vmul.f32 %v2989_v47, %v5181_v25 }
0x1c12   :  { %v3005_v35 = vsub.f32 1.5, %v3004_v3 }
0x1c13   :  { %v5002_v52 = vpop.eup %5001  ;;  %v2999_v34 = vadd.f32 1e-05, %v2995_v61 }
0x1c14   :  { %v3006_v28 = vmul.f32 %v5000_v9, %v3005_v35  ;;  %v3012_v18 = vmul.f32 %v5002_v52, %v2998_v41  ;;  %vm3018_vm10 = vweird.f32 %v5002_v52 }
0x1c15   :  { %5003 = vrsqrt.f32 %v2999_v34  ;;  %vm3019_vm12 = vmor %vm3017_vm11, %vm3018_vm10  ;;  %vm3027_vm14 = vweird.f32 %v2999_v34 }
0x1c16   :  { %v3010_v10 = vsel %vm3009_vm9, %v5000_v9, %v3006_v28  ;;  %v3013_v2 = vmul.f32 %v5002_v52, %v3012_v18 }
0x1c17   :  { %v3041_v20 = vmul.f32 %v3010_v10, %v2973_v32 }
0x1c18   :  { %v3014_v8 = vmul.f32 0.5, %v3013_v2  ;;  %v2992_v6 = vpop.xlane.xlu2 %2991 }
0x1c19   :  { %v3045_v33 = vmul.f32 %v3041_v20, %v5347_v56  ;;  %v2996_v19 = vmul.f32 %v2992_v6, %v5181_v25 }
0x1c1a   :  { %v3015_v55 = vsub.f32 1.5, %v3014_v8 }
0x1c1b   :  { %v5004_v31 = vpop.eup %5003  ;;  %v3049_v42 = vadd.f32 %v3045_v33, %v5350_v62  ;;  %v3000_v40 = vadd.f32 1e-05, %v2996_v19 }
0x1c1c   :  { %v3016_v48 = vmul.f32 %v5002_v52, %v3015_v55  ;;  %v3022_v37 = vmul.f32 %v5004_v31, %v2999_v34  ;;  %vm3028_vm13 = vweird.f32 %v5004_v31 }
0x1c1d   :  { %v3053_v59 = vmax.f32 %v3049_v42, 0.0  ;;  %5005 = vrsqrt.f32 %v3000_v40  ;;  %vm3029_vm15 = vmor %vm3027_vm14, %vm3028_vm13  ;;  %vm3037_vm4 = vweird.f32 %v3000_v40 }
0x1c1e   :  { %v3020_v45 = vsel %vm3019_vm12, %v5002_v52, %v3016_v48  ;;  %v3023_v32 = vmul.f32 %v5004_v31, %v3022_v37 }
0x1c1f   :  { %v3042_v17 = vmul.f32 %v3020_v45, %v2974_v16  ;;  %4635 = vmatmul.msk.f32.vlgmr.msrb.gmra.mxu0 %vm71_vm2, %v3053_v59 }
0x1c20   :  { %v3024_v4 = vmul.f32 0.5, %v3023_v32 }
0x1c21   :  { %v3046_v26 = vmul.f32 %v3042_v17, %v5347_v56 }
0x1c22   :  { %v3025_v1 = vsub.f32 1.5, %v3024_v4 }
0x1c23   :  { %v5006_v51 = vpop.eup %5005  ;;  %v3050_v57 = vadd.f32 %v3046_v26, %v5350_v62 }
0x1c24   :  { %v3026_v14 = vmul.f32 %v5004_v31, %v3025_v1  ;;  %v3032_v38 = vmul.f32 %v5006_v51, %v3000_v40  ;;  %vm3038_vm3 = vweird.f32 %v5006_v51 }
0x1c25   :  { %v3054_v44 = vmax.f32 %v3050_v57, 0.0  ;;  %vm3039_vm5 = vmor %vm3037_vm4, %vm3038_vm3 }
0x1c26   :  { %v3030_v39 = vsel %vm3029_vm15, %v5004_v31, %v3026_v14  ;;  %v3033_v58 = vmul.f32 %v5006_v51, %v3032_v38 }
0x1c27   :  { %v3043_v15 = vmul.f32 %v3030_v39, %v6447_v27  ;;  %4636 = vmatmul.msk.f32.gmra.mxu0 %vm71_vm2, %v3054_v44 }
0x1c28   :  { %v3034_v16 = vmul.f32 0.5, %v3033_v58 }
0x1c29   :  { %v3047_v60 = vmul.f32 %v3043_v15, %v5347_v56 }
0x1c2a   :  { %v3035_v5 = vsub.f32 1.5, %v3034_v16 }
0x1c2b   :  { %v3051_v11 = vadd.f32 %v3047_v60, %v5350_v62 }
0x1c2c   :  { %v3036_v7 = vmul.f32 %v5006_v51, %v3035_v5 }
0x1c2d   :  { %v3055_v46 = vmax.f32 %v3051_v11, 0.0 }
0x1c2e   :  { %v3040_v21 = vsel %vm3039_vm5, %v5006_v51, %v3036_v7 }
0x1c2f   :  { %v3044_v9 = vmul.f32 %v3040_v21, %v6453_v13  ;;  %4637 = vmatmul.msk.f32.gmra.mxu0 %vm71_vm2, %v3055_v46 }
0x1c31   :  { %v3048_v27 = vmul.f32 %v3044_v9, %v5347_v56 }
0x1c33   :  { %v3052_v41 = vadd.f32 %v3048_v27, %v5350_v62 }
0x1c35   :  { %v3056_v23 = vmax.f32 %v3052_v41, 0.0 }
0x1c37   :  { %4638 = vmatmul.msk.f32.gmra.mxu0 %vm71_vm2, %v3056_v23 }
0x1c9c   :  { %v3090_v63 = vpop.f32.mrf.mxu0 }
0x1c9d   :  { %v6490_v20 = vadd.f32 %v3090_v63, %v5369_v49 }
0x1c9f   :  { %v3102_v6 = vmul.f32 %v6490_v20, %v6490_v20 }
0x1ca1   :  { %v3106_v33 = vsel %vm71_vm2, %v3102_v6, 0.0 }
0x1ca4   :  { %v3093_v3 = vpop.f32.mrf.mxu0 }
0x1ca5   :  { %v6477_v47 = vadd.f32 %v3093_v3, %v5369_v49 }
0x1ca7   :  { %v3103_v61 = vmul.f32 %v6477_v47, %v6477_v47 }
0x1ca9   :  { %v3109_v35 = vsel %vm71_vm2, %v3103_v61, 0.0 }
0x1caa   :  { %3110 = vadd.xlane.f32.xlu2 %v3109_v35 }
0x1cac   :  { %v3096_v13 = vpop.f32.mrf.mxu0 }
0x1cad   :  { %v6483_v52 = vadd.f32 %v3096_v13, %v5369_v49 }
0x1caf   :  { %v3104_v34 = vmul.f32 %v6483_v52, %v6483_v52 }
0x1cb1   :  { %v3112_v28 = vsel %vm71_vm2, %v3104_v34, 0.0 }
0x1cb2   :  { %3113 = vadd.xlane.f32.xlu1 %v3112_v28 }
0x1cb4   :  { %v3099_v18 = vpop.f32.mrf.mxu0 }
0x1cb5   :  { %v3100_v10 = vadd.f32 %v3099_v18, %v5369_v49 }
0x1cb7   :  { %v3105_v2 = vmul.f32 %v3100_v10, %v3100_v10 }
0x1cb9   :  { %v3115_v8 = vsel %vm71_vm2, %v3105_v2, 0.0 }
0x1cba   :  { %3116 = vadd.xlane.f32.xlu0 %v3115_v8 }
0x1cc2   :  { %3107 = vadd.xlane.f32.xlu0 %v3106_v33  ;;  %v3223_v33 = vmul.f32 0.03, %v6410_v50 }
0x1d1d   :  { %v3111_v19 = vpop.xlane.xlu2 %3110 }
0x1d1e   :  { %v3119_v55 = vadd.f32 1e-24, %v3111_v19 }
0x1d20   :  { %5007 = vrsqrt.f32 %v3119_v55  ;;  %vm3138_vm10 = vweird.f32 %v3119_v55 }
0x1d25   :  { %v3114_v31 = vpop.xlane.xlu1 %3113 }
0x1d26   :  { %v3120_v42 = vadd.f32 1e-24, %v3114_v31  ;;  %v5008_v40 = vpop.eup %5007 }
0x1d27   :  { %v3133_v48 = vmul.f32 %v5008_v40, %v3119_v55  ;;  %vm3139_vm7 = vweird.f32 %v5008_v40 }
0x1d28   :  { %5009 = vrsqrt.f32 %v3120_v42  ;;  %vm3148_vm8 = vweird.f32 %v3120_v42  ;;  %vm3140_vm12 = vmor %vm3138_vm10, %vm3139_vm7 }
0x1d29   :  { %v3134_v17 = vmul.f32 %v5008_v40, %v3133_v48 }
0x1d2b   :  { %v3135_v1 = vmul.f32 0.5, %v3134_v17 }
0x1d2d   :  { %v3117_v37 = vpop.xlane.xlu0 %3116  ;;  %v3136_v39 = vsub.f32 1.5, %v3135_v1 }
0x1d2e   :  { %v5010_v59 = vpop.eup %5009  ;;  %v3121_v45 = vadd.f32 1e-24, %v3117_v37 }
0x1d2f   :  { %v3143_v32 = vmul.f32 %v5010_v59, %v3120_v42  ;;  %vm3149_vm6 = vweird.f32 %v5010_v59  ;;  %v3137_v60 = vmul.f32 %v5008_v40, %v3136_v39 }
0x1d30   :  { %5011 = vrsqrt.f32 %v3121_v45  ;;  %vm3150_vm11 = vmor %vm3148_vm8, %vm3149_vm6  ;;  %vm3158_vm13 = vweird.f32 %v3121_v45 }
0x1d31   :  { %v3144_v4 = vmul.f32 %v5010_v59, %v3143_v32  ;;  %v3141_v41 = vsel %vm3140_vm12, %v5008_v40, %v3137_v60  ;;  %v3225_v40 = vmul.f32 0.03, %v6420_v53  ;;  %v3226_v32 = vmul.f32 0.03, %v6428_v30 }
0x1d32   :  { %v3163_v35 = vmul.f32 5.656854, %v3141_v41 }
0x1d33   :  { %v3145_v26 = vmul.f32 0.5, %v3144_v4 }
0x1d34   :  { %v3167_v18 = vmul.f32 %v3163_v35, %v6477_v47 }
0x1d35   :  { %v3108_v51 = vpop.xlane.xlu0 %3107  ;;  %v3146_v38 = vsub.f32 1.5, %v3145_v26 }
0x1d36   :  { %v5012_v57 = vpop.eup %5011  ;;  %v3118_v14 = vadd.f32 1e-24, %v3108_v51 }
0x1d37   :  { %v3153_v44 = vmul.f32 %v5012_v57, %v3121_v45  ;;  %v3147_v15 = vmul.f32 %v5010_v59, %v3146_v38  ;;  %vm3159_vm9 = vweird.f32 %v5012_v57 }
0x1d38   :  { %5013 = vrsqrt.f32 %v3118_v14  ;;  %vm3160_vm14 = vmor %vm3158_vm13, %vm3159_vm9  ;;  %vm3128_vm3 = vweird.f32 %v3118_v14 }
0x1d39   :  { %v3154_v58 = vmul.f32 %v5012_v57, %v3153_v44  ;;  %v3151_v21 = vsel %vm3150_vm11, %v5010_v59, %v3147_v15 }
0x1d3a   :  { %v3164_v63 = vmul.f32 5.656854, %v3151_v21 }
0x1d3b   :  { %v3155_v16 = vmul.f32 0.5, %v3154_v58 }
0x1d3c   :  { %v3168_v34 = vmul.f32 %v3164_v63, %v6483_v52 }
0x1d3d   :  { %v3156_v5 = vsub.f32 1.5, %v3155_v16 }
0x1d3e   :  { %v5014_v11 = vpop.eup %5013 }
0x1d3f   :  { %v3157_v7 = vmul.f32 %v5012_v57, %v3156_v5  ;;  %v3123_v46 = vmul.f32 %v5014_v11, %v3118_v14  ;;  %vm3129_vm15 = vweird.f32 %v5014_v11 }
0x1d40   :  { %vm3130_vm4 = vmor %vm3128_vm3, %vm3129_vm15 }
0x1d41   :  { %v3161_v9 = vsel %vm3160_vm14, %v5012_v57, %v3157_v7  ;;  %v3124_v27 = vmul.f32 %v5014_v11, %v3123_v46 }
0x1d42   :  { %v3165_v23 = vmul.f32 5.656854, %v3161_v9 }
0x1d43   :  { %v3125_v3 = vmul.f32 0.5, %v3124_v27 }
0x1d44   :  { %v3169_v61 = vmul.f32 %v3165_v23, %v3100_v10 }
0x1d45   :  { %v3126_v13 = vsub.f32 1.5, %v3125_v3 }
0x1d46   :  { %3198 = vmatpush.msrb.mxu1 %v3169_v61 }
0x1d47   :  { %v3127_v28 = vmul.f32 %v5014_v11, %v3126_v13 }
0x1d48   :  { %3199 = vmatpush.msrb.mxu1 %v3168_v34 }
0x1d49   :  { %v3131_v2 = vsel %vm3130_vm4, %v5014_v11, %v3127_v28 }
0x1d4a   :  { %3200 = vmatpush.msrb.mxu1 %v3167_v18  ;;  %v3162_v8 = vmul.f32 5.656854, %v3131_v2 }
0x1d4c   :  { %v3166_v6 = vmul.f32 %v3162_v8, %v6490_v20 }
0x1d4e   :  { %3201 = vmatpush.msrb.mxu1 %v3166_v6 }
0x1d4f   :  { %4639 = vmatmul.msk.f32.vlgmr.msrb.gmra.mxu1 %vm71_vm2, %v6302_v22 }
0x1d57   :  { %4640 = vmatmul.msk.f32.gmra.mxu1 %vm71_vm2, %v6311_v54  ;;  %v3224_v54 = vmul.f32 0.03, %v6404_v12 }
0x1d5f   :  { %4641 = vmatmul.msk.f32.gmra.mxu1 %vm71_vm2, %v6320_v43 }
0x1d67   :  { %4642 = vmatmul.msk.f32.gmra.mxu1 %vm71_vm2, %v6327_v24 }
0x1dcc   :  { %v3203_v52 = vpop.f32.mrf.mxu1 }
0x1dcd   :  { %v3215_v47 = vmul.f32 0.02, %v3203_v52 }
0x1dcf   :  { %v3219_v10 = vadd.f32 %v3215_v47, %v3166_v6 }
0x1dd1   :  { %v3227_v19 = vsub.f32 %v3219_v10, %v3223_v33  ;;  %4647 = vmatmul.msk.f32.vlgmr.msra.gmra.mxu2 %vm71_vm2, %v3219_v10 }
0x1dd3   :  { %4643 = vmatmul.msk.f32.vlgmr.msrb.gmra.mxu3 %vm71_vm2, %v3227_v19 }
0x1dd4   :  { %v3206_v22 = vpop.f32.mrf.mxu1 }
0x1dd5   :  { %v3216_v20 = vmul.f32 0.02, %v3206_v22 }
0x1dd7   :  { %v3220_v55 = vadd.f32 %v3216_v20, %v3167_v18 }
0x1dd9   :  { %v3228_v31 = vsub.f32 %v3220_v55, %v3224_v54  ;;  %4648 = vmatmul.msk.f32.gmra.mxu2 %vm71_vm2, %v3220_v55 }
0x1ddb   :  { %4644 = vmatmul.msk.f32.gmra.mxu3 %vm71_vm2, %v3228_v31 }
0x1ddc   :  { %v3209_v43 = vpop.f32.mrf.mxu1 }
0x1ddd   :  { %v3217_v24 = vmul.f32 0.02, %v3209_v43  ;;  %v3449_v43 = vld [vmem:[%s7175_s2 + $0x60] sm:$0xff] }
0x1dde   :  { %3470 = vmatpush.msra.mxu0 %v3449_v43 }
0x1ddf   :  { %v3221_v42 = vadd.f32 %v3217_v24, %v3168_v34 }
0x1de1   :  { %v3229_v48 = vsub.f32 %v3221_v42, %v3225_v40  ;;  %4649 = vmatmul.msk.f32.gmra.mxu2 %vm71_vm2, %v3221_v42  ;;  %v3448_v42 = vld [vmem:[%s7175_s2 + $0x58] sm:$0xff] }
0x1de2   :  { %3471 = vmatpush.msra.mxu0 %v3448_v42 }
0x1de3   :  { %4645 = vmatmul.msk.f32.gmra.mxu3 %vm71_vm2, %v3229_v48  ;;  %v3447_v48 = vld [vmem:[%s7175_s2 + $0x50] sm:$0xff] }
0x1de4   :  { %v3212_v37 = vpop.f32.mrf.mxu1  ;;  %3472 = vmatpush.msra.mxu0 %v3447_v48 }
0x1de5   :  { %v3218_v59 = vmul.f32 0.02, %v3212_v37 }
0x1de7   :  { %v3222_v45 = vadd.f32 %v3218_v59, %v3169_v61  ;;  %v3446_v59 = vld [vmem:[%s7175_s2 + $0x48] sm:$0xff] }
0x1de8   :  { %3473 = vmatpush.msra.mxu0 %v3446_v59 }
0x1de9   :  { %v3230_v17 = vsub.f32 %v3222_v45, %v3226_v32  ;;  %4650 = vmatmul.msk.f32.gmra.mxu2 %vm71_vm2, %v3222_v45 }
0x1deb   :  { %4646 = vmatmul.msk.f32.gmra.mxu3 %vm71_vm2, %v3230_v17  ;;  %v3445_v17 = vld [vmem:[%s7175_s2 + $0x40] sm:$0xff] }
0x1dec   :  { %3474 = vmatpush.msra.mxu0 %v3445_v17 }
0x1e54   :  { %v3313_v4 = vpop.f32.mrf.mxu2 }
0x1e55   :  { %v3314_v26 = vadd.f32 %v3313_v4, %v5473_v29 }
0x1e56   :  { %v3264_v60 = vpop.f32.mrf.mxu3 }
0x1e57   :  { %5015 = vtanh.f32 %v3314_v26  ;;  %v3265_v41 = vadd.f32 %v3264_v60, %v5483_v36  ;;  %v3444_v26 = vld [vmem:[%s7175_s2 + $0x38] sm:$0xff] }
0x1e58   :  { %3475 = vmatpush.msra.mxu0 %v3444_v26 }
0x1e5c   :  { %v3316_v1 = vpop.f32.mrf.mxu2 }
0x1e5d   :  { %v5016_v51 = vpop.eup %5015  ;;  %v3317_v57 = vadd.f32 %v3316_v1, %v5473_v29 }
0x1e5e   :  { %3333 = vrot.lane.b32.xlu1 %v5016_v51, %s5123_s30  ;;  %v3267_v5 = vpop.f32.mrf.mxu3 }
0x1e5f   :  { %5017 = vtanh.f32 %v3317_v57  ;;  %v3268_v11 = vadd.f32 %v3267_v5, %v5483_v36  ;;  %v3443_v57 = vld [vmem:[%s7175_s2 + $0x30] sm:$0xff] }
0x1e60   :  { %3476 = vmatpush.msra.mxu0 %v3443_v57 }
0x1e64   :  { %v3319_v14 = vpop.f32.mrf.mxu2 }
0x1e65   :  { %v5018_v38 = vpop.eup %5017  ;;  %v3320_v44 = vadd.f32 %v3319_v14, %v5473_v29 }
0x1e66   :  { %3335 = vrot.lane.b32.xlu2 %v5018_v38, %s5123_s30  ;;  %v3270_v3 = vpop.f32.mrf.mxu3  ;;  %v3442_v38 = vld [vmem:[%s7175_s2 + $0x28] sm:$0xff] }
0x1e67   :  { %5019 = vtanh.f32 %v3320_v44  ;;  %v3271_v34 = vadd.f32 %v3270_v3, %v5483_v36  ;;  %3477 = vmatpush.msra.mxu0 %v3442_v38 }
0x1e6c   :  { %v3322_v39 = vpop.f32.mrf.mxu2 }
0x1e6d   :  { %v5020_v58 = vpop.eup %5019  ;;  %v3323_v15 = vadd.f32 %v3322_v39, %v5473_v29 }
0x1e6e   :  { %3337 = vrot.lane.b32.xlu0 %v5020_v58, %s5123_s30  ;;  %v3273_v28 = vpop.f32.mrf.mxu3 }
0x1e6f   :  { %5021 = vtanh.f32 %v3323_v15  ;;  %v3274_v18 = vadd.f32 %v3273_v28, %v5483_v36 }
0x1e70   :  { %5023 = vtanh.f32 %v3268_v11 }
0x1e71   :  { %5025 = vtanh.f32 %v3265_v41 }
0x1e72   :  { %5027 = vtanh.f32 %v3271_v34 }
0x1e73   :  { %5029 = vtanh.f32 %v3274_v18 }
0x1e75   :  { %v5022_v16 = vpop.eup %5021 }
0x1e76   :  { %3339 = vrot.lane.b32.xlu1 %v5022_v16, %s5123_s30  ;;  %v5024_v7 = vpop.eup %5023 }
0x1e77   :  { %v5026_v23 = vpop.eup %5025 }
0x1e78   :  { %v5028_v2 = vpop.eup %5027 }
0x1e79   :  { %v5030_v10 = vpop.eup %5029 }
0x1ec0   :  { %v3336_v46 = vpop.permute.xlu2 %3335 }
0x1ec1   :  { %v6529_v21 = vsel %vm71_vm2, %v5024_v7, %v3336_v46 }
0x1ec2   :  { %v3350_v9 = vmul.f32 %v6529_v21, %v6529_v21 }
0x1ec4   :  { %v3356_v27 = vsel %vm227_vm0, %v3350_v9, 0.0 }
0x1ec5   :  { %3357 = vadd.xlane.f32.xlu2 %v3356_v27 }
0x1ed0   :  { %v3334_v63 = vpop.permute.xlu1 %3333 }
0x1ed1   :  { %v6536_v61 = vsel %vm71_vm2, %v5026_v23, %v3334_v63 }
0x1ed2   :  { %v3349_v35 = vmul.f32 %v6536_v61, %v6536_v61 }
0x1ed4   :  { %v3353_v13 = vsel %vm227_vm0, %v3349_v35, 0.0 }
0x1ed5   :  { %3354 = vadd.xlane.f32.xlu0 %v3353_v13 }
0x1ee0   :  { %v3338_v8 = vpop.permute.xlu0 %3337 }
0x1ee1   :  { %v6544_v6 = vsel %vm71_vm2, %v5028_v2, %v3338_v8 }
0x1ee2   :  { %v3351_v52 = vmul.f32 %v6544_v6, %v6544_v6 }
0x1ee4   :  { %v3359_v47 = vsel %vm227_vm0, %v3351_v52, 0.0 }
0x1ee5   :  { %3360 = vadd.xlane.f32.xlu1 %v3359_v47 }
0x1ee8   :  { %v3340_v33 = vpop.permute.xlu1 %3339 }
0x1ee9   :  { %v6550_v19 = vsel %vm71_vm2, %v5030_v10, %v3340_v33 }
0x1eea   :  { %v3352_v22 = vmul.f32 %v6550_v19, %v6550_v19 }
0x1eec   :  { %v3362_v20 = vsel %vm227_vm0, %v3352_v22, 0.0 }
0x1eed   :  { %3363 = vadd.xlane.f32.xlu0 %v3362_v20 }
0x1f38   :  { %v3358_v55 = vpop.xlane.xlu2 %3357 }
0x1f39   :  { %5031 = vrsqrt.f32 %v3358_v55  ;;  %vm3384_vm5 = vcmp.eq.f32.partialorder %v3358_v55, inf  ;;  %v3387_v1 = vand.u32 2147483648, %v3358_v55  ;;  %vm3386_vm6 = vcmp.eq.f32.partialorder %v3358_v55, 0.0 }
0x1f3f   :  { %v5032_v54 = vpop.eup %5031 }
0x1f40   :  { %v3378_v31 = vmul.f32 %v5032_v54, %v3358_v55 }
0x1f42   :  { %v3379_v24 = vmul.f32 %v5032_v54, %v3378_v31 }
0x1f44   :  { %v3380_v40 = vmul.f32 0.5, %v3379_v24 }
0x1f46   :  { %v3381_v37 = vsub.f32 1.5, %v3380_v40 }
0x1f48   :  { %v3382_v45 = vmul.f32 %v5032_v54, %v3381_v37  ;;  %v3355_v32 = vpop.xlane.xlu0 %3354 }
0x1f49   :  { %5033 = vrsqrt.f32 %v3355_v32  ;;  %vm3372_vm7 = vcmp.eq.f32.partialorder %v3355_v32, inf  ;;  %v3375_v41 = vand.u32 2147483648, %v3355_v32  ;;  %vm3374_vm8 = vcmp.eq.f32.partialorder %v3355_v32, 0.0 }
0x1f4a   :  { %v3383_v4 = vmul.f32 %v3382_v45, %v3358_v55 }
0x1f4c   :  { %v3385_v51 = vsel %vm3384_vm5, %v3358_v55, %v3383_v4 }
0x1f4d   :  { %v3388_v14 = vsel %vm3386_vm6, %v3387_v1, %v3385_v51 }
0x1f4e   :  { %v3414_v44 = vadd.f32 1e-08, %v3388_v14 }
0x1f4f   :  { %v5034_v39 = vpop.eup %5033 }
0x1f50   :  { %v3366_v58 = vmul.f32 %v5034_v39, %v3355_v32  ;;  %5035 = vrcp.f32 %v3414_v44 }
0x1f52   :  { %v3367_v15 = vmul.f32 %v5034_v39, %v3366_v58 }
0x1f54   :  { %v3368_v16 = vmul.f32 0.5, %v3367_v15 }
0x1f56   :  { %v5036_v60 = vpop.eup %5035  ;;  %v3369_v5 = vsub.f32 1.5, %v3368_v16 }
0x1f57   :  { %v3422_v11 = vmul.f32 5.0, %v5036_v60 }
0x1f58   :  { %v3370_v7 = vmul.f32 %v5034_v39, %v3369_v5  ;;  %v3361_v46 = vpop.xlane.xlu1 %3360 }
0x1f59   :  { %5037 = vrsqrt.f32 %v3361_v46  ;;  %v3426_v27 = vmin.f32 %v3422_v11, 1.0  ;;  %vm3396_vm9 = vcmp.eq.f32.partialorder %v3361_v46, inf  ;;  %v3399_v54 = vand.u32 2147483648, %v3361_v46 }
0x1f5a   :  { %v3371_v9 = vmul.f32 %v3370_v7, %v3355_v32  ;;  %vm3398_vm10 = vcmp.eq.f32.partialorder %v3361_v46, 0.0 }
0x1f5b   :  { %v3430_v63 = vmul.f32 %v3426_v27, %v6529_v21 }
0x1f5c   :  { %v3373_v23 = vsel %vm3372_vm7, %v3355_v32, %v3371_v9 }
0x1f5d   :  { %v3376_v3 = vsel %vm3374_vm8, %v3375_v41, %v3373_v23  ;;  %v6581_v13 = vadd.f32 %v3430_v63, %v6404_v12 }
0x1f5e   :  { %v3413_v35 = vadd.f32 1e-08, %v3376_v3 }
0x1f5f   :  { %v5038_v34 = vpop.eup %5037  ;;  %3439 = vst.msk [vmem:[#allocation2 + $0xc8] sm:$0xff] %vm227_vm0, %v6581_v13 }
0x1f60   :  { %5039 = vrcp.f32 %v3413_v35  ;;  %v3390_v28 = vmul.f32 %v5038_v34, %v3361_v46  ;;  %v3364_v18 = vpop.xlane.xlu0 %3363 }
0x1f61   :  { %5041 = vrsqrt.f32 %v3364_v18  ;;  %vm3408_vm11 = vcmp.eq.f32.partialorder %v3364_v18, inf  ;;  %vm3410_vm12 = vcmp.eq.f32.partialorder %v3364_v18, 0.0 }
0x1f62   :  { %v3391_v2 = vmul.f32 %v5038_v34, %v3390_v28 }
0x1f64   :  { %v3392_v8 = vmul.f32 0.5, %v3391_v2 }
0x1f66   :  { %v5040_v52 = vpop.eup %5039  ;;  %v3393_v47 = vsub.f32 1.5, %v3392_v8 }
0x1f67   :  { %v5042_v10 = vpop.eup %5041  ;;  %v3421_v33 = vmul.f32 5.0, %v5040_v52 }
0x1f68   :  { %v3394_v21 = vmul.f32 %v5038_v34, %v3393_v47  ;;  %v3402_v22 = vmul.f32 %v5042_v10, %v3364_v18 }
0x1f69   :  { %v3425_v20 = vmin.f32 %v3421_v33, 1.0 }
0x1f6a   :  { %v3395_v55 = vmul.f32 %v3394_v21, %v3361_v46  ;;  %v3403_v12 = vmul.f32 %v5042_v10, %v3402_v22 }
0x1f6b   :  { %v3429_v31 = vmul.f32 %v3425_v20, %v6536_v61  ;;  %v3411_v61 = vand.u32 2147483648, %v3364_v18 }
0x1f6c   :  { %v3397_v43 = vsel %vm3396_vm9, %v3361_v46, %v3395_v55  ;;  %v3404_v24 = vmul.f32 0.5, %v3403_v12  ;;  %v3594_v12 = vld [vmem:[%s7175_s2 + $0x80] sm:$0xff] }
0x1f6d   :  { %v6587_v42 = vadd.f32 %v3429_v31, %v6410_v50  ;;  %v3400_v40 = vsel %vm3398_vm10, %v3399_v54, %v3397_v43  ;;  %3619 = vmatpush.msra.mxu1 %v3594_v12  ;;  %v3593_v54 = vld [vmem:[%s7175_s2 + $0x78] sm:$0xff]  ;;  %v3592_v31 = vld [vmem:[%s7175_s2 + $0x70] sm:$0xff]  ;;  %v3591_v43 = vld [vmem:[%s7175_s2 + $0x68] sm:$0xff] }
0x1f6e   :  { %v3405_v48 = vsub.f32 1.5, %v3404_v24  ;;  %v3415_v37 = vadd.f32 1e-08, %v3400_v40 }
0x1f6f   :  { %3438 = vst.msk [vmem:[#allocation2 + $0xc0] sm:$0xff] %vm227_vm0, %v6587_v42  ;;  %4651 = vmatmul.msk.f32.vlgmr.msra.gmra.mxu0 %vm227_vm0, %v6587_v42  ;;  %3620 = vmatpush.msra.mxu1 %v3593_v54 }
0x1f70   :  { %v3406_v59 = vmul.f32 %v5042_v10, %v3405_v48  ;;  %5043 = vrcp.f32 %v3415_v37 }
0x1f71   :  { %3621 = vmatpush.msra.mxu1 %v3592_v31 }
0x1f72   :  { %v3407_v45 = vmul.f32 %v3406_v59, %v3364_v18 }
0x1f73   :  { %3622 = vmatpush.msra.mxu1 %v3591_v43 }
0x1f74   :  { %v3409_v32 = vsel %vm3408_vm11, %v3364_v18, %v3407_v45 }
0x1f75   :  { %v3412_v17 = vsel %vm3410_vm12, %v3411_v61, %v3409_v32 }
0x1f76   :  { %v5044_v4 = vpop.eup %5043  ;;  %v3416_v50 = vadd.f32 1e-08, %v3412_v17 }
0x1f77   :  { %4652 = vmatmul.msk.f32.gmra.mxu0 %vm227_vm0, %v6581_v13  ;;  %v3423_v26 = vmul.f32 5.0, %v5044_v4 }
0x1f78   :  { %5045 = vrcp.f32 %v3416_v50 }
0x1f79   :  { %v3427_v1 = vmin.f32 %v3423_v26, 1.0 }
0x1f7b   :  { %v3431_v51 = vmul.f32 %v3427_v1, %v6544_v6 }
0x1f7d   :  { %v6597_v57 = vadd.f32 %v3431_v51, %v6420_v53 }
0x1f7e   :  { %v5046_v14 = vpop.eup %5045 }
0x1f7f   :  { %3440 = vst.msk [vmem:[#allocation2 + $0xd0] sm:$0xff] %vm227_vm0, %v6597_v57  ;;  %4653 = vmatmul.msk.f32.gmra.mxu0 %vm227_vm0, %v6597_v57  ;;  %v3424_v38 = vmul.f32 5.0, %v5046_v14 }
0x1f81   :  { %v3428_v44 = vmin.f32 %v3424_v38, 1.0 }
0x1f83   :  { %v3432_v39 = vmul.f32 %v3428_v44, %v6550_v19 }
0x1f85   :  { %v6605_v58 = vadd.f32 %v3432_v39, %v6428_v30 }
0x1f87   :  { %3441 = vst.msk [vmem:[#allocation2 + $0xd8] sm:$0xff] %vm227_vm0, %v6605_v58  ;;  %4654 = vmatmul.msk.f32.gmra.mxu0 %vm227_vm0, %v6605_v58 }
0x1fec   :  { %v3479_v53 = vpop.f32.mrf.mxu0 }
0x1fed   :  { %v3480_v6 = vadd.f32 %v3479_v53, %v5289_v0 }
0x1fef   :  { %v3491_v15 = vsel %vm71_vm2, %v3480_v6, 0.0 }
0x1ff0   :  { %3492 = vadd.xlane.f32.xlu2 %v3491_v15  ;;  %v6657_v15 = vld [vmem:[%s7175_s2 + $0xe0] sm:$0xff] }
0x1ff1   :  { %4121 = vmatpush.msrb.mxu1 %v6657_v15 }
0x1ff4   :  { %v3482_v16 = vpop.f32.mrf.mxu0 }
0x1ff5   :  { %v3483_v60 = vadd.f32 %v3482_v16, %v5289_v0  ;;  %v6662_v16 = vld [vmem:[%s7175_s2 + $0xd8] sm:$0xff] }
0x1ff6   :  { %4122 = vmatpush.msrb.mxu1 %v6662_v16 }
0x1ff7   :  { %v3494_v19 = vsel %vm71_vm2, %v3483_v60, 0.0 }
0x1ff8   :  { %3495 = vadd.xlane.f32.xlu1 %v3494_v19 }
0x1ffc   :  { %v3485_v30 = vpop.f32.mrf.mxu0 }
0x1ffd   :  { %v3486_v5 = vadd.f32 %v3485_v30, %v5289_v0 }
0x1fff   :  { %v3497_v11 = vsel %vm71_vm2, %v3486_v5, 0.0 }
0x2000   :  { %3498 = vadd.xlane.f32.xlu0 %v3497_v11  ;;  %v6670_v11 = vld [vmem:[%s7175_s2 + $0xd0] sm:$0xff] }
0x2001   :  { %4123 = vmatpush.msrb.mxu1 %v6670_v11 }
0x2004   :  { %v3488_v7 = vpop.f32.mrf.mxu0 }
0x2005   :  { %v3489_v46 = vadd.f32 %v3488_v7, %v5289_v0 }
0x2007   :  { %v3500_v9 = vsel %vm71_vm2, %v3489_v46, 0.0 }
0x2008   :  { %3501 = vadd.xlane.f32.xlu2 %v3500_v9 }
0x2063   :  { %v3493_v27 = vpop.xlane.xlu2 %3492 }
0x2064   :  { %v3503_v41 = vmul.f32 %v3493_v27, %v5181_v25 }
0x2066   :  { %v3507_v23 = vsub.f32 %v3480_v6, %v3503_v41  ;;  %v6677_v41 = vld [vmem:[%s7175_s2 + $0xc8] sm:$0xff] }
0x2067   :  { %4124 = vmatpush.msrb.mxu1 %v6677_v41 }
0x2068   :  { %v3511_v63 = vmul.f32 %v3507_v23, %v3507_v23 }
0x206a   :  { %v3515_v3 = vsel %vm71_vm2, %v3511_v63, 0.0 }
0x206b   :  { %3516 = vadd.xlane.f32.xlu1 %v3515_v3  ;;  %v3496_v35 = vpop.xlane.xlu1 %3495 }
0x206c   :  { %v3504_v34 = vmul.f32 %v3496_v35, %v5181_v25 }
0x206e   :  { %v6622_v28 = vsub.f32 %v3483_v60, %v3504_v34 }
0x2070   :  { %v3512_v18 = vmul.f32 %v6622_v28, %v6622_v28 }
0x2072   :  { %v3518_v0 = vsel %vm71_vm2, %v3512_v18, 0.0 }
0x2073   :  { %3519 = vadd.xlane.f32.xlu0 %v3518_v0  ;;  %v3499_v2 = vpop.xlane.xlu0 %3498 }
0x2074   :  { %v3505_v8 = vmul.f32 %v3499_v2, %v5181_v25 }
0x2076   :  { %v6628_v52 = vsub.f32 %v3486_v5, %v3505_v8 }
0x2078   :  { %v3513_v47 = vmul.f32 %v6628_v52, %v6628_v52 }
0x207a   :  { %v3521_v10 = vsel %vm71_vm2, %v3513_v47, 0.0 }
0x207b   :  { %v3502_v33 = vpop.xlane.xlu2 %3501  ;;  %3522 = vadd.xlane.f32.xlu2 %v3521_v10 }
0x207c   :  { %v3506_v21 = vmul.f32 %v3502_v33, %v5181_v25 }
0x207e   :  { %v6634_v22 = vsub.f32 %v3489_v46, %v3506_v21 }
0x2080   :  { %v3514_v20 = vmul.f32 %v6634_v22, %v6634_v22 }
0x2082   :  { %v3524_v55 = vsel %vm71_vm2, %v3514_v20, 0.0 }
0x2083   :  { %3525 = vadd.xlane.f32.xlu1 %v3524_v55 }
0x20de   :  { %v3517_v24 = vpop.xlane.xlu1 %3516 }
0x20df   :  { %v3527_v40 = vmul.f32 %v3517_v24, %v5181_v25 }
0x20e1   :  { %v3531_v48 = vadd.f32 1e-05, %v3527_v40 }
0x20e3   :  { %5047 = vrsqrt.f32 %v3531_v48  ;;  %vm3541_vm14 = vweird.f32 %v3531_v48 }
0x20e6   :  { %v3520_v37 = vpop.xlane.xlu0 %3519 }
0x20e7   :  { %v3528_v59 = vmul.f32 %v3520_v37, %v5181_v25 }
0x20e9   :  { %v5048_v45 = vpop.eup %5047  ;;  %v3532_v61 = vadd.f32 1e-05, %v3528_v59 }
0x20ea   :  { %v3536_v32 = vmul.f32 %v5048_v45, %v3531_v48  ;;  %vm3542_vm13 = vweird.f32 %v5048_v45 }
0x20eb   :  { %5049 = vrsqrt.f32 %v3532_v61  ;;  %vm3543_vm15 = vmor %vm3541_vm14, %vm3542_vm13  ;;  %vm3551_vm4 = vweird.f32 %v3532_v61 }
0x20ec   :  { %v3537_v17 = vmul.f32 %v5048_v45, %v3536_v32  ;;  %v3977_v32 = vld [vmem:[#allocation2 + $0x8] sm:$0xff] }
0x20ee   :  { %v3538_v4 = vmul.f32 0.5, %v3537_v17  ;;  %v3523_v50 = vpop.xlane.xlu2 %3522  ;;  %v3978_v17 = vld [vmem:[#allocation2 + $0x10] sm:$0xff] }
0x20ef   :  { %v3529_v26 = vmul.f32 %v3523_v50, %v5181_v25  ;;  %v3983_v50 = vld [vmem:[#allocation2 + $0x38] sm:$0xff] }
0x20f0   :  { %v3539_v1 = vsub.f32 1.5, %v3538_v4  ;;  %v3979_v4 = vld [vmem:[#allocation2 + $0x18] sm:$0xff] }
0x20f1   :  { %v5050_v51 = vpop.eup %5049  ;;  %v3533_v14 = vadd.f32 1e-05, %v3529_v26  ;;  %v3984_v26 = vld [vmem:[#allocation2 + $0x40] sm:$0xff] }
0x20f2   :  { %v3540_v38 = vmul.f32 %v5048_v45, %v3539_v1  ;;  %v3546_v44 = vmul.f32 %v5050_v51, %v3532_v61  ;;  %vm3552_vm3 = vweird.f32 %v5050_v51  ;;  %v3976_v61 = vld [vmem:[#allocation2] sm:$0xff]  ;;  %v3985_v1 = vld [vmem:[#allocation2 + $0x48] sm:$0xff] }
0x20f3   :  { %5051 = vrsqrt.f32 %v3533_v14  ;;  %vm3553_vm5 = vmor %vm3551_vm4, %vm3552_vm3  ;;  %vm3561_vm7 = vweird.f32 %v3533_v14 }
0x20f4   :  { %v3544_v39 = vsel %vm3543_vm15, %v5048_v45, %v3540_v38  ;;  %v3547_v53 = vmul.f32 %v5050_v51, %v3546_v44  ;;  %v3988_v44 = vld [vmem:[#allocation2 + $0x60] sm:$0xff] }
0x20f5   :  { %v3575_v6 = vmul.f32 %v3544_v39, %v3507_v23 }
0x20f6   :  { %v3548_v60 = vmul.f32 0.5, %v3547_v53  ;;  %v3526_v19 = vpop.xlane.xlu1 %3525 }
0x20f7   :  { %v3579_v30 = vmul.f32 %v3575_v6, %v5347_v56  ;;  %v3530_v5 = vmul.f32 %v3526_v19, %v5181_v25  ;;  %v3989_v6 = vld [vmem:[#allocation2 + $0x68] sm:$0xff] }
0x20f8   :  { %v3549_v7 = vsub.f32 1.5, %v3548_v60 }
0x20f9   :  { %v5052_v46 = vpop.eup %5051  ;;  %v3583_v9 = vadd.f32 %v3579_v30, %v5350_v62  ;;  %v3534_v27 = vadd.f32 1e-05, %v3530_v5 }
0x20fa   :  { %v3550_v23 = vmul.f32 %v5050_v51, %v3549_v7  ;;  %v3556_v25 = vmul.f32 %v5052_v46, %v3533_v14  ;;  %vm3562_vm6 = vweird.f32 %v5052_v46  ;;  %v3987_v14 = vld [vmem:[#allocation2 + $0x58] sm:$0xff]  ;;  %v3990_v7 = vld [vmem:[#allocation2 + $0x70] sm:$0xff] }
0x20fb   :  { %v3587_v63 = vmax.f32 %v3583_v9, 0.0  ;;  %5053 = vrsqrt.f32 %v3534_v27  ;;  %vm3563_vm8 = vmor %vm3561_vm7, %vm3562_vm6  ;;  %vm3571_vm10 = vweird.f32 %v3534_v27 }
0x20fc   :  { %v3554_v3 = vsel %vm3553_vm5, %v5050_v51, %v3550_v23  ;;  %v3557_v35 = vmul.f32 %v5052_v46, %v3556_v25  ;;  %v3986_v51 = vld [vmem:[#allocation2 + $0x50] sm:$0xff]  ;;  %v3991_v25 = vld [vmem:[#allocation2 + $0x78] sm:$0xff] }
0x20fd   :  { %v3576_v34 = vmul.f32 %v3554_v3, %v6622_v28  ;;  %4655 = vmatmul.msk.f32.vlgmr.msra.gmra.mxu1 %vm71_vm2, %v3587_v63 }
0x20fe   :  { %v3558_v18 = vmul.f32 0.5, %v3557_v35 }
0x20ff   :  { %v3580_v0 = vmul.f32 %v3576_v34, %v5347_v56 }
0x2100   :  { %v3559_v2 = vsub.f32 1.5, %v3558_v18  ;;  %v3992_v18 = vld [vmem:[#allocation2 + $0x80] sm:$0xff] }
0x2101   :  { %v5054_v8 = vpop.eup %5053  ;;  %v3584_v47 = vadd.f32 %v3580_v0, %v5350_v62 }
0x2102   :  { %v3560_v10 = vmul.f32 %v5052_v46, %v3559_v2  ;;  %v3566_v33 = vmul.f32 %v5054_v8, %v3534_v27  ;;  %vm3572_vm9 = vweird.f32 %v5054_v8 }
0x2103   :  { %v3588_v21 = vmax.f32 %v3584_v47, 0.0  ;;  %vm3573_vm11 = vmor %vm3571_vm10, %vm3572_vm9 }
0x2104   :  { %v3564_v20 = vsel %vm3563_vm8, %v5052_v46, %v3560_v10  ;;  %v3567_v55 = vmul.f32 %v5054_v8, %v3566_v33 }
0x2105   :  { %v3577_v12 = vmul.f32 %v3564_v20, %v6628_v52  ;;  %4656 = vmatmul.msk.f32.gmra.mxu1 %vm71_vm2, %v3588_v21 }
0x2106   :  { %v3568_v28 = vmul.f32 0.5, %v3567_v55 }
0x2107   :  { %v3581_v54 = vmul.f32 %v3577_v12, %v5347_v56 }
0x2108   :  { %v3569_v31 = vsub.f32 1.5, %v3568_v28 }
0x2109   :  { %v3585_v43 = vadd.f32 %v3581_v54, %v5350_v62 }
0x210a   :  { %v3570_v24 = vmul.f32 %v5054_v8, %v3569_v31 }
0x210b   :  { %v3589_v40 = vmax.f32 %v3585_v43, 0.0 }
0x210c   :  { %v3574_v48 = vsel %vm3573_vm11, %v5054_v8, %v3570_v24 }
0x210d   :  { %v3578_v37 = vmul.f32 %v3574_v48, %v6634_v22  ;;  %4657 = vmatmul.msk.f32.gmra.mxu1 %vm71_vm2, %v3589_v40  ;;  %v3980_v22 = vld [vmem:[#allocation2 + $0x20] sm:$0xff] }
0x210f   :  { %v3582_v52 = vmul.f32 %v3578_v37, %v5347_v56  ;;  %v3981_v56 = vld [vmem:[#allocation2 + $0x28] sm:$0xff] }
0x2111   :  { %v3586_v59 = vadd.f32 %v3582_v52, %v5350_v62  ;;  %v3982_v62 = vld [vmem:[#allocation2 + $0x30] sm:$0xff] }
0x2113   :  { %v3590_v45 = vmax.f32 %v3586_v59, 0.0 }
0x2115   :  { %4658 = vmatmul.msk.f32.gmra.mxu1 %vm71_vm2, %v3590_v45 }
0x211d   :  { %4671 = vmatmul.msk.f32.vlgmr.msrb.gmra.mxu1 %vm71_vm2, %v3976_v61 }
0x2125   :  { %4672 = vmatmul.msk.f32.gmra.mxu1 %vm71_vm2, %v3977_v32 }
0x212d   :  { %4673 = vmatmul.msk.f32.gmra.mxu1 %vm71_vm2, %v3978_v17 }
0x2135   :  { %4674 = vmatmul.msk.f32.gmra.mxu1 %vm71_vm2, %v3979_v4 }
0x213d   :  { %4675 = vmatmul.msk.f32.gmra.mxu1 %vm71_vm2, %v3980_v22 }
0x2145   :  { %4676 = vmatmul.msk.f32.gmra.mxu1 %vm71_vm2, %v3981_v56 }
0x214d   :  { %4677 = vmatmul.msk.f32.gmra.mxu1 %vm71_vm2, %v3982_v62 }
0x2155   :  { %4678 = vmatmul.msk.f32.gmra.mxu1 %vm71_vm2, %v3983_v50 }
0x215d   :  { %4679 = vmatmul.msk.f32.gmra.mxu1 %vm71_vm2, %v3984_v26 }
0x2165   :  { %4680 = vmatmul.msk.f32.gmra.mxu1 %vm71_vm2, %v3985_v1 }
0x216d   :  { %4681 = vmatmul.msk.f32.gmra.mxu1 %vm71_vm2, %v3986_v51 }
0x2175   :  { %4682 = vmatmul.msk.f32.gmra.mxu1 %vm71_vm2, %v3987_v14 }
0x217a   :  { %v3624_v38 = vpop.f32.mrf.mxu1 }
0x217b   :  { %v6728_v3 = vadd.f32 %v3624_v38, %v5369_v49 }
0x217d   :  { %4683 = vmatmul.msk.f32.gmra.mxu1 %vm71_vm2, %v3988_v44  ;;  %v3636_v34 = vmul.f32 %v6728_v3, %v6728_v3 }
0x217f   :  { %v3640_v0 = vsel %vm71_vm2, %v3636_v34, 0.0 }
0x2182   :  { %v3627_v39 = vpop.f32.mrf.mxu1 }
0x2183   :  { %v6708_v53 = vadd.f32 %v3627_v39, %v5369_v49 }
0x2185   :  { %4684 = vmatmul.msk.f32.gmra.mxu1 %vm71_vm2, %v3989_v6  ;;  %v3637_v60 = vmul.f32 %v6708_v53, %v6708_v53 }
0x2187   :  { %v3643_v19 = vsel %vm71_vm2, %v3637_v60, 0.0 }
0x2188   :  { %3644 = vadd.xlane.f32.xlu1 %v3643_v19 }
0x218a   :  { %v3630_v30 = vpop.f32.mrf.mxu1 }
0x218b   :  { %v6715_v5 = vadd.f32 %v3630_v30, %v5369_v49 }
0x218d   :  { %4685 = vmatmul.msk.f32.gmra.mxu1 %vm71_vm2, %v3990_v7  ;;  %v3638_v46 = vmul.f32 %v6715_v5, %v6715_v5 }
0x218f   :  { %v3646_v9 = vsel %vm71_vm2, %v3638_v46, 0.0 }
0x2190   :  { %3647 = vadd.xlane.f32.xlu2 %v3646_v9 }
0x2192   :  { %v3633_v27 = vpop.f32.mrf.mxu1 }
0x2193   :  { %v6722_v23 = vadd.f32 %v3633_v27, %v5369_v49 }
0x2195   :  { %4686 = vmatmul.msk.f32.gmra.mxu1 %vm71_vm2, %v3991_v25  ;;  %v3639_v63 = vmul.f32 %v6722_v23, %v6722_v23 }
0x2197   :  { %v3649_v35 = vsel %vm71_vm2, %v3639_v63, 0.0 }
0x2198   :  { %3650 = vadd.xlane.f32.xlu0 %v3649_v35 }
0x219a   :  { %v6735_v2 = vpop.f32.mrf.mxu1 }
0x219d   :  { %4687 = vmatmul.msk.f32.gmra.mxu1 %vm71_vm2, %v3992_v18 }
0x21a0   :  { %3641 = vadd.xlane.f32.xlu0 %v3640_v0 }
0x21a2   :  { %v6737_v8 = vpop.f32.mrf.mxu1 }
0x21aa   :  { %v6739_v47 = vpop.f32.mrf.mxu1 }
0x21b2   :  { %v6741_v49 = vpop.f32.mrf.mxu1 }
0x21ba   :  { %v6743_v10 = vpop.f32.mrf.mxu1 }
0x21c2   :  { %v6745_v33 = vpop.f32.mrf.mxu1 }
0x21ca   :  { %v6747_v21 = vpop.f32.mrf.mxu1 }
0x21d2   :  { %v6749_v20 = vpop.f32.mrf.mxu1 }
0x21da   :  { %v6751_v12 = vpop.f32.mrf.mxu1 }
0x21e2   :  { %v6753_v43 = vpop.f32.mrf.mxu1 }
0x21ea   :  { %v6755_v32 = vpop.f32.mrf.mxu1 }
0x21f2   :  { %v6757_v44 = vpop.f32.mrf.mxu1 }
0x21fb   :  { %v3645_v55 = vpop.xlane.xlu1 %3644 }
0x21fc   :  { %v3653_v28 = vadd.f32 1e-24, %v3645_v55  ;;  %v6762_v55 = vpop.f32.mrf.mxu1 }
0x21fe   :  { %5055 = vrsqrt.f32 %v3653_v28  ;;  %vm3672_vm3 = vweird.f32 %v3653_v28 }
0x2203   :  { %v3648_v54 = vpop.xlane.xlu2 %3647 }
0x2204   :  { %v3654_v31 = vadd.f32 1e-24, %v3648_v54  ;;  %v5056_v24 = vpop.eup %5055 }
0x2205   :  { %v3667_v40 = vmul.f32 %v5056_v24, %v3653_v28  ;;  %vm3673_vm13 = vweird.f32 %v5056_v24 }
0x2206   :  { %5057 = vrsqrt.f32 %v3654_v31  ;;  %vm3682_vm14 = vweird.f32 %v3654_v31  ;;  %vm3674_vm5 = vmor %vm3672_vm3, %vm3673_vm13 }
0x2207   :  { %v3668_v45 = vmul.f32 %v5056_v24, %v3667_v40 }
0x2209   :  { %v3669_v4 = vmul.f32 0.5, %v3668_v45  ;;  %v3817_v45 = vld [vmem:[%s7175_s2 + $0xc0] sm:$0xff] }
0x220a   :  { %3842 = vmatpush.msrb.mxu0 %v3817_v45 }
0x220b   :  { %v3651_v48 = vpop.xlane.xlu0 %3650  ;;  %v3670_v1 = vsub.f32 1.5, %v3669_v4 }
0x220c   :  { %v5058_v37 = vpop.eup %5057  ;;  %v3655_v52 = vadd.f32 1e-24, %v3651_v48  ;;  %v3704_v48 = vld [vmem:[%s7174_s1] sm:$0xff] }
0x220d   :  { %v3677_v59 = vmul.f32 %v5058_v37, %v3654_v31  ;;  %vm3683_vm12 = vweird.f32 %v5058_v37  ;;  %v3671_v39 = vmul.f32 %v5056_v24, %v3670_v1 }
0x220e   :  { %5059 = vrsqrt.f32 %v3655_v52  ;;  %vm3684_vm4 = vmor %vm3682_vm14, %vm3683_vm12  ;;  %vm3692_vm6 = vweird.f32 %v3655_v52 }
0x220f   :  { %v3678_v61 = vmul.f32 %v5058_v37, %v3677_v59  ;;  %v3675_v27 = vsel %vm3674_vm5, %v5056_v24, %v3671_v39  ;;  %v3705_v59 = vld [vmem:[%s7174_s1 + $0x8] sm:$0xff]  ;;  %v3816_v39 = vld [vmem:[%s7175_s2 + $0xb8] sm:$0xff] }
0x2210   :  { %v3697_v18 = vmul.f32 5.656854, %v3675_v27  ;;  %3843 = vmatpush.msrb.mxu0 %v3816_v39  ;;  %v3997_v39 = vld [vmem:[#allocation2 + $0xa8] sm:$0xff] }
0x2211   :  { %v3679_v17 = vmul.f32 0.5, %v3678_v61 }
0x2212   :  { %v6770_v31 = vmul.f32 %v3697_v18, %v6708_v53  ;;  %v4256_v53 = vld [vmem:[%s7175_s2 + $0xf8] sm:$0xff]  ;;  %v3758_v18 = vmul.f32 0.03, %v6581_v13 }
0x2213   :  { %v3642_v22 = vpop.xlane.xlu0 %3641  ;;  %v3680_v50 = vsub.f32 1.5, %v3679_v17  ;;  %v3706_v17 = vld [vmem:[%s7174_s1 + $0x10] sm:$0xff] }
0x2214   :  { %v5060_v56 = vpop.eup %5059  ;;  %v3652_v62 = vadd.f32 1e-24, %v3642_v22  ;;  %v3707_v22 = vld [vmem:[%s7174_s1 + $0x18] sm:$0xff] }
0x2215   :  { %v3687_v26 = vmul.f32 %v5060_v56, %v3655_v52  ;;  %v3681_v14 = vmul.f32 %v5058_v37, %v3680_v50  ;;  %vm3693_vm15 = vweird.f32 %v5060_v56  ;;  %v4254_v52 = vld [vmem:[%s7175_s2 + $0xe8] sm:$0xff] }
0x2216   :  { %5061 = vrsqrt.f32 %v3652_v62  ;;  %vm3694_vm7 = vmor %vm3692_vm6, %vm3693_vm15  ;;  %vm3662_vm9 = vweird.f32 %v3652_v62 }
0x2217   :  { %v3688_v51 = vmul.f32 %v5060_v56, %v3687_v26  ;;  %v3685_v7 = vsel %vm3684_vm4, %v5058_v37, %v3681_v14  ;;  %v6784_v37 = vpop.f32.mrf.mxu1 }
0x2218   :  { %v3698_v63 = vmul.f32 5.656854, %v3685_v7  ;;  %v3765_v7 = vld [vmem:[%s7175_s2 + $0x88] sm:$0xff] }
0x2219   :  { %v3689_v38 = vmul.f32 0.5, %v3688_v51 }
0x221a   :  { %v6766_v28 = vmul.f32 %v3698_v63, %v6715_v5  ;;  %v4257_v5 = vld [vmem:[%s7175_s2 + $0x100] sm:$0xff] }
0x221b   :  { %v3690_v6 = vsub.f32 1.5, %v3689_v38  ;;  %v3768_v38 = vld [vmem:[%s7175_s2 + $0xa0] sm:$0xff] }
0x221c   :  { %v5062_v60 = vpop.eup %5061  ;;  %3793 = vmatpush.msrb.mxu2 %v3768_v38 }
0x221d   :  { %v3691_v19 = vmul.f32 %v5060_v56, %v3690_v6  ;;  %v3657_v30 = vmul.f32 %v5062_v60, %v3652_v62  ;;  %vm3663_vm8 = vweird.f32 %v5062_v60  ;;  %v3767_v6 = vld [vmem:[%s7175_s2 + $0x98] sm:$0xff] }
0x221e   :  { %vm3664_vm10 = vmor %vm3662_vm9, %vm3663_vm8  ;;  %3794 = vmatpush.msrb.mxu2 %v3767_v6 }
0x221f   :  { %v3695_v46 = vsel %vm3694_vm7, %v5060_v56, %v3691_v19  ;;  %v3658_v9 = vmul.f32 %v5062_v60, %v3657_v30  ;;  %v6799_v61 = vpop.f32.mrf.mxu1  ;;  %v5095_v56 = vld [vmem:[%s7175_s2 + $0x110] sm:$0xff]  ;;  %v3814_v30 = vld [vmem:[%s7175_s2 + $0xa8] sm:$0xff] }
0x2220   :  { %v3699_v25 = vmul.f32 5.656854, %v3695_v46  ;;  %v6811_v62 = vperm.slane %v5095_v56, 2  ;;  %v3766_v19 = vld [vmem:[%s7175_s2 + $0x90] sm:$0xff] }
0x2221   :  { %v3659_v35 = vmul.f32 0.5, %v3658_v9  ;;  %3795 = vmatpush.msrb.mxu2 %v3766_v19 }
0x2222   :  { %v6760_v34 = vmul.f32 %v3699_v25, %v6722_v23  ;;  %v3757_v25 = vmul.f32 0.03, %v6587_v42  ;;  %v4139_v38 = vadd.f32 %v6743_v10, %v6811_v62  ;;  %v4142_v6 = vadd.f32 %v6745_v33, %v6811_v62 }
0x2223   :  { %v3660_v0 = vsub.f32 1.5, %v3659_v35  ;;  %3796 = vmatpush.msrb.mxu2 %v3765_v7  ;;  %v4145_v19 = vadd.f32 %v6747_v21, %v6811_v62  ;;  %v4148_v7 = vadd.f32 %v6749_v20, %v6811_v62 }
0x2224   :  { %3732 = vmatpush.msra.mxu3 %v6760_v34 }
0x2225   :  { %v3661_v54 = vmul.f32 %v5062_v60, %v3660_v0  ;;  %4736 = vmatpush.msra.mxu2 %v6657_v15  ;;  %v4228_v10 = vmax.f32 %v4145_v19, 0.0  ;;  %v4229_v33 = vmax.f32 %v4148_v7, 0.0 }
0x2226   :  { %3733 = vmatpush.msra.mxu3 %v6766_v28 }
0x2227   :  { %v3665_v23 = vsel %vm3664_vm10, %v5062_v60, %v3661_v54  ;;  %v4171_v4 = vpop.f32.mrf.mxu1  ;;  %v3815_v60 = vld [vmem:[%s7175_s2 + $0xb0] sm:$0xff]  ;;  %4737 = vmatpush.msra.mxu2 %v6662_v16 }
0x2228   :  { %3734 = vmatpush.msra.mxu3 %v6770_v31  ;;  %v3696_v24 = vmul.f32 5.656854, %v3665_v23  ;;  %v4172_v50 = vadd.f32 %v4171_v4, %v6811_v62  ;;  %3844 = vmatpush.msrb.mxu0 %v3815_v60  ;;  %v3759_v23 = vmul.f32 0.03, %v6597_v57  ;;  %v3998_v60 = vld [vmem:[#allocation2 + $0xb0] sm:$0xff] }
0x2229   :  { %4738 = vmatpush.msra.mxu2 %v6670_v11 }
0x222a   :  { %v3700_v40 = vmul.f32 %v3696_v24, %v6728_v3  ;;  %v4255_v3 = vld [vmem:[%s7175_s2 + $0xf0] sm:$0xff]  ;;  %v4237_v26 = vmax.f32 %v4172_v50, 0.0  ;;  %3845 = vmatpush.msrb.mxu0 %v3814_v30  ;;  %v4133_v50 = vadd.f32 %v6739_v47, %v6811_v62  ;;  %v4226_v47 = vmax.f32 %v4139_v38, 0.0  ;;  %v3999_v30 = vld [vmem:[#allocation2 + $0xb8] sm:$0xff] }
0x222b   :  { %4739 = vmatpush.msra.mxu2 %v6677_v41 }
0x222c   :  { %3735 = vmatpush.msra.mxu3 %v3700_v40  ;;  %4367 = vmatpush.msra.mxu0 %v4257_v5 }
0x222d   :  { %4659 = vmatmul.msk.f32.vlgmr.msra.gmra.mxu3 %vm71_vm2, %v3704_v48 }
0x222e   :  { %4740 = vmatpush.msrb.mxu3 %v4257_v5  ;;  %4368 = vmatpush.msra.mxu0 %v4256_v53  ;;  %v3760_v5 = vmul.f32 0.03, %v6605_v58 }
0x222f   :  { %v4174_v1 = vpop.f32.mrf.mxu1 }
0x2230   :  { %4741 = vmatpush.msrb.mxu3 %v4256_v53  ;;  %v4175_v51 = vadd.f32 %v4174_v1, %v6811_v62  ;;  %4369 = vmatpush.msra.mxu0 %v4255_v3  ;;  %v6856_v53 = vperm.slane %v5095_v56, 3  ;;  %v3994_v56 = vld [vmem:[#allocation2 + $0x90] sm:$0xff]  ;;  %v4136_v1 = vadd.f32 %v6741_v49, %v6811_v62  ;;  %v4227_v49 = vmax.f32 %v4142_v6, 0.0 }
0x2232   :  { %4742 = vmatpush.msrb.mxu3 %v4255_v3  ;;  %v4238_v14 = vmax.f32 %v4175_v51, 0.0  ;;  %4370 = vmatpush.msra.mxu0 %v4254_v52  ;;  %v4225_v51 = vmax.f32 %v4136_v1, 0.0 }
0x2234   :  { %4743 = vmatpush.msrb.mxu3 %v4254_v52 }
0x2235   :  { %4660 = vmatmul.msk.f32.gmra.mxu3 %vm71_vm2, %v3705_v59 }
0x223d   :  { %4661 = vmatmul.msk.f32.gmra.mxu3 %vm71_vm2, %v3706_v17  ;;  %v4130_v17 = vadd.f32 %v6737_v8, %v6811_v62  ;;  %v4224_v8 = vmax.f32 %v4133_v50, 0.0 }
0x2245   :  { %4662 = vmatmul.msk.f32.gmra.mxu3 %vm71_vm2, %v3707_v22  ;;  %v4223_v22 = vmax.f32 %v4130_v17, 0.0 }
0x224d   :  { %4718 = vmatmul.msk.f32.vlgmr.msrb.gmra.mxu3 %vm71_vm2, %v4237_v26  ;;  %v3995_v26 = vld [vmem:[#allocation2 + $0x98] sm:$0xff] }
0x2255   :  { %4719 = vmatmul.msk.f32.gmra.mxu3 %vm71_vm2, %v4238_v14  ;;  %v3996_v14 = vld [vmem:[#allocation2 + $0xa0] sm:$0xff] }
0x22b0   :  { %v3737_v46 = vpop.f32.mrf.mxu3 }
0x22b1   :  { %v3749_v9 = vmul.f32 0.02, %v3737_v46  ;;  %v4000_v46 = vld [vmem:[#allocation2 + $0xc0] sm:$0xff] }
0x22b3   :  { %v3753_v27 = vadd.f32 %v3749_v9, %v3700_v40  ;;  %v4151_v9 = vadd.f32 %v6751_v12, %v6811_v62 }
0x22b5   :  { %v3761_v63 = vsub.f32 %v3753_v27, %v3757_v25  ;;  %4667 = vmatmul.msk.f32.vlgmr.msrb.gmra.mxu0 %vm71_vm2, %v3753_v27  ;;  %v4230_v21 = vmax.f32 %v4151_v9, 0.0  ;;  %v4001_v27 = vld [vmem:[#allocation2 + $0xc8] sm:$0xff]  ;;  %v4154_v25 = vadd.f32 %v6753_v43, %v6811_v62 }
0x22b7   :  { %4663 = vmatmul.msk.f32.vlgmr.msrb.gmra.mxu2 %vm71_vm2, %v3761_v63  ;;  %v4231_v20 = vmax.f32 %v4154_v25, 0.0  ;;  %v4002_v63 = vld [vmem:[#allocation2 + $0xd0] sm:$0xff] }
0x22b8   :  { %v3740_v15 = vpop.f32.mrf.mxu3 }
0x22b9   :  { %v3750_v35 = vmul.f32 0.02, %v3740_v15  ;;  %v4157_v15 = vadd.f32 %v6755_v32, %v6811_v62 }
0x22bb   :  { %v3754_v16 = vadd.f32 %v3750_v35, %v6770_v31  ;;  %v4232_v12 = vmax.f32 %v4157_v15, 0.0  ;;  %v4003_v35 = vld [vmem:[#allocation2 + $0xd8] sm:$0xff] }
0x22bd   :  { %v3762_v11 = vsub.f32 %v3754_v16, %v3758_v18  ;;  %4668 = vmatmul.msk.f32.gmra.mxu0 %vm71_vm2, %v3754_v16  ;;  %v4160_v16 = vadd.f32 %v6757_v44, %v6811_v62  ;;  %v4163_v18 = vadd.f32 %v6762_v55, %v6811_v62  ;;  %v4169_v55 = vadd.f32 %v6799_v61, %v6811_v62 }
0x22bf   :  { %4664 = vmatmul.msk.f32.gmra.mxu2 %vm71_vm2, %v3762_v11  ;;  %v4233_v43 = vmax.f32 %v4160_v16, 0.0 }
0x22c0   :  { %v3743_v41 = vpop.f32.mrf.mxu3 }
0x22c1   :  { %v3751_v0 = vmul.f32 0.02, %v3743_v41  ;;  %v4234_v41 = vmax.f32 %v4163_v18, 0.0 }
0x22c3   :  { %v3755_v54 = vadd.f32 %v3751_v0, %v6766_v28  ;;  %v4127_v28 = vadd.f32 %v6735_v2, %v6811_v62  ;;  %v4166_v0 = vadd.f32 %v6784_v37, %v6811_v62 }
0x22c5   :  { %v3763_v24 = vsub.f32 %v3755_v54, %v3759_v23  ;;  %4669 = vmatmul.msk.f32.gmra.mxu0 %vm71_vm2, %v3755_v54  ;;  %v4222_v45 = vmax.f32 %v4127_v28, 0.0 }
0x22c7   :  { %4665 = vmatmul.msk.f32.gmra.mxu2 %vm71_vm2, %v3763_v24  ;;  %v4235_v24 = vmax.f32 %v4166_v0, 0.0 }
0x22c8   :  { %v3746_v40 = vpop.f32.mrf.mxu3 }
0x22c9   :  { %v3752_v31 = vmul.f32 0.02, %v3746_v40 }
0x22cb   :  { %v3756_v48 = vadd.f32 %v3752_v31, %v6760_v34  ;;  %v3993_v34 = vld [vmem:[#allocation2 + $0x88] sm:$0xff] }
0x22cd   :  { %v3764_v3 = vsub.f32 %v3756_v48, %v3760_v5  ;;  %4670 = vmatmul.msk.f32.gmra.mxu0 %vm71_vm2, %v3756_v48  ;;  %v4236_v5 = vmax.f32 %v4169_v55, 0.0 }
0x22cf   :  { %4666 = vmatmul.msk.f32.gmra.mxu2 %vm71_vm2, %v3764_v3 }
0x22d0   :  { %v4417_v52 = vpop.f32.mrf.mxu3 }
0x22d1   :  { %v4418_v59 = vadd.f32 %v4417_v52, %v6856_v53 }
0x22d3   :  { %4483 = vst.msk [vmem:[%s7177_s4 + $0x78] sm:$0xff] %vm25_vm1, %v4418_v59 }
0x22d5   :  { %4703 = vmatmul.msk.f32.vlgmr.msra.gmra.mxu0 %vm71_vm2, %v4222_v45 }
0x22d7   :  { %4688 = vmatmul.msk.f32.vlgmr.msra.gmra.mxu2 %vm71_vm2, %v3993_v34 }
0x22d8   :  { %v4420_v2 = vpop.f32.mrf.mxu3 }
0x22d9   :  { %v4421_v4 = vadd.f32 %v4420_v2, %v6856_v53 }
0x22db   :  { %4484 = vst.msk [vmem:[%s7177_s4 + $0x80] sm:$0xff] %vm25_vm1, %v4421_v4 }
0x22dd   :  { %4704 = vmatmul.msk.f32.gmra.mxu0 %vm71_vm2, %v4223_v22 }
0x22df   :  { %4689 = vmatmul.msk.f32.gmra.mxu2 %vm71_vm2, %v3994_v56 }
0x22e5   :  { %4705 = vmatmul.msk.f32.gmra.mxu0 %vm71_vm2, %v4224_v8 }
0x22e7   :  { %4690 = vmatmul.msk.f32.gmra.mxu2 %vm71_vm2, %v3995_v26 }
0x22ed   :  { %4706 = vmatmul.msk.f32.gmra.mxu0 %vm71_vm2, %v4225_v51 }
0x22ef   :  { %4691 = vmatmul.msk.f32.gmra.mxu2 %vm71_vm2, %v3996_v14 }
0x22f5   :  { %4707 = vmatmul.msk.f32.gmra.mxu0 %vm71_vm2, %v4226_v47 }
0x22f7   :  { %4692 = vmatmul.msk.f32.gmra.mxu2 %vm71_vm2, %v3997_v39 }
0x22fd   :  { %4708 = vmatmul.msk.f32.gmra.mxu0 %vm71_vm2, %v4227_v49 }
0x22ff   :  { %4693 = vmatmul.msk.f32.gmra.mxu2 %vm71_vm2, %v3998_v60 }
0x2305   :  { %4709 = vmatmul.msk.f32.gmra.mxu0 %vm71_vm2, %v4228_v10 }
0x2307   :  { %4694 = vmatmul.msk.f32.gmra.mxu2 %vm71_vm2, %v3999_v30 }
0x230d   :  { %4710 = vmatmul.msk.f32.gmra.mxu0 %vm71_vm2, %v4229_v33 }
0x230f   :  { %4695 = vmatmul.msk.f32.gmra.mxu2 %vm71_vm2, %v4000_v46 }
0x2315   :  { %4711 = vmatmul.msk.f32.gmra.mxu0 %vm71_vm2, %v4230_v21 }
0x2317   :  { %4696 = vmatmul.msk.f32.gmra.mxu2 %vm71_vm2, %v4001_v27 }
0x231d   :  { %4712 = vmatmul.msk.f32.gmra.mxu0 %vm71_vm2, %v4231_v20 }
0x231f   :  { %4697 = vmatmul.msk.f32.gmra.mxu2 %vm71_vm2, %v4002_v63 }
0x2325   :  { %4713 = vmatmul.msk.f32.gmra.mxu0 %vm71_vm2, %v4232_v12 }
0x2327   :  { %4698 = vmatmul.msk.f32.gmra.mxu2 %vm71_vm2, %v4003_v35 }
0x232d   :  { %4714 = vmatmul.msk.f32.gmra.mxu0 %vm71_vm2, %v4233_v43 }
0x2332   :  { %v3847_v11 = vpop.f32.mrf.mxu0 }
0x2333   :  { %v3848_v32 = vadd.f32 %v3847_v11, %v5473_v29 }
0x2335   :  { %5063 = vtanh.f32 %v3848_v32  ;;  %4715 = vmatmul.msk.f32.gmra.mxu0 %vm71_vm2, %v4234_v41 }
0x233a   :  { %v6923_v54 = vpop.f32.mrf.mxu2  ;;  %v3850_v44 = vpop.f32.mrf.mxu0 }
0x233b   :  { %v5064_v23 = vpop.eup %5063  ;;  %v3851_v40 = vadd.f32 %v3850_v44, %v5473_v29  ;;  %v3799_v11 = vadd.f32 %v6923_v54, %v5483_v36 }
0x233c   :  { %3867 = vrot.lane.b32.xlu2 %v5064_v23, %s5123_s30 }
0x233d   :  { %4716 = vmatmul.msk.f32.gmra.mxu0 %vm71_vm2, %v4235_v24  ;;  %5065 = vtanh.f32 %v3851_v40 }
0x2342   :  { %v6930_v31 = vpop.f32.mrf.mxu2  ;;  %v3853_v48 = vpop.f32.mrf.mxu0 }
0x2343   :  { %v3854_v37 = vadd.f32 %v3853_v48, %v5473_v29  ;;  %v5066_v3 = vpop.eup %5065 }
0x2344   :  { %3869 = vrot.lane.b32.xlu1 %v5066_v3, %s5123_s30 }
0x2345   :  { %4717 = vmatmul.msk.f32.gmra.mxu0 %vm71_vm2, %v4236_v5  ;;  %5067 = vtanh.f32 %v3854_v37 }
0x234a   :  { %v6935_v28 = vpop.f32.mrf.mxu2  ;;  %v3856_v52 = vpop.f32.mrf.mxu0 }
0x234b   :  { %v3857_v59 = vadd.f32 %v3856_v52, %v5473_v29  ;;  %v5068_v45 = vpop.eup %5067 }
0x234c   :  { %3871 = vrot.lane.b32.xlu0 %v5068_v45, %s5123_s30 }
0x234d   :  { %5069 = vtanh.f32 %v3857_v59 }
0x234e   :  { %5071 = vtanh.f32 %v3799_v11 }
0x2352   :  { %v6939_v61 = vpop.f32.mrf.mxu2  ;;  %v4372_v34 = vpop.f32.mrf.mxu0 }
0x2353   :  { %v4373_v17 = vadd.f32 %v4372_v34, %v6856_v53  ;;  %v5070_v2 = vpop.eup %5069 }
0x2354   :  { %3873 = vrot.lane.b32.xlu2 %v5070_v2, %s5123_s30  ;;  %v5072_v54 = vpop.eup %5071 }
0x2355   :  { %4468 = vst.msk [vmem:[%s7177_s4] sm:$0xff] %vm25_vm1, %v4373_v17 }
0x235a   :  { %v4177_v4 = vpop.f32.mrf.mxu2  ;;  %v4375_v22 = vpop.f32.mrf.mxu0 }
0x235b   :  { %v4178_v29 = vadd.f32 %v4177_v4, %v6811_v62  ;;  %v4376_v56 = vadd.f32 %v4375_v22, %v6856_v53  ;;  %v3808_v22 = vadd.f32 %v6939_v61, %v5483_v36 }
0x235d   :  { %v4239_v50 = vmax.f32 %v4178_v29, 0.0  ;;  %4469 = vst.msk [vmem:[%s7177_s4 + $0x8] sm:$0xff] %vm25_vm1, %v4376_v56  ;;  %5073 = vtanh.f32 %v3808_v22 }
0x235f   :  { %4720 = vmatmul.msk.f32.gmra.mxu3 %vm71_vm2, %v4239_v50 }
0x2362   :  { %v4180_v8 = vpop.f32.mrf.mxu2  ;;  %v4378_v26 = vpop.f32.mrf.mxu0 }
0x2363   :  { %v4181_v1 = vadd.f32 %v4180_v8, %v6811_v62  ;;  %v4379_v51 = vadd.f32 %v4378_v26, %v6856_v53  ;;  %v5074_v61 = vpop.eup %5073 }
0x2365   :  { %v4240_v14 = vmax.f32 %v4181_v1, 0.0  ;;  %4470 = vst.msk [vmem:[%s7177_s4 + $0x10] sm:$0xff] %vm25_vm1, %v4379_v51  ;;  %v3802_v1 = vadd.f32 %v6930_v31, %v5483_v36 }
0x2367   :  { %4721 = vmatmul.msk.f32.gmra.mxu3 %vm71_vm2, %v4240_v14  ;;  %5075 = vtanh.f32 %v3802_v1 }
0x236a   :  { %v4183_v38 = vpop.f32.mrf.mxu2  ;;  %v4381_v47 = vpop.f32.mrf.mxu0 }
0x236b   :  { %v4184_v39 = vadd.f32 %v4183_v38, %v6811_v62  ;;  %v4382_v6 = vadd.f32 %v4381_v47, %v6856_v53 }
0x236d   :  { %v4241_v49 = vmax.f32 %v4184_v39, 0.0  ;;  %4471 = vst.msk [vmem:[%s7177_s4 + $0x18] sm:$0xff] %vm25_vm1, %v4382_v6 }
0x236f   :  { %4722 = vmatmul.msk.f32.gmra.mxu3 %vm71_vm2, %v4241_v49  ;;  %v3805_v49 = vadd.f32 %v6935_v28, %v5483_v36 }
0x2371   :  { %5077 = vtanh.f32 %v3805_v49 }
0x2372   :  { %v4186_v60 = vpop.f32.mrf.mxu2  ;;  %v4384_v19 = vpop.f32.mrf.mxu0 }
0x2373   :  { %v4187_v10 = vadd.f32 %v4186_v60, %v6811_v62  ;;  %v4385_v30 = vadd.f32 %v4384_v19, %v6856_v53  ;;  %v5076_v60 = vpop.eup %5075 }
0x2375   :  { %v4242_v7 = vmax.f32 %v4187_v10, 0.0  ;;  %4472 = vst.msk [vmem:[%s7177_s4 + $0x20] sm:$0xff] %vm25_vm1, %v4385_v30 }
0x2377   :  { %4723 = vmatmul.msk.f32.gmra.mxu3 %vm71_vm2, %v4242_v7  ;;  %v5078_v36 = vpop.eup %5077 }
0x237a   :  { %v4189_v33 = vpop.f32.mrf.mxu2  ;;  %v4387_v46 = vpop.f32.mrf.mxu0 }
0x237b   :  { %v4190_v9 = vadd.f32 %v4189_v33, %v6811_v62  ;;  %v4388_v21 = vadd.f32 %v4387_v46, %v6856_v53 }
0x237d   :  { %v4243_v27 = vmax.f32 %v4190_v9, 0.0  ;;  %4473 = vst.msk [vmem:[%s7177_s4 + $0x28] sm:$0xff] %vm25_vm1, %v4388_v21 }
0x237f   :  { %4724 = vmatmul.msk.f32.gmra.mxu3 %vm71_vm2, %v4243_v27 }
0x2382   :  { %v4192_v25 = vpop.f32.mrf.mxu2  ;;  %v4390_v20 = vpop.f32.mrf.mxu0 }
0x2383   :  { %v4193_v63 = vadd.f32 %v4192_v25, %v6811_v62  ;;  %v4391_v15 = vadd.f32 %v4390_v20, %v6856_v53 }
0x2385   :  { %v4244_v12 = vmax.f32 %v4193_v63, 0.0  ;;  %4474 = vst.msk [vmem:[%s7177_s4 + $0x30] sm:$0xff] %vm25_vm1, %v4391_v15 }
0x2387   :  { %4725 = vmatmul.msk.f32.gmra.mxu3 %vm71_vm2, %v4244_v12 }
0x238a   :  { %v4195_v35 = vpop.f32.mrf.mxu2  ;;  %v4393_v16 = vpop.f32.mrf.mxu0 }
0x238b   :  { %v4196_v43 = vadd.f32 %v4195_v35, %v6811_v62  ;;  %v4394_v18 = vadd.f32 %v4393_v16, %v6856_v53 }
0x238d   :  { %v4245_v41 = vmax.f32 %v4196_v43, 0.0  ;;  %4475 = vst.msk [vmem:[%s7177_s4 + $0x38] sm:$0xff] %vm25_vm1, %v4394_v18 }
0x238f   :  { %4726 = vmatmul.msk.f32.gmra.mxu3 %vm71_vm2, %v4245_v41 }
0x2392   :  { %v4198_v32 = vpop.f32.mrf.mxu2  ;;  %v4396_v0 = vpop.f32.mrf.mxu0 }
0x2393   :  { %v4199_v44 = vadd.f32 %v4198_v32, %v6811_v62  ;;  %v4397_v23 = vadd.f32 %v4396_v0, %v6856_v53 }
0x2395   :  { %v4246_v24 = vmax.f32 %v4199_v44, 0.0  ;;  %4476 = vst.msk [vmem:[%s7177_s4 + $0x40] sm:$0xff] %vm25_vm1, %v4397_v23 }
0x2396   :  { %v3868_v40 = vpop.permute.xlu2 %3867 }
0x2397   :  { %v7005_v55 = vsel %vm71_vm2, %v5072_v54, %v3868_v40  ;;  %4727 = vmatmul.msk.f32.gmra.mxu3 %vm71_vm2, %v4246_v24 }
0x2398   :  { %v3883_v48 = vmul.f32 %v7005_v55, %v7005_v55 }
0x239a   :  { %v4201_v5 = vpop.f32.mrf.mxu2  ;;  %v4399_v37 = vpop.f32.mrf.mxu0  ;;  %v3887_v3 = vsel %vm227_vm0, %v3883_v48, 0.0 }
0x239b   :  { %v4202_v52 = vadd.f32 %v4201_v5, %v6811_v62  ;;  %v4400_v59 = vadd.f32 %v4399_v37, %v6856_v53  ;;  %3888 = vadd.xlane.f32.xlu0 %v3887_v3 }
0x239d   :  { %v4247_v45 = vmax.f32 %v4202_v52, 0.0  ;;  %4477 = vst.msk [vmem:[%s7177_s4 + $0x48] sm:$0xff] %vm25_vm1, %v4400_v59 }
0x239f   :  { %4728 = vmatmul.msk.f32.gmra.mxu3 %vm71_vm2, %v4247_v45 }
0x23a2   :  { %v4204_v34 = vpop.f32.mrf.mxu2  ;;  %v4402_v17 = vpop.f32.mrf.mxu0 }
0x23a3   :  { %v4205_v2 = vadd.f32 %v4204_v34, %v6811_v62  ;;  %v4403_v4 = vadd.f32 %v4402_v17, %v6856_v53 }
0x23a5   :  { %v4248_v29 = vmax.f32 %v4205_v2, 0.0  ;;  %4478 = vst.msk [vmem:[%s7177_s4 + $0x50] sm:$0xff] %vm25_vm1, %v4403_v4 }
0x23a7   :  { %4729 = vmatmul.msk.f32.gmra.mxu3 %vm71_vm2, %v4248_v29 }
0x23aa   :  { %v4207_v56 = vpop.f32.mrf.mxu2  ;;  %v4405_v50 = vpop.f32.mrf.mxu0 }
0x23ab   :  { %v4208_v8 = vadd.f32 %v4207_v56, %v6811_v62  ;;  %v4406_v26 = vadd.f32 %v4405_v50, %v6856_v53 }
0x23ad   :  { %v4249_v51 = vmax.f32 %v4208_v8, 0.0  ;;  %4479 = vst.msk [vmem:[%s7177_s4 + $0x58] sm:$0xff] %vm25_vm1, %v4406_v26 }
0x23ae   :  { %v3874_v14 = vpop.permute.xlu2 %3873 }
0x23af   :  { %4730 = vmatmul.msk.f32.gmra.mxu3 %vm71_vm2, %v4249_v51  ;;  %v7037_v38 = vsel %vm71_vm2, %v5074_v61, %v3874_v14 }
0x23b0   :  { %v3886_v47 = vmul.f32 %v7037_v38, %v7037_v38 }
0x23b2   :  { %v4408_v39 = vpop.f32.mrf.mxu0  ;;  %v3896_v6 = vsel %vm227_vm0, %v3886_v47, 0.0 }
0x23b3   :  { %v4409_v31 = vadd.f32 %v4408_v39, %v6856_v53  ;;  %3897 = vadd.xlane.f32.xlu0 %v3896_v6 }
0x23b5   :  { %4480 = vst.msk [vmem:[%s7177_s4 + $0x60] sm:$0xff] %vm25_vm1, %v4409_v31 }
0x23b6   :  { %v3870_v19 = vpop.permute.xlu1 %3869 }
0x23b7   :  { %v7050_v10 = vsel %vm71_vm2, %v5076_v60, %v3870_v19 }
0x23b8   :  { %v3884_v30 = vmul.f32 %v7050_v10, %v7050_v10 }
0x23ba   :  { %v4411_v7 = vpop.f32.mrf.mxu0  ;;  %v3890_v46 = vsel %vm227_vm0, %v3884_v30, 0.0 }
0x23bb   :  { %v4412_v33 = vadd.f32 %v4411_v7, %v6856_v53  ;;  %3891 = vadd.xlane.f32.xlu1 %v3890_v46 }
0x23bd   :  { %4481 = vst.msk [vmem:[%s7177_s4 + $0x68] sm:$0xff] %vm25_vm1, %v4412_v33 }
0x23be   :  { %v3872_v28 = vpop.permute.xlu0 %3871 }
0x23bf   :  { %v7061_v9 = vsel %vm71_vm2, %v5078_v36, %v3872_v28 }
0x23c0   :  { %v3885_v21 = vmul.f32 %v7061_v9, %v7061_v9 }
0x23c2   :  { %v4414_v27 = vpop.f32.mrf.mxu0  ;;  %v3893_v20 = vsel %vm227_vm0, %v3885_v21, 0.0 }
0x23c3   :  { %v4415_v25 = vadd.f32 %v4414_v27, %v6856_v53  ;;  %3894 = vadd.xlane.f32.xlu2 %v3893_v20 }
0x23c5   :  { %4482 = vst.msk [vmem:[%s7177_s4 + $0x70] sm:$0xff] %vm25_vm1, %v4415_v25 }
0x23e2   :  { %v4423_v63 = vpop.f32.mrf.mxu3 }
0x23e3   :  { %v4424_v15 = vadd.f32 %v4423_v63, %v6856_v53 }
0x23e5   :  { %4485 = vst.msk [vmem:[%s7177_s4 + $0x88] sm:$0xff] %vm25_vm1, %v4424_v15 }
0x23ea   :  { %v4426_v12 = vpop.f32.mrf.mxu3 }
0x23eb   :  { %v4427_v35 = vadd.f32 %v4426_v12, %v6856_v53 }
0x23ed   :  { %4486 = vst.msk [vmem:[%s7177_s4 + $0x90] sm:$0xff] %vm25_vm1, %v4427_v35 }
0x23f2   :  { %v4429_v16 = vpop.f32.mrf.mxu3 }
0x23f3   :  { %v4430_v43 = vadd.f32 %v4429_v16, %v6856_v53 }
0x23f5   :  { %4487 = vst.msk [vmem:[%s7177_s4 + $0x98] sm:$0xff] %vm25_vm1, %v4430_v43 }
0x23fa   :  { %v4432_v18 = vpop.f32.mrf.mxu3 }
0x23fb   :  { %v4433_v11 = vadd.f32 %v4432_v18, %v6856_v53 }
0x23fd   :  { %4488 = vst.msk [vmem:[%s7177_s4 + $0xa0] sm:$0xff] %vm25_vm1, %v4433_v11 }
0x2402   :  { %v4435_v41 = vpop.f32.mrf.mxu3 }
0x2403   :  { %v4436_v32 = vadd.f32 %v4435_v41, %v6856_v53 }
0x2405   :  { %4489 = vst.msk [vmem:[%s7177_s4 + $0xa8] sm:$0xff] %vm25_vm1, %v4436_v32 }
0x240a   :  { %v4438_v0 = vpop.f32.mrf.mxu3 }
0x240b   :  { %v4439_v44 = vadd.f32 %v4438_v0, %v6856_v53 }
0x240d   :  { %4490 = vst.msk [vmem:[%s7177_s4 + $0xb0] sm:$0xff] %vm25_vm1, %v4439_v44 }
0x240e   :  { %v3889_v23 = vpop.xlane.xlu0 %3888 }
0x240f   :  { %5079 = vrsqrt.f32 %v3889_v23  ;;  %vm3906_vm11 = vcmp.eq.f32.partialorder %v3889_v23, inf  ;;  %v3909_v17 = vand.u32 2147483648, %v3889_v23  ;;  %vm3908_vm12 = vcmp.eq.f32.partialorder %v3889_v23, 0.0 }
0x2412   :  { %v4441_v24 = vpop.f32.mrf.mxu3 }
0x2413   :  { %v4442_v54 = vadd.f32 %v4441_v24, %v6856_v53 }
0x2415   :  { %v5080_v40 = vpop.eup %5079  ;;  %4491 = vst.msk [vmem:[%s7177_s4 + $0xb8] sm:$0xff] %vm25_vm1, %v4442_v54 }
0x2416   :  { %v3900_v48 = vmul.f32 %v5080_v40, %v3889_v23 }
0x2418   :  { %v3901_v5 = vmul.f32 %v5080_v40, %v3900_v48 }
0x241a   :  { %v3902_v37 = vmul.f32 0.5, %v3901_v5  ;;  %v4444_v3 = vpop.f32.mrf.mxu3 }
0x241b   :  { %v4445_v52 = vadd.f32 %v4444_v3, %v6856_v53 }
0x241c   :  { %v3903_v59 = vsub.f32 1.5, %v3902_v37 }
0x241d   :  { %4492 = vst.msk [vmem:[%s7177_s4 + $0xc0] sm:$0xff] %vm25_vm1, %v4445_v52 }
0x241e   :  { %v3904_v45 = vmul.f32 %v5080_v40, %v3903_v59 }
0x2420   :  { %v3905_v34 = vmul.f32 %v3904_v45, %v3889_v23 }
0x2422   :  { %v3907_v2 = vsel %vm3906_vm11, %v3889_v23, %v3905_v34  ;;  %v4447_v4 = vpop.f32.mrf.mxu3 }
0x2423   :  { %v3910_v22 = vsel %vm3908_vm12, %v3909_v17, %v3907_v2  ;;  %v4448_v29 = vadd.f32 %v4447_v4, %v6856_v53 }
0x2424   :  { %v3947_v56 = vadd.f32 1e-08, %v3910_v22 }
0x2425   :  { %4493 = vst.msk [vmem:[%s7177_s4 + $0xc8] sm:$0xff] %vm25_vm1, %v4448_v29 }
0x2426   :  { %5081 = vrcp.f32 %v3947_v56  ;;  %v3898_v50 = vpop.xlane.xlu0 %3897 }
0x2427   :  { %5083 = vrsqrt.f32 %v3898_v50  ;;  %vm3942_vm13 = vcmp.eq.f32.partialorder %v3898_v50, inf  ;;  %vm3944_vm14 = vcmp.eq.f32.partialorder %v3898_v50, 0.0 }
0x242a   :  { %v4450_v8 = vpop.f32.mrf.mxu3 }
0x242b   :  { %v4451_v26 = vadd.f32 %v4450_v8, %v6856_v53 }
0x242c   :  { %v5082_v1 = vpop.eup %5081 }
0x242d   :  { %v3955_v51 = vmul.f32 5.0, %v5082_v1  ;;  %4494 = vst.msk [vmem:[%s7177_s4 + $0xd0] sm:$0xff] %vm25_vm1, %v4451_v26  ;;  %v5084_v61 = vpop.eup %5083 }
0x242e   :  { %v3936_v47 = vmul.f32 %v5084_v61, %v3898_v50  ;;  %v3892_v39 = vpop.xlane.xlu1 %3891 }
0x242f   :  { %v3959_v14 = vmin.f32 %v3955_v51, 1.0  ;;  %5085 = vrsqrt.f32 %v3892_v39  ;;  %vm3918_vm15 = vcmp.eq.f32.partialorder %v3892_v39, inf  ;;  %v3921_v41 = vand.u32 2147483648, %v3892_v39 }
0x2430   :  { %v3937_v6 = vmul.f32 %v5084_v61, %v3936_v47  ;;  %vm3920_vm3 = vcmp.eq.f32.partialorder %v3892_v39, 0.0 }
0x2431   :  { %v3963_v31 = vmul.f32 %v3959_v14, %v7005_v55 }
0x2432   :  { %v4453_v49 = vpop.f32.mrf.mxu3  ;;  %v3938_v19 = vmul.f32 0.5, %v3937_v6 }
0x2433   :  { %v3967_v60 = vadd.f32 %v3963_v31, %v6587_v42  ;;  %v4454_v30 = vadd.f32 %v4453_v49, %v6856_v53  ;;  %v3945_v42 = vand.u32 2147483648, %v3898_v50 }
0x2434   :  { %v3939_v7 = vsub.f32 1.5, %v3938_v19 }
0x2435   :  { %3972 = vst.msk [vmem:[#allocation2 + $0xe0] sm:$0xff] %vm227_vm0, %v3967_v60  ;;  %v5086_v33 = vpop.eup %5085 }
0x2436   :  { %4495 = vst.msk [vmem:[%s7177_s4 + $0xd8] sm:$0xff] %vm25_vm1, %v4454_v30  ;;  %v3940_v46 = vmul.f32 %v5084_v61, %v3939_v7  ;;  %v3912_v36 = vmul.f32 %v5086_v33, %v3892_v39  ;;  %v3895_v28 = vpop.xlane.xlu2 %3894 }
0x2437   :  { %5087 = vrsqrt.f32 %v3895_v28  ;;  %vm3930_vm4 = vcmp.eq.f32.partialorder %v3895_v28, inf  ;;  %v3933_v52 = vand.u32 2147483648, %v3895_v28  ;;  %vm3932_vm5 = vcmp.eq.f32.partialorder %v3895_v28, 0.0 }
0x2438   :  { %v3941_v55 = vmul.f32 %v3940_v46, %v3898_v50  ;;  %v3913_v21 = vmul.f32 %v5086_v33, %v3912_v36 }
0x243a   :  { %v3943_v27 = vsel %vm3942_vm13, %v3898_v50, %v3941_v55  ;;  %v3914_v25 = vmul.f32 0.5, %v3913_v21 }
0x243b   :  { %v3946_v20 = vsel %vm3944_vm14, %v3945_v42, %v3943_v27 }
0x243c   :  { %v4004_v63 = vld [vmem:[#allocation2 + $0xe0] sm:$0xff]  ;;  %v3950_v15 = vadd.f32 1e-08, %v3946_v20  ;;  %v3915_v12 = vsub.f32 1.5, %v3914_v25 }
0x243d   :  { %4699 = vmatmul.msk.f32.gmra.mxu2 %vm71_vm2, %v4004_v63  ;;  %v5088_v35 = vpop.eup %5087 }
0x243e   :  { %5089 = vrcp.f32 %v3950_v15  ;;  %v3916_v16 = vmul.f32 %v5086_v33, %v3915_v12  ;;  %v3924_v43 = vmul.f32 %v5088_v35, %v3895_v28 }
0x2440   :  { %v3917_v18 = vmul.f32 %v3916_v16, %v3892_v39  ;;  %v3925_v11 = vmul.f32 %v5088_v35, %v3924_v43 }
0x2442   :  { %v3919_v32 = vsel %vm3918_vm15, %v3892_v39, %v3917_v18  ;;  %v3926_v0 = vmul.f32 0.5, %v3925_v11 }
0x2443   :  { %v3922_v44 = vsel %vm3920_vm3, %v3921_v41, %v3919_v32 }
0x2444   :  { %v5090_v23 = vpop.eup %5089  ;;  %v3948_v24 = vadd.f32 1e-08, %v3922_v44  ;;  %v3927_v54 = vsub.f32 1.5, %v3926_v0 }
0x2445   :  { %v3958_v40 = vmul.f32 5.0, %v5090_v23 }
0x2446   :  { %5091 = vrcp.f32 %v3948_v24  ;;  %v3928_v48 = vmul.f32 %v5088_v35, %v3927_v54 }
0x2447   :  { %v3962_v5 = vmin.f32 %v3958_v40, 1.0 }
0x2448   :  { %v3929_v37 = vmul.f32 %v3928_v48, %v3895_v28 }
0x2449   :  { %v3966_v3 = vmul.f32 %v3962_v5, %v7037_v38 }
0x244a   :  { %v3931_v59 = vsel %vm3930_vm4, %v3895_v28, %v3929_v37 }
0x244b   :  { %v3970_v45 = vadd.f32 %v3966_v3, %v6605_v58  ;;  %v3934_v34 = vsel %vm3932_vm5, %v3933_v52, %v3931_v59 }
0x244c   :  { %v5092_v17 = vpop.eup %5091  ;;  %v3949_v2 = vadd.f32 1e-08, %v3934_v34 }
0x244d   :  { %3975 = vst.msk [vmem:[#allocation2 + $0xf8] sm:$0xff] %vm227_vm0, %v3970_v45  ;;  %v3956_v4 = vmul.f32 5.0, %v5092_v17 }
0x244e   :  { %5093 = vrcp.f32 %v3949_v2 }
0x244f   :  { %v3960_v22 = vmin.f32 %v3956_v4, 1.0 }
0x2451   :  { %v3964_v29 = vmul.f32 %v3960_v22, %v7050_v10 }
0x2453   :  { %v3968_v56 = vadd.f32 %v3964_v29, %v6581_v13 }
0x2454   :  { %v5094_v50 = vpop.eup %5093  ;;  %v4007_v10 = vld [vmem:[#allocation2 + $0xf8] sm:$0xff] }
0x2455   :  { %3973 = vst.msk [vmem:[#allocation2 + $0xe8] sm:$0xff] %vm227_vm0, %v3968_v56  ;;  %v3957_v38 = vmul.f32 5.0, %v5094_v50 }
0x2457   :  { %v3961_v8 = vmin.f32 %v3957_v38, 1.0 }
0x2459   :  { %v3965_v26 = vmul.f32 %v3961_v8, %v7061_v9 }
0x245b   :  { %v3969_v58 = vadd.f32 %v3965_v26, %v6597_v57 }
0x245c   :  { %v4005_v1 = vld [vmem:[#allocation2 + $0xe8] sm:$0xff] }
0x245d   :  { %3974 = vst.msk [vmem:[#allocation2 + $0xf0] sm:$0xff] %vm227_vm0, %v3969_v58  ;;  %4700 = vmatmul.msk.f32.gmra.mxu2 %vm71_vm2, %v4005_v1 }
0x245e   :  { %4512 = dma.vmem_to_hbm [thread:$0]  %s4505_s9, 4096, %s4507_s11, [#allocation3], %s5125_s12, %s5125_s12, %s5126_s13  }
0x2464   :  { %v4006_v51 = vld [vmem:[#allocation2 + $0xf0] sm:$0xff] }
0x2465   :  { %4701 = vmatmul.msk.f32.gmra.mxu2 %vm71_vm2, %v4006_v51 }
0x246d   :  { %4702 = vmatmul.msk.f32.gmra.mxu2 %vm71_vm2, %v4007_v10 }
0x24c0   :  { %v4210_v13 = vpop.f32.mrf.mxu2 }
0x24c1   :  { %v4211_v61 = vadd.f32 %v4210_v13, %v6811_v62 }
0x24c3   :  { %v4250_v14 = vmax.f32 %v4211_v61, 0.0 }
0x24c5   :  { %4731 = vmatmul.msk.f32.gmra.mxu3 %vm71_vm2, %v4250_v14 }
0x24e0   :  { %v4213_v9 = vpop.f32.mrf.mxu2 }
0x24e1   :  { %v4214_v57 = vadd.f32 %v4213_v9, %v6811_v62 }
0x24e3   :  { %v4251_v47 = vmax.f32 %v4214_v57, 0.0 }
0x24e5   :  { %4732 = vmatmul.msk.f32.gmra.mxu3 %vm71_vm2, %v4251_v47 }
0x24e8   :  { %v4216_v39 = vpop.f32.mrf.mxu2 }
0x24e9   :  { %v4217_v31 = vadd.f32 %v4216_v39, %v6811_v62 }
0x24eb   :  { %v4252_v6 = vmax.f32 %v4217_v31, 0.0 }
0x24ed   :  { %4733 = vmatmul.msk.f32.gmra.mxu3 %vm71_vm2, %v4252_v6 }
0x24f0   :  { %v4219_v49 = vpop.f32.mrf.mxu2 }
0x24f1   :  { %v4220_v60 = vadd.f32 %v4219_v49, %v6811_v62 }
0x24f3   :  { %v4253_v19 = vmax.f32 %v4220_v60, 0.0 }
0x24f5   :  { %4734 = vmatmul.msk.f32.gmra.mxu3 %vm71_vm2, %v4253_v19 }
0x2548   :  { %v4456_v30 = vpop.f32.mrf.mxu3 }
0x2549   :  { %v4457_v7 = vadd.f32 %v4456_v30, %v6856_v53 }
0x254b   :  { %4496 = vst.msk [vmem:[%s7177_s4 + $0xe0] sm:$0xff] %vm25_vm1, %v4457_v7 }
0x2568   :  { %v4459_v62 = vpop.f32.mrf.mxu3 }
0x2569   :  { %v4460_v33 = vadd.f32 %v4459_v62, %v6856_v53 }
0x256b   :  { %4497 = vst.msk [vmem:[%s7177_s4 + $0xe8] sm:$0xff] %vm25_vm1, %v4460_v33 }
0x2570   :  { %v4462_v46 = vpop.f32.mrf.mxu3 }
0x2571   :  { %v4463_v36 = vadd.f32 %v4462_v46, %v6856_v53 }
0x2573   :  { %4498 = vst.msk [vmem:[%s7177_s4 + $0xf0] sm:$0xff] %vm25_vm1, %v4463_v36 }
0x2578   :  { %v4465_v28 = vpop.f32.mrf.mxu3 }
0x2579   :  { %v4466_v55 = vadd.f32 %v4465_v28, %v6856_v53 }
0x257b   :  { %4499 = vst.msk [vmem:[%s7177_s4 + $0xf8] sm:$0xff] %vm25_vm1, %v4466_v55 }
0x257c   :  { %5120 = dma.done.wait [#allocation3], 4096  }
0x257d   :  { %5121 = vsyncadd [#allocation3], 4294963200 }
0x257e   :  { %4521 = vsyncpa [#allocation3], 1 }

</bundles_post_ra>
